<compile_context>
chip_gen: v7x
topology: tpu7x:2x2x1
jax: 0.10.0
libtpu: 0.0.40
codegen_flags: <defaults>
</compile_context>

<pallas_src>
from functools import partial

import jax
import jax.numpy as jnp
from jax.experimental import pallas as pl
from jax.experimental.pallas import tpu as pltpu

LANE = 128
_VMEM_LIMIT = 32 * 1024 * 1024   # explicit scoped-VMEM budget (ok on v5e/v6e/v7x)


def _round_up(x, m):
    return (x + m - 1) // m * m


def _cdiv(a, b):
    return -(-a // b)


# ----------------------------------------------------------------------------
# Pallas kernels
# ----------------------------------------------------------------------------

def _matmul_bias_kernel(p_ref, w_ref, b_ref, o_ref, *, relu):
    """(TM, K) x (K, Coutp) matmul + bias (+ReLU).  BN scale pre-folded into w."""
    acc = jnp.dot(p_ref[...], w_ref[...], preferred_element_type=jnp.float32)
    y = acc + b_ref[...]
    if relu:
        y = jnp.maximum(y, 0.0)
    o_ref[...] = y.astype(o_ref.dtype)


def _make_conv_tap_kernel(nsrc, taps, mflat, relu, has_residual):
    """Direct conv: one 2-D matmul per kernel tap, accumulated in f32.

    Source planes are per-image padded activations flattened to
    (rows * padded_width, Cin); each tap is a static flat-offset slice, so no
    im2col patch tensor is ever written to HBM.
    """
    def kernel(*refs):
        srcs = refs[:nsrc]
        w_ref = refs[nsrc]
        b_ref = refs[nsrc + 1]
        r_ref = refs[nsrc + 2] if has_residual else None
        o_ref = refs[-1]

        acc = None
        for t, (p, off) in enumerate(taps):
            lhs = srcs[p][pl.ds(off, mflat), :]            # (mflat, Cin) bf16
            part = jnp.dot(lhs, w_ref[t], preferred_element_type=jnp.float32)
            acc = part if acc is None else acc + part
        y = acc + b_ref[...]
        if relu:
            y = jnp.maximum(y, 0.0)
        if has_residual:
            y = y + r_ref[...].astype(jnp.float32)
        o_ref[...] = y.astype(o_ref.dtype)

    return kernel


def _make_maxpool_kernel(taps, mflat):
    """3x3/s2 max pool over parity planes; taps are static flat-offset slices."""
    def kernel(*refs):
        srcs = refs[:-1]
        o_ref = refs[-1]
        m = None
        for p, off in taps:
            v = srcs[p][pl.ds(off, mflat), :]
            m = v if m is None else jnp.maximum(m, v)
        o_ref[...] = m
    return kernel


def _decoder_kernel(x_ref, w_ref, b_ref, o_ref):
    """Global average pool (mean over H*W) + Linear (tiny op)."""
    pooled = jnp.mean(x_ref[...].astype(jnp.float32), axis=1)        # (N, C)
    o_ref[...] = jnp.dot(pooled, w_ref[...],
                         preferred_element_type=jnp.float32) + b_ref[...]


# ----------------------------------------------------------------------------
# Wrapper glue: BN folding, plane construction, pallas_call wiring
# ----------------------------------------------------------------------------

def _fold_bn(w, bn, eps=1e-5):
    """Fold BN scale into conv weights; return (w_folded f32, bias f32)."""
    scale = bn["gamma"] / jnp.sqrt(bn["var"] + eps)                  # (Cout,)
    bias = bn["beta"] - bn["mean"] * scale
    wf = (w * scale[:, None, None, None]).astype(jnp.float32)
    return wf, bias.astype(jnp.float32)


def _planes_s1(x):
    """Stride-1 3x3, pad=1: one zero-padded plane, flattened per image."""
    N, H, W, C = x.shape
    Ho, Wo = H, W
    Wq, Hq = W + 2, H + 3          # +2 W pad (l/r), +1 top / +2 bottom H pad
    xp = jnp.pad(x, ((0, 0), (1, Hq - H - 1), (1, Wq - W - 1), (0, 0)))
    plane = xp.reshape(N, Hq * Wq, C)
    taps = [(0, dy * Wq + dx) for dy in range(3) for dx in range(3)]
    return [plane], taps, Ho, Wo, Wq


def _planes_s2(x, pad_value=0.0):
    """Stride-2, k=3, pad=1: four row/col-parity planes, flattened per image.
    Also used by the 3x3/s2 max-pool (pad_value=-inf)."""
    N, H, W, C = x.shape
    Ho = (H - 1) // 2 + 1
    Wo = (W - 1) // 2 + 1
    Hq, Wq = Ho + 2, Wo + 1
    Hp, Wp = 2 * Hq, 2 * Wq
    xp = jnp.pad(x, ((0, 0), (1, Hp - H - 1), (1, Wp - W - 1), (0, 0)),
                 constant_values=pad_value)
    planes = []
    for r in range(2):
        for c in range(2):
            pln = xp[:, r::2, c::2, :][:, :Hq, :Wq, :]
            planes.append(pln.reshape(N, Hq * Wq, C))
    taps = [((dy % 2) * 2 + (dx % 2), (dy // 2) * Wq + (dx // 2))
            for dy in range(3) for dx in range(3)]
    return planes, taps, Ho, Wo, Wq


def conv3x3_bn_pallas(x, p, *, stride, relu, residual=None):
    """Fused 3x3 Conv(bias=False) + folded BN (+ReLU / +residual add)."""
    N, H, W, Cin = x.shape
    w, bias = _fold_bn(p["w"], p["bn"])                              # (Cout,Cin,3,3)
    Cout = w.shape[0]
    Coutp = _round_up(Cout, LANE)

    if stride == 1:
        planes, taps, Ho, Wo, Wq = _planes_s1(x)
    else:
        planes, taps, Ho, Wo, Wq = _planes_s2(x)
    mflat = Ho * Wq

    # (kh, kw, Cin, Cout) -> (9, Cin, Coutp); BN scale already folded in.
    wt = jnp.transpose(w, (2, 3, 1, 0)).reshape(9, Cin, Cout)
    wt = jnp.pad(wt, ((0, 0), (0, 0), (0, Coutp - Cout))).astype(jnp.bfloat16)
    bvec = jnp.pad(bias, (0, Coutp - Cout)).reshape(1, Coutp)

    planes = [pln.astype(jnp.bfloat16) for pln in planes]
    nsrc = len(planes)

    in_specs = [pl.BlockSpec((None, pln.shape[1], Cin), lambda n: (n, 0, 0))
                for pln in planes]
    in_specs += [
        pl.BlockSpec((9, Cin, Coutp), lambda n: (0, 0, 0)),
        pl.BlockSpec((1, Coutp), lambda n: (0, 0)),
    ]
    args = planes + [wt, bvec]

    has_residual = residual is not None
    if has_residual:
        r = jnp.pad(residual.astype(jnp.bfloat16),
                    ((0, 0), (0, 0), (0, Wq - Wo), (0, Coutp - Cout)))
        r = r.reshape(N, mflat, Coutp)
        in_specs.append(pl.BlockSpec((None, mflat, Coutp), lambda n: (n, 0, 0)))
        args.append(r)

    kernel = _make_conv_tap_kernel(nsrc, taps, mflat, relu, has_residual)
    out = pl.pallas_call(
        kernel,
        out_shape=jax.ShapeDtypeStruct((N, mflat, Coutp), jnp.bfloat16),
        grid=(N,),
        in_specs=in_specs,
        out_specs=pl.BlockSpec((None, mflat, Coutp), lambda n: (n, 0, 0)),
        compiler_params=pltpu.CompilerParams(
            dimension_semantics=("parallel",),
            vmem_limit_bytes=_VMEM_LIMIT),
    )(*args)
    return out.reshape(N, Ho, Wq, Coutp)[:, :, :Wo, :Cout]


def _matmul_bn_pallas(mat, w, bias, *, relu):
    """(M, K) x (K, Cout) + bias (+ReLU), tiled over M, lane-dense padded Cout."""
    M, K = mat.shape
    Cout = w.shape[1]
    Coutp = _round_up(Cout, LANE)

    g = max(2, _cdiv(M, 512))            # >= 2 grid steps (keep both v7x TCs busy)
    TM = _round_up(_cdiv(M, g), 8)
    Mp = TM * g
    if Mp != M:
        mat = jnp.pad(mat, ((0, Mp - M), (0, 0)))

    wp = jnp.pad(w, ((0, 0), (0, Coutp - Cout))).astype(jnp.bfloat16)
    bp = jnp.pad(bias, (0, Coutp - Cout)).reshape(1, Coutp)

    out = pl.pallas_call(
        partial(_matmul_bias_kernel, relu=relu),
        out_shape=jax.ShapeDtypeStruct((Mp, Coutp), jnp.bfloat16),
        grid=(g,),
        in_specs=[
            pl.BlockSpec((TM, K), lambda i: (i, 0)),
            pl.BlockSpec((K, Coutp), lambda i: (0, 0)),
            pl.BlockSpec((1, Coutp), lambda i: (0, 0)),
        ],
        out_specs=pl.BlockSpec((TM, Coutp), lambda i: (i, 0)),
        compiler_params=pltpu.CompilerParams(
            dimension_semantics=("parallel",),
            vmem_limit_bytes=_VMEM_LIMIT),
    )(mat.astype(jnp.bfloat16), wp, bp)
    return out[:M, :Cout]


def gate_conv_pallas(x, p):
    """Gate: 7x7/s2/p3 Conv + BN + ReLU (tiny 3-channel input -> im2col matmul)."""
    N, H, W, Cin = x.shape
    w, bias = _fold_bn(p["w"], p["bn"])                              # (Cout,Cin,7,7)
    Cout = w.shape[0]
    k, s, pad = 7, 2, 3
    Ho = (H + 2 * pad - k) // s + 1
    Wo = (W + 2 * pad - k) // s + 1
    xp = jnp.pad(x, ((0, 0), (pad, pad), (pad, pad), (0, 0)))
    cols = [xp[:, dy:dy + s * Ho:s, dx:dx + s * Wo:s, :]
            for dy in range(k) for dx in range(k)]
    patches = jnp.concatenate(cols, axis=-1).reshape(N * Ho * Wo, k * k * Cin)
    wmat = jnp.transpose(w, (2, 3, 1, 0)).reshape(k * k * Cin, Cout)
    out = _matmul_bn_pallas(patches, wmat, bias, relu=True)
    return out.reshape(N, Ho, Wo, Cout)


def conv1x1_bn_pallas(x, p, *, stride):
    """Shortcut: 1x1 Conv(stride) + BN as a plain channel matmul."""
    N, H, W, Cin = x.shape
    w, bias = _fold_bn(p["w"], p["bn"])                              # (Cout,Cin,1,1)
    Cout = w.shape[0]
    xs = x[:, ::stride, ::stride, :] if stride > 1 else x
    Ho, Wo = xs.shape[1], xs.shape[2]
    mat = xs.reshape(N * Ho * Wo, Cin)
    wmat = w.reshape(Cout, Cin).T
    out = _matmul_bn_pallas(mat, wmat, bias, relu=False)
    return out.reshape(N, Ho, Wo, Cout)


def maxpool3x3_s2_pallas(x):
    """nn.MaxPool2d(kernel_size=3, stride=2, padding=1), NHWC."""
    N, H, W, C = x.shape
    planes, taps, Ho, Wo, Wq = _planes_s2(x, pad_value=-jnp.inf)
    mflat = Ho * Wq
    planes = [pln.astype(jnp.bfloat16) for pln in planes]
    in_specs = [pl.BlockSpec((None, pln.shape[1], C), lambda n: (n, 0, 0))
                for pln in planes]
    out = pl.pallas_call(
        _make_maxpool_kernel(taps, mflat),
        out_shape=jax.ShapeDtypeStruct((N, mflat, C), jnp.bfloat16),
        grid=(N,),
        in_specs=in_specs,
        out_specs=pl.BlockSpec((None, mflat, C), lambda n: (n, 0, 0)),
        compiler_params=pltpu.CompilerParams(
            dimension_semantics=("parallel",),
            vmem_limit_bytes=_VMEM_LIMIT),
    )(*planes)
    return out.reshape(N, Ho, Wq, C)[:, :, :Wo, :]


def decoder_pallas(x, p):
    """AdaptiveAvgPool2d((1,1)) + flatten + Linear (tiny (N,C) op, one kernel)."""
    N, H, W, C = x.shape
    ncls = p["w"].shape[1]
    nclp = _round_up(ncls, LANE)
    xr = x.reshape(N, H * W, C).astype(jnp.float32)
    wp = jnp.pad(p["w"], ((0, 0), (0, nclp - ncls))).astype(jnp.float32)
    bp = jnp.pad(p["b"], (0, nclp - ncls)).reshape(1, nclp).astype(jnp.float32)
    out = pl.pallas_call(
        _decoder_kernel,
        out_shape=jax.ShapeDtypeStruct((N, nclp), jnp.float32),
        compiler_params=pltpu.CompilerParams(vmem_limit_bytes=_VMEM_LIMIT),
    )(xr, wp, bp)
    return out[:, :ncls]


# ----------------------------------------------------------------------------
# Model: parameter init + forward
# ----------------------------------------------------------------------------

def _make_conv(key, cout, cin, k):
    fan_in = cin * k * k
    return (jax.random.normal(key, (cout, cin, k, k)) /
            jnp.sqrt(float(fan_in))).astype(jnp.float32)


def _make_bn(key, c):
    k1, k2, k3, k4 = jax.random.split(key, 4)
    return dict(
        gamma=(1.0 + 0.1 * jax.random.normal(k1, (c,))).astype(jnp.float32),
        beta=(0.1 * jax.random.normal(k2, (c,))).astype(jnp.float32),
        mean=(0.1 * jax.random.normal(k3, (c,))).astype(jnp.float32),
        var=(0.5 + jax.random.uniform(k4, (c,))).astype(jnp.float32),
    )


def init_resnet_params(key, in_channels, n_classes, blocks_sizes, deepths):
    keys = iter(jax.random.split(key, 512))
    params = {}

    c0 = blocks_sizes[0]
    params["gate"] = dict(w=_make_conv(next(keys), c0, in_channels, 7),
                          bn=_make_bn(next(keys), c0))

    layers = []
    in_out = [(blocks_sizes[0], blocks_sizes[0])] + list(zip(blocks_sizes, blocks_sizes[1:]))
    for (cin, cout), n in zip(in_out, deepths):
        blocks = []
        for b in range(n):
            bc_in = cin if b == 0 else cout
            ds = 2 if (b == 0 and bc_in != cout) else 1     # ResNetLayer rule
            blk = dict(
                downsampling=ds,
                conv1=dict(w=_make_conv(next(keys), cout, bc_in, 3),
                           bn=_make_bn(next(keys), cout)),
                conv2=dict(w=_make_conv(next(keys), cout, cout, 3),
                           bn=_make_bn(next(keys), cout)),
                shortcut=(dict(w=_make_conv(next(keys), cout, bc_in, 1),
                               bn=_make_bn(next(keys), cout))
                          if bc_in != cout else None),       # should_apply_shortcut
            )
            blocks.append(blk)
        layers.append(blocks)
    params["layers"] = layers

    c_last = blocks_sizes[-1]
    params["decoder"] = dict(
        w=(jax.random.normal(next(keys), (c_last, n_classes)) /
           jnp.sqrt(float(c_last))).astype(jnp.float32),
        b=(0.01 * jax.random.normal(next(keys), (n_classes,))).astype(jnp.float32),
    )
    return params


def basic_block_forward(x, blk):
    """ResNetBasicBlock: conv_bn -> ReLU -> conv_bn, then += residual
    (no ReLU after the add, exactly as ResidualBlock.forward)."""
    ds = blk["downsampling"]
    if blk["shortcut"] is not None:
        residual = conv1x1_bn_pallas(x, blk["shortcut"], stride=ds)
    else:
        residual = x
    h = conv3x3_bn_pallas(x, blk["conv1"], stride=ds, relu=True)
    return conv3x3_bn_pallas(h, blk["conv2"], stride=1, relu=False,
                             residual=residual)


def resnet_forward(x_nchw, params):
    # PyTorch NCHW -> NHWC bf16 for the kernels.
    x = jnp.transpose(x_nchw, (0, 2, 3, 1)).astype(jnp.bfloat16)

    # gate: Conv 7x7 s2 p3 + BN + ReLU + MaxPool 3x3 s2 p1
    x = gate_conv_pallas(x, params["gate"])
    x = maxpool3x3_s2_pallas(x)

    # encoder residual layers
    for layer in params["layers"]:
        for blk in layer:
            x = basic_block_forward(x, blk)

    # decoder: global avg pool + linear
    return decoder_pallas(x, params["decoder"])


# ----------------------------------------------------------------------------
# Main
# ----------------------------------------------------------------------------

if __name__ == "__main__":
    key = jax.random.PRNGKey(0)
    kx, kp = jax.random.split(key)

    in_channels, n_classes = 3, 10
    # Small-shape instantiation of the same architecture family
    # (ResNet(in_channels, n_classes, blocks_sizes=..., deepths=...)).
    blocks_sizes = [16, 32, 64, 128]
    deepths = [2, 2, 2, 2]

    x = jax.random.normal(kx, (2, in_channels, 32, 32), dtype=jnp.float32)
    params = init_resnet_params(kp, in_channels, n_classes, blocks_sizes, deepths)

    # jit the whole forward (params captured as constants so the per-block
    # Python config stays static) to fuse the wrapper-side pad/slice glue.
    fwd = jax.jit(lambda inp: resnet_forward(inp, params))
    logits = jax.block_until_ready(fwd(x))

    assert logits.shape == (2, n_classes), logits.shape
    assert bool(jnp.all(jnp.isfinite(logits)))
    print("KERNEL_OK")
</pallas_src>

<mosaic_0001>
module attributes {stable_mosaic.version = 11 : i64} {
  func.func @_matmul_bias_kernel(%arg0: i32, %arg1: memref<256x147xbf16, #tpu.memory_space<vmem>>, %arg2: memref<147x128xbf16, #tpu.memory_space<vmem>>, %arg3: memref<1x128xf32, #tpu.memory_space<vmem>>, %arg4: memref<256x128xbf16, #tpu.memory_space<vmem>>) attributes {dimension_semantics = [#tpu.dimension_semantics<parallel>], iteration_bounds = array<i64: 2>, scalar_prefetch = 0 : i64, scratch_operands = 0 : i64, tpu.core_type = #tpu.core_type<tc>, window_params = [{transform_indices = @transform_0, window_bounds = array<i64: 256, 147>}, {pipeline_mode = #tpu.pipeline_mode<synchronous>, transform_indices = @transform_1, window_bounds = array<i64: 147, 128>}, {pipeline_mode = #tpu.pipeline_mode<synchronous>, transform_indices = @transform_2, window_bounds = array<i64: 1, 128>}, {transform_indices = @transform_3, window_bounds = array<i64: 256, 128>}]} {
    %c0 = arith.constant 0 : index
    %c0_0 = arith.constant 0 : index
    %0 = vector.load %arg1[%c0, %c0_0] : memref<256x147xbf16, #tpu.memory_space<vmem>>, vector<256x147xbf16>
    %c0_1 = arith.constant 0 : index
    %c0_2 = arith.constant 0 : index
    %1 = vector.load %arg2[%c0_1, %c0_2] : memref<147x128xbf16, #tpu.memory_space<vmem>>, vector<147x128xbf16>
    %cst = arith.constant dense<0.000000e+00> : vector<256x128xf32>
    %2 = tpu.matmul %0, %1, %cst {dimension_numbers = #tpu.dot_dimension_numbers<[1], [0], [0], [1], [0, 0, 1, 1], [], []>} : vector<256x147xbf16>, vector<147x128xbf16>, vector<256x128xf32> -> vector<256x128xf32>
    %c0_3 = arith.constant 0 : index
    %c0_4 = arith.constant 0 : index
    %3 = vector.load %arg3[%c0_3, %c0_4] : memref<1x128xf32, #tpu.memory_space<vmem>>, vector<1x128xf32>
    %4 = vector.broadcast %3 : vector<1x128xf32> to vector<256x128xf32>
    %5 = arith.addf %2, %4 : vector<256x128xf32>
    %cst_5 = arith.constant 0.000000e+00 : f32
    %6 = vector.broadcast %cst_5 : f32 to vector<256x128xf32>
    %7 = arith.maximumf %5, %6 : vector<256x128xf32>
    %8 = arith.truncf %7 : vector<256x128xf32> to vector<256x128xbf16>
    %c0_6 = arith.constant 0 : index
    %c0_7 = arith.constant 0 : index
    %9 = vector.load %arg4[%c0_6, %c0_7] : memref<256x128xbf16, #tpu.memory_space<vmem>>, vector<256x128xbf16>
    tpu.vector_store %arg4[%c0_6, %c0_7], %8 {strides = array<i32>} : memref<256x128xbf16, #tpu.memory_space<vmem>>, vector<256x128xbf16>,
    return
  }
  func.func @transform_0(%arg0: i32) -> (i32, i32) {
    %c0_i32 = arith.constant 0 : i32
    %c0_i32_0 = arith.constant 0 : i32
    return %arg0, %c0_i32 : i32, i32
  }
  func.func @transform_1(%arg0: i32) -> (i32, i32) {
    %c0_i32 = arith.constant 0 : i32
    %c0_i32_0 = arith.constant 0 : i32
    %c0_i32_1 = arith.constant 0 : i32
    return %c0_i32, %c0_i32_0 : i32, i32
  }
  func.func @transform_2(%arg0: i32) -> (i32, i32) {
    %c0_i32 = arith.constant 0 : i32
    %c0_i32_0 = arith.constant 0 : i32
    %c0_i32_1 = arith.constant 0 : i32
    return %c0_i32, %c0_i32_0 : i32, i32
  }
  func.func @transform_3(%arg0: i32) -> (i32, i32) {
    %c0_i32 = arith.constant 0 : i32
    %c0_i32_0 = arith.constant 0 : i32
    return %arg0, %c0_i32 : i32, i32
  }
}

module attributes {stable_mosaic.version = 11 : i64} {
  func.func @kernel(%arg0: i32, %arg1: memref<1x90x16xbf16, #tpu.memory_space<vmem>>, %arg2: memref<1x90x16xbf16, #tpu.memory_space<vmem>>, %arg3: memref<1x90x16xbf16, #tpu.memory_space<vmem>>, %arg4: memref<1x90x16xbf16, #tpu.memory_space<vmem>>, %arg5: memref<1x72x16xbf16, #tpu.memory_space<vmem>>) attributes {dimension_semantics = [#tpu.dimension_semantics<parallel>], iteration_bounds = array<i64: 2>, scalar_prefetch = 0 : i64, scratch_operands = 0 : i64, tpu.core_type = #tpu.core_type<tc>, window_params = [{transform_indices = @transform_0, window_bounds = array<i64: 1, 90, 16>}, {transform_indices = @transform_1, window_bounds = array<i64: 1, 90, 16>}, {transform_indices = @transform_2, window_bounds = array<i64: 1, 90, 16>}, {transform_indices = @transform_3, window_bounds = array<i64: 1, 90, 16>}, {transform_indices = @transform_4, window_bounds = array<i64: 1, 72, 16>}]} {
    %c0 = arith.constant 0 : index
    %c0_0 = arith.constant 0 : index
    %c0_1 = arith.constant 0 : index
    %0 = vector.load %arg1[%c0, %c0_0, %c0_1] : memref<1x90x16xbf16, #tpu.memory_space<vmem>>, vector<1x72x16xbf16>
    %1 = vector.shape_cast %0 : vector<1x72x16xbf16> to vector<72x16xbf16>
    %c0_2 = arith.constant 0 : index
    %c0_3 = arith.constant 0 : index
    %c0_4 = arith.constant 0 : index
    %2 = vector.load %arg2[%c0_2, %c0_3, %c0_4] : memref<1x90x16xbf16, #tpu.memory_space<vmem>>, vector<1x72x16xbf16>
    %3 = vector.shape_cast %2 : vector<1x72x16xbf16> to vector<72x16xbf16>
    %4 = arith.maximumf %1, %3 : vector<72x16xbf16>
    %c0_5 = arith.constant 0 : index
    %c1 = arith.constant 1 : index
    %c0_6 = arith.constant 0 : index
    %5 = vector.load %arg1[%c0_5, %c1, %c0_6] : memref<1x90x16xbf16, #tpu.memory_space<vmem>>, vector<1x72x16xbf16>
    %6 = vector.shape_cast %5 : vector<1x72x16xbf16> to vector<72x16xbf16>
    %7 = arith.maximumf %4, %6 : vector<72x16xbf16>
    %c0_7 = arith.constant 0 : index
    %c0_8 = arith.constant 0 : index
    %c0_9 = arith.constant 0 : index
    %8 = vector.load %arg3[%c0_7, %c0_8, %c0_9] : memref<1x90x16xbf16, #tpu.memory_space<vmem>>, vector<1x72x16xbf16>
    %9 = vector.shape_cast %8 : vector<1x72x16xbf16> to vector<72x16xbf16>
    %10 = arith.maximumf %7, %9 : vector<72x16xbf16>
    %c0_10 = arith.constant 0 : index
    %c0_11 = arith.constant 0 : index
    %c0_12 = arith.constant 0 : index
    %11 = vector.load %arg4[%c0_10, %c0_11, %c0_12] : memref<1x90x16xbf16, #tpu.memory_space<vmem>>, vector<1x72x16xbf16>
    %12 = vector.shape_cast %11 : vector<1x72x16xbf16> to vector<72x16xbf16>
    %13 = arith.maximumf %10, %12 : vector<72x16xbf16>
    %c0_13 = arith.constant 0 : index
    %c1_14 = arith.constant 1 : index
    %c0_15 = arith.constant 0 : index
    %14 = vector.load %arg3[%c0_13, %c1_14, %c0_15] : memref<1x90x16xbf16, #tpu.memory_space<vmem>>, vector<1x72x16xbf16>
    %15 = vector.shape_cast %14 : vector<1x72x16xbf16> to vector<72x16xbf16>
    %16 = arith.maximumf %13, %15 : vector<72x16xbf16>
    %c0_16 = arith.constant 0 : index
    %c9 = arith.constant 9 : index
    %c0_17 = arith.constant 0 : index
    %17 = vector.load %arg1[%c0_16, %c9, %c0_17] : memref<1x90x16xbf16, #tpu.memory_space<vmem>>, vector<1x72x16xbf16>
    %18 = vector.shape_cast %17 : vector<1x72x16xbf16> to vector<72x16xbf16>
    %19 = arith.maximumf %16, %18 : vector<72x16xbf16>
    %c0_18 = arith.constant 0 : index
    %c9_19 = arith.constant 9 : index
    %c0_20 = arith.constant 0 : index
    %20 = vector.load %arg2[%c0_18, %c9_19, %c0_20] : memref<1x90x16xbf16, #tpu.memory_space<vmem>>, vector<1x72x16xbf16>
    %21 = vector.shape_cast %20 : vector<1x72x16xbf16> to vector<72x16xbf16>
    %22 = arith.maximumf %19, %21 : vector<72x16xbf16>
    %c0_21 = arith.constant 0 : index
    %c10 = arith.constant 10 : index
    %c0_22 = arith.constant 0 : index
    %23 = vector.load %arg1[%c0_21, %c10, %c0_22] : memref<1x90x16xbf16, #tpu.memory_space<vmem>>, vector<1x72x16xbf16>
    %24 = vector.shape_cast %23 : vector<1x72x16xbf16> to vector<72x16xbf16>
    %25 = arith.maximumf %22, %24 : vector<72x16xbf16>
    %c0_23 = arith.constant 0 : index
    %c0_24 = arith.constant 0 : index
    %c0_25 = arith.constant 0 : index
    %26 = vector.load %arg5[%c0_23, %c0_24, %c0_25] : memref<1x72x16xbf16, #tpu.memory_space<vmem>>, vector<1x72x16xbf16>
    %27 = vector.shape_cast %26 : vector<1x72x16xbf16> to vector<72x16xbf16>
    %28 = vector.shape_cast %25 : vector<72x16xbf16> to vector<1x72x16xbf16>
    tpu.vector_store %arg5[%c0_23, %c0_24, %c0_25], %28 {strides = array<i32>} : memref<1x72x16xbf16, #tpu.memory_space<vmem>>, vector<1x72x16xbf16>,
    return
  }
  func.func @transform_0(%arg0: i32) -> (i32, i32, i32) {
    %c0_i32 = arith.constant 0 : i32
    %c0_i32_0 = arith.constant 0 : i32
    %c0_i32_1 = arith.constant 0 : i32
    return %arg0, %c0_i32, %c0_i32_0 : i32, i32, i32
  }
  func.func @transform_1(%arg0: i32) -> (i32, i32, i32) {
    %c0_i32 = arith.constant 0 : i32
    %c0_i32_0 = arith.constant 0 : i32
    %c0_i32_1 = arith.constant 0 : i32
    return %arg0, %c0_i32, %c0_i32_0 : i32, i32, i32
  }
  func.func @transform_2(%arg0: i32) -> (i32, i32, i32) {
    %c0_i32 = arith.constant 0 : i32
    %c0_i32_0 = arith.constant 0 : i32
    %c0_i32_1 = arith.constant 0 : i32
    return %arg0, %c0_i32, %c0_i32_0 : i32, i32, i32
  }
  func.func @transform_3(%arg0: i32) -> (i32, i32, i32) {
    %c0_i32 = arith.constant 0 : i32
    %c0_i32_0 = arith.constant 0 : i32
    %c0_i32_1 = arith.constant 0 : i32
    return %arg0, %c0_i32, %c0_i32_0 : i32, i32, i32
  }
  func.func @transform_4(%arg0: i32) -> (i32, i32, i32) {
    %c0_i32 = arith.constant 0 : i32
    %c0_i32_0 = arith.constant 0 : i32
    %c0_i32_1 = arith.constant 0 : i32
    return %arg0, %c0_i32, %c0_i32_0 : i32, i32, i32
  }
}

module attributes {stable_mosaic.version = 11 : i64} {
  func.func @kernel(%arg0: i32, %arg1: memref<1x110x16xbf16, #tpu.memory_space<vmem>>, %arg2: memref<9x16x128xbf16, #tpu.memory_space<vmem>>, %arg3: memref<1x128xf32, #tpu.memory_space<vmem>>, %arg4: memref<1x80x128xbf16, #tpu.memory_space<vmem>>) attributes {dimension_semantics = [#tpu.dimension_semantics<parallel>], iteration_bounds = array<i64: 2>, scalar_prefetch = 0 : i64, scratch_operands = 0 : i64, tpu.core_type = #tpu.core_type<tc>, window_params = [{transform_indices = @transform_0, window_bounds = array<i64: 1, 110, 16>}, {pipeline_mode = #tpu.pipeline_mode<synchronous>, transform_indices = @transform_1, window_bounds = array<i64: 9, 16, 128>}, {pipeline_mode = #tpu.pipeline_mode<synchronous>, transform_indices = @transform_2, window_bounds = array<i64: 1, 128>}, {transform_indices = @transform_3, window_bounds = array<i64: 1, 80, 128>}]} {
    %c0 = arith.constant 0 : index
    %c0_0 = arith.constant 0 : index
    %c0_1 = arith.constant 0 : index
    %0 = vector.load %arg1[%c0, %c0_0, %c0_1] : memref<1x110x16xbf16, #tpu.memory_space<vmem>>, vector<1x80x16xbf16>
    %1 = vector.shape_cast %0 : vector<1x80x16xbf16> to vector<80x16xbf16>
    %c0_2 = arith.constant 0 : index
    %c0_3 = arith.constant 0 : index
    %c0_4 = arith.constant 0 : index
    %2 = vector.load %arg2[%c0_2, %c0_3, %c0_4] : memref<9x16x128xbf16, #tpu.memory_space<vmem>>, vector<1x16x128xbf16>
    %3 = vector.shape_cast %2 : vector<1x16x128xbf16> to vector<16x128xbf16>
    %cst = arith.constant dense<0.000000e+00> : vector<80x128xf32>
    %4 = tpu.matmul %1, %3, %cst {dimension_numbers = #tpu.dot_dimension_numbers<[1], [0], [0], [1], [0, 0, 1, 1], [], []>} : vector<80x16xbf16>, vector<16x128xbf16>, vector<80x128xf32> -> vector<80x128xf32>
    %c0_5 = arith.constant 0 : index
    %c1 = arith.constant 1 : index
    %c0_6 = arith.constant 0 : index
    %5 = vector.load %arg1[%c0_5, %c1, %c0_6] : memref<1x110x16xbf16, #tpu.memory_space<vmem>>, vector<1x80x16xbf16>
    %6 = vector.shape_cast %5 : vector<1x80x16xbf16> to vector<80x16xbf16>
    %c1_7 = arith.constant 1 : index
    %c0_8 = arith.constant 0 : index
    %c0_9 = arith.constant 0 : index
    %7 = vector.load %arg2[%c1_7, %c0_8, %c0_9] : memref<9x16x128xbf16, #tpu.memory_space<vmem>>, vector<1x16x128xbf16>
    %8 = vector.shape_cast %7 : vector<1x16x128xbf16> to vector<16x128xbf16>
    %cst_10 = arith.constant dense<0.000000e+00> : vector<80x128xf32>
    %9 = tpu.matmul %6, %8, %cst_10 {dimension_numbers = #tpu.dot_dimension_numbers<[1], [0], [0], [1], [0, 0, 1, 1], [], []>} : vector<80x16xbf16>, vector<16x128xbf16>, vector<80x128xf32> -> vector<80x128xf32>
    %10 = arith.addf %4, %9 : vector<80x128xf32>
    %c0_11 = arith.constant 0 : index
    %c2 = arith.constant 2 : index
    %c0_12 = arith.constant 0 : index
    %11 = vector.load %arg1[%c0_11, %c2, %c0_12] : memref<1x110x16xbf16, #tpu.memory_space<vmem>>, vector<1x80x16xbf16>
    %12 = vector.shape_cast %11 : vector<1x80x16xbf16> to vector<80x16xbf16>
    %c2_13 = arith.constant 2 : index
    %c0_14 = arith.constant 0 : index
    %c0_15 = arith.constant 0 : index
    %13 = vector.load %arg2[%c2_13, %c0_14, %c0_15] : memref<9x16x128xbf16, #tpu.memory_space<vmem>>, vector<1x16x128xbf16>
    %14 = vector.shape_cast %13 : vector<1x16x128xbf16> to vector<16x128xbf16>
    %cst_16 = arith.constant dense<0.000000e+00> : vector<80x128xf32>
    %15 = tpu.matmul %12, %14, %cst_16 {dimension_numbers = #tpu.dot_dimension_numbers<[1], [0], [0], [1], [0, 0, 1, 1], [], []>} : vector<80x16xbf16>, vector<16x128xbf16>, vector<80x128xf32> -> vector<80x128xf32>
    %16 = arith.addf %10, %15 : vector<80x128xf32>
    %c0_17 = arith.constant 0 : index
    %c10 = arith.constant 10 : index
    %c0_18 = arith.constant 0 : index
    %17 = vector.load %arg1[%c0_17, %c10, %c0_18] : memref<1x110x16xbf16, #tpu.memory_space<vmem>>, vector<1x80x16xbf16>
    %18 = vector.shape_cast %17 : vector<1x80x16xbf16> to vector<80x16xbf16>
    %c3 = arith.constant 3 : index
    %c0_19 = arith.constant 0 : index
    %c0_20 = arith.constant 0 : index
    %19 = vector.load %arg2[%c3, %c0_19, %c0_20] : memref<9x16x128xbf16, #tpu.memory_space<vmem>>, vector<1x16x128xbf16>
    %20 = vector.shape_cast %19 : vector<1x16x128xbf16> to vector<16x128xbf16>
    %cst_21 = arith.constant dense<0.000000e+00> : vector<80x128xf32>
    %21 = tpu.matmul %18, %20, %cst_21 {dimension_numbers = #tpu.dot_dimension_numbers<[1], [0], [0], [1], [0, 0, 1, 1], [], []>} : vector<80x16xbf16>, vector<16x128xbf16>, vector<80x128xf32> -> vector<80x128xf32>
    %22 = arith.addf %16, %21 : vector<80x128xf32>
    %c0_22 = arith.constant 0 : index
    %c11 = arith.constant 11 : index
    %c0_23 = arith.constant 0 : index
    %23 = vector.load %arg1[%c0_22, %c11, %c0_23] : memref<1x110x16xbf16, #tpu.memory_space<vmem>>, vector<1x80x16xbf16>
    %24 = vector.shape_cast %23 : vector<1x80x16xbf16> to vector<80x16xbf16>
    %c4 = arith.constant 4 : index
    %c0_24 = arith.constant 0 : index
    %c0_25 = arith.constant 0 : index
    %25 = vector.load %arg2[%c4, %c0_24, %c0_25] : memref<9x16x128xbf16, #tpu.memory_space<vmem>>, vector<1x16x128xbf16>
    %26 = vector.shape_cast %25 : vector<1x16x128xbf16> to vector<16x128xbf16>
    %cst_26 = arith.constant dense<0.000000e+00> : vector<80x128xf32>
    %27 = tpu.matmul %24, %26, %cst_26 {dimension_numbers = #tpu.dot_dimension_numbers<[1], [0], [0], [1], [0, 0, 1, 1], [], []>} : vector<80x16xbf16>, vector<16x128xbf16>, vector<80x128xf32> -> vector<80x128xf32>
    %28 = arith.addf %22, %27 : vector<80x128xf32>
    %c0_27 = arith.constant 0 : index
    %c12 = arith.constant 12 : index
    %c0_28 = arith.constant 0 : index
    %29 = vector.load %arg1[%c0_27, %c12, %c0_28] : memref<1x110x16xbf16, #tpu.memory_space<vmem>>, vector<1x80x16xbf16>
    %30 = vector.shape_cast %29 : vector<1x80x16xbf16> to vector<80x16xbf16>
    %c5 = arith.constant 5 : index
    %c0_29 = arith.constant 0 : index
    %c0_30 = arith.constant 0 : index
    %31 = vector.load %arg2[%c5, %c0_29, %c0_30] : memref<9x16x128xbf16, #tpu.memory_space<vmem>>, vector<1x16x128xbf16>
    %32 = vector.shape_cast %31 : vector<1x16x128xbf16> to vector<16x128xbf16>
    %cst_31 = arith.constant dense<0.000000e+00> : vector<80x128xf32>
    %33 = tpu.matmul %30, %32, %cst_31 {dimension_numbers = #tpu.dot_dimension_numbers<[1], [0], [0], [1], [0, 0, 1, 1], [], []>} : vector<80x16xbf16>, vector<16x128xbf16>, vector<80x128xf32> -> vector<80x128xf32>
    %34 = arith.addf %28, %33 : vector<80x128xf32>
    %c0_32 = arith.constant 0 : index
    %c20 = arith.constant 20 : index
    %c0_33 = arith.constant 0 : index
    %35 = vector.load %arg1[%c0_32, %c20, %c0_33] : memref<1x110x16xbf16, #tpu.memory_space<vmem>>, vector<1x80x16xbf16>
    %36 = vector.shape_cast %35 : vector<1x80x16xbf16> to vector<80x16xbf16>
    %c6 = arith.constant 6 : index
    %c0_34 = arith.constant 0 : index
    %c0_35 = arith.constant 0 : index
    %37 = vector.load %arg2[%c6, %c0_34, %c0_35] : memref<9x16x128xbf16, #tpu.memory_space<vmem>>, vector<1x16x128xbf16>
    %38 = vector.shape_cast %37 : vector<1x16x128xbf16> to vector<16x128xbf16>
    %cst_36 = arith.constant dense<0.000000e+00> : vector<80x128xf32>
    %39 = tpu.matmul %36, %38, %cst_36 {dimension_numbers = #tpu.dot_dimension_numbers<[1], [0], [0], [1], [0, 0, 1, 1], [], []>} : vector<80x16xbf16>, vector<16x128xbf16>, vector<80x128xf32> -> vector<80x128xf32>
    %40 = arith.addf %34, %39 : vector<80x128xf32>
    %c0_37 = arith.constant 0 : index
    %c21 = arith.constant 21 : index
    %c0_38 = arith.constant 0 : index
    %41 = vector.load %arg1[%c0_37, %c21, %c0_38] : memref<1x110x16xbf16, #tpu.memory_space<vmem>>, vector<1x80x16xbf16>
    %42 = vector.shape_cast %41 : vector<1x80x16xbf16> to vector<80x16xbf16>
    %c7 = arith.constant 7 : index
    %c0_39 = arith.constant 0 : index
    %c0_40 = arith.constant 0 : index
    %43 = vector.load %arg2[%c7, %c0_39, %c0_40] : memref<9x16x128xbf16, #tpu.memory_space<vmem>>, vector<1x16x128xbf16>
    %44 = vector.shape_cast %43 : vector<1x16x128xbf16> to vector<16x128xbf16>
    %cst_41 = arith.constant dense<0.000000e+00> : vector<80x128xf32>
    %45 = tpu.matmul %42, %44, %cst_41 {dimension_numbers = #tpu.dot_dimension_numbers<[1], [0], [0], [1], [0, 0, 1, 1], [], []>} : vector<80x16xbf16>, vector<16x128xbf16>, vector<80x128xf32> -> vector<80x128xf32>
    %46 = arith.addf %40, %45 : vector<80x128xf32>
    %c0_42 = arith.constant 0 : index
    %c22 = arith.constant 22 : index
    %c0_43 = arith.constant 0 : index
    %47 = vector.load %arg1[%c0_42, %c22, %c0_43] : memref<1x110x16xbf16, #tpu.memory_space<vmem>>, vector<1x80x16xbf16>
    %48 = vector.shape_cast %47 : vector<1x80x16xbf16> to vector<80x16xbf16>
    %c8 = arith.constant 8 : index
    %c0_44 = arith.constant 0 : index
    %c0_45 = arith.constant 0 : index
    %49 = vector.load %arg2[%c8, %c0_44, %c0_45] : memref<9x16x128xbf16, #tpu.memory_space<vmem>>, vector<1x16x128xbf16>
    %50 = vector.shape_cast %49 : vector<1x16x128xbf16> to vector<16x128xbf16>
    %cst_46 = arith.constant dense<0.000000e+00> : vector<80x128xf32>
    %51 = tpu.matmul %48, %50, %cst_46 {dimension_numbers = #tpu.dot_dimension_numbers<[1], [0], [0], [1], [0, 0, 1, 1], [], []>} : vector<80x16xbf16>, vector<16x128xbf16>, vector<80x128xf32> -> vector<80x128xf32>
    %52 = arith.addf %46, %51 : vector<80x128xf32>
    %c0_47 = arith.constant 0 : index
    %c0_48 = arith.constant 0 : index
    %53 = vector.load %arg3[%c0_47, %c0_48] : memref<1x128xf32, #tpu.memory_space<vmem>>, vector<1x128xf32>
    %54 = vector.broadcast %53 : vector<1x128xf32> to vector<80x128xf32>
    %55 = arith.addf %52, %54 : vector<80x128xf32>
    %cst_49 = arith.constant 0.000000e+00 : f32
    %56 = vector.broadcast %cst_49 : f32 to vector<80x128xf32>
    %57 = arith.maximumf %55, %56 : vector<80x128xf32>
    %58 = arith.truncf %57 : vector<80x128xf32> to vector<80x128xbf16>
    %c0_50 = arith.constant 0 : index
    %c0_51 = arith.constant 0 : index
    %c0_52 = arith.constant 0 : index
    %59 = vector.load %arg4[%c0_50, %c0_51, %c0_52] : memref<1x80x128xbf16, #tpu.memory_space<vmem>>, vector<1x80x128xbf16>
    %60 = vector.shape_cast %59 : vector<1x80x128xbf16> to vector<80x128xbf16>
    %61 = vector.shape_cast %58 : vector<80x128xbf16> to vector<1x80x128xbf16>
    tpu.vector_store %arg4[%c0_50, %c0_51, %c0_52], %61 {strides = array<i32>} : memref<1x80x128xbf16, #tpu.memory_space<vmem>>, vector<1x80x128xbf16>,
    return
  }
  func.func @transform_0(%arg0: i32) -> (i32, i32, i32) {
    %c0_i32 = arith.constant 0 : i32
    %c0_i32_0 = arith.constant 0 : i32
    %c0_i32_1 = arith.constant 0 : i32
    return %arg0, %c0_i32, %c0_i32_0 : i32, i32, i32
  }
  func.func @transform_1(%arg0: i32) -> (i32, i32, i32) {
    %c0_i32 = arith.constant 0 : i32
    %c0_i32_0 = arith.constant 0 : i32
    %c0_i32_1 = arith.constant 0 : i32
    %c0_i32_2 = arith.constant 0 : i32
    return %c0_i32, %c0_i32_0, %c0_i32_1 : i32, i32, i32
  }
  func.func @transform_2(%arg0: i32) -> (i32, i32) {
    %c0_i32 = arith.constant 0 : i32
    %c0_i32_0 = arith.constant 0 : i32
    %c0_i32_1 = arith.constant 0 : i32
    return %c0_i32, %c0_i32_0 : i32, i32
  }
  func.func @transform_3(%arg0: i32) -> (i32, i32, i32) {
    %c0_i32 = arith.constant 0 : i32
    %c0_i32_0 = arith.constant 0 : i32
    %c0_i32_1 = arith.constant 0 : i32
    return %arg0, %c0_i32, %c0_i32_0 : i32, i32, i32
  }
}

module attributes {stable_mosaic.version = 11 : i64} {
  func.func @kernel(%arg0: i32, %arg1: memref<1x110x16xbf16, #tpu.memory_space<vmem>>, %arg2: memref<9x16x128xbf16, #tpu.memory_space<vmem>>, %arg3: memref<1x128xf32, #tpu.memory_space<vmem>>, %arg4: memref<1x80x128xbf16, #tpu.memory_space<vmem>>, %arg5: memref<1x80x128xbf16, #tpu.memory_space<vmem>>) attributes {dimension_semantics = [#tpu.dimension_semantics<parallel>], iteration_bounds = array<i64: 2>, scalar_prefetch = 0 : i64, scratch_operands = 0 : i64, tpu.core_type = #tpu.core_type<tc>, window_params = [{transform_indices = @transform_0, window_bounds = array<i64: 1, 110, 16>}, {pipeline_mode = #tpu.pipeline_mode<synchronous>, transform_indices = @transform_1, window_bounds = array<i64: 9, 16, 128>}, {pipeline_mode = #tpu.pipeline_mode<synchronous>, transform_indices = @transform_2, window_bounds = array<i64: 1, 128>}, {transform_indices = @transform_3, window_bounds = array<i64: 1, 80, 128>}, {transform_indices = @transform_4, window_bounds = array<i64: 1, 80, 128>}]} {
    %c0 = arith.constant 0 : index
    %c0_0 = arith.constant 0 : index
    %c0_1 = arith.constant 0 : index
    %0 = vector.load %arg1[%c0, %c0_0, %c0_1] : memref<1x110x16xbf16, #tpu.memory_space<vmem>>, vector<1x80x16xbf16>
    %1 = vector.shape_cast %0 : vector<1x80x16xbf16> to vector<80x16xbf16>
    %c0_2 = arith.constant 0 : index
    %c0_3 = arith.constant 0 : index
    %c0_4 = arith.constant 0 : index
    %2 = vector.load %arg2[%c0_2, %c0_3, %c0_4] : memref<9x16x128xbf16, #tpu.memory_space<vmem>>, vector<1x16x128xbf16>
    %3 = vector.shape_cast %2 : vector<1x16x128xbf16> to vector<16x128xbf16>
    %cst = arith.constant dense<0.000000e+00> : vector<80x128xf32>
    %4 = tpu.matmul %1, %3, %cst {dimension_numbers = #tpu.dot_dimension_numbers<[1], [0], [0], [1], [0, 0, 1, 1], [], []>} : vector<80x16xbf16>, vector<16x128xbf16>, vector<80x128xf32> -> vector<80x128xf32>
    %c0_5 = arith.constant 0 : index
    %c1 = arith.constant 1 : index
    %c0_6 = arith.constant 0 : index
    %5 = vector.load %arg1[%c0_5, %c1, %c0_6] : memref<1x110x16xbf16, #tpu.memory_space<vmem>>, vector<1x80x16xbf16>
    %6 = vector.shape_cast %5 : vector<1x80x16xbf16> to vector<80x16xbf16>
    %c1_7 = arith.constant 1 : index
    %c0_8 = arith.constant 0 : index
    %c0_9 = arith.constant 0 : index
    %7 = vector.load %arg2[%c1_7, %c0_8, %c0_9] : memref<9x16x128xbf16, #tpu.memory_space<vmem>>, vector<1x16x128xbf16>
    %8 = vector.shape_cast %7 : vector<1x16x128xbf16> to vector<16x128xbf16>
    %cst_10 = arith.constant dense<0.000000e+00> : vector<80x128xf32>
    %9 = tpu.matmul %6, %8, %cst_10 {dimension_numbers = #tpu.dot_dimension_numbers<[1], [0], [0], [1], [0, 0, 1, 1], [], []>} : vector<80x16xbf16>, vector<16x128xbf16>, vector<80x128xf32> -> vector<80x128xf32>
    %10 = arith.addf %4, %9 : vector<80x128xf32>
    %c0_11 = arith.constant 0 : index
    %c2 = arith.constant 2 : index
    %c0_12 = arith.constant 0 : index
    %11 = vector.load %arg1[%c0_11, %c2, %c0_12] : memref<1x110x16xbf16, #tpu.memory_space<vmem>>, vector<1x80x16xbf16>
    %12 = vector.shape_cast %11 : vector<1x80x16xbf16> to vector<80x16xbf16>
    %c2_13 = arith.constant 2 : index
    %c0_14 = arith.constant 0 : index
    %c0_15 = arith.constant 0 : index
    %13 = vector.load %arg2[%c2_13, %c0_14, %c0_15] : memref<9x16x128xbf16, #tpu.memory_space<vmem>>, vector<1x16x128xbf16>
    %14 = vector.shape_cast %13 : vector<1x16x128xbf16> to vector<16x128xbf16>
    %cst_16 = arith.constant dense<0.000000e+00> : vector<80x128xf32>
    %15 = tpu.matmul %12, %14, %cst_16 {dimension_numbers = #tpu.dot_dimension_numbers<[1], [0], [0], [1], [0, 0, 1, 1], [], []>} : vector<80x16xbf16>, vector<16x128xbf16>, vector<80x128xf32> -> vector<80x128xf32>
    %16 = arith.addf %10, %15 : vector<80x128xf32>
    %c0_17 = arith.constant 0 : index
    %c10 = arith.constant 10 : index
    %c0_18 = arith.constant 0 : index
    %17 = vector.load %arg1[%c0_17, %c10, %c0_18] : memref<1x110x16xbf16, #tpu.memory_space<vmem>>, vector<1x80x16xbf16>
    %18 = vector.shape_cast %17 : vector<1x80x16xbf16> to vector<80x16xbf16>
    %c3 = arith.constant 3 : index
    %c0_19 = arith.constant 0 : index
    %c0_20 = arith.constant 0 : index
    %19 = vector.load %arg2[%c3, %c0_19, %c0_20] : memref<9x16x128xbf16, #tpu.memory_space<vmem>>, vector<1x16x128xbf16>
    %20 = vector.shape_cast %19 : vector<1x16x128xbf16> to vector<16x128xbf16>
    %cst_21 = arith.constant dense<0.000000e+00> : vector<80x128xf32>
    %21 = tpu.matmul %18, %20, %cst_21 {dimension_numbers = #tpu.dot_dimension_numbers<[1], [0], [0], [1], [0, 0, 1, 1], [], []>} : vector<80x16xbf16>, vector<16x128xbf16>, vector<80x128xf32> -> vector<80x128xf32>
    %22 = arith.addf %16, %21 : vector<80x128xf32>
    %c0_22 = arith.constant 0 : index
    %c11 = arith.constant 11 : index
    %c0_23 = arith.constant 0 : index
    %23 = vector.load %arg1[%c0_22, %c11, %c0_23] : memref<1x110x16xbf16, #tpu.memory_space<vmem>>, vector<1x80x16xbf16>
    %24 = vector.shape_cast %23 : vector<1x80x16xbf16> to vector<80x16xbf16>
    %c4 = arith.constant 4 : index
    %c0_24 = arith.constant 0 : index
    %c0_25 = arith.constant 0 : index
    %25 = vector.load %arg2[%c4, %c0_24, %c0_25] : memref<9x16x128xbf16, #tpu.memory_space<vmem>>, vector<1x16x128xbf16>
    %26 = vector.shape_cast %25 : vector<1x16x128xbf16> to vector<16x128xbf16>
    %cst_26 = arith.constant dense<0.000000e+00> : vector<80x128xf32>
    %27 = tpu.matmul %24, %26, %cst_26 {dimension_numbers = #tpu.dot_dimension_numbers<[1], [0], [0], [1], [0, 0, 1, 1], [], []>} : vector<80x16xbf16>, vector<16x128xbf16>, vector<80x128xf32> -> vector<80x128xf32>
    %28 = arith.addf %22, %27 : vector<80x128xf32>
    %c0_27 = arith.constant 0 : index
    %c12 = arith.constant 12 : index
    %c0_28 = arith.constant 0 : index
    %29 = vector.load %arg1[%c0_27, %c12, %c0_28] : memref<1x110x16xbf16, #tpu.memory_space<vmem>>, vector<1x80x16xbf16>
    %30 = vector.shape_cast %29 : vector<1x80x16xbf16> to vector<80x16xbf16>
    %c5 = arith.constant 5 : index
    %c0_29 = arith.constant 0 : index
    %c0_30 = arith.constant 0 : index
    %31 = vector.load %arg2[%c5, %c0_29, %c0_30] : memref<9x16x128xbf16, #tpu.memory_space<vmem>>, vector<1x16x128xbf16>
    %32 = vector.shape_cast %31 : vector<1x16x128xbf16> to vector<16x128xbf16>
    %cst_31 = arith.constant dense<0.000000e+00> : vector<80x128xf32>
    %33 = tpu.matmul %30, %32, %cst_31 {dimension_numbers = #tpu.dot_dimension_numbers<[1], [0], [0], [1], [0, 0, 1, 1], [], []>} : vector<80x16xbf16>, vector<16x128xbf16>, vector<80x128xf32> -> vector<80x128xf32>
    %34 = arith.addf %28, %33 : vector<80x128xf32>
    %c0_32 = arith.constant 0 : index
    %c20 = arith.constant 20 : index
    %c0_33 = arith.constant 0 : index
    %35 = vector.load %arg1[%c0_32, %c20, %c0_33] : memref<1x110x16xbf16, #tpu.memory_space<vmem>>, vector<1x80x16xbf16>
    %36 = vector.shape_cast %35 : vector<1x80x16xbf16> to vector<80x16xbf16>
    %c6 = arith.constant 6 : index
    %c0_34 = arith.constant 0 : index
    %c0_35 = arith.constant 0 : index
    %37 = vector.load %arg2[%c6, %c0_34, %c0_35] : memref<9x16x128xbf16, #tpu.memory_space<vmem>>, vector<1x16x128xbf16>
    %38 = vector.shape_cast %37 : vector<1x16x128xbf16> to vector<16x128xbf16>
    %cst_36 = arith.constant dense<0.000000e+00> : vector<80x128xf32>
    %39 = tpu.matmul %36, %38, %cst_36 {dimension_numbers = #tpu.dot_dimension_numbers<[1], [0], [0], [1], [0, 0, 1, 1], [], []>} : vector<80x16xbf16>, vector<16x128xbf16>, vector<80x128xf32> -> vector<80x128xf32>
    %40 = arith.addf %34, %39 : vector<80x128xf32>
    %c0_37 = arith.constant 0 : index
    %c21 = arith.constant 21 : index
    %c0_38 = arith.constant 0 : index
    %41 = vector.load %arg1[%c0_37, %c21, %c0_38] : memref<1x110x16xbf16, #tpu.memory_space<vmem>>, vector<1x80x16xbf16>
    %42 = vector.shape_cast %41 : vector<1x80x16xbf16> to vector<80x16xbf16>
    %c7 = arith.constant 7 : index
    %c0_39 = arith.constant 0 : index
    %c0_40 = arith.constant 0 : index
    %43 = vector.load %arg2[%c7, %c0_39, %c0_40] : memref<9x16x128xbf16, #tpu.memory_space<vmem>>, vector<1x16x128xbf16>
    %44 = vector.shape_cast %43 : vector<1x16x128xbf16> to vector<16x128xbf16>
    %cst_41 = arith.constant dense<0.000000e+00> : vector<80x128xf32>
    %45 = tpu.matmul %42, %44, %cst_41 {dimension_numbers = #tpu.dot_dimension_numbers<[1], [0], [0], [1], [0, 0, 1, 1], [], []>} : vector<80x16xbf16>, vector<16x128xbf16>, vector<80x128xf32> -> vector<80x128xf32>
    %46 = arith.addf %40, %45 : vector<80x128xf32>
    %c0_42 = arith.constant 0 : index
    %c22 = arith.constant 22 : index
    %c0_43 = arith.constant 0 : index
    %47 = vector.load %arg1[%c0_42, %c22, %c0_43] : memref<1x110x16xbf16, #tpu.memory_space<vmem>>, vector<1x80x16xbf16>
    %48 = vector.shape_cast %47 : vector<1x80x16xbf16> to vector<80x16xbf16>
    %c8 = arith.constant 8 : index
    %c0_44 = arith.constant 0 : index
    %c0_45 = arith.constant 0 : index
    %49 = vector.load %arg2[%c8, %c0_44, %c0_45] : memref<9x16x128xbf16, #tpu.memory_space<vmem>>, vector<1x16x128xbf16>
    %50 = vector.shape_cast %49 : vector<1x16x128xbf16> to vector<16x128xbf16>
    %cst_46 = arith.constant dense<0.000000e+00> : vector<80x128xf32>
    %51 = tpu.matmul %48, %50, %cst_46 {dimension_numbers = #tpu.dot_dimension_numbers<[1], [0], [0], [1], [0, 0, 1, 1], [], []>} : vector<80x16xbf16>, vector<16x128xbf16>, vector<80x128xf32> -> vector<80x128xf32>
    %52 = arith.addf %46, %51 : vector<80x128xf32>
    %c0_47 = arith.constant 0 : index
    %c0_48 = arith.constant 0 : index
    %53 = vector.load %arg3[%c0_47, %c0_48] : memref<1x128xf32, #tpu.memory_space<vmem>>, vector<1x128xf32>
    %54 = vector.broadcast %53 : vector<1x128xf32> to vector<80x128xf32>
    %55 = arith.addf %52, %54 : vector<80x128xf32>
    %c0_49 = arith.constant 0 : index
    %c0_50 = arith.constant 0 : index
    %c0_51 = arith.constant 0 : index
    %56 = vector.load %arg4[%c0_49, %c0_50, %c0_51] : memref<1x80x128xbf16, #tpu.memory_space<vmem>>, vector<1x80x128xbf16>
    %57 = vector.shape_cast %56 : vector<1x80x128xbf16> to vector<80x128xbf16>
    %58 = arith.extf %57 : vector<80x128xbf16> to vector<80x128xf32>
    %59 = arith.addf %55, %58 : vector<80x128xf32>
    %60 = arith.truncf %59 : vector<80x128xf32> to vector<80x128xbf16>
    %c0_52 = arith.constant 0 : index
    %c0_53 = arith.constant 0 : index
    %c0_54 = arith.constant 0 : index
    %61 = vector.load %arg5[%c0_52, %c0_53, %c0_54] : memref<1x80x128xbf16, #tpu.memory_space<vmem>>, vector<1x80x128xbf16>
    %62 = vector.shape_cast %61 : vector<1x80x128xbf16> to vector<80x128xbf16>
    %63 = vector.shape_cast %60 : vector<80x128xbf16> to vector<1x80x128xbf16>
    tpu.vector_store %arg5[%c0_52, %c0_53, %c0_54], %63 {strides = array<i32>} : memref<1x80x128xbf16, #tpu.memory_space<vmem>>, vector<1x80x128xbf16>,
    return
  }
  func.func @transform_0(%arg0: i32) -> (i32, i32, i32) {
    %c0_i32 = arith.constant 0 : i32
    %c0_i32_0 = arith.constant 0 : i32
    %c0_i32_1 = arith.constant 0 : i32
    return %arg0, %c0_i32, %c0_i32_0 : i32, i32, i32
  }
  func.func @transform_1(%arg0: i32) -> (i32, i32, i32) {
    %c0_i32 = arith.constant 0 : i32
    %c0_i32_0 = arith.constant 0 : i32
    %c0_i32_1 = arith.constant 0 : i32
    %c0_i32_2 = arith.constant 0 : i32
    return %c0_i32, %c0_i32_0, %c0_i32_1 : i32, i32, i32
  }
  func.func @transform_2(%arg0: i32) -> (i32, i32) {
    %c0_i32 = arith.constant 0 : i32
    %c0_i32_0 = arith.constant 0 : i32
    %c0_i32_1 = arith.constant 0 : i32
    return %c0_i32, %c0_i32_0 : i32, i32
  }
  func.func @transform_3(%arg0: i32) -> (i32, i32, i32) {
    %c0_i32 = arith.constant 0 : i32
    %c0_i32_0 = arith.constant 0 : i32
    %c0_i32_1 = arith.constant 0 : i32
    return %arg0, %c0_i32, %c0_i32_0 : i32, i32, i32
  }
  func.func @transform_4(%arg0: i32) -> (i32, i32, i32) {
    %c0_i32 = arith.constant 0 : i32
    %c0_i32_0 = arith.constant 0 : i32
    %c0_i32_1 = arith.constant 0 : i32
    return %arg0, %c0_i32, %c0_i32_0 : i32, i32, i32
  }
}

module attributes {stable_mosaic.version = 11 : i64} {
  func.func @_matmul_bias_kernel(%arg0: i32, %arg1: memref<16x16xbf16, #tpu.memory_space<vmem>>, %arg2: memref<16x128xbf16, #tpu.memory_space<vmem>>, %arg3: memref<1x128xf32, #tpu.memory_space<vmem>>, %arg4: memref<16x128xbf16, #tpu.memory_space<vmem>>) attributes {dimension_semantics = [#tpu.dimension_semantics<parallel>], iteration_bounds = array<i64: 2>, scalar_prefetch = 0 : i64, scratch_operands = 0 : i64, tpu.core_type = #tpu.core_type<tc>, window_params = [{transform_indices = @transform_0, window_bounds = array<i64: 16, 16>}, {pipeline_mode = #tpu.pipeline_mode<synchronous>, transform_indices = @transform_1, window_bounds = array<i64: 16, 128>}, {pipeline_mode = #tpu.pipeline_mode<synchronous>, transform_indices = @transform_2, window_bounds = array<i64: 1, 128>}, {transform_indices = @transform_3, window_bounds = array<i64: 16, 128>}]} {
    %c0 = arith.constant 0 : index
    %c0_0 = arith.constant 0 : index
    %0 = vector.load %arg1[%c0, %c0_0] : memref<16x16xbf16, #tpu.memory_space<vmem>>, vector<16x16xbf16>
    %c0_1 = arith.constant 0 : index
    %c0_2 = arith.constant 0 : index
    %1 = vector.load %arg2[%c0_1, %c0_2] : memref<16x128xbf16, #tpu.memory_space<vmem>>, vector<16x128xbf16>
    %cst = arith.constant dense<0.000000e+00> : vector<16x128xf32>
    %2 = tpu.matmul %0, %1, %cst {dimension_numbers = #tpu.dot_dimension_numbers<[1], [0], [0], [1], [0, 0, 1, 1], [], []>} : vector<16x16xbf16>, vector<16x128xbf16>, vector<16x128xf32> -> vector<16x128xf32>
    %c0_3 = arith.constant 0 : index
    %c0_4 = arith.constant 0 : index
    %3 = vector.load %arg3[%c0_3, %c0_4] : memref<1x128xf32, #tpu.memory_space<vmem>>, vector<1x128xf32>
    %4 = vector.broadcast %3 : vector<1x128xf32> to vector<16x128xf32>
    %5 = arith.addf %2, %4 : vector<16x128xf32>
    %6 = arith.truncf %5 : vector<16x128xf32> to vector<16x128xbf16>
    %c0_5 = arith.constant 0 : index
    %c0_6 = arith.constant 0 : index
    %7 = vector.load %arg4[%c0_5, %c0_6] : memref<16x128xbf16, #tpu.memory_space<vmem>>, vector<16x128xbf16>
    tpu.vector_store %arg4[%c0_5, %c0_6], %6 {strides = array<i32>} : memref<16x128xbf16, #tpu.memory_space<vmem>>, vector<16x128xbf16>,
    return
  }
  func.func @transform_0(%arg0: i32) -> (i32, i32) {
    %c0_i32 = arith.constant 0 : i32
    %c0_i32_0 = arith.constant 0 : i32
    return %arg0, %c0_i32 : i32, i32
  }
  func.func @transform_1(%arg0: i32) -> (i32, i32) {
    %c0_i32 = arith.constant 0 : i32
    %c0_i32_0 = arith.constant 0 : i32
    %c0_i32_1 = arith.constant 0 : i32
    return %c0_i32, %c0_i32_0 : i32, i32
  }
  func.func @transform_2(%arg0: i32) -> (i32, i32) {
    %c0_i32 = arith.constant 0 : i32
    %c0_i32_0 = arith.constant 0 : i32
    %c0_i32_1 = arith.constant 0 : i32
    return %c0_i32, %c0_i32_0 : i32, i32
  }
  func.func @transform_3(%arg0: i32) -> (i32, i32) {
    %c0_i32 = arith.constant 0 : i32
    %c0_i32_0 = arith.constant 0 : i32
    return %arg0, %c0_i32 : i32, i32
  }
}

module attributes {stable_mosaic.version = 11 : i64} {
  func.func @kernel(%arg0: i32, %arg1: memref<1x30x16xbf16, #tpu.memory_space<vmem>>, %arg2: memref<1x30x16xbf16, #tpu.memory_space<vmem>>, %arg3: memref<1x30x16xbf16, #tpu.memory_space<vmem>>, %arg4: memref<1x30x16xbf16, #tpu.memory_space<vmem>>, %arg5: memref<9x16x128xbf16, #tpu.memory_space<vmem>>, %arg6: memref<1x128xf32, #tpu.memory_space<vmem>>, %arg7: memref<1x20x128xbf16, #tpu.memory_space<vmem>>) attributes {dimension_semantics = [#tpu.dimension_semantics<parallel>], iteration_bounds = array<i64: 2>, scalar_prefetch = 0 : i64, scratch_operands = 0 : i64, tpu.core_type = #tpu.core_type<tc>, window_params = [{transform_indices = @transform_0, window_bounds = array<i64: 1, 30, 16>}, {transform_indices = @transform_1, window_bounds = array<i64: 1, 30, 16>}, {transform_indices = @transform_2, window_bounds = array<i64: 1, 30, 16>}, {transform_indices = @transform_3, window_bounds = array<i64: 1, 30, 16>}, {pipeline_mode = #tpu.pipeline_mode<synchronous>, transform_indices = @transform_4, window_bounds = array<i64: 9, 16, 128>}, {pipeline_mode = #tpu.pipeline_mode<synchronous>, transform_indices = @transform_5, window_bounds = array<i64: 1, 128>}, {transform_indices = @transform_6, window_bounds = array<i64: 1, 20, 128>}]} {
    %c0 = arith.constant 0 : index
    %c0_0 = arith.constant 0 : index
    %c0_1 = arith.constant 0 : index
    %0 = vector.load %arg1[%c0, %c0_0, %c0_1] : memref<1x30x16xbf16, #tpu.memory_space<vmem>>, vector<1x20x16xbf16>
    %1 = vector.shape_cast %0 : vector<1x20x16xbf16> to vector<20x16xbf16>
    %c0_2 = arith.constant 0 : index
    %c0_3 = arith.constant 0 : index
    %c0_4 = arith.constant 0 : index
    %2 = vector.load %arg5[%c0_2, %c0_3, %c0_4] : memref<9x16x128xbf16, #tpu.memory_space<vmem>>, vector<1x16x128xbf16>
    %3 = vector.shape_cast %2 : vector<1x16x128xbf16> to vector<16x128xbf16>
    %cst = arith.constant dense<0.000000e+00> : vector<20x128xf32>
    %4 = tpu.matmul %1, %3, %cst {dimension_numbers = #tpu.dot_dimension_numbers<[1], [0], [0], [1], [0, 0, 1, 1], [], []>} : vector<20x16xbf16>, vector<16x128xbf16>, vector<20x128xf32> -> vector<20x128xf32>
    %c0_5 = arith.constant 0 : index
    %c0_6 = arith.constant 0 : index
    %c0_7 = arith.constant 0 : index
    %5 = vector.load %arg2[%c0_5, %c0_6, %c0_7] : memref<1x30x16xbf16, #tpu.memory_space<vmem>>, vector<1x20x16xbf16>
    %6 = vector.shape_cast %5 : vector<1x20x16xbf16> to vector<20x16xbf16>
    %c1 = arith.constant 1 : index
    %c0_8 = arith.constant 0 : index
    %c0_9 = arith.constant 0 : index
    %7 = vector.load %arg5[%c1, %c0_8, %c0_9] : memref<9x16x128xbf16, #tpu.memory_space<vmem>>, vector<1x16x128xbf16>
    %8 = vector.shape_cast %7 : vector<1x16x128xbf16> to vector<16x128xbf16>
    %cst_10 = arith.constant dense<0.000000e+00> : vector<20x128xf32>
    %9 = tpu.matmul %6, %8, %cst_10 {dimension_numbers = #tpu.dot_dimension_numbers<[1], [0], [0], [1], [0, 0, 1, 1], [], []>} : vector<20x16xbf16>, vector<16x128xbf16>, vector<20x128xf32> -> vector<20x128xf32>
    %10 = arith.addf %4, %9 : vector<20x128xf32>
    %c0_11 = arith.constant 0 : index
    %c1_12 = arith.constant 1 : index
    %c0_13 = arith.constant 0 : index
    %11 = vector.load %arg1[%c0_11, %c1_12, %c0_13] : memref<1x30x16xbf16, #tpu.memory_space<vmem>>, vector<1x20x16xbf16>
    %12 = vector.shape_cast %11 : vector<1x20x16xbf16> to vector<20x16xbf16>
    %c2 = arith.constant 2 : index
    %c0_14 = arith.constant 0 : index
    %c0_15 = arith.constant 0 : index
    %13 = vector.load %arg5[%c2, %c0_14, %c0_15] : memref<9x16x128xbf16, #tpu.memory_space<vmem>>, vector<1x16x128xbf16>
    %14 = vector.shape_cast %13 : vector<1x16x128xbf16> to vector<16x128xbf16>
    %cst_16 = arith.constant dense<0.000000e+00> : vector<20x128xf32>
    %15 = tpu.matmul %12, %14, %cst_16 {dimension_numbers = #tpu.dot_dimension_numbers<[1], [0], [0], [1], [0, 0, 1, 1], [], []>} : vector<20x16xbf16>, vector<16x128xbf16>, vector<20x128xf32> -> vector<20x128xf32>
    %16 = arith.addf %10, %15 : vector<20x128xf32>
    %c0_17 = arith.constant 0 : index
    %c0_18 = arith.constant 0 : index
    %c0_19 = arith.constant 0 : index
    %17 = vector.load %arg3[%c0_17, %c0_18, %c0_19] : memref<1x30x16xbf16, #tpu.memory_space<vmem>>, vector<1x20x16xbf16>
    %18 = vector.shape_cast %17 : vector<1x20x16xbf16> to vector<20x16xbf16>
    %c3 = arith.constant 3 : index
    %c0_20 = arith.constant 0 : index
    %c0_21 = arith.constant 0 : index
    %19 = vector.load %arg5[%c3, %c0_20, %c0_21] : memref<9x16x128xbf16, #tpu.memory_space<vmem>>, vector<1x16x128xbf16>
    %20 = vector.shape_cast %19 : vector<1x16x128xbf16> to vector<16x128xbf16>
    %cst_22 = arith.constant dense<0.000000e+00> : vector<20x128xf32>
    %21 = tpu.matmul %18, %20, %cst_22 {dimension_numbers = #tpu.dot_dimension_numbers<[1], [0], [0], [1], [0, 0, 1, 1], [], []>} : vector<20x16xbf16>, vector<16x128xbf16>, vector<20x128xf32> -> vector<20x128xf32>
    %22 = arith.addf %16, %21 : vector<20x128xf32>
    %c0_23 = arith.constant 0 : index
    %c0_24 = arith.constant 0 : index
    %c0_25 = arith.constant 0 : index
    %23 = vector.load %arg4[%c0_23, %c0_24, %c0_25] : memref<1x30x16xbf16, #tpu.memory_space<vmem>>, vector<1x20x16xbf16>
    %24 = vector.shape_cast %23 : vector<1x20x16xbf16> to vector<20x16xbf16>
    %c4 = arith.constant 4 : index
    %c0_26 = arith.constant 0 : index
    %c0_27 = arith.constant 0 : index
    %25 = vector.load %arg5[%c4, %c0_26, %c0_27] : memref<9x16x128xbf16, #tpu.memory_space<vmem>>, vector<1x16x128xbf16>
    %26 = vector.shape_cast %25 : vector<1x16x128xbf16> to vector<16x128xbf16>
    %cst_28 = arith.constant dense<0.000000e+00> : vector<20x128xf32>
    %27 = tpu.matmul %24, %26, %cst_28 {dimension_numbers = #tpu.dot_dimension_numbers<[1], [0], [0], [1], [0, 0, 1, 1], [], []>} : vector<20x16xbf16>, vector<16x128xbf16>, vector<20x128xf32> -> vector<20x128xf32>
    %28 = arith.addf %22, %27 : vector<20x128xf32>
    %c0_29 = arith.constant 0 : index
    %c1_30 = arith.constant 1 : index
    %c0_31 = arith.constant 0 : index
    %29 = vector.load %arg3[%c0_29, %c1_30, %c0_31] : memref<1x30x16xbf16, #tpu.memory_space<vmem>>, vector<1x20x16xbf16>
    %30 = vector.shape_cast %29 : vector<1x20x16xbf16> to vector<20x16xbf16>
    %c5 = arith.constant 5 : index
    %c0_32 = arith.constant 0 : index
    %c0_33 = arith.constant 0 : index
    %31 = vector.load %arg5[%c5, %c0_32, %c0_33] : memref<9x16x128xbf16, #tpu.memory_space<vmem>>, vector<1x16x128xbf16>
    %32 = vector.shape_cast %31 : vector<1x16x128xbf16> to vector<16x128xbf16>
    %cst_34 = arith.constant dense<0.000000e+00> : vector<20x128xf32>
    %33 = tpu.matmul %30, %32, %cst_34 {dimension_numbers = #tpu.dot_dimension_numbers<[1], [0], [0], [1], [0, 0, 1, 1], [], []>} : vector<20x16xbf16>, vector<16x128xbf16>, vector<20x128xf32> -> vector<20x128xf32>
    %34 = arith.addf %28, %33 : vector<20x128xf32>
    %c0_35 = arith.constant 0 : index
    %c5_36 = arith.constant 5 : index
    %c0_37 = arith.constant 0 : index
    %35 = vector.load %arg1[%c0_35, %c5_36, %c0_37] : memref<1x30x16xbf16, #tpu.memory_space<vmem>>, vector<1x20x16xbf16>
    %36 = vector.shape_cast %35 : vector<1x20x16xbf16> to vector<20x16xbf16>
    %c6 = arith.constant 6 : index
    %c0_38 = arith.constant 0 : index
    %c0_39 = arith.constant 0 : index
    %37 = vector.load %arg5[%c6, %c0_38, %c0_39] : memref<9x16x128xbf16, #tpu.memory_space<vmem>>, vector<1x16x128xbf16>
    %38 = vector.shape_cast %37 : vector<1x16x128xbf16> to vector<16x128xbf16>
    %cst_40 = arith.constant dense<0.000000e+00> : vector<20x128xf32>
    %39 = tpu.matmul %36, %38, %cst_40 {dimension_numbers = #tpu.dot_dimension_numbers<[1], [0], [0], [1], [0, 0, 1, 1], [], []>} : vector<20x16xbf16>, vector<16x128xbf16>, vector<20x128xf32> -> vector<20x128xf32>
    %40 = arith.addf %34, %39 : vector<20x128xf32>
    %c0_41 = arith.constant 0 : index
    %c5_42 = arith.constant 5 : index
    %c0_43 = arith.constant 0 : index
    %41 = vector.load %arg2[%c0_41, %c5_42, %c0_43] : memref<1x30x16xbf16, #tpu.memory_space<vmem>>, vector<1x20x16xbf16>
    %42 = vector.shape_cast %41 : vector<1x20x16xbf16> to vector<20x16xbf16>
    %c7 = arith.constant 7 : index
    %c0_44 = arith.constant 0 : index
    %c0_45 = arith.constant 0 : index
    %43 = vector.load %arg5[%c7, %c0_44, %c0_45] : memref<9x16x128xbf16, #tpu.memory_space<vmem>>, vector<1x16x128xbf16>
    %44 = vector.shape_cast %43 : vector<1x16x128xbf16> to vector<16x128xbf16>
    %cst_46 = arith.constant dense<0.000000e+00> : vector<20x128xf32>
    %45 = tpu.matmul %42, %44, %cst_46 {dimension_numbers = #tpu.dot_dimension_numbers<[1], [0], [0], [1], [0, 0, 1, 1], [], []>} : vector<20x16xbf16>, vector<16x128xbf16>, vector<20x128xf32> -> vector<20x128xf32>
    %46 = arith.addf %40, %45 : vector<20x128xf32>
    %c0_47 = arith.constant 0 : index
    %c6_48 = arith.constant 6 : index
    %c0_49 = arith.constant 0 : index
    %47 = vector.load %arg1[%c0_47, %c6_48, %c0_49] : memref<1x30x16xbf16, #tpu.memory_space<vmem>>, vector<1x20x16xbf16>
    %48 = vector.shape_cast %47 : vector<1x20x16xbf16> to vector<20x16xbf16>
    %c8 = arith.constant 8 : index
    %c0_50 = arith.constant 0 : index
    %c0_51 = arith.constant 0 : index
    %49 = vector.load %arg5[%c8, %c0_50, %c0_51] : memref<9x16x128xbf16, #tpu.memory_space<vmem>>, vector<1x16x128xbf16>
    %50 = vector.shape_cast %49 : vector<1x16x128xbf16> to vector<16x128xbf16>
    %cst_52 = arith.constant dense<0.000000e+00> : vector<20x128xf32>
    %51 = tpu.matmul %48, %50, %cst_52 {dimension_numbers = #tpu.dot_dimension_numbers<[1], [0], [0], [1], [0, 0, 1, 1], [], []>} : vector<20x16xbf16>, vector<16x128xbf16>, vector<20x128xf32> -> vector<20x128xf32>
    %52 = arith.addf %46, %51 : vector<20x128xf32>
    %c0_53 = arith.constant 0 : index
    %c0_54 = arith.constant 0 : index
    %53 = vector.load %arg6[%c0_53, %c0_54] : memref<1x128xf32, #tpu.memory_space<vmem>>, vector<1x128xf32>
    %54 = vector.broadcast %53 : vector<1x128xf32> to vector<20x128xf32>
    %55 = arith.addf %52, %54 : vector<20x128xf32>
    %cst_55 = arith.constant 0.000000e+00 : f32
    %56 = vector.broadcast %cst_55 : f32 to vector<20x128xf32>
    %57 = arith.maximumf %55, %56 : vector<20x128xf32>
    %58 = arith.truncf %57 : vector<20x128xf32> to vector<20x128xbf16>
    %c0_56 = arith.constant 0 : index
    %c0_57 = arith.constant 0 : index
    %c0_58 = arith.constant 0 : index
    %59 = vector.load %arg7[%c0_56, %c0_57, %c0_58] : memref<1x20x128xbf16, #tpu.memory_space<vmem>>, vector<1x20x128xbf16>
    %60 = vector.shape_cast %59 : vector<1x20x128xbf16> to vector<20x128xbf16>
    %61 = vector.shape_cast %58 : vector<20x128xbf16> to vector<1x20x128xbf16>
    tpu.vector_store %arg7[%c0_56, %c0_57, %c0_58], %61 {strides = array<i32>} : memref<1x20x128xbf16, #tpu.memory_space<vmem>>, vector<1x20x128xbf16>,
    return
  }
  func.func @transform_0(%arg0: i32) -> (i32, i32, i32) {
    %c0_i32 = arith.constant 0 : i32
    %c0_i32_0 = arith.constant 0 : i32
    %c0_i32_1 = arith.constant 0 : i32
    return %arg0, %c0_i32, %c0_i32_0 : i32, i32, i32
  }
  func.func @transform_1(%arg0: i32) -> (i32, i32, i32) {
    %c0_i32 = arith.constant 0 : i32
    %c0_i32_0 = arith.constant 0 : i32
    %c0_i32_1 = arith.constant 0 : i32
    return %arg0, %c0_i32, %c0_i32_0 : i32, i32, i32
  }
  func.func @transform_2(%arg0: i32) -> (i32, i32, i32) {
    %c0_i32 = arith.constant 0 : i32
    %c0_i32_0 = arith.constant 0 : i32
    %c0_i32_1 = arith.constant 0 : i32
    return %arg0, %c0_i32, %c0_i32_0 : i32, i32, i32
  }
  func.func @transform_3(%arg0: i32) -> (i32, i32, i32) {
    %c0_i32 = arith.constant 0 : i32
    %c0_i32_0 = arith.constant 0 : i32
    %c0_i32_1 = arith.constant 0 : i32
    return %arg0, %c0_i32, %c0_i32_0 : i32, i32, i32
  }
  func.func @transform_4(%arg0: i32) -> (i32, i32, i32) {
    %c0_i32 = arith.constant 0 : i32
    %c0_i32_0 = arith.constant 0 : i32
    %c0_i32_1 = arith.constant 0 : i32
    %c0_i32_2 = arith.constant 0 : i32
    return %c0_i32, %c0_i32_0, %c0_i32_1 : i32, i32, i32
  }
  func.func @transform_5(%arg0: i32) -> (i32, i32) {
    %c0_i32 = arith.constant 0 : i32
    %c0_i32_0 = arith.constant 0 : i32
    %c0_i32_1 = arith.constant 0 : i32
    return %c0_i32, %c0_i32_0 : i32, i32
  }
  func.func @transform_6(%arg0: i32) -> (i32, i32, i32) {
    %c0_i32 = arith.constant 0 : i32
    %c0_i32_0 = arith.constant 0 : i32
    %c0_i32_1 = arith.constant 0 : i32
    return %arg0, %c0_i32, %c0_i32_0 : i32, i32, i32
  }
}

module attributes {stable_mosaic.version = 11 : i64} {
  func.func @kernel(%arg0: i32, %arg1: memref<1x42x32xbf16, #tpu.memory_space<vmem>>, %arg2: memref<9x32x128xbf16, #tpu.memory_space<vmem>>, %arg3: memref<1x128xf32, #tpu.memory_space<vmem>>, %arg4: memref<1x24x128xbf16, #tpu.memory_space<vmem>>, %arg5: memref<1x24x128xbf16, #tpu.memory_space<vmem>>) attributes {dimension_semantics = [#tpu.dimension_semantics<parallel>], iteration_bounds = array<i64: 2>, scalar_prefetch = 0 : i64, scratch_operands = 0 : i64, tpu.core_type = #tpu.core_type<tc>, window_params = [{transform_indices = @transform_0, window_bounds = array<i64: 1, 42, 32>}, {pipeline_mode = #tpu.pipeline_mode<synchronous>, transform_indices = @transform_1, window_bounds = array<i64: 9, 32, 128>}, {pipeline_mode = #tpu.pipeline_mode<synchronous>, transform_indices = @transform_2, window_bounds = array<i64: 1, 128>}, {transform_indices = @transform_3, window_bounds = array<i64: 1, 24, 128>}, {transform_indices = @transform_4, window_bounds = array<i64: 1, 24, 128>}]} {
    %c0 = arith.constant 0 : index
    %c0_0 = arith.constant 0 : index
    %c0_1 = arith.constant 0 : index
    %0 = vector.load %arg1[%c0, %c0_0, %c0_1] : memref<1x42x32xbf16, #tpu.memory_space<vmem>>, vector<1x24x32xbf16>
    %1 = vector.shape_cast %0 : vector<1x24x32xbf16> to vector<24x32xbf16>
    %c0_2 = arith.constant 0 : index
    %c0_3 = arith.constant 0 : index
    %c0_4 = arith.constant 0 : index
    %2 = vector.load %arg2[%c0_2, %c0_3, %c0_4] : memref<9x32x128xbf16, #tpu.memory_space<vmem>>, vector<1x32x128xbf16>
    %3 = vector.shape_cast %2 : vector<1x32x128xbf16> to vector<32x128xbf16>
    %cst = arith.constant dense<0.000000e+00> : vector<24x128xf32>
    %4 = tpu.matmul %1, %3, %cst {dimension_numbers = #tpu.dot_dimension_numbers<[1], [0], [0], [1], [0, 0, 1, 1], [], []>} : vector<24x32xbf16>, vector<32x128xbf16>, vector<24x128xf32> -> vector<24x128xf32>
    %c0_5 = arith.constant 0 : index
    %c1 = arith.constant 1 : index
    %c0_6 = arith.constant 0 : index
    %5 = vector.load %arg1[%c0_5, %c1, %c0_6] : memref<1x42x32xbf16, #tpu.memory_space<vmem>>, vector<1x24x32xbf16>
    %6 = vector.shape_cast %5 : vector<1x24x32xbf16> to vector<24x32xbf16>
    %c1_7 = arith.constant 1 : index
    %c0_8 = arith.constant 0 : index
    %c0_9 = arith.constant 0 : index
    %7 = vector.load %arg2[%c1_7, %c0_8, %c0_9] : memref<9x32x128xbf16, #tpu.memory_space<vmem>>, vector<1x32x128xbf16>
    %8 = vector.shape_cast %7 : vector<1x32x128xbf16> to vector<32x128xbf16>
    %cst_10 = arith.constant dense<0.000000e+00> : vector<24x128xf32>
    %9 = tpu.matmul %6, %8, %cst_10 {dimension_numbers = #tpu.dot_dimension_numbers<[1], [0], [0], [1], [0, 0, 1, 1], [], []>} : vector<24x32xbf16>, vector<32x128xbf16>, vector<24x128xf32> -> vector<24x128xf32>
    %10 = arith.addf %4, %9 : vector<24x128xf32>
    %c0_11 = arith.constant 0 : index
    %c2 = arith.constant 2 : index
    %c0_12 = arith.constant 0 : index
    %11 = vector.load %arg1[%c0_11, %c2, %c0_12] : memref<1x42x32xbf16, #tpu.memory_space<vmem>>, vector<1x24x32xbf16>
    %12 = vector.shape_cast %11 : vector<1x24x32xbf16> to vector<24x32xbf16>
    %c2_13 = arith.constant 2 : index
    %c0_14 = arith.constant 0 : index
    %c0_15 = arith.constant 0 : index
    %13 = vector.load %arg2[%c2_13, %c0_14, %c0_15] : memref<9x32x128xbf16, #tpu.memory_space<vmem>>, vector<1x32x128xbf16>
    %14 = vector.shape_cast %13 : vector<1x32x128xbf16> to vector<32x128xbf16>
    %cst_16 = arith.constant dense<0.000000e+00> : vector<24x128xf32>
    %15 = tpu.matmul %12, %14, %cst_16 {dimension_numbers = #tpu.dot_dimension_numbers<[1], [0], [0], [1], [0, 0, 1, 1], [], []>} : vector<24x32xbf16>, vector<32x128xbf16>, vector<24x128xf32> -> vector<24x128xf32>
    %16 = arith.addf %10, %15 : vector<24x128xf32>
    %c0_17 = arith.constant 0 : index
    %c6 = arith.constant 6 : index
    %c0_18 = arith.constant 0 : index
    %17 = vector.load %arg1[%c0_17, %c6, %c0_18] : memref<1x42x32xbf16, #tpu.memory_space<vmem>>, vector<1x24x32xbf16>
    %18 = vector.shape_cast %17 : vector<1x24x32xbf16> to vector<24x32xbf16>
    %c3 = arith.constant 3 : index
    %c0_19 = arith.constant 0 : index
    %c0_20 = arith.constant 0 : index
    %19 = vector.load %arg2[%c3, %c0_19, %c0_20] : memref<9x32x128xbf16, #tpu.memory_space<vmem>>, vector<1x32x128xbf16>
    %20 = vector.shape_cast %19 : vector<1x32x128xbf16> to vector<32x128xbf16>
    %cst_21 = arith.constant dense<0.000000e+00> : vector<24x128xf32>
    %21 = tpu.matmul %18, %20, %cst_21 {dimension_numbers = #tpu.dot_dimension_numbers<[1], [0], [0], [1], [0, 0, 1, 1], [], []>} : vector<24x32xbf16>, vector<32x128xbf16>, vector<24x128xf32> -> vector<24x128xf32>
    %22 = arith.addf %16, %21 : vector<24x128xf32>
    %c0_22 = arith.constant 0 : index
    %c7 = arith.constant 7 : index
    %c0_23 = arith.constant 0 : index
    %23 = vector.load %arg1[%c0_22, %c7, %c0_23] : memref<1x42x32xbf16, #tpu.memory_space<vmem>>, vector<1x24x32xbf16>
    %24 = vector.shape_cast %23 : vector<1x24x32xbf16> to vector<24x32xbf16>
    %c4 = arith.constant 4 : index
    %c0_24 = arith.constant 0 : index
    %c0_25 = arith.constant 0 : index
    %25 = vector.load %arg2[%c4, %c0_24, %c0_25] : memref<9x32x128xbf16, #tpu.memory_space<vmem>>, vector<1x32x128xbf16>
    %26 = vector.shape_cast %25 : vector<1x32x128xbf16> to vector<32x128xbf16>
    %cst_26 = arith.constant dense<0.000000e+00> : vector<24x128xf32>
    %27 = tpu.matmul %24, %26, %cst_26 {dimension_numbers = #tpu.dot_dimension_numbers<[1], [0], [0], [1], [0, 0, 1, 1], [], []>} : vector<24x32xbf16>, vector<32x128xbf16>, vector<24x128xf32> -> vector<24x128xf32>
    %28 = arith.addf %22, %27 : vector<24x128xf32>
    %c0_27 = arith.constant 0 : index
    %c8 = arith.constant 8 : index
    %c0_28 = arith.constant 0 : index
    %29 = vector.load %arg1[%c0_27, %c8, %c0_28] : memref<1x42x32xbf16, #tpu.memory_space<vmem>>, vector<1x24x32xbf16>
    %30 = vector.shape_cast %29 : vector<1x24x32xbf16> to vector<24x32xbf16>
    %c5 = arith.constant 5 : index
    %c0_29 = arith.constant 0 : index
    %c0_30 = arith.constant 0 : index
    %31 = vector.load %arg2[%c5, %c0_29, %c0_30] : memref<9x32x128xbf16, #tpu.memory_space<vmem>>, vector<1x32x128xbf16>
    %32 = vector.shape_cast %31 : vector<1x32x128xbf16> to vector<32x128xbf16>
    %cst_31 = arith.constant dense<0.000000e+00> : vector<24x128xf32>
    %33 = tpu.matmul %30, %32, %cst_31 {dimension_numbers = #tpu.dot_dimension_numbers<[1], [0], [0], [1], [0, 0, 1, 1], [], []>} : vector<24x32xbf16>, vector<32x128xbf16>, vector<24x128xf32> -> vector<24x128xf32>
    %34 = arith.addf %28, %33 : vector<24x128xf32>
    %c0_32 = arith.constant 0 : index
    %c12 = arith.constant 12 : index
    %c0_33 = arith.constant 0 : index
    %35 = vector.load %arg1[%c0_32, %c12, %c0_33] : memref<1x42x32xbf16, #tpu.memory_space<vmem>>, vector<1x24x32xbf16>
    %36 = vector.shape_cast %35 : vector<1x24x32xbf16> to vector<24x32xbf16>
    %c6_34 = arith.constant 6 : index
    %c0_35 = arith.constant 0 : index
    %c0_36 = arith.constant 0 : index
    %37 = vector.load %arg2[%c6_34, %c0_35, %c0_36] : memref<9x32x128xbf16, #tpu.memory_space<vmem>>, vector<1x32x128xbf16>
    %38 = vector.shape_cast %37 : vector<1x32x128xbf16> to vector<32x128xbf16>
    %cst_37 = arith.constant dense<0.000000e+00> : vector<24x128xf32>
    %39 = tpu.matmul %36, %38, %cst_37 {dimension_numbers = #tpu.dot_dimension_numbers<[1], [0], [0], [1], [0, 0, 1, 1], [], []>} : vector<24x32xbf16>, vector<32x128xbf16>, vector<24x128xf32> -> vector<24x128xf32>
    %40 = arith.addf %34, %39 : vector<24x128xf32>
    %c0_38 = arith.constant 0 : index
    %c13 = arith.constant 13 : index
    %c0_39 = arith.constant 0 : index
    %41 = vector.load %arg1[%c0_38, %c13, %c0_39] : memref<1x42x32xbf16, #tpu.memory_space<vmem>>, vector<1x24x32xbf16>
    %42 = vector.shape_cast %41 : vector<1x24x32xbf16> to vector<24x32xbf16>
    %c7_40 = arith.constant 7 : index
    %c0_41 = arith.constant 0 : index
    %c0_42 = arith.constant 0 : index
    %43 = vector.load %arg2[%c7_40, %c0_41, %c0_42] : memref<9x32x128xbf16, #tpu.memory_space<vmem>>, vector<1x32x128xbf16>
    %44 = vector.shape_cast %43 : vector<1x32x128xbf16> to vector<32x128xbf16>
    %cst_43 = arith.constant dense<0.000000e+00> : vector<24x128xf32>
    %45 = tpu.matmul %42, %44, %cst_43 {dimension_numbers = #tpu.dot_dimension_numbers<[1], [0], [0], [1], [0, 0, 1, 1], [], []>} : vector<24x32xbf16>, vector<32x128xbf16>, vector<24x128xf32> -> vector<24x128xf32>
    %46 = arith.addf %40, %45 : vector<24x128xf32>
    %c0_44 = arith.constant 0 : index
    %c14 = arith.constant 14 : index
    %c0_45 = arith.constant 0 : index
    %47 = vector.load %arg1[%c0_44, %c14, %c0_45] : memref<1x42x32xbf16, #tpu.memory_space<vmem>>, vector<1x24x32xbf16>
    %48 = vector.shape_cast %47 : vector<1x24x32xbf16> to vector<24x32xbf16>
    %c8_46 = arith.constant 8 : index
    %c0_47 = arith.constant 0 : index
    %c0_48 = arith.constant 0 : index
    %49 = vector.load %arg2[%c8_46, %c0_47, %c0_48] : memref<9x32x128xbf16, #tpu.memory_space<vmem>>, vector<1x32x128xbf16>
    %50 = vector.shape_cast %49 : vector<1x32x128xbf16> to vector<32x128xbf16>
    %cst_49 = arith.constant dense<0.000000e+00> : vector<24x128xf32>
    %51 = tpu.matmul %48, %50, %cst_49 {dimension_numbers = #tpu.dot_dimension_numbers<[1], [0], [0], [1], [0, 0, 1, 1], [], []>} : vector<24x32xbf16>, vector<32x128xbf16>, vector<24x128xf32> -> vector<24x128xf32>
    %52 = arith.addf %46, %51 : vector<24x128xf32>
    %c0_50 = arith.constant 0 : index
    %c0_51 = arith.constant 0 : index
    %53 = vector.load %arg3[%c0_50, %c0_51] : memref<1x128xf32, #tpu.memory_space<vmem>>, vector<1x128xf32>
    %54 = vector.broadcast %53 : vector<1x128xf32> to vector<24x128xf32>
    %55 = arith.addf %52, %54 : vector<24x128xf32>
    %c0_52 = arith.constant 0 : index
    %c0_53 = arith.constant 0 : index
    %c0_54 = arith.constant 0 : index
    %56 = vector.load %arg4[%c0_52, %c0_53, %c0_54] : memref<1x24x128xbf16, #tpu.memory_space<vmem>>, vector<1x24x128xbf16>
    %57 = vector.shape_cast %56 : vector<1x24x128xbf16> to vector<24x128xbf16>
    %58 = arith.extf %57 : vector<24x128xbf16> to vector<24x128xf32>
    %59 = arith.addf %55, %58 : vector<24x128xf32>
    %60 = arith.truncf %59 : vector<24x128xf32> to vector<24x128xbf16>
    %c0_55 = arith.constant 0 : index
    %c0_56 = arith.constant 0 : index
    %c0_57 = arith.constant 0 : index
    %61 = vector.load %arg5[%c0_55, %c0_56, %c0_57] : memref<1x24x128xbf16, #tpu.memory_space<vmem>>, vector<1x24x128xbf16>
    %62 = vector.shape_cast %61 : vector<1x24x128xbf16> to vector<24x128xbf16>
    %63 = vector.shape_cast %60 : vector<24x128xbf16> to vector<1x24x128xbf16>
    tpu.vector_store %arg5[%c0_55, %c0_56, %c0_57], %63 {strides = array<i32>} : memref<1x24x128xbf16, #tpu.memory_space<vmem>>, vector<1x24x128xbf16>,
    return
  }
  func.func @transform_0(%arg0: i32) -> (i32, i32, i32) {
    %c0_i32 = arith.constant 0 : i32
    %c0_i32_0 = arith.constant 0 : i32
    %c0_i32_1 = arith.constant 0 : i32
    return %arg0, %c0_i32, %c0_i32_0 : i32, i32, i32
  }
  func.func @transform_1(%arg0: i32) -> (i32, i32, i32) {
    %c0_i32 = arith.constant 0 : i32
    %c0_i32_0 = arith.constant 0 : i32
    %c0_i32_1 = arith.constant 0 : i32
    %c0_i32_2 = arith.constant 0 : i32
    return %c0_i32, %c0_i32_0, %c0_i32_1 : i32, i32, i32
  }
  func.func @transform_2(%arg0: i32) -> (i32, i32) {
    %c0_i32 = arith.constant 0 : i32
    %c0_i32_0 = arith.constant 0 : i32
    %c0_i32_1 = arith.constant 0 : i32
    return %c0_i32, %c0_i32_0 : i32, i32
  }
  func.func @transform_3(%arg0: i32) -> (i32, i32, i32) {
    %c0_i32 = arith.constant 0 : i32
    %c0_i32_0 = arith.constant 0 : i32
    %c0_i32_1 = arith.constant 0 : i32
    return %arg0, %c0_i32, %c0_i32_0 : i32, i32, i32
  }
  func.func @transform_4(%arg0: i32) -> (i32, i32, i32) {
    %c0_i32 = arith.constant 0 : i32
    %c0_i32_0 = arith.constant 0 : i32
    %c0_i32_1 = arith.constant 0 : i32
    return %arg0, %c0_i32, %c0_i32_0 : i32, i32, i32
  }
}

module attributes {stable_mosaic.version = 11 : i64} {
  func.func @kernel(%arg0: i32, %arg1: memref<1x42x32xbf16, #tpu.memory_space<vmem>>, %arg2: memref<9x32x128xbf16, #tpu.memory_space<vmem>>, %arg3: memref<1x128xf32, #tpu.memory_space<vmem>>, %arg4: memref<1x24x128xbf16, #tpu.memory_space<vmem>>) attributes {dimension_semantics = [#tpu.dimension_semantics<parallel>], iteration_bounds = array<i64: 2>, scalar_prefetch = 0 : i64, scratch_operands = 0 : i64, tpu.core_type = #tpu.core_type<tc>, window_params = [{transform_indices = @transform_0, window_bounds = array<i64: 1, 42, 32>}, {pipeline_mode = #tpu.pipeline_mode<synchronous>, transform_indices = @transform_1, window_bounds = array<i64: 9, 32, 128>}, {pipeline_mode = #tpu.pipeline_mode<synchronous>, transform_indices = @transform_2, window_bounds = array<i64: 1, 128>}, {transform_indices = @transform_3, window_bounds = array<i64: 1, 24, 128>}]} {
    %c0 = arith.constant 0 : index
    %c0_0 = arith.constant 0 : index
    %c0_1 = arith.constant 0 : index
    %0 = vector.load %arg1[%c0, %c0_0, %c0_1] : memref<1x42x32xbf16, #tpu.memory_space<vmem>>, vector<1x24x32xbf16>
    %1 = vector.shape_cast %0 : vector<1x24x32xbf16> to vector<24x32xbf16>
    %c0_2 = arith.constant 0 : index
    %c0_3 = arith.constant 0 : index
    %c0_4 = arith.constant 0 : index
    %2 = vector.load %arg2[%c0_2, %c0_3, %c0_4] : memref<9x32x128xbf16, #tpu.memory_space<vmem>>, vector<1x32x128xbf16>
    %3 = vector.shape_cast %2 : vector<1x32x128xbf16> to vector<32x128xbf16>
    %cst = arith.constant dense<0.000000e+00> : vector<24x128xf32>
    %4 = tpu.matmul %1, %3, %cst {dimension_numbers = #tpu.dot_dimension_numbers<[1], [0], [0], [1], [0, 0, 1, 1], [], []>} : vector<24x32xbf16>, vector<32x128xbf16>, vector<24x128xf32> -> vector<24x128xf32>
    %c0_5 = arith.constant 0 : index
    %c1 = arith.constant 1 : index
    %c0_6 = arith.constant 0 : index
    %5 = vector.load %arg1[%c0_5, %c1, %c0_6] : memref<1x42x32xbf16, #tpu.memory_space<vmem>>, vector<1x24x32xbf16>
    %6 = vector.shape_cast %5 : vector<1x24x32xbf16> to vector<24x32xbf16>
    %c1_7 = arith.constant 1 : index
    %c0_8 = arith.constant 0 : index
    %c0_9 = arith.constant 0 : index
    %7 = vector.load %arg2[%c1_7, %c0_8, %c0_9] : memref<9x32x128xbf16, #tpu.memory_space<vmem>>, vector<1x32x128xbf16>
    %8 = vector.shape_cast %7 : vector<1x32x128xbf16> to vector<32x128xbf16>
    %cst_10 = arith.constant dense<0.000000e+00> : vector<24x128xf32>
    %9 = tpu.matmul %6, %8, %cst_10 {dimension_numbers = #tpu.dot_dimension_numbers<[1], [0], [0], [1], [0, 0, 1, 1], [], []>} : vector<24x32xbf16>, vector<32x128xbf16>, vector<24x128xf32> -> vector<24x128xf32>
    %10 = arith.addf %4, %9 : vector<24x128xf32>
    %c0_11 = arith.constant 0 : index
    %c2 = arith.constant 2 : index
    %c0_12 = arith.constant 0 : index
    %11 = vector.load %arg1[%c0_11, %c2, %c0_12] : memref<1x42x32xbf16, #tpu.memory_space<vmem>>, vector<1x24x32xbf16>
    %12 = vector.shape_cast %11 : vector<1x24x32xbf16> to vector<24x32xbf16>
    %c2_13 = arith.constant 2 : index
    %c0_14 = arith.constant 0 : index
    %c0_15 = arith.constant 0 : index
    %13 = vector.load %arg2[%c2_13, %c0_14, %c0_15] : memref<9x32x128xbf16, #tpu.memory_space<vmem>>, vector<1x32x128xbf16>
    %14 = vector.shape_cast %13 : vector<1x32x128xbf16> to vector<32x128xbf16>
    %cst_16 = arith.constant dense<0.000000e+00> : vector<24x128xf32>
    %15 = tpu.matmul %12, %14, %cst_16 {dimension_numbers = #tpu.dot_dimension_numbers<[1], [0], [0], [1], [0, 0, 1, 1], [], []>} : vector<24x32xbf16>, vector<32x128xbf16>, vector<24x128xf32> -> vector<24x128xf32>
    %16 = arith.addf %10, %15 : vector<24x128xf32>
    %c0_17 = arith.constant 0 : index
    %c6 = arith.constant 6 : index
    %c0_18 = arith.constant 0 : index
    %17 = vector.load %arg1[%c0_17, %c6, %c0_18] : memref<1x42x32xbf16, #tpu.memory_space<vmem>>, vector<1x24x32xbf16>
    %18 = vector.shape_cast %17 : vector<1x24x32xbf16> to vector<24x32xbf16>
    %c3 = arith.constant 3 : index
    %c0_19 = arith.constant 0 : index
    %c0_20 = arith.constant 0 : index
    %19 = vector.load %arg2[%c3, %c0_19, %c0_20] : memref<9x32x128xbf16, #tpu.memory_space<vmem>>, vector<1x32x128xbf16>
    %20 = vector.shape_cast %19 : vector<1x32x128xbf16> to vector<32x128xbf16>
    %cst_21 = arith.constant dense<0.000000e+00> : vector<24x128xf32>
    %21 = tpu.matmul %18, %20, %cst_21 {dimension_numbers = #tpu.dot_dimension_numbers<[1], [0], [0], [1], [0, 0, 1, 1], [], []>} : vector<24x32xbf16>, vector<32x128xbf16>, vector<24x128xf32> -> vector<24x128xf32>
    %22 = arith.addf %16, %21 : vector<24x128xf32>
    %c0_22 = arith.constant 0 : index
    %c7 = arith.constant 7 : index
    %c0_23 = arith.constant 0 : index
    %23 = vector.load %arg1[%c0_22, %c7, %c0_23] : memref<1x42x32xbf16, #tpu.memory_space<vmem>>, vector<1x24x32xbf16>
    %24 = vector.shape_cast %23 : vector<1x24x32xbf16> to vector<24x32xbf16>
    %c4 = arith.constant 4 : index
    %c0_24 = arith.constant 0 : index
    %c0_25 = arith.constant 0 : index
    %25 = vector.load %arg2[%c4, %c0_24, %c0_25] : memref<9x32x128xbf16, #tpu.memory_space<vmem>>, vector<1x32x128xbf16>
    %26 = vector.shape_cast %25 : vector<1x32x128xbf16> to vector<32x128xbf16>
    %cst_26 = arith.constant dense<0.000000e+00> : vector<24x128xf32>
    %27 = tpu.matmul %24, %26, %cst_26 {dimension_numbers = #tpu.dot_dimension_numbers<[1], [0], [0], [1], [0, 0, 1, 1], [], []>} : vector<24x32xbf16>, vector<32x128xbf16>, vector<24x128xf32> -> vector<24x128xf32>
    %28 = arith.addf %22, %27 : vector<24x128xf32>
    %c0_27 = arith.constant 0 : index
    %c8 = arith.constant 8 : index
    %c0_28 = arith.constant 0 : index
    %29 = vector.load %arg1[%c0_27, %c8, %c0_28] : memref<1x42x32xbf16, #tpu.memory_space<vmem>>, vector<1x24x32xbf16>
    %30 = vector.shape_cast %29 : vector<1x24x32xbf16> to vector<24x32xbf16>
    %c5 = arith.constant 5 : index
    %c0_29 = arith.constant 0 : index
    %c0_30 = arith.constant 0 : index
    %31 = vector.load %arg2[%c5, %c0_29, %c0_30] : memref<9x32x128xbf16, #tpu.memory_space<vmem>>, vector<1x32x128xbf16>
    %32 = vector.shape_cast %31 : vector<1x32x128xbf16> to vector<32x128xbf16>
    %cst_31 = arith.constant dense<0.000000e+00> : vector<24x128xf32>
    %33 = tpu.matmul %30, %32, %cst_31 {dimension_numbers = #tpu.dot_dimension_numbers<[1], [0], [0], [1], [0, 0, 1, 1], [], []>} : vector<24x32xbf16>, vector<32x128xbf16>, vector<24x128xf32> -> vector<24x128xf32>
    %34 = arith.addf %28, %33 : vector<24x128xf32>
    %c0_32 = arith.constant 0 : index
    %c12 = arith.constant 12 : index
    %c0_33 = arith.constant 0 : index
    %35 = vector.load %arg1[%c0_32, %c12, %c0_33] : memref<1x42x32xbf16, #tpu.memory_space<vmem>>, vector<1x24x32xbf16>
    %36 = vector.shape_cast %35 : vector<1x24x32xbf16> to vector<24x32xbf16>
    %c6_34 = arith.constant 6 : index
    %c0_35 = arith.constant 0 : index
    %c0_36 = arith.constant 0 : index
    %37 = vector.load %arg2[%c6_34, %c0_35, %c0_36] : memref<9x32x128xbf16, #tpu.memory_space<vmem>>, vector<1x32x128xbf16>
    %38 = vector.shape_cast %37 : vector<1x32x128xbf16> to vector<32x128xbf16>
    %cst_37 = arith.constant dense<0.000000e+00> : vector<24x128xf32>
    %39 = tpu.matmul %36, %38, %cst_37 {dimension_numbers = #tpu.dot_dimension_numbers<[1], [0], [0], [1], [0, 0, 1, 1], [], []>} : vector<24x32xbf16>, vector<32x128xbf16>, vector<24x128xf32> -> vector<24x128xf32>
    %40 = arith.addf %34, %39 : vector<24x128xf32>
    %c0_38 = arith.constant 0 : index
    %c13 = arith.constant 13 : index
    %c0_39 = arith.constant 0 : index
    %41 = vector.load %arg1[%c0_38, %c13, %c0_39] : memref<1x42x32xbf16, #tpu.memory_space<vmem>>, vector<1x24x32xbf16>
    %42 = vector.shape_cast %41 : vector<1x24x32xbf16> to vector<24x32xbf16>
    %c7_40 = arith.constant 7 : index
    %c0_41 = arith.constant 0 : index
    %c0_42 = arith.constant 0 : index
    %43 = vector.load %arg2[%c7_40, %c0_41, %c0_42] : memref<9x32x128xbf16, #tpu.memory_space<vmem>>, vector<1x32x128xbf16>
    %44 = vector.shape_cast %43 : vector<1x32x128xbf16> to vector<32x128xbf16>
    %cst_43 = arith.constant dense<0.000000e+00> : vector<24x128xf32>
    %45 = tpu.matmul %42, %44, %cst_43 {dimension_numbers = #tpu.dot_dimension_numbers<[1], [0], [0], [1], [0, 0, 1, 1], [], []>} : vector<24x32xbf16>, vector<32x128xbf16>, vector<24x128xf32> -> vector<24x128xf32>
    %46 = arith.addf %40, %45 : vector<24x128xf32>
    %c0_44 = arith.constant 0 : index
    %c14 = arith.constant 14 : index
    %c0_45 = arith.constant 0 : index
    %47 = vector.load %arg1[%c0_44, %c14, %c0_45] : memref<1x42x32xbf16, #tpu.memory_space<vmem>>, vector<1x24x32xbf16>
    %48 = vector.shape_cast %47 : vector<1x24x32xbf16> to vector<24x32xbf16>
    %c8_46 = arith.constant 8 : index
    %c0_47 = arith.constant 0 : index
    %c0_48 = arith.constant 0 : index
    %49 = vector.load %arg2[%c8_46, %c0_47, %c0_48] : memref<9x32x128xbf16, #tpu.memory_space<vmem>>, vector<1x32x128xbf16>
    %50 = vector.shape_cast %49 : vector<1x32x128xbf16> to vector<32x128xbf16>
    %cst_49 = arith.constant dense<0.000000e+00> : vector<24x128xf32>
    %51 = tpu.matmul %48, %50, %cst_49 {dimension_numbers = #tpu.dot_dimension_numbers<[1], [0], [0], [1], [0, 0, 1, 1], [], []>} : vector<24x32xbf16>, vector<32x128xbf16>, vector<24x128xf32> -> vector<24x128xf32>
    %52 = arith.addf %46, %51 : vector<24x128xf32>
    %c0_50 = arith.constant 0 : index
    %c0_51 = arith.constant 0 : index
    %53 = vector.load %arg3[%c0_50, %c0_51] : memref<1x128xf32, #tpu.memory_space<vmem>>, vector<1x128xf32>
    %54 = vector.broadcast %53 : vector<1x128xf32> to vector<24x128xf32>
    %55 = arith.addf %52, %54 : vector<24x128xf32>
    %cst_52 = arith.constant 0.000000e+00 : f32
    %56 = vector.broadcast %cst_52 : f32 to vector<24x128xf32>
    %57 = arith.maximumf %55, %56 : vector<24x128xf32>
    %58 = arith.truncf %57 : vector<24x128xf32> to vector<24x128xbf16>
    %c0_53 = arith.constant 0 : index
    %c0_54 = arith.constant 0 : index
    %c0_55 = arith.constant 0 : index
    %59 = vector.load %arg4[%c0_53, %c0_54, %c0_55] : memref<1x24x128xbf16, #tpu.memory_space<vmem>>, vector<1x24x128xbf16>
    %60 = vector.shape_cast %59 : vector<1x24x128xbf16> to vector<24x128xbf16>
    %61 = vector.shape_cast %58 : vector<24x128xbf16> to vector<1x24x128xbf16>
    tpu.vector_store %arg4[%c0_53, %c0_54, %c0_55], %61 {strides = array<i32>} : memref<1x24x128xbf16, #tpu.memory_space<vmem>>, vector<1x24x128xbf16>,
    return
  }
  func.func @transform_0(%arg0: i32) -> (i32, i32, i32) {
    %c0_i32 = arith.constant 0 : i32
    %c0_i32_0 = arith.constant 0 : i32
    %c0_i32_1 = arith.constant 0 : i32
    return %arg0, %c0_i32, %c0_i32_0 : i32, i32, i32
  }
  func.func @transform_1(%arg0: i32) -> (i32, i32, i32) {
    %c0_i32 = arith.constant 0 : i32
    %c0_i32_0 = arith.constant 0 : i32
    %c0_i32_1 = arith.constant 0 : i32
    %c0_i32_2 = arith.constant 0 : i32
    return %c0_i32, %c0_i32_0, %c0_i32_1 : i32, i32, i32
  }
  func.func @transform_2(%arg0: i32) -> (i32, i32) {
    %c0_i32 = arith.constant 0 : i32
    %c0_i32_0 = arith.constant 0 : i32
    %c0_i32_1 = arith.constant 0 : i32
    return %c0_i32, %c0_i32_0 : i32, i32
  }
  func.func @transform_3(%arg0: i32) -> (i32, i32, i32) {
    %c0_i32 = arith.constant 0 : i32
    %c0_i32_0 = arith.constant 0 : i32
    %c0_i32_1 = arith.constant 0 : i32
    return %arg0, %c0_i32, %c0_i32_0 : i32, i32, i32
  }
}

module attributes {stable_mosaic.version = 11 : i64} {
  func.func @_matmul_bias_kernel(%arg0: i32, %arg1: memref<8x32xbf16, #tpu.memory_space<vmem>>, %arg2: memref<32x128xbf16, #tpu.memory_space<vmem>>, %arg3: memref<1x128xf32, #tpu.memory_space<vmem>>, %arg4: memref<8x128xbf16, #tpu.memory_space<vmem>>) attributes {dimension_semantics = [#tpu.dimension_semantics<parallel>], iteration_bounds = array<i64: 2>, scalar_prefetch = 0 : i64, scratch_operands = 0 : i64, tpu.core_type = #tpu.core_type<tc>, window_params = [{transform_indices = @transform_0, window_bounds = array<i64: 8, 32>}, {pipeline_mode = #tpu.pipeline_mode<synchronous>, transform_indices = @transform_1, window_bounds = array<i64: 32, 128>}, {pipeline_mode = #tpu.pipeline_mode<synchronous>, transform_indices = @transform_2, window_bounds = array<i64: 1, 128>}, {transform_indices = @transform_3, window_bounds = array<i64: 8, 128>}]} {
    %c0 = arith.constant 0 : index
    %c0_0 = arith.constant 0 : index
    %0 = vector.load %arg1[%c0, %c0_0] : memref<8x32xbf16, #tpu.memory_space<vmem>>, vector<8x32xbf16>
    %c0_1 = arith.constant 0 : index
    %c0_2 = arith.constant 0 : index
    %1 = vector.load %arg2[%c0_1, %c0_2] : memref<32x128xbf16, #tpu.memory_space<vmem>>, vector<32x128xbf16>
    %cst = arith.constant dense<0.000000e+00> : vector<8x128xf32>
    %2 = tpu.matmul %0, %1, %cst {dimension_numbers = #tpu.dot_dimension_numbers<[1], [0], [0], [1], [0, 0, 1, 1], [], []>} : vector<8x32xbf16>, vector<32x128xbf16>, vector<8x128xf32> -> vector<8x128xf32>
    %c0_3 = arith.constant 0 : index
    %c0_4 = arith.constant 0 : index
    %3 = vector.load %arg3[%c0_3, %c0_4] : memref<1x128xf32, #tpu.memory_space<vmem>>, vector<1x128xf32>
    %4 = vector.broadcast %3 : vector<1x128xf32> to vector<8x128xf32>
    %5 = arith.addf %2, %4 : vector<8x128xf32>
    %6 = arith.truncf %5 : vector<8x128xf32> to vector<8x128xbf16>
    %c0_5 = arith.constant 0 : index
    %c0_6 = arith.constant 0 : index
    %7 = vector.load %arg4[%c0_5, %c0_6] : memref<8x128xbf16, #tpu.memory_space<vmem>>, vector<8x128xbf16>
    tpu.vector_store %arg4[%c0_5, %c0_6], %6 {strides = array<i32>} : memref<8x128xbf16, #tpu.memory_space<vmem>>, vector<8x128xbf16>,
    return
  }
  func.func @transform_0(%arg0: i32) -> (i32, i32) {
    %c0_i32 = arith.constant 0 : i32
    %c0_i32_0 = arith.constant 0 : i32
    return %arg0, %c0_i32 : i32, i32
  }
  func.func @transform_1(%arg0: i32) -> (i32, i32) {
    %c0_i32 = arith.constant 0 : i32
    %c0_i32_0 = arith.constant 0 : i32
    %c0_i32_1 = arith.constant 0 : i32
    return %c0_i32, %c0_i32_0 : i32, i32
  }
  func.func @transform_2(%arg0: i32) -> (i32, i32) {
    %c0_i32 = arith.constant 0 : i32
    %c0_i32_0 = arith.constant 0 : i32
    %c0_i32_1 = arith.constant 0 : i32
    return %c0_i32, %c0_i32_0 : i32, i32
  }
  func.func @transform_3(%arg0: i32) -> (i32, i32) {
    %c0_i32 = arith.constant 0 : i32
    %c0_i32_0 = arith.constant 0 : i32
    return %arg0, %c0_i32 : i32, i32
  }
}

module attributes {stable_mosaic.version = 11 : i64} {
  func.func @kernel(%arg0: i32, %arg1: memref<1x12x32xbf16, #tpu.memory_space<vmem>>, %arg2: memref<1x12x32xbf16, #tpu.memory_space<vmem>>, %arg3: memref<1x12x32xbf16, #tpu.memory_space<vmem>>, %arg4: memref<1x12x32xbf16, #tpu.memory_space<vmem>>, %arg5: memref<9x32x128xbf16, #tpu.memory_space<vmem>>, %arg6: memref<1x128xf32, #tpu.memory_space<vmem>>, %arg7: memref<1x6x128xbf16, #tpu.memory_space<vmem>>) attributes {dimension_semantics = [#tpu.dimension_semantics<parallel>], iteration_bounds = array<i64: 2>, scalar_prefetch = 0 : i64, scratch_operands = 0 : i64, tpu.core_type = #tpu.core_type<tc>, window_params = [{transform_indices = @transform_0, window_bounds = array<i64: 1, 12, 32>}, {transform_indices = @transform_1, window_bounds = array<i64: 1, 12, 32>}, {transform_indices = @transform_2, window_bounds = array<i64: 1, 12, 32>}, {transform_indices = @transform_3, window_bounds = array<i64: 1, 12, 32>}, {pipeline_mode = #tpu.pipeline_mode<synchronous>, transform_indices = @transform_4, window_bounds = array<i64: 9, 32, 128>}, {pipeline_mode = #tpu.pipeline_mode<synchronous>, transform_indices = @transform_5, window_bounds = array<i64: 1, 128>}, {transform_indices = @transform_6, window_bounds = array<i64: 1, 6, 128>}]} {
    %c0 = arith.constant 0 : index
    %c0_0 = arith.constant 0 : index
    %c0_1 = arith.constant 0 : index
    %0 = vector.load %arg1[%c0, %c0_0, %c0_1] : memref<1x12x32xbf16, #tpu.memory_space<vmem>>, vector<1x6x32xbf16>
    %1 = vector.shape_cast %0 : vector<1x6x32xbf16> to vector<6x32xbf16>
    %c0_2 = arith.constant 0 : index
    %c0_3 = arith.constant 0 : index
    %c0_4 = arith.constant 0 : index
    %2 = vector.load %arg5[%c0_2, %c0_3, %c0_4] : memref<9x32x128xbf16, #tpu.memory_space<vmem>>, vector<1x32x128xbf16>
    %3 = vector.shape_cast %2 : vector<1x32x128xbf16> to vector<32x128xbf16>
    %cst = arith.constant dense<0.000000e+00> : vector<6x128xf32>
    %4 = tpu.matmul %1, %3, %cst {dimension_numbers = #tpu.dot_dimension_numbers<[1], [0], [0], [1], [0, 0, 1, 1], [], []>} : vector<6x32xbf16>, vector<32x128xbf16>, vector<6x128xf32> -> vector<6x128xf32>
    %c0_5 = arith.constant 0 : index
    %c0_6 = arith.constant 0 : index
    %c0_7 = arith.constant 0 : index
    %5 = vector.load %arg2[%c0_5, %c0_6, %c0_7] : memref<1x12x32xbf16, #tpu.memory_space<vmem>>, vector<1x6x32xbf16>
    %6 = vector.shape_cast %5 : vector<1x6x32xbf16> to vector<6x32xbf16>
    %c1 = arith.constant 1 : index
    %c0_8 = arith.constant 0 : index
    %c0_9 = arith.constant 0 : index
    %7 = vector.load %arg5[%c1, %c0_8, %c0_9] : memref<9x32x128xbf16, #tpu.memory_space<vmem>>, vector<1x32x128xbf16>
    %8 = vector.shape_cast %7 : vector<1x32x128xbf16> to vector<32x128xbf16>
    %cst_10 = arith.constant dense<0.000000e+00> : vector<6x128xf32>
    %9 = tpu.matmul %6, %8, %cst_10 {dimension_numbers = #tpu.dot_dimension_numbers<[1], [0], [0], [1], [0, 0, 1, 1], [], []>} : vector<6x32xbf16>, vector<32x128xbf16>, vector<6x128xf32> -> vector<6x128xf32>
    %10 = arith.addf %4, %9 : vector<6x128xf32>
    %c0_11 = arith.constant 0 : index
    %c1_12 = arith.constant 1 : index
    %c0_13 = arith.constant 0 : index
    %11 = vector.load %arg1[%c0_11, %c1_12, %c0_13] : memref<1x12x32xbf16, #tpu.memory_space<vmem>>, vector<1x6x32xbf16>
    %12 = vector.shape_cast %11 : vector<1x6x32xbf16> to vector<6x32xbf16>
    %c2 = arith.constant 2 : index
    %c0_14 = arith.constant 0 : index
    %c0_15 = arith.constant 0 : index
    %13 = vector.load %arg5[%c2, %c0_14, %c0_15] : memref<9x32x128xbf16, #tpu.memory_space<vmem>>, vector<1x32x128xbf16>
    %14 = vector.shape_cast %13 : vector<1x32x128xbf16> to vector<32x128xbf16>
    %cst_16 = arith.constant dense<0.000000e+00> : vector<6x128xf32>
    %15 = tpu.matmul %12, %14, %cst_16 {dimension_numbers = #tpu.dot_dimension_numbers<[1], [0], [0], [1], [0, 0, 1, 1], [], []>} : vector<6x32xbf16>, vector<32x128xbf16>, vector<6x128xf32> -> vector<6x128xf32>
    %16 = arith.addf %10, %15 : vector<6x128xf32>
    %c0_17 = arith.constant 0 : index
    %c0_18 = arith.constant 0 : index
    %c0_19 = arith.constant 0 : index
    %17 = vector.load %arg3[%c0_17, %c0_18, %c0_19] : memref<1x12x32xbf16, #tpu.memory_space<vmem>>, vector<1x6x32xbf16>
    %18 = vector.shape_cast %17 : vector<1x6x32xbf16> to vector<6x32xbf16>
    %c3 = arith.constant 3 : index
    %c0_20 = arith.constant 0 : index
    %c0_21 = arith.constant 0 : index
    %19 = vector.load %arg5[%c3, %c0_20, %c0_21] : memref<9x32x128xbf16, #tpu.memory_space<vmem>>, vector<1x32x128xbf16>
    %20 = vector.shape_cast %19 : vector<1x32x128xbf16> to vector<32x128xbf16>
    %cst_22 = arith.constant dense<0.000000e+00> : vector<6x128xf32>
    %21 = tpu.matmul %18, %20, %cst_22 {dimension_numbers = #tpu.dot_dimension_numbers<[1], [0], [0], [1], [0, 0, 1, 1], [], []>} : vector<6x32xbf16>, vector<32x128xbf16>, vector<6x128xf32> -> vector<6x128xf32>
    %22 = arith.addf %16, %21 : vector<6x128xf32>
    %c0_23 = arith.constant 0 : index
    %c0_24 = arith.constant 0 : index
    %c0_25 = arith.constant 0 : index
    %23 = vector.load %arg4[%c0_23, %c0_24, %c0_25] : memref<1x12x32xbf16, #tpu.memory_space<vmem>>, vector<1x6x32xbf16>
    %24 = vector.shape_cast %23 : vector<1x6x32xbf16> to vector<6x32xbf16>
    %c4 = arith.constant 4 : index
    %c0_26 = arith.constant 0 : index
    %c0_27 = arith.constant 0 : index
    %25 = vector.load %arg5[%c4, %c0_26, %c0_27] : memref<9x32x128xbf16, #tpu.memory_space<vmem>>, vector<1x32x128xbf16>
    %26 = vector.shape_cast %25 : vector<1x32x128xbf16> to vector<32x128xbf16>
    %cst_28 = arith.constant dense<0.000000e+00> : vector<6x128xf32>
    %27 = tpu.matmul %24, %26, %cst_28 {dimension_numbers = #tpu.dot_dimension_numbers<[1], [0], [0], [1], [0, 0, 1, 1], [], []>} : vector<6x32xbf16>, vector<32x128xbf16>, vector<6x128xf32> -> vector<6x128xf32>
    %28 = arith.addf %22, %27 : vector<6x128xf32>
    %c0_29 = arith.constant 0 : index
    %c1_30 = arith.constant 1 : index
    %c0_31 = arith.constant 0 : index
    %29 = vector.load %arg3[%c0_29, %c1_30, %c0_31] : memref<1x12x32xbf16, #tpu.memory_space<vmem>>, vector<1x6x32xbf16>
    %30 = vector.shape_cast %29 : vector<1x6x32xbf16> to vector<6x32xbf16>
    %c5 = arith.constant 5 : index
    %c0_32 = arith.constant 0 : index
    %c0_33 = arith.constant 0 : index
    %31 = vector.load %arg5[%c5, %c0_32, %c0_33] : memref<9x32x128xbf16, #tpu.memory_space<vmem>>, vector<1x32x128xbf16>
    %32 = vector.shape_cast %31 : vector<1x32x128xbf16> to vector<32x128xbf16>
    %cst_34 = arith.constant dense<0.000000e+00> : vector<6x128xf32>
    %33 = tpu.matmul %30, %32, %cst_34 {dimension_numbers = #tpu.dot_dimension_numbers<[1], [0], [0], [1], [0, 0, 1, 1], [], []>} : vector<6x32xbf16>, vector<32x128xbf16>, vector<6x128xf32> -> vector<6x128xf32>
    %34 = arith.addf %28, %33 : vector<6x128xf32>
    %c0_35 = arith.constant 0 : index
    %c3_36 = arith.constant 3 : index
    %c0_37 = arith.constant 0 : index
    %35 = vector.load %arg1[%c0_35, %c3_36, %c0_37] : memref<1x12x32xbf16, #tpu.memory_space<vmem>>, vector<1x6x32xbf16>
    %36 = vector.shape_cast %35 : vector<1x6x32xbf16> to vector<6x32xbf16>
    %c6 = arith.constant 6 : index
    %c0_38 = arith.constant 0 : index
    %c0_39 = arith.constant 0 : index
    %37 = vector.load %arg5[%c6, %c0_38, %c0_39] : memref<9x32x128xbf16, #tpu.memory_space<vmem>>, vector<1x32x128xbf16>
    %38 = vector.shape_cast %37 : vector<1x32x128xbf16> to vector<32x128xbf16>
    %cst_40 = arith.constant dense<0.000000e+00> : vector<6x128xf32>
    %39 = tpu.matmul %36, %38, %cst_40 {dimension_numbers = #tpu.dot_dimension_numbers<[1], [0], [0], [1], [0, 0, 1, 1], [], []>} : vector<6x32xbf16>, vector<32x128xbf16>, vector<6x128xf32> -> vector<6x128xf32>
    %40 = arith.addf %34, %39 : vector<6x128xf32>
    %c0_41 = arith.constant 0 : index
    %c3_42 = arith.constant 3 : index
    %c0_43 = arith.constant 0 : index
    %41 = vector.load %arg2[%c0_41, %c3_42, %c0_43] : memref<1x12x32xbf16, #tpu.memory_space<vmem>>, vector<1x6x32xbf16>
    %42 = vector.shape_cast %41 : vector<1x6x32xbf16> to vector<6x32xbf16>
    %c7 = arith.constant 7 : index
    %c0_44 = arith.constant 0 : index
    %c0_45 = arith.constant 0 : index
    %43 = vector.load %arg5[%c7, %c0_44, %c0_45] : memref<9x32x128xbf16, #tpu.memory_space<vmem>>, vector<1x32x128xbf16>
    %44 = vector.shape_cast %43 : vector<1x32x128xbf16> to vector<32x128xbf16>
    %cst_46 = arith.constant dense<0.000000e+00> : vector<6x128xf32>
    %45 = tpu.matmul %42, %44, %cst_46 {dimension_numbers = #tpu.dot_dimension_numbers<[1], [0], [0], [1], [0, 0, 1, 1], [], []>} : vector<6x32xbf16>, vector<32x128xbf16>, vector<6x128xf32> -> vector<6x128xf32>
    %46 = arith.addf %40, %45 : vector<6x128xf32>
    %c0_47 = arith.constant 0 : index
    %c4_48 = arith.constant 4 : index
    %c0_49 = arith.constant 0 : index
    %47 = vector.load %arg1[%c0_47, %c4_48, %c0_49] : memref<1x12x32xbf16, #tpu.memory_space<vmem>>, vector<1x6x32xbf16>
    %48 = vector.shape_cast %47 : vector<1x6x32xbf16> to vector<6x32xbf16>
    %c8 = arith.constant 8 : index
    %c0_50 = arith.constant 0 : index
    %c0_51 = arith.constant 0 : index
    %49 = vector.load %arg5[%c8, %c0_50, %c0_51] : memref<9x32x128xbf16, #tpu.memory_space<vmem>>, vector<1x32x128xbf16>
    %50 = vector.shape_cast %49 : vector<1x32x128xbf16> to vector<32x128xbf16>
    %cst_52 = arith.constant dense<0.000000e+00> : vector<6x128xf32>
    %51 = tpu.matmul %48, %50, %cst_52 {dimension_numbers = #tpu.dot_dimension_numbers<[1], [0], [0], [1], [0, 0, 1, 1], [], []>} : vector<6x32xbf16>, vector<32x128xbf16>, vector<6x128xf32> -> vector<6x128xf32>
    %52 = arith.addf %46, %51 : vector<6x128xf32>
    %c0_53 = arith.constant 0 : index
    %c0_54 = arith.constant 0 : index
    %53 = vector.load %arg6[%c0_53, %c0_54] : memref<1x128xf32, #tpu.memory_space<vmem>>, vector<1x128xf32>
    %54 = vector.broadcast %53 : vector<1x128xf32> to vector<6x128xf32>
    %55 = arith.addf %52, %54 : vector<6x128xf32>
    %cst_55 = arith.constant 0.000000e+00 : f32
    %56 = vector.broadcast %cst_55 : f32 to vector<6x128xf32>
    %57 = arith.maximumf %55, %56 : vector<6x128xf32>
    %58 = arith.truncf %57 : vector<6x128xf32> to vector<6x128xbf16>
    %c0_56 = arith.constant 0 : index
    %c0_57 = arith.constant 0 : index
    %c0_58 = arith.constant 0 : index
    %59 = vector.load %arg7[%c0_56, %c0_57, %c0_58] : memref<1x6x128xbf16, #tpu.memory_space<vmem>>, vector<1x6x128xbf16>
    %60 = vector.shape_cast %59 : vector<1x6x128xbf16> to vector<6x128xbf16>
    %61 = vector.shape_cast %58 : vector<6x128xbf16> to vector<1x6x128xbf16>
    tpu.vector_store %arg7[%c0_56, %c0_57, %c0_58], %61 {strides = array<i32>} : memref<1x6x128xbf16, #tpu.memory_space<vmem>>, vector<1x6x128xbf16>,
    return
  }
  func.func @transform_0(%arg0: i32) -> (i32, i32, i32) {
    %c0_i32 = arith.constant 0 : i32
    %c0_i32_0 = arith.constant 0 : i32
    %c0_i32_1 = arith.constant 0 : i32
    return %arg0, %c0_i32, %c0_i32_0 : i32, i32, i32
  }
  func.func @transform_1(%arg0: i32) -> (i32, i32, i32) {
    %c0_i32 = arith.constant 0 : i32
    %c0_i32_0 = arith.constant 0 : i32
    %c0_i32_1 = arith.constant 0 : i32
    return %arg0, %c0_i32, %c0_i32_0 : i32, i32, i32
  }
  func.func @transform_2(%arg0: i32) -> (i32, i32, i32) {
    %c0_i32 = arith.constant 0 : i32
    %c0_i32_0 = arith.constant 0 : i32
    %c0_i32_1 = arith.constant 0 : i32
    return %arg0, %c0_i32, %c0_i32_0 : i32, i32, i32
  }
  func.func @transform_3(%arg0: i32) -> (i32, i32, i32) {
    %c0_i32 = arith.constant 0 : i32
    %c0_i32_0 = arith.constant 0 : i32
    %c0_i32_1 = arith.constant 0 : i32
    return %arg0, %c0_i32, %c0_i32_0 : i32, i32, i32
  }
  func.func @transform_4(%arg0: i32) -> (i32, i32, i32) {
    %c0_i32 = arith.constant 0 : i32
    %c0_i32_0 = arith.constant 0 : i32
    %c0_i32_1 = arith.constant 0 : i32
    %c0_i32_2 = arith.constant 0 : i32
    return %c0_i32, %c0_i32_0, %c0_i32_1 : i32, i32, i32
  }
  func.func @transform_5(%arg0: i32) -> (i32, i32) {
    %c0_i32 = arith.constant 0 : i32
    %c0_i32_0 = arith.constant 0 : i32
    %c0_i32_1 = arith.constant 0 : i32
    return %c0_i32, %c0_i32_0 : i32, i32
  }
  func.func @transform_6(%arg0: i32) -> (i32, i32, i32) {
    %c0_i32 = arith.constant 0 : i32
    %c0_i32_0 = arith.constant 0 : i32
    %c0_i32_1 = arith.constant 0 : i32
    return %arg0, %c0_i32, %c0_i32_0 : i32, i32, i32
  }
}

module attributes {stable_mosaic.version = 11 : i64} {
  func.func @kernel(%arg0: i32, %arg1: memref<1x20x64xbf16, #tpu.memory_space<vmem>>, %arg2: memref<9x64x128xbf16, #tpu.memory_space<vmem>>, %arg3: memref<1x128xf32, #tpu.memory_space<vmem>>, %arg4: memref<1x8x128xbf16, #tpu.memory_space<vmem>>, %arg5: memref<1x8x128xbf16, #tpu.memory_space<vmem>>) attributes {dimension_semantics = [#tpu.dimension_semantics<parallel>], iteration_bounds = array<i64: 2>, scalar_prefetch = 0 : i64, scratch_operands = 0 : i64, tpu.core_type = #tpu.core_type<tc>, window_params = [{transform_indices = @transform_0, window_bounds = array<i64: 1, 20, 64>}, {pipeline_mode = #tpu.pipeline_mode<synchronous>, transform_indices = @transform_1, window_bounds = array<i64: 9, 64, 128>}, {pipeline_mode = #tpu.pipeline_mode<synchronous>, transform_indices = @transform_2, window_bounds = array<i64: 1, 128>}, {transform_indices = @transform_3, window_bounds = array<i64: 1, 8, 128>}, {transform_indices = @transform_4, window_bounds = array<i64: 1, 8, 128>}]} {
    %c0 = arith.constant 0 : index
    %c0_0 = arith.constant 0 : index
    %c0_1 = arith.constant 0 : index
    %0 = vector.load %arg1[%c0, %c0_0, %c0_1] : memref<1x20x64xbf16, #tpu.memory_space<vmem>>, vector<1x8x64xbf16>
    %1 = vector.shape_cast %0 : vector<1x8x64xbf16> to vector<8x64xbf16>
    %c0_2 = arith.constant 0 : index
    %c0_3 = arith.constant 0 : index
    %c0_4 = arith.constant 0 : index
    %2 = vector.load %arg2[%c0_2, %c0_3, %c0_4] : memref<9x64x128xbf16, #tpu.memory_space<vmem>>, vector<1x64x128xbf16>
    %3 = vector.shape_cast %2 : vector<1x64x128xbf16> to vector<64x128xbf16>
    %cst = arith.constant dense<0.000000e+00> : vector<8x128xf32>
    %4 = tpu.matmul %1, %3, %cst {dimension_numbers = #tpu.dot_dimension_numbers<[1], [0], [0], [1], [0, 0, 1, 1], [], []>} : vector<8x64xbf16>, vector<64x128xbf16>, vector<8x128xf32> -> vector<8x128xf32>
    %c0_5 = arith.constant 0 : index
    %c1 = arith.constant 1 : index
    %c0_6 = arith.constant 0 : index
    %5 = vector.load %arg1[%c0_5, %c1, %c0_6] : memref<1x20x64xbf16, #tpu.memory_space<vmem>>, vector<1x8x64xbf16>
    %6 = vector.shape_cast %5 : vector<1x8x64xbf16> to vector<8x64xbf16>
    %c1_7 = arith.constant 1 : index
    %c0_8 = arith.constant 0 : index
    %c0_9 = arith.constant 0 : index
    %7 = vector.load %arg2[%c1_7, %c0_8, %c0_9] : memref<9x64x128xbf16, #tpu.memory_space<vmem>>, vector<1x64x128xbf16>
    %8 = vector.shape_cast %7 : vector<1x64x128xbf16> to vector<64x128xbf16>
    %cst_10 = arith.constant dense<0.000000e+00> : vector<8x128xf32>
    %9 = tpu.matmul %6, %8, %cst_10 {dimension_numbers = #tpu.dot_dimension_numbers<[1], [0], [0], [1], [0, 0, 1, 1], [], []>} : vector<8x64xbf16>, vector<64x128xbf16>, vector<8x128xf32> -> vector<8x128xf32>
    %10 = arith.addf %4, %9 : vector<8x128xf32>
    %c0_11 = arith.constant 0 : index
    %c2 = arith.constant 2 : index
    %c0_12 = arith.constant 0 : index
    %11 = vector.load %arg1[%c0_11, %c2, %c0_12] : memref<1x20x64xbf16, #tpu.memory_space<vmem>>, vector<1x8x64xbf16>
    %12 = vector.shape_cast %11 : vector<1x8x64xbf16> to vector<8x64xbf16>
    %c2_13 = arith.constant 2 : index
    %c0_14 = arith.constant 0 : index
    %c0_15 = arith.constant 0 : index
    %13 = vector.load %arg2[%c2_13, %c0_14, %c0_15] : memref<9x64x128xbf16, #tpu.memory_space<vmem>>, vector<1x64x128xbf16>
    %14 = vector.shape_cast %13 : vector<1x64x128xbf16> to vector<64x128xbf16>
    %cst_16 = arith.constant dense<0.000000e+00> : vector<8x128xf32>
    %15 = tpu.matmul %12, %14, %cst_16 {dimension_numbers = #tpu.dot_dimension_numbers<[1], [0], [0], [1], [0, 0, 1, 1], [], []>} : vector<8x64xbf16>, vector<64x128xbf16>, vector<8x128xf32> -> vector<8x128xf32>
    %16 = arith.addf %10, %15 : vector<8x128xf32>
    %c0_17 = arith.constant 0 : index
    %c4 = arith.constant 4 : index
    %c0_18 = arith.constant 0 : index
    %17 = vector.load %arg1[%c0_17, %c4, %c0_18] : memref<1x20x64xbf16, #tpu.memory_space<vmem>>, vector<1x8x64xbf16>
    %18 = vector.shape_cast %17 : vector<1x8x64xbf16> to vector<8x64xbf16>
    %c3 = arith.constant 3 : index
    %c0_19 = arith.constant 0 : index
    %c0_20 = arith.constant 0 : index
    %19 = vector.load %arg2[%c3, %c0_19, %c0_20] : memref<9x64x128xbf16, #tpu.memory_space<vmem>>, vector<1x64x128xbf16>
    %20 = vector.shape_cast %19 : vector<1x64x128xbf16> to vector<64x128xbf16>
    %cst_21 = arith.constant dense<0.000000e+00> : vector<8x128xf32>
    %21 = tpu.matmul %18, %20, %cst_21 {dimension_numbers = #tpu.dot_dimension_numbers<[1], [0], [0], [1], [0, 0, 1, 1], [], []>} : vector<8x64xbf16>, vector<64x128xbf16>, vector<8x128xf32> -> vector<8x128xf32>
    %22 = arith.addf %16, %21 : vector<8x128xf32>
    %c0_22 = arith.constant 0 : index
    %c5 = arith.constant 5 : index
    %c0_23 = arith.constant 0 : index
    %23 = vector.load %arg1[%c0_22, %c5, %c0_23] : memref<1x20x64xbf16, #tpu.memory_space<vmem>>, vector<1x8x64xbf16>
    %24 = vector.shape_cast %23 : vector<1x8x64xbf16> to vector<8x64xbf16>
    %c4_24 = arith.constant 4 : index
    %c0_25 = arith.constant 0 : index
    %c0_26 = arith.constant 0 : index
    %25 = vector.load %arg2[%c4_24, %c0_25, %c0_26] : memref<9x64x128xbf16, #tpu.memory_space<vmem>>, vector<1x64x128xbf16>
    %26 = vector.shape_cast %25 : vector<1x64x128xbf16> to vector<64x128xbf16>
    %cst_27 = arith.constant dense<0.000000e+00> : vector<8x128xf32>
    %27 = tpu.matmul %24, %26, %cst_27 {dimension_numbers = #tpu.dot_dimension_numbers<[1], [0], [0], [1], [0, 0, 1, 1], [], []>} : vector<8x64xbf16>, vector<64x128xbf16>, vector<8x128xf32> -> vector<8x128xf32>
    %28 = arith.addf %22, %27 : vector<8x128xf32>
    %c0_28 = arith.constant 0 : index
    %c6 = arith.constant 6 : index
    %c0_29 = arith.constant 0 : index
    %29 = vector.load %arg1[%c0_28, %c6, %c0_29] : memref<1x20x64xbf16, #tpu.memory_space<vmem>>, vector<1x8x64xbf16>
    %30 = vector.shape_cast %29 : vector<1x8x64xbf16> to vector<8x64xbf16>
    %c5_30 = arith.constant 5 : index
    %c0_31 = arith.constant 0 : index
    %c0_32 = arith.constant 0 : index
    %31 = vector.load %arg2[%c5_30, %c0_31, %c0_32] : memref<9x64x128xbf16, #tpu.memory_space<vmem>>, vector<1x64x128xbf16>
    %32 = vector.shape_cast %31 : vector<1x64x128xbf16> to vector<64x128xbf16>
    %cst_33 = arith.constant dense<0.000000e+00> : vector<8x128xf32>
    %33 = tpu.matmul %30, %32, %cst_33 {dimension_numbers = #tpu.dot_dimension_numbers<[1], [0], [0], [1], [0, 0, 1, 1], [], []>} : vector<8x64xbf16>, vector<64x128xbf16>, vector<8x128xf32> -> vector<8x128xf32>
    %34 = arith.addf %28, %33 : vector<8x128xf32>
    %c0_34 = arith.constant 0 : index
    %c8 = arith.constant 8 : index
    %c0_35 = arith.constant 0 : index
    %35 = vector.load %arg1[%c0_34, %c8, %c0_35] : memref<1x20x64xbf16, #tpu.memory_space<vmem>>, vector<1x8x64xbf16>
    %36 = vector.shape_cast %35 : vector<1x8x64xbf16> to vector<8x64xbf16>
    %c6_36 = arith.constant 6 : index
    %c0_37 = arith.constant 0 : index
    %c0_38 = arith.constant 0 : index
    %37 = vector.load %arg2[%c6_36, %c0_37, %c0_38] : memref<9x64x128xbf16, #tpu.memory_space<vmem>>, vector<1x64x128xbf16>
    %38 = vector.shape_cast %37 : vector<1x64x128xbf16> to vector<64x128xbf16>
    %cst_39 = arith.constant dense<0.000000e+00> : vector<8x128xf32>
    %39 = tpu.matmul %36, %38, %cst_39 {dimension_numbers = #tpu.dot_dimension_numbers<[1], [0], [0], [1], [0, 0, 1, 1], [], []>} : vector<8x64xbf16>, vector<64x128xbf16>, vector<8x128xf32> -> vector<8x128xf32>
    %40 = arith.addf %34, %39 : vector<8x128xf32>
    %c0_40 = arith.constant 0 : index
    %c9 = arith.constant 9 : index
    %c0_41 = arith.constant 0 : index
    %41 = vector.load %arg1[%c0_40, %c9, %c0_41] : memref<1x20x64xbf16, #tpu.memory_space<vmem>>, vector<1x8x64xbf16>
    %42 = vector.shape_cast %41 : vector<1x8x64xbf16> to vector<8x64xbf16>
    %c7 = arith.constant 7 : index
    %c0_42 = arith.constant 0 : index
    %c0_43 = arith.constant 0 : index
    %43 = vector.load %arg2[%c7, %c0_42, %c0_43] : memref<9x64x128xbf16, #tpu.memory_space<vmem>>, vector<1x64x128xbf16>
    %44 = vector.shape_cast %43 : vector<1x64x128xbf16> to vector<64x128xbf16>
    %cst_44 = arith.constant dense<0.000000e+00> : vector<8x128xf32>
    %45 = tpu.matmul %42, %44, %cst_44 {dimension_numbers = #tpu.dot_dimension_numbers<[1], [0], [0], [1], [0, 0, 1, 1], [], []>} : vector<8x64xbf16>, vector<64x128xbf16>, vector<8x128xf32> -> vector<8x128xf32>
    %46 = arith.addf %40, %45 : vector<8x128xf32>
    %c0_45 = arith.constant 0 : index
    %c10 = arith.constant 10 : index
    %c0_46 = arith.constant 0 : index
    %47 = vector.load %arg1[%c0_45, %c10, %c0_46] : memref<1x20x64xbf16, #tpu.memory_space<vmem>>, vector<1x8x64xbf16>
    %48 = vector.shape_cast %47 : vector<1x8x64xbf16> to vector<8x64xbf16>
    %c8_47 = arith.constant 8 : index
    %c0_48 = arith.constant 0 : index
    %c0_49 = arith.constant 0 : index
    %49 = vector.load %arg2[%c8_47, %c0_48, %c0_49] : memref<9x64x128xbf16, #tpu.memory_space<vmem>>, vector<1x64x128xbf16>
    %50 = vector.shape_cast %49 : vector<1x64x128xbf16> to vector<64x128xbf16>
    %cst_50 = arith.constant dense<0.000000e+00> : vector<8x128xf32>
    %51 = tpu.matmul %48, %50, %cst_50 {dimension_numbers = #tpu.dot_dimension_numbers<[1], [0], [0], [1], [0, 0, 1, 1], [], []>} : vector<8x64xbf16>, vector<64x128xbf16>, vector<8x128xf32> -> vector<8x128xf32>
    %52 = arith.addf %46, %51 : vector<8x128xf32>
    %c0_51 = arith.constant 0 : index
    %c0_52 = arith.constant 0 : index
    %53 = vector.load %arg3[%c0_51, %c0_52] : memref<1x128xf32, #tpu.memory_space<vmem>>, vector<1x128xf32>
    %54 = vector.broadcast %53 : vector<1x128xf32> to vector<8x128xf32>
    %55 = arith.addf %52, %54 : vector<8x128xf32>
    %c0_53 = arith.constant 0 : index
    %c0_54 = arith.constant 0 : index
    %c0_55 = arith.constant 0 : index
    %56 = vector.load %arg4[%c0_53, %c0_54, %c0_55] : memref<1x8x128xbf16, #tpu.memory_space<vmem>>, vector<1x8x128xbf16>
    %57 = vector.shape_cast %56 : vector<1x8x128xbf16> to vector<8x128xbf16>
    %58 = arith.extf %57 : vector<8x128xbf16> to vector<8x128xf32>
    %59 = arith.addf %55, %58 : vector<8x128xf32>
    %60 = arith.truncf %59 : vector<8x128xf32> to vector<8x128xbf16>
    %c0_56 = arith.constant 0 : index
    %c0_57 = arith.constant 0 : index
    %c0_58 = arith.constant 0 : index
    %61 = vector.load %arg5[%c0_56, %c0_57, %c0_58] : memref<1x8x128xbf16, #tpu.memory_space<vmem>>, vector<1x8x128xbf16>
    %62 = vector.shape_cast %61 : vector<1x8x128xbf16> to vector<8x128xbf16>
    %63 = vector.shape_cast %60 : vector<8x128xbf16> to vector<1x8x128xbf16>
    tpu.vector_store %arg5[%c0_56, %c0_57, %c0_58], %63 {strides = array<i32>} : memref<1x8x128xbf16, #tpu.memory_space<vmem>>, vector<1x8x128xbf16>,
    return
  }
  func.func @transform_0(%arg0: i32) -> (i32, i32, i32) {
    %c0_i32 = arith.constant 0 : i32
    %c0_i32_0 = arith.constant 0 : i32
    %c0_i32_1 = arith.constant 0 : i32
    return %arg0, %c0_i32, %c0_i32_0 : i32, i32, i32
  }
  func.func @transform_1(%arg0: i32) -> (i32, i32, i32) {
    %c0_i32 = arith.constant 0 : i32
    %c0_i32_0 = arith.constant 0 : i32
    %c0_i32_1 = arith.constant 0 : i32
    %c0_i32_2 = arith.constant 0 : i32
    return %c0_i32, %c0_i32_0, %c0_i32_1 : i32, i32, i32
  }
  func.func @transform_2(%arg0: i32) -> (i32, i32) {
    %c0_i32 = arith.constant 0 : i32
    %c0_i32_0 = arith.constant 0 : i32
    %c0_i32_1 = arith.constant 0 : i32
    return %c0_i32, %c0_i32_0 : i32, i32
  }
  func.func @transform_3(%arg0: i32) -> (i32, i32, i32) {
    %c0_i32 = arith.constant 0 : i32
    %c0_i32_0 = arith.constant 0 : i32
    %c0_i32_1 = arith.constant 0 : i32
    return %arg0, %c0_i32, %c0_i32_0 : i32, i32, i32
  }
  func.func @transform_4(%arg0: i32) -> (i32, i32, i32) {
    %c0_i32 = arith.constant 0 : i32
    %c0_i32_0 = arith.constant 0 : i32
    %c0_i32_1 = arith.constant 0 : i32
    return %arg0, %c0_i32, %c0_i32_0 : i32, i32, i32
  }
}

module attributes {stable_mosaic.version = 11 : i64} {
  func.func @kernel(%arg0: i32, %arg1: memref<1x20x64xbf16, #tpu.memory_space<vmem>>, %arg2: memref<9x64x128xbf16, #tpu.memory_space<vmem>>, %arg3: memref<1x128xf32, #tpu.memory_space<vmem>>, %arg4: memref<1x8x128xbf16, #tpu.memory_space<vmem>>) attributes {dimension_semantics = [#tpu.dimension_semantics<parallel>], iteration_bounds = array<i64: 2>, scalar_prefetch = 0 : i64, scratch_operands = 0 : i64, tpu.core_type = #tpu.core_type<tc>, window_params = [{transform_indices = @transform_0, window_bounds = array<i64: 1, 20, 64>}, {pipeline_mode = #tpu.pipeline_mode<synchronous>, transform_indices = @transform_1, window_bounds = array<i64: 9, 64, 128>}, {pipeline_mode = #tpu.pipeline_mode<synchronous>, transform_indices = @transform_2, window_bounds = array<i64: 1, 128>}, {transform_indices = @transform_3, window_bounds = array<i64: 1, 8, 128>}]} {
    %c0 = arith.constant 0 : index
    %c0_0 = arith.constant 0 : index
    %c0_1 = arith.constant 0 : index
    %0 = vector.load %arg1[%c0, %c0_0, %c0_1] : memref<1x20x64xbf16, #tpu.memory_space<vmem>>, vector<1x8x64xbf16>
    %1 = vector.shape_cast %0 : vector<1x8x64xbf16> to vector<8x64xbf16>
    %c0_2 = arith.constant 0 : index
    %c0_3 = arith.constant 0 : index
    %c0_4 = arith.constant 0 : index
    %2 = vector.load %arg2[%c0_2, %c0_3, %c0_4] : memref<9x64x128xbf16, #tpu.memory_space<vmem>>, vector<1x64x128xbf16>
    %3 = vector.shape_cast %2 : vector<1x64x128xbf16> to vector<64x128xbf16>
    %cst = arith.constant dense<0.000000e+00> : vector<8x128xf32>
    %4 = tpu.matmul %1, %3, %cst {dimension_numbers = #tpu.dot_dimension_numbers<[1], [0], [0], [1], [0, 0, 1, 1], [], []>} : vector<8x64xbf16>, vector<64x128xbf16>, vector<8x128xf32> -> vector<8x128xf32>
    %c0_5 = arith.constant 0 : index
    %c1 = arith.constant 1 : index
    %c0_6 = arith.constant 0 : index
    %5 = vector.load %arg1[%c0_5, %c1, %c0_6] : memref<1x20x64xbf16, #tpu.memory_space<vmem>>, vector<1x8x64xbf16>
    %6 = vector.shape_cast %5 : vector<1x8x64xbf16> to vector<8x64xbf16>
    %c1_7 = arith.constant 1 : index
    %c0_8 = arith.constant 0 : index
    %c0_9 = arith.constant 0 : index
    %7 = vector.load %arg2[%c1_7, %c0_8, %c0_9] : memref<9x64x128xbf16, #tpu.memory_space<vmem>>, vector<1x64x128xbf16>
    %8 = vector.shape_cast %7 : vector<1x64x128xbf16> to vector<64x128xbf16>
    %cst_10 = arith.constant dense<0.000000e+00> : vector<8x128xf32>
    %9 = tpu.matmul %6, %8, %cst_10 {dimension_numbers = #tpu.dot_dimension_numbers<[1], [0], [0], [1], [0, 0, 1, 1], [], []>} : vector<8x64xbf16>, vector<64x128xbf16>, vector<8x128xf32> -> vector<8x128xf32>
    %10 = arith.addf %4, %9 : vector<8x128xf32>
    %c0_11 = arith.constant 0 : index
    %c2 = arith.constant 2 : index
    %c0_12 = arith.constant 0 : index
    %11 = vector.load %arg1[%c0_11, %c2, %c0_12] : memref<1x20x64xbf16, #tpu.memory_space<vmem>>, vector<1x8x64xbf16>
    %12 = vector.shape_cast %11 : vector<1x8x64xbf16> to vector<8x64xbf16>
    %c2_13 = arith.constant 2 : index
    %c0_14 = arith.constant 0 : index
    %c0_15 = arith.constant 0 : index
    %13 = vector.load %arg2[%c2_13, %c0_14, %c0_15] : memref<9x64x128xbf16, #tpu.memory_space<vmem>>, vector<1x64x128xbf16>
    %14 = vector.shape_cast %13 : vector<1x64x128xbf16> to vector<64x128xbf16>
    %cst_16 = arith.constant dense<0.000000e+00> : vector<8x128xf32>
    %15 = tpu.matmul %12, %14, %cst_16 {dimension_numbers = #tpu.dot_dimension_numbers<[1], [0], [0], [1], [0, 0, 1, 1], [], []>} : vector<8x64xbf16>, vector<64x128xbf16>, vector<8x128xf32> -> vector<8x128xf32>
    %16 = arith.addf %10, %15 : vector<8x128xf32>
    %c0_17 = arith.constant 0 : index
    %c4 = arith.constant 4 : index
    %c0_18 = arith.constant 0 : index
    %17 = vector.load %arg1[%c0_17, %c4, %c0_18] : memref<1x20x64xbf16, #tpu.memory_space<vmem>>, vector<1x8x64xbf16>
    %18 = vector.shape_cast %17 : vector<1x8x64xbf16> to vector<8x64xbf16>
    %c3 = arith.constant 3 : index
    %c0_19 = arith.constant 0 : index
    %c0_20 = arith.constant 0 : index
    %19 = vector.load %arg2[%c3, %c0_19, %c0_20] : memref<9x64x128xbf16, #tpu.memory_space<vmem>>, vector<1x64x128xbf16>
    %20 = vector.shape_cast %19 : vector<1x64x128xbf16> to vector<64x128xbf16>
    %cst_21 = arith.constant dense<0.000000e+00> : vector<8x128xf32>
    %21 = tpu.matmul %18, %20, %cst_21 {dimension_numbers = #tpu.dot_dimension_numbers<[1], [0], [0], [1], [0, 0, 1, 1], [], []>} : vector<8x64xbf16>, vector<64x128xbf16>, vector<8x128xf32> -> vector<8x128xf32>
    %22 = arith.addf %16, %21 : vector<8x128xf32>
    %c0_22 = arith.constant 0 : index
    %c5 = arith.constant 5 : index
    %c0_23 = arith.constant 0 : index
    %23 = vector.load %arg1[%c0_22, %c5, %c0_23] : memref<1x20x64xbf16, #tpu.memory_space<vmem>>, vector<1x8x64xbf16>
    %24 = vector.shape_cast %23 : vector<1x8x64xbf16> to vector<8x64xbf16>
    %c4_24 = arith.constant 4 : index
    %c0_25 = arith.constant 0 : index
    %c0_26 = arith.constant 0 : index
    %25 = vector.load %arg2[%c4_24, %c0_25, %c0_26] : memref<9x64x128xbf16, #tpu.memory_space<vmem>>, vector<1x64x128xbf16>
    %26 = vector.shape_cast %25 : vector<1x64x128xbf16> to vector<64x128xbf16>
    %cst_27 = arith.constant dense<0.000000e+00> : vector<8x128xf32>
    %27 = tpu.matmul %24, %26, %cst_27 {dimension_numbers = #tpu.dot_dimension_numbers<[1], [0], [0], [1], [0, 0, 1, 1], [], []>} : vector<8x64xbf16>, vector<64x128xbf16>, vector<8x128xf32> -> vector<8x128xf32>
    %28 = arith.addf %22, %27 : vector<8x128xf32>
    %c0_28 = arith.constant 0 : index
    %c6 = arith.constant 6 : index
    %c0_29 = arith.constant 0 : index
    %29 = vector.load %arg1[%c0_28, %c6, %c0_29] : memref<1x20x64xbf16, #tpu.memory_space<vmem>>, vector<1x8x64xbf16>
    %30 = vector.shape_cast %29 : vector<1x8x64xbf16> to vector<8x64xbf16>
    %c5_30 = arith.constant 5 : index
    %c0_31 = arith.constant 0 : index
    %c0_32 = arith.constant 0 : index
    %31 = vector.load %arg2[%c5_30, %c0_31, %c0_32] : memref<9x64x128xbf16, #tpu.memory_space<vmem>>, vector<1x64x128xbf16>
    %32 = vector.shape_cast %31 : vector<1x64x128xbf16> to vector<64x128xbf16>
    %cst_33 = arith.constant dense<0.000000e+00> : vector<8x128xf32>
    %33 = tpu.matmul %30, %32, %cst_33 {dimension_numbers = #tpu.dot_dimension_numbers<[1], [0], [0], [1], [0, 0, 1, 1], [], []>} : vector<8x64xbf16>, vector<64x128xbf16>, vector<8x128xf32> -> vector<8x128xf32>
    %34 = arith.addf %28, %33 : vector<8x128xf32>
    %c0_34 = arith.constant 0 : index
    %c8 = arith.constant 8 : index
    %c0_35 = arith.constant 0 : index
    %35 = vector.load %arg1[%c0_34, %c8, %c0_35] : memref<1x20x64xbf16, #tpu.memory_space<vmem>>, vector<1x8x64xbf16>
    %36 = vector.shape_cast %35 : vector<1x8x64xbf16> to vector<8x64xbf16>
    %c6_36 = arith.constant 6 : index
    %c0_37 = arith.constant 0 : index
    %c0_38 = arith.constant 0 : index
    %37 = vector.load %arg2[%c6_36, %c0_37, %c0_38] : memref<9x64x128xbf16, #tpu.memory_space<vmem>>, vector<1x64x128xbf16>
    %38 = vector.shape_cast %37 : vector<1x64x128xbf16> to vector<64x128xbf16>
    %cst_39 = arith.constant dense<0.000000e+00> : vector<8x128xf32>
    %39 = tpu.matmul %36, %38, %cst_39 {dimension_numbers = #tpu.dot_dimension_numbers<[1], [0], [0], [1], [0, 0, 1, 1], [], []>} : vector<8x64xbf16>, vector<64x128xbf16>, vector<8x128xf32> -> vector<8x128xf32>
    %40 = arith.addf %34, %39 : vector<8x128xf32>
    %c0_40 = arith.constant 0 : index
    %c9 = arith.constant 9 : index
    %c0_41 = arith.constant 0 : index
    %41 = vector.load %arg1[%c0_40, %c9, %c0_41] : memref<1x20x64xbf16, #tpu.memory_space<vmem>>, vector<1x8x64xbf16>
    %42 = vector.shape_cast %41 : vector<1x8x64xbf16> to vector<8x64xbf16>
    %c7 = arith.constant 7 : index
    %c0_42 = arith.constant 0 : index
    %c0_43 = arith.constant 0 : index
    %43 = vector.load %arg2[%c7, %c0_42, %c0_43] : memref<9x64x128xbf16, #tpu.memory_space<vmem>>, vector<1x64x128xbf16>
    %44 = vector.shape_cast %43 : vector<1x64x128xbf16> to vector<64x128xbf16>
    %cst_44 = arith.constant dense<0.000000e+00> : vector<8x128xf32>
    %45 = tpu.matmul %42, %44, %cst_44 {dimension_numbers = #tpu.dot_dimension_numbers<[1], [0], [0], [1], [0, 0, 1, 1], [], []>} : vector<8x64xbf16>, vector<64x128xbf16>, vector<8x128xf32> -> vector<8x128xf32>
    %46 = arith.addf %40, %45 : vector<8x128xf32>
    %c0_45 = arith.constant 0 : index
    %c10 = arith.constant 10 : index
    %c0_46 = arith.constant 0 : index
    %47 = vector.load %arg1[%c0_45, %c10, %c0_46] : memref<1x20x64xbf16, #tpu.memory_space<vmem>>, vector<1x8x64xbf16>
    %48 = vector.shape_cast %47 : vector<1x8x64xbf16> to vector<8x64xbf16>
    %c8_47 = arith.constant 8 : index
    %c0_48 = arith.constant 0 : index
    %c0_49 = arith.constant 0 : index
    %49 = vector.load %arg2[%c8_47, %c0_48, %c0_49] : memref<9x64x128xbf16, #tpu.memory_space<vmem>>, vector<1x64x128xbf16>
    %50 = vector.shape_cast %49 : vector<1x64x128xbf16> to vector<64x128xbf16>
    %cst_50 = arith.constant dense<0.000000e+00> : vector<8x128xf32>
    %51 = tpu.matmul %48, %50, %cst_50 {dimension_numbers = #tpu.dot_dimension_numbers<[1], [0], [0], [1], [0, 0, 1, 1], [], []>} : vector<8x64xbf16>, vector<64x128xbf16>, vector<8x128xf32> -> vector<8x128xf32>
    %52 = arith.addf %46, %51 : vector<8x128xf32>
    %c0_51 = arith.constant 0 : index
    %c0_52 = arith.constant 0 : index
    %53 = vector.load %arg3[%c0_51, %c0_52] : memref<1x128xf32, #tpu.memory_space<vmem>>, vector<1x128xf32>
    %54 = vector.broadcast %53 : vector<1x128xf32> to vector<8x128xf32>
    %55 = arith.addf %52, %54 : vector<8x128xf32>
    %cst_53 = arith.constant 0.000000e+00 : f32
    %56 = vector.broadcast %cst_53 : f32 to vector<8x128xf32>
    %57 = arith.maximumf %55, %56 : vector<8x128xf32>
    %58 = arith.truncf %57 : vector<8x128xf32> to vector<8x128xbf16>
    %c0_54 = arith.constant 0 : index
    %c0_55 = arith.constant 0 : index
    %c0_56 = arith.constant 0 : index
    %59 = vector.load %arg4[%c0_54, %c0_55, %c0_56] : memref<1x8x128xbf16, #tpu.memory_space<vmem>>, vector<1x8x128xbf16>
    %60 = vector.shape_cast %59 : vector<1x8x128xbf16> to vector<8x128xbf16>
    %61 = vector.shape_cast %58 : vector<8x128xbf16> to vector<1x8x128xbf16>
    tpu.vector_store %arg4[%c0_54, %c0_55, %c0_56], %61 {strides = array<i32>} : memref<1x8x128xbf16, #tpu.memory_space<vmem>>, vector<1x8x128xbf16>,
    return
  }
  func.func @transform_0(%arg0: i32) -> (i32, i32, i32) {
    %c0_i32 = arith.constant 0 : i32
    %c0_i32_0 = arith.constant 0 : i32
    %c0_i32_1 = arith.constant 0 : i32
    return %arg0, %c0_i32, %c0_i32_0 : i32, i32, i32
  }
  func.func @transform_1(%arg0: i32) -> (i32, i32, i32) {
    %c0_i32 = arith.constant 0 : i32
    %c0_i32_0 = arith.constant 0 : i32
    %c0_i32_1 = arith.constant 0 : i32
    %c0_i32_2 = arith.constant 0 : i32
    return %c0_i32, %c0_i32_0, %c0_i32_1 : i32, i32, i32
  }
  func.func @transform_2(%arg0: i32) -> (i32, i32) {
    %c0_i32 = arith.constant 0 : i32
    %c0_i32_0 = arith.constant 0 : i32
    %c0_i32_1 = arith.constant 0 : i32
    return %c0_i32, %c0_i32_0 : i32, i32
  }
  func.func @transform_3(%arg0: i32) -> (i32, i32, i32) {
    %c0_i32 = arith.constant 0 : i32
    %c0_i32_0 = arith.constant 0 : i32
    %c0_i32_1 = arith.constant 0 : i32
    return %arg0, %c0_i32, %c0_i32_0 : i32, i32, i32
  }
}

module attributes {stable_mosaic.version = 11 : i64} {
  func.func @_matmul_bias_kernel(%arg0: i32, %arg1: memref<8x64xbf16, #tpu.memory_space<vmem>>, %arg2: memref<64x128xbf16, #tpu.memory_space<vmem>>, %arg3: memref<1x128xf32, #tpu.memory_space<vmem>>, %arg4: memref<8x128xbf16, #tpu.memory_space<vmem>>) attributes {dimension_semantics = [#tpu.dimension_semantics<parallel>], iteration_bounds = array<i64: 2>, scalar_prefetch = 0 : i64, scratch_operands = 0 : i64, tpu.core_type = #tpu.core_type<tc>, window_params = [{transform_indices = @transform_0, window_bounds = array<i64: 8, 64>}, {pipeline_mode = #tpu.pipeline_mode<synchronous>, transform_indices = @transform_1, window_bounds = array<i64: 64, 128>}, {pipeline_mode = #tpu.pipeline_mode<synchronous>, transform_indices = @transform_2, window_bounds = array<i64: 1, 128>}, {transform_indices = @transform_3, window_bounds = array<i64: 8, 128>}]} {
    %c0 = arith.constant 0 : index
    %c0_0 = arith.constant 0 : index
    %0 = vector.load %arg1[%c0, %c0_0] : memref<8x64xbf16, #tpu.memory_space<vmem>>, vector<8x64xbf16>
    %c0_1 = arith.constant 0 : index
    %c0_2 = arith.constant 0 : index
    %1 = vector.load %arg2[%c0_1, %c0_2] : memref<64x128xbf16, #tpu.memory_space<vmem>>, vector<64x128xbf16>
    %cst = arith.constant dense<0.000000e+00> : vector<8x128xf32>
    %2 = tpu.matmul %0, %1, %cst {dimension_numbers = #tpu.dot_dimension_numbers<[1], [0], [0], [1], [0, 0, 1, 1], [], []>} : vector<8x64xbf16>, vector<64x128xbf16>, vector<8x128xf32> -> vector<8x128xf32>
    %c0_3 = arith.constant 0 : index
    %c0_4 = arith.constant 0 : index
    %3 = vector.load %arg3[%c0_3, %c0_4] : memref<1x128xf32, #tpu.memory_space<vmem>>, vector<1x128xf32>
    %4 = vector.broadcast %3 : vector<1x128xf32> to vector<8x128xf32>
    %5 = arith.addf %2, %4 : vector<8x128xf32>
    %6 = arith.truncf %5 : vector<8x128xf32> to vector<8x128xbf16>
    %c0_5 = arith.constant 0 : index
    %c0_6 = arith.constant 0 : index
    %7 = vector.load %arg4[%c0_5, %c0_6] : memref<8x128xbf16, #tpu.memory_space<vmem>>, vector<8x128xbf16>
    tpu.vector_store %arg4[%c0_5, %c0_6], %6 {strides = array<i32>} : memref<8x128xbf16, #tpu.memory_space<vmem>>, vector<8x128xbf16>,
    return
  }
  func.func @transform_0(%arg0: i32) -> (i32, i32) {
    %c0_i32 = arith.constant 0 : i32
    %c0_i32_0 = arith.constant 0 : i32
    return %arg0, %c0_i32 : i32, i32
  }
  func.func @transform_1(%arg0: i32) -> (i32, i32) {
    %c0_i32 = arith.constant 0 : i32
    %c0_i32_0 = arith.constant 0 : i32
    %c0_i32_1 = arith.constant 0 : i32
    return %c0_i32, %c0_i32_0 : i32, i32
  }
  func.func @transform_2(%arg0: i32) -> (i32, i32) {
    %c0_i32 = arith.constant 0 : i32
    %c0_i32_0 = arith.constant 0 : i32
    %c0_i32_1 = arith.constant 0 : i32
    return %c0_i32, %c0_i32_0 : i32, i32
  }
  func.func @transform_3(%arg0: i32) -> (i32, i32) {
    %c0_i32 = arith.constant 0 : i32
    %c0_i32_0 = arith.constant 0 : i32
    return %arg0, %c0_i32 : i32, i32
  }
}

module attributes {stable_mosaic.version = 11 : i64} {
  func.func @kernel(%arg0: i32, %arg1: memref<1x6x64xbf16, #tpu.memory_space<vmem>>, %arg2: memref<1x6x64xbf16, #tpu.memory_space<vmem>>, %arg3: memref<1x6x64xbf16, #tpu.memory_space<vmem>>, %arg4: memref<1x6x64xbf16, #tpu.memory_space<vmem>>, %arg5: memref<9x64x128xbf16, #tpu.memory_space<vmem>>, %arg6: memref<1x128xf32, #tpu.memory_space<vmem>>, %arg7: memref<1x2x128xbf16, #tpu.memory_space<vmem>>) attributes {dimension_semantics = [#tpu.dimension_semantics<parallel>], iteration_bounds = array<i64: 2>, scalar_prefetch = 0 : i64, scratch_operands = 0 : i64, tpu.core_type = #tpu.core_type<tc>, window_params = [{transform_indices = @transform_0, window_bounds = array<i64: 1, 6, 64>}, {transform_indices = @transform_1, window_bounds = array<i64: 1, 6, 64>}, {transform_indices = @transform_2, window_bounds = array<i64: 1, 6, 64>}, {transform_indices = @transform_3, window_bounds = array<i64: 1, 6, 64>}, {pipeline_mode = #tpu.pipeline_mode<synchronous>, transform_indices = @transform_4, window_bounds = array<i64: 9, 64, 128>}, {pipeline_mode = #tpu.pipeline_mode<synchronous>, transform_indices = @transform_5, window_bounds = array<i64: 1, 128>}, {transform_indices = @transform_6, window_bounds = array<i64: 1, 2, 128>}]} {
    %c0 = arith.constant 0 : index
    %c0_0 = arith.constant 0 : index
    %c0_1 = arith.constant 0 : index
    %0 = vector.load %arg1[%c0, %c0_0, %c0_1] : memref<1x6x64xbf16, #tpu.memory_space<vmem>>, vector<1x2x64xbf16>
    %1 = vector.shape_cast %0 : vector<1x2x64xbf16> to vector<2x64xbf16>
    %c0_2 = arith.constant 0 : index
    %c0_3 = arith.constant 0 : index
    %c0_4 = arith.constant 0 : index
    %2 = vector.load %arg5[%c0_2, %c0_3, %c0_4] : memref<9x64x128xbf16, #tpu.memory_space<vmem>>, vector<1x64x128xbf16>
    %3 = vector.shape_cast %2 : vector<1x64x128xbf16> to vector<64x128xbf16>
    %cst = arith.constant dense<0.000000e+00> : vector<2x128xf32>
    %4 = tpu.matmul %1, %3, %cst {dimension_numbers = #tpu.dot_dimension_numbers<[1], [0], [0], [1], [0, 0, 1, 1], [], []>} : vector<2x64xbf16>, vector<64x128xbf16>, vector<2x128xf32> -> vector<2x128xf32>
    %c0_5 = arith.constant 0 : index
    %c0_6 = arith.constant 0 : index
    %c0_7 = arith.constant 0 : index
    %5 = vector.load %arg2[%c0_5, %c0_6, %c0_7] : memref<1x6x64xbf16, #tpu.memory_space<vmem>>, vector<1x2x64xbf16>
    %6 = vector.shape_cast %5 : vector<1x2x64xbf16> to vector<2x64xbf16>
    %c1 = arith.constant 1 : index
    %c0_8 = arith.constant 0 : index
    %c0_9 = arith.constant 0 : index
    %7 = vector.load %arg5[%c1, %c0_8, %c0_9] : memref<9x64x128xbf16, #tpu.memory_space<vmem>>, vector<1x64x128xbf16>
    %8 = vector.shape_cast %7 : vector<1x64x128xbf16> to vector<64x128xbf16>
    %cst_10 = arith.constant dense<0.000000e+00> : vector<2x128xf32>
    %9 = tpu.matmul %6, %8, %cst_10 {dimension_numbers = #tpu.dot_dimension_numbers<[1], [0], [0], [1], [0, 0, 1, 1], [], []>} : vector<2x64xbf16>, vector<64x128xbf16>, vector<2x128xf32> -> vector<2x128xf32>
    %10 = arith.addf %4, %9 : vector<2x128xf32>
    %c0_11 = arith.constant 0 : index
    %c1_12 = arith.constant 1 : index
    %c0_13 = arith.constant 0 : index
    %11 = vector.load %arg1[%c0_11, %c1_12, %c0_13] : memref<1x6x64xbf16, #tpu.memory_space<vmem>>, vector<1x2x64xbf16>
    %12 = vector.shape_cast %11 : vector<1x2x64xbf16> to vector<2x64xbf16>
    %c2 = arith.constant 2 : index
    %c0_14 = arith.constant 0 : index
    %c0_15 = arith.constant 0 : index
    %13 = vector.load %arg5[%c2, %c0_14, %c0_15] : memref<9x64x128xbf16, #tpu.memory_space<vmem>>, vector<1x64x128xbf16>
    %14 = vector.shape_cast %13 : vector<1x64x128xbf16> to vector<64x128xbf16>
    %cst_16 = arith.constant dense<0.000000e+00> : vector<2x128xf32>
    %15 = tpu.matmul %12, %14, %cst_16 {dimension_numbers = #tpu.dot_dimension_numbers<[1], [0], [0], [1], [0, 0, 1, 1], [], []>} : vector<2x64xbf16>, vector<64x128xbf16>, vector<2x128xf32> -> vector<2x128xf32>
    %16 = arith.addf %10, %15 : vector<2x128xf32>
    %c0_17 = arith.constant 0 : index
    %c0_18 = arith.constant 0 : index
    %c0_19 = arith.constant 0 : index
    %17 = vector.load %arg3[%c0_17, %c0_18, %c0_19] : memref<1x6x64xbf16, #tpu.memory_space<vmem>>, vector<1x2x64xbf16>
    %18 = vector.shape_cast %17 : vector<1x2x64xbf16> to vector<2x64xbf16>
    %c3 = arith.constant 3 : index
    %c0_20 = arith.constant 0 : index
    %c0_21 = arith.constant 0 : index
    %19 = vector.load %arg5[%c3, %c0_20, %c0_21] : memref<9x64x128xbf16, #tpu.memory_space<vmem>>, vector<1x64x128xbf16>
    %20 = vector.shape_cast %19 : vector<1x64x128xbf16> to vector<64x128xbf16>
    %cst_22 = arith.constant dense<0.000000e+00> : vector<2x128xf32>
    %21 = tpu.matmul %18, %20, %cst_22 {dimension_numbers = #tpu.dot_dimension_numbers<[1], [0], [0], [1], [0, 0, 1, 1], [], []>} : vector<2x64xbf16>, vector<64x128xbf16>, vector<2x128xf32> -> vector<2x128xf32>
    %22 = arith.addf %16, %21 : vector<2x128xf32>
    %c0_23 = arith.constant 0 : index
    %c0_24 = arith.constant 0 : index
    %c0_25 = arith.constant 0 : index
    %23 = vector.load %arg4[%c0_23, %c0_24, %c0_25] : memref<1x6x64xbf16, #tpu.memory_space<vmem>>, vector<1x2x64xbf16>
    %24 = vector.shape_cast %23 : vector<1x2x64xbf16> to vector<2x64xbf16>
    %c4 = arith.constant 4 : index
    %c0_26 = arith.constant 0 : index
    %c0_27 = arith.constant 0 : index
    %25 = vector.load %arg5[%c4, %c0_26, %c0_27] : memref<9x64x128xbf16, #tpu.memory_space<vmem>>, vector<1x64x128xbf16>
    %26 = vector.shape_cast %25 : vector<1x64x128xbf16> to vector<64x128xbf16>
    %cst_28 = arith.constant dense<0.000000e+00> : vector<2x128xf32>
    %27 = tpu.matmul %24, %26, %cst_28 {dimension_numbers = #tpu.dot_dimension_numbers<[1], [0], [0], [1], [0, 0, 1, 1], [], []>} : vector<2x64xbf16>, vector<64x128xbf16>, vector<2x128xf32> -> vector<2x128xf32>
    %28 = arith.addf %22, %27 : vector<2x128xf32>
    %c0_29 = arith.constant 0 : index
    %c1_30 = arith.constant 1 : index
    %c0_31 = arith.constant 0 : index
    %29 = vector.load %arg3[%c0_29, %c1_30, %c0_31] : memref<1x6x64xbf16, #tpu.memory_space<vmem>>, vector<1x2x64xbf16>
    %30 = vector.shape_cast %29 : vector<1x2x64xbf16> to vector<2x64xbf16>
    %c5 = arith.constant 5 : index
    %c0_32 = arith.constant 0 : index
    %c0_33 = arith.constant 0 : index
    %31 = vector.load %arg5[%c5, %c0_32, %c0_33] : memref<9x64x128xbf16, #tpu.memory_space<vmem>>, vector<1x64x128xbf16>
    %32 = vector.shape_cast %31 : vector<1x64x128xbf16> to vector<64x128xbf16>
    %cst_34 = arith.constant dense<0.000000e+00> : vector<2x128xf32>
    %33 = tpu.matmul %30, %32, %cst_34 {dimension_numbers = #tpu.dot_dimension_numbers<[1], [0], [0], [1], [0, 0, 1, 1], [], []>} : vector<2x64xbf16>, vector<64x128xbf16>, vector<2x128xf32> -> vector<2x128xf32>
    %34 = arith.addf %28, %33 : vector<2x128xf32>
    %c0_35 = arith.constant 0 : index
    %c2_36 = arith.constant 2 : index
    %c0_37 = arith.constant 0 : index
    %35 = vector.load %arg1[%c0_35, %c2_36, %c0_37] : memref<1x6x64xbf16, #tpu.memory_space<vmem>>, vector<1x2x64xbf16>
    %36 = vector.shape_cast %35 : vector<1x2x64xbf16> to vector<2x64xbf16>
    %c6 = arith.constant 6 : index
    %c0_38 = arith.constant 0 : index
    %c0_39 = arith.constant 0 : index
    %37 = vector.load %arg5[%c6, %c0_38, %c0_39] : memref<9x64x128xbf16, #tpu.memory_space<vmem>>, vector<1x64x128xbf16>
    %38 = vector.shape_cast %37 : vector<1x64x128xbf16> to vector<64x128xbf16>
    %cst_40 = arith.constant dense<0.000000e+00> : vector<2x128xf32>
    %39 = tpu.matmul %36, %38, %cst_40 {dimension_numbers = #tpu.dot_dimension_numbers<[1], [0], [0], [1], [0, 0, 1, 1], [], []>} : vector<2x64xbf16>, vector<64x128xbf16>, vector<2x128xf32> -> vector<2x128xf32>
    %40 = arith.addf %34, %39 : vector<2x128xf32>
    %c0_41 = arith.constant 0 : index
    %c2_42 = arith.constant 2 : index
    %c0_43 = arith.constant 0 : index
    %41 = vector.load %arg2[%c0_41, %c2_42, %c0_43] : memref<1x6x64xbf16, #tpu.memory_space<vmem>>, vector<1x2x64xbf16>
    %42 = vector.shape_cast %41 : vector<1x2x64xbf16> to vector<2x64xbf16>
    %c7 = arith.constant 7 : index
    %c0_44 = arith.constant 0 : index
    %c0_45 = arith.constant 0 : index
    %43 = vector.load %arg5[%c7, %c0_44, %c0_45] : memref<9x64x128xbf16, #tpu.memory_space<vmem>>, vector<1x64x128xbf16>
    %44 = vector.shape_cast %43 : vector<1x64x128xbf16> to vector<64x128xbf16>
    %cst_46 = arith.constant dense<0.000000e+00> : vector<2x128xf32>
    %45 = tpu.matmul %42, %44, %cst_46 {dimension_numbers = #tpu.dot_dimension_numbers<[1], [0], [0], [1], [0, 0, 1, 1], [], []>} : vector<2x64xbf16>, vector<64x128xbf16>, vector<2x128xf32> -> vector<2x128xf32>
    %46 = arith.addf %40, %45 : vector<2x128xf32>
    %c0_47 = arith.constant 0 : index
    %c3_48 = arith.constant 3 : index
    %c0_49 = arith.constant 0 : index
    %47 = vector.load %arg1[%c0_47, %c3_48, %c0_49] : memref<1x6x64xbf16, #tpu.memory_space<vmem>>, vector<1x2x64xbf16>
    %48 = vector.shape_cast %47 : vector<1x2x64xbf16> to vector<2x64xbf16>
    %c8 = arith.constant 8 : index
    %c0_50 = arith.constant 0 : index
    %c0_51 = arith.constant 0 : index
    %49 = vector.load %arg5[%c8, %c0_50, %c0_51] : memref<9x64x128xbf16, #tpu.memory_space<vmem>>, vector<1x64x128xbf16>
    %50 = vector.shape_cast %49 : vector<1x64x128xbf16> to vector<64x128xbf16>
    %cst_52 = arith.constant dense<0.000000e+00> : vector<2x128xf32>
    %51 = tpu.matmul %48, %50, %cst_52 {dimension_numbers = #tpu.dot_dimension_numbers<[1], [0], [0], [1], [0, 0, 1, 1], [], []>} : vector<2x64xbf16>, vector<64x128xbf16>, vector<2x128xf32> -> vector<2x128xf32>
    %52 = arith.addf %46, %51 : vector<2x128xf32>
    %c0_53 = arith.constant 0 : index
    %c0_54 = arith.constant 0 : index
    %53 = vector.load %arg6[%c0_53, %c0_54] : memref<1x128xf32, #tpu.memory_space<vmem>>, vector<1x128xf32>
    %54 = vector.broadcast %53 : vector<1x128xf32> to vector<2x128xf32>
    %55 = arith.addf %52, %54 : vector<2x128xf32>
    %cst_55 = arith.constant 0.000000e+00 : f32
    %56 = vector.broadcast %cst_55 : f32 to vector<2x128xf32>
    %57 = arith.maximumf %55, %56 : vector<2x128xf32>
    %58 = arith.truncf %57 : vector<2x128xf32> to vector<2x128xbf16>
    %c0_56 = arith.constant 0 : index
    %c0_57 = arith.constant 0 : index
    %c0_58 = arith.constant 0 : index
    %59 = vector.load %arg7[%c0_56, %c0_57, %c0_58] : memref<1x2x128xbf16, #tpu.memory_space<vmem>>, vector<1x2x128xbf16>
    %60 = vector.shape_cast %59 : vector<1x2x128xbf16> to vector<2x128xbf16>
    %61 = vector.shape_cast %58 : vector<2x128xbf16> to vector<1x2x128xbf16>
    tpu.vector_store %arg7[%c0_56, %c0_57, %c0_58], %61 {strides = array<i32>} : memref<1x2x128xbf16, #tpu.memory_space<vmem>>, vector<1x2x128xbf16>,
    return
  }
  func.func @transform_0(%arg0: i32) -> (i32, i32, i32) {
    %c0_i32 = arith.constant 0 : i32
    %c0_i32_0 = arith.constant 0 : i32
    %c0_i32_1 = arith.constant 0 : i32
    return %arg0, %c0_i32, %c0_i32_0 : i32, i32, i32
  }
  func.func @transform_1(%arg0: i32) -> (i32, i32, i32) {
    %c0_i32 = arith.constant 0 : i32
    %c0_i32_0 = arith.constant 0 : i32
    %c0_i32_1 = arith.constant 0 : i32
    return %arg0, %c0_i32, %c0_i32_0 : i32, i32, i32
  }
  func.func @transform_2(%arg0: i32) -> (i32, i32, i32) {
    %c0_i32 = arith.constant 0 : i32
    %c0_i32_0 = arith.constant 0 : i32
    %c0_i32_1 = arith.constant 0 : i32
    return %arg0, %c0_i32, %c0_i32_0 : i32, i32, i32
  }
  func.func @transform_3(%arg0: i32) -> (i32, i32, i32) {
    %c0_i32 = arith.constant 0 : i32
    %c0_i32_0 = arith.constant 0 : i32
    %c0_i32_1 = arith.constant 0 : i32
    return %arg0, %c0_i32, %c0_i32_0 : i32, i32, i32
  }
  func.func @transform_4(%arg0: i32) -> (i32, i32, i32) {
    %c0_i32 = arith.constant 0 : i32
    %c0_i32_0 = arith.constant 0 : i32
    %c0_i32_1 = arith.constant 0 : i32
    %c0_i32_2 = arith.constant 0 : i32
    return %c0_i32, %c0_i32_0, %c0_i32_1 : i32, i32, i32
  }
  func.func @transform_5(%arg0: i32) -> (i32, i32) {
    %c0_i32 = arith.constant 0 : i32
    %c0_i32_0 = arith.constant 0 : i32
    %c0_i32_1 = arith.constant 0 : i32
    return %c0_i32, %c0_i32_0 : i32, i32
  }
  func.func @transform_6(%arg0: i32) -> (i32, i32, i32) {
    %c0_i32 = arith.constant 0 : i32
    %c0_i32_0 = arith.constant 0 : i32
    %c0_i32_1 = arith.constant 0 : i32
    return %arg0, %c0_i32, %c0_i32_0 : i32, i32, i32
  }
}

module attributes {stable_mosaic.version = 11 : i64} {
  func.func @kernel(%arg0: i32, %arg1: memref<1x12x128xbf16, #tpu.memory_space<vmem>>, %arg2: memref<9x128x128xbf16, #tpu.memory_space<vmem>>, %arg3: memref<1x128xf32, #tpu.memory_space<vmem>>, %arg4: memref<1x3x128xbf16, #tpu.memory_space<vmem>>, %arg5: memref<1x3x128xbf16, #tpu.memory_space<vmem>>) attributes {dimension_semantics = [#tpu.dimension_semantics<parallel>], iteration_bounds = array<i64: 2>, scalar_prefetch = 0 : i64, scratch_operands = 0 : i64, tpu.core_type = #tpu.core_type<tc>, window_params = [{transform_indices = @transform_0, window_bounds = array<i64: 1, 12, 128>}, {pipeline_mode = #tpu.pipeline_mode<synchronous>, transform_indices = @transform_1, window_bounds = array<i64: 9, 128, 128>}, {pipeline_mode = #tpu.pipeline_mode<synchronous>, transform_indices = @transform_2, window_bounds = array<i64: 1, 128>}, {transform_indices = @transform_3, window_bounds = array<i64: 1, 3, 128>}, {transform_indices = @transform_4, window_bounds = array<i64: 1, 3, 128>}]} {
    %c0 = arith.constant 0 : index
    %c0_0 = arith.constant 0 : index
    %c0_1 = arith.constant 0 : index
    %0 = vector.load %arg1[%c0, %c0_0, %c0_1] : memref<1x12x128xbf16, #tpu.memory_space<vmem>>, vector<1x3x128xbf16>
    %1 = vector.shape_cast %0 : vector<1x3x128xbf16> to vector<3x128xbf16>
    %c0_2 = arith.constant 0 : index
    %c0_3 = arith.constant 0 : index
    %c0_4 = arith.constant 0 : index
    %2 = vector.load %arg2[%c0_2, %c0_3, %c0_4] : memref<9x128x128xbf16, #tpu.memory_space<vmem>>, vector<1x128x128xbf16>
    %3 = vector.shape_cast %2 : vector<1x128x128xbf16> to vector<128x128xbf16>
    %cst = arith.constant dense<0.000000e+00> : vector<3x128xf32>
    %4 = tpu.matmul %1, %3, %cst {dimension_numbers = #tpu.dot_dimension_numbers<[1], [0], [0], [1], [0, 0, 1, 1], [], []>} : vector<3x128xbf16>, vector<128x128xbf16>, vector<3x128xf32> -> vector<3x128xf32>
    %c0_5 = arith.constant 0 : index
    %c1 = arith.constant 1 : index
    %c0_6 = arith.constant 0 : index
    %5 = vector.load %arg1[%c0_5, %c1, %c0_6] : memref<1x12x128xbf16, #tpu.memory_space<vmem>>, vector<1x3x128xbf16>
    %6 = vector.shape_cast %5 : vector<1x3x128xbf16> to vector<3x128xbf16>
    %c1_7 = arith.constant 1 : index
    %c0_8 = arith.constant 0 : index
    %c0_9 = arith.constant 0 : index
    %7 = vector.load %arg2[%c1_7, %c0_8, %c0_9] : memref<9x128x128xbf16, #tpu.memory_space<vmem>>, vector<1x128x128xbf16>
    %8 = vector.shape_cast %7 : vector<1x128x128xbf16> to vector<128x128xbf16>
    %cst_10 = arith.constant dense<0.000000e+00> : vector<3x128xf32>
    %9 = tpu.matmul %6, %8, %cst_10 {dimension_numbers = #tpu.dot_dimension_numbers<[1], [0], [0], [1], [0, 0, 1, 1], [], []>} : vector<3x128xbf16>, vector<128x128xbf16>, vector<3x128xf32> -> vector<3x128xf32>
    %10 = arith.addf %4, %9 : vector<3x128xf32>
    %c0_11 = arith.constant 0 : index
    %c2 = arith.constant 2 : index
    %c0_12 = arith.constant 0 : index
    %11 = vector.load %arg1[%c0_11, %c2, %c0_12] : memref<1x12x128xbf16, #tpu.memory_space<vmem>>, vector<1x3x128xbf16>
    %12 = vector.shape_cast %11 : vector<1x3x128xbf16> to vector<3x128xbf16>
    %c2_13 = arith.constant 2 : index
    %c0_14 = arith.constant 0 : index
    %c0_15 = arith.constant 0 : index
    %13 = vector.load %arg2[%c2_13, %c0_14, %c0_15] : memref<9x128x128xbf16, #tpu.memory_space<vmem>>, vector<1x128x128xbf16>
    %14 = vector.shape_cast %13 : vector<1x128x128xbf16> to vector<128x128xbf16>
    %cst_16 = arith.constant dense<0.000000e+00> : vector<3x128xf32>
    %15 = tpu.matmul %12, %14, %cst_16 {dimension_numbers = #tpu.dot_dimension_numbers<[1], [0], [0], [1], [0, 0, 1, 1], [], []>} : vector<3x128xbf16>, vector<128x128xbf16>, vector<3x128xf32> -> vector<3x128xf32>
    %16 = arith.addf %10, %15 : vector<3x128xf32>
    %c0_17 = arith.constant 0 : index
    %c3 = arith.constant 3 : index
    %c0_18 = arith.constant 0 : index
    %17 = vector.load %arg1[%c0_17, %c3, %c0_18] : memref<1x12x128xbf16, #tpu.memory_space<vmem>>, vector<1x3x128xbf16>
    %18 = vector.shape_cast %17 : vector<1x3x128xbf16> to vector<3x128xbf16>
    %c3_19 = arith.constant 3 : index
    %c0_20 = arith.constant 0 : index
    %c0_21 = arith.constant 0 : index
    %19 = vector.load %arg2[%c3_19, %c0_20, %c0_21] : memref<9x128x128xbf16, #tpu.memory_space<vmem>>, vector<1x128x128xbf16>
    %20 = vector.shape_cast %19 : vector<1x128x128xbf16> to vector<128x128xbf16>
    %cst_22 = arith.constant dense<0.000000e+00> : vector<3x128xf32>
    %21 = tpu.matmul %18, %20, %cst_22 {dimension_numbers = #tpu.dot_dimension_numbers<[1], [0], [0], [1], [0, 0, 1, 1], [], []>} : vector<3x128xbf16>, vector<128x128xbf16>, vector<3x128xf32> -> vector<3x128xf32>
    %22 = arith.addf %16, %21 : vector<3x128xf32>
    %c0_23 = arith.constant 0 : index
    %c4 = arith.constant 4 : index
    %c0_24 = arith.constant 0 : index
    %23 = vector.load %arg1[%c0_23, %c4, %c0_24] : memref<1x12x128xbf16, #tpu.memory_space<vmem>>, vector<1x3x128xbf16>
    %24 = vector.shape_cast %23 : vector<1x3x128xbf16> to vector<3x128xbf16>
    %c4_25 = arith.constant 4 : index
    %c0_26 = arith.constant 0 : index
    %c0_27 = arith.constant 0 : index
    %25 = vector.load %arg2[%c4_25, %c0_26, %c0_27] : memref<9x128x128xbf16, #tpu.memory_space<vmem>>, vector<1x128x128xbf16>
    %26 = vector.shape_cast %25 : vector<1x128x128xbf16> to vector<128x128xbf16>
    %cst_28 = arith.constant dense<0.000000e+00> : vector<3x128xf32>
    %27 = tpu.matmul %24, %26, %cst_28 {dimension_numbers = #tpu.dot_dimension_numbers<[1], [0], [0], [1], [0, 0, 1, 1], [], []>} : vector<3x128xbf16>, vector<128x128xbf16>, vector<3x128xf32> -> vector<3x128xf32>
    %28 = arith.addf %22, %27 : vector<3x128xf32>
    %c0_29 = arith.constant 0 : index
    %c5 = arith.constant 5 : index
    %c0_30 = arith.constant 0 : index
    %29 = vector.load %arg1[%c0_29, %c5, %c0_30] : memref<1x12x128xbf16, #tpu.memory_space<vmem>>, vector<1x3x128xbf16>
    %30 = vector.shape_cast %29 : vector<1x3x128xbf16> to vector<3x128xbf16>
    %c5_31 = arith.constant 5 : index
    %c0_32 = arith.constant 0 : index
    %c0_33 = arith.constant 0 : index
    %31 = vector.load %arg2[%c5_31, %c0_32, %c0_33] : memref<9x128x128xbf16, #tpu.memory_space<vmem>>, vector<1x128x128xbf16>
    %32 = vector.shape_cast %31 : vector<1x128x128xbf16> to vector<128x128xbf16>
    %cst_34 = arith.constant dense<0.000000e+00> : vector<3x128xf32>
    %33 = tpu.matmul %30, %32, %cst_34 {dimension_numbers = #tpu.dot_dimension_numbers<[1], [0], [0], [1], [0, 0, 1, 1], [], []>} : vector<3x128xbf16>, vector<128x128xbf16>, vector<3x128xf32> -> vector<3x128xf32>
    %34 = arith.addf %28, %33 : vector<3x128xf32>
    %c0_35 = arith.constant 0 : index
    %c6 = arith.constant 6 : index
    %c0_36 = arith.constant 0 : index
    %35 = vector.load %arg1[%c0_35, %c6, %c0_36] : memref<1x12x128xbf16, #tpu.memory_space<vmem>>, vector<1x3x128xbf16>
    %36 = vector.shape_cast %35 : vector<1x3x128xbf16> to vector<3x128xbf16>
    %c6_37 = arith.constant 6 : index
    %c0_38 = arith.constant 0 : index
    %c0_39 = arith.constant 0 : index
    %37 = vector.load %arg2[%c6_37, %c0_38, %c0_39] : memref<9x128x128xbf16, #tpu.memory_space<vmem>>, vector<1x128x128xbf16>
    %38 = vector.shape_cast %37 : vector<1x128x128xbf16> to vector<128x128xbf16>
    %cst_40 = arith.constant dense<0.000000e+00> : vector<3x128xf32>
    %39 = tpu.matmul %36, %38, %cst_40 {dimension_numbers = #tpu.dot_dimension_numbers<[1], [0], [0], [1], [0, 0, 1, 1], [], []>} : vector<3x128xbf16>, vector<128x128xbf16>, vector<3x128xf32> -> vector<3x128xf32>
    %40 = arith.addf %34, %39 : vector<3x128xf32>
    %c0_41 = arith.constant 0 : index
    %c7 = arith.constant 7 : index
    %c0_42 = arith.constant 0 : index
    %41 = vector.load %arg1[%c0_41, %c7, %c0_42] : memref<1x12x128xbf16, #tpu.memory_space<vmem>>, vector<1x3x128xbf16>
    %42 = vector.shape_cast %41 : vector<1x3x128xbf16> to vector<3x128xbf16>
    %c7_43 = arith.constant 7 : index
    %c0_44 = arith.constant 0 : index
    %c0_45 = arith.constant 0 : index
    %43 = vector.load %arg2[%c7_43, %c0_44, %c0_45] : memref<9x128x128xbf16, #tpu.memory_space<vmem>>, vector<1x128x128xbf16>
    %44 = vector.shape_cast %43 : vector<1x128x128xbf16> to vector<128x128xbf16>
    %cst_46 = arith.constant dense<0.000000e+00> : vector<3x128xf32>
    %45 = tpu.matmul %42, %44, %cst_46 {dimension_numbers = #tpu.dot_dimension_numbers<[1], [0], [0], [1], [0, 0, 1, 1], [], []>} : vector<3x128xbf16>, vector<128x128xbf16>, vector<3x128xf32> -> vector<3x128xf32>
    %46 = arith.addf %40, %45 : vector<3x128xf32>
    %c0_47 = arith.constant 0 : index
    %c8 = arith.constant 8 : index
    %c0_48 = arith.constant 0 : index
    %47 = vector.load %arg1[%c0_47, %c8, %c0_48] : memref<1x12x128xbf16, #tpu.memory_space<vmem>>, vector<1x3x128xbf16>
    %48 = vector.shape_cast %47 : vector<1x3x128xbf16> to vector<3x128xbf16>
    %c8_49 = arith.constant 8 : index
    %c0_50 = arith.constant 0 : index
    %c0_51 = arith.constant 0 : index
    %49 = vector.load %arg2[%c8_49, %c0_50, %c0_51] : memref<9x128x128xbf16, #tpu.memory_space<vmem>>, vector<1x128x128xbf16>
    %50 = vector.shape_cast %49 : vector<1x128x128xbf16> to vector<128x128xbf16>
    %cst_52 = arith.constant dense<0.000000e+00> : vector<3x128xf32>
    %51 = tpu.matmul %48, %50, %cst_52 {dimension_numbers = #tpu.dot_dimension_numbers<[1], [0], [0], [1], [0, 0, 1, 1], [], []>} : vector<3x128xbf16>, vector<128x128xbf16>, vector<3x128xf32> -> vector<3x128xf32>
    %52 = arith.addf %46, %51 : vector<3x128xf32>
    %c0_53 = arith.constant 0 : index
    %c0_54 = arith.constant 0 : index
    %53 = vector.load %arg3[%c0_53, %c0_54] : memref<1x128xf32, #tpu.memory_space<vmem>>, vector<1x128xf32>
    %54 = vector.broadcast %53 : vector<1x128xf32> to vector<3x128xf32>
    %55 = arith.addf %52, %54 : vector<3x128xf32>
    %c0_55 = arith.constant 0 : index
    %c0_56 = arith.constant 0 : index
    %c0_57 = arith.constant 0 : index
    %56 = vector.load %arg4[%c0_55, %c0_56, %c0_57] : memref<1x3x128xbf16, #tpu.memory_space<vmem>>, vector<1x3x128xbf16>
    %57 = vector.shape_cast %56 : vector<1x3x128xbf16> to vector<3x128xbf16>
    %58 = arith.extf %57 : vector<3x128xbf16> to vector<3x128xf32>
    %59 = arith.addf %55, %58 : vector<3x128xf32>
    %60 = arith.truncf %59 : vector<3x128xf32> to vector<3x128xbf16>
    %c0_58 = arith.constant 0 : index
    %c0_59 = arith.constant 0 : index
    %c0_60 = arith.constant 0 : index
    %61 = vector.load %arg5[%c0_58, %c0_59, %c0_60] : memref<1x3x128xbf16, #tpu.memory_space<vmem>>, vector<1x3x128xbf16>
    %62 = vector.shape_cast %61 : vector<1x3x128xbf16> to vector<3x128xbf16>
    %63 = vector.shape_cast %60 : vector<3x128xbf16> to vector<1x3x128xbf16>
    tpu.vector_store %arg5[%c0_58, %c0_59, %c0_60], %63 {strides = array<i32>} : memref<1x3x128xbf16, #tpu.memory_space<vmem>>, vector<1x3x128xbf16>,
    return
  }
  func.func @transform_0(%arg0: i32) -> (i32, i32, i32) {
    %c0_i32 = arith.constant 0 : i32
    %c0_i32_0 = arith.constant 0 : i32
    %c0_i32_1 = arith.constant 0 : i32
    return %arg0, %c0_i32, %c0_i32_0 : i32, i32, i32
  }
  func.func @transform_1(%arg0: i32) -> (i32, i32, i32) {
    %c0_i32 = arith.constant 0 : i32
    %c0_i32_0 = arith.constant 0 : i32
    %c0_i32_1 = arith.constant 0 : i32
    %c0_i32_2 = arith.constant 0 : i32
    return %c0_i32, %c0_i32_0, %c0_i32_1 : i32, i32, i32
  }
  func.func @transform_2(%arg0: i32) -> (i32, i32) {
    %c0_i32 = arith.constant 0 : i32
    %c0_i32_0 = arith.constant 0 : i32
    %c0_i32_1 = arith.constant 0 : i32
    return %c0_i32, %c0_i32_0 : i32, i32
  }
  func.func @transform_3(%arg0: i32) -> (i32, i32, i32) {
    %c0_i32 = arith.constant 0 : i32
    %c0_i32_0 = arith.constant 0 : i32
    %c0_i32_1 = arith.constant 0 : i32
    return %arg0, %c0_i32, %c0_i32_0 : i32, i32, i32
  }
  func.func @transform_4(%arg0: i32) -> (i32, i32, i32) {
    %c0_i32 = arith.constant 0 : i32
    %c0_i32_0 = arith.constant 0 : i32
    %c0_i32_1 = arith.constant 0 : i32
    return %arg0, %c0_i32, %c0_i32_0 : i32, i32, i32
  }
}

module attributes {stable_mosaic.version = 11 : i64} {
  func.func @kernel(%arg0: i32, %arg1: memref<1x12x128xbf16, #tpu.memory_space<vmem>>, %arg2: memref<9x128x128xbf16, #tpu.memory_space<vmem>>, %arg3: memref<1x128xf32, #tpu.memory_space<vmem>>, %arg4: memref<1x3x128xbf16, #tpu.memory_space<vmem>>) attributes {dimension_semantics = [#tpu.dimension_semantics<parallel>], iteration_bounds = array<i64: 2>, scalar_prefetch = 0 : i64, scratch_operands = 0 : i64, tpu.core_type = #tpu.core_type<tc>, window_params = [{transform_indices = @transform_0, window_bounds = array<i64: 1, 12, 128>}, {pipeline_mode = #tpu.pipeline_mode<synchronous>, transform_indices = @transform_1, window_bounds = array<i64: 9, 128, 128>}, {pipeline_mode = #tpu.pipeline_mode<synchronous>, transform_indices = @transform_2, window_bounds = array<i64: 1, 128>}, {transform_indices = @transform_3, window_bounds = array<i64: 1, 3, 128>}]} {
    %c0 = arith.constant 0 : index
    %c0_0 = arith.constant 0 : index
    %c0_1 = arith.constant 0 : index
    %0 = vector.load %arg1[%c0, %c0_0, %c0_1] : memref<1x12x128xbf16, #tpu.memory_space<vmem>>, vector<1x3x128xbf16>
    %1 = vector.shape_cast %0 : vector<1x3x128xbf16> to vector<3x128xbf16>
    %c0_2 = arith.constant 0 : index
    %c0_3 = arith.constant 0 : index
    %c0_4 = arith.constant 0 : index
    %2 = vector.load %arg2[%c0_2, %c0_3, %c0_4] : memref<9x128x128xbf16, #tpu.memory_space<vmem>>, vector<1x128x128xbf16>
    %3 = vector.shape_cast %2 : vector<1x128x128xbf16> to vector<128x128xbf16>
    %cst = arith.constant dense<0.000000e+00> : vector<3x128xf32>
    %4 = tpu.matmul %1, %3, %cst {dimension_numbers = #tpu.dot_dimension_numbers<[1], [0], [0], [1], [0, 0, 1, 1], [], []>} : vector<3x128xbf16>, vector<128x128xbf16>, vector<3x128xf32> -> vector<3x128xf32>
    %c0_5 = arith.constant 0 : index
    %c1 = arith.constant 1 : index
    %c0_6 = arith.constant 0 : index
    %5 = vector.load %arg1[%c0_5, %c1, %c0_6] : memref<1x12x128xbf16, #tpu.memory_space<vmem>>, vector<1x3x128xbf16>
    %6 = vector.shape_cast %5 : vector<1x3x128xbf16> to vector<3x128xbf16>
    %c1_7 = arith.constant 1 : index
    %c0_8 = arith.constant 0 : index
    %c0_9 = arith.constant 0 : index
    %7 = vector.load %arg2[%c1_7, %c0_8, %c0_9] : memref<9x128x128xbf16, #tpu.memory_space<vmem>>, vector<1x128x128xbf16>
    %8 = vector.shape_cast %7 : vector<1x128x128xbf16> to vector<128x128xbf16>
    %cst_10 = arith.constant dense<0.000000e+00> : vector<3x128xf32>
    %9 = tpu.matmul %6, %8, %cst_10 {dimension_numbers = #tpu.dot_dimension_numbers<[1], [0], [0], [1], [0, 0, 1, 1], [], []>} : vector<3x128xbf16>, vector<128x128xbf16>, vector<3x128xf32> -> vector<3x128xf32>
    %10 = arith.addf %4, %9 : vector<3x128xf32>
    %c0_11 = arith.constant 0 : index
    %c2 = arith.constant 2 : index
    %c0_12 = arith.constant 0 : index
    %11 = vector.load %arg1[%c0_11, %c2, %c0_12] : memref<1x12x128xbf16, #tpu.memory_space<vmem>>, vector<1x3x128xbf16>
    %12 = vector.shape_cast %11 : vector<1x3x128xbf16> to vector<3x128xbf16>
    %c2_13 = arith.constant 2 : index
    %c0_14 = arith.constant 0 : index
    %c0_15 = arith.constant 0 : index
    %13 = vector.load %arg2[%c2_13, %c0_14, %c0_15] : memref<9x128x128xbf16, #tpu.memory_space<vmem>>, vector<1x128x128xbf16>
    %14 = vector.shape_cast %13 : vector<1x128x128xbf16> to vector<128x128xbf16>
    %cst_16 = arith.constant dense<0.000000e+00> : vector<3x128xf32>
    %15 = tpu.matmul %12, %14, %cst_16 {dimension_numbers = #tpu.dot_dimension_numbers<[1], [0], [0], [1], [0, 0, 1, 1], [], []>} : vector<3x128xbf16>, vector<128x128xbf16>, vector<3x128xf32> -> vector<3x128xf32>
    %16 = arith.addf %10, %15 : vector<3x128xf32>
    %c0_17 = arith.constant 0 : index
    %c3 = arith.constant 3 : index
    %c0_18 = arith.constant 0 : index
    %17 = vector.load %arg1[%c0_17, %c3, %c0_18] : memref<1x12x128xbf16, #tpu.memory_space<vmem>>, vector<1x3x128xbf16>
    %18 = vector.shape_cast %17 : vector<1x3x128xbf16> to vector<3x128xbf16>
    %c3_19 = arith.constant 3 : index
    %c0_20 = arith.constant 0 : index
    %c0_21 = arith.constant 0 : index
    %19 = vector.load %arg2[%c3_19, %c0_20, %c0_21] : memref<9x128x128xbf16, #tpu.memory_space<vmem>>, vector<1x128x128xbf16>
    %20 = vector.shape_cast %19 : vector<1x128x128xbf16> to vector<128x128xbf16>
    %cst_22 = arith.constant dense<0.000000e+00> : vector<3x128xf32>
    %21 = tpu.matmul %18, %20, %cst_22 {dimension_numbers = #tpu.dot_dimension_numbers<[1], [0], [0], [1], [0, 0, 1, 1], [], []>} : vector<3x128xbf16>, vector<128x128xbf16>, vector<3x128xf32> -> vector<3x128xf32>
    %22 = arith.addf %16, %21 : vector<3x128xf32>
    %c0_23 = arith.constant 0 : index
    %c4 = arith.constant 4 : index
    %c0_24 = arith.constant 0 : index
    %23 = vector.load %arg1[%c0_23, %c4, %c0_24] : memref<1x12x128xbf16, #tpu.memory_space<vmem>>, vector<1x3x128xbf16>
    %24 = vector.shape_cast %23 : vector<1x3x128xbf16> to vector<3x128xbf16>
    %c4_25 = arith.constant 4 : index
    %c0_26 = arith.constant 0 : index
    %c0_27 = arith.constant 0 : index
    %25 = vector.load %arg2[%c4_25, %c0_26, %c0_27] : memref<9x128x128xbf16, #tpu.memory_space<vmem>>, vector<1x128x128xbf16>
    %26 = vector.shape_cast %25 : vector<1x128x128xbf16> to vector<128x128xbf16>
    %cst_28 = arith.constant dense<0.000000e+00> : vector<3x128xf32>
    %27 = tpu.matmul %24, %26, %cst_28 {dimension_numbers = #tpu.dot_dimension_numbers<[1], [0], [0], [1], [0, 0, 1, 1], [], []>} : vector<3x128xbf16>, vector<128x128xbf16>, vector<3x128xf32> -> vector<3x128xf32>
    %28 = arith.addf %22, %27 : vector<3x128xf32>
    %c0_29 = arith.constant 0 : index
    %c5 = arith.constant 5 : index
    %c0_30 = arith.constant 0 : index
    %29 = vector.load %arg1[%c0_29, %c5, %c0_30] : memref<1x12x128xbf16, #tpu.memory_space<vmem>>, vector<1x3x128xbf16>
    %30 = vector.shape_cast %29 : vector<1x3x128xbf16> to vector<3x128xbf16>
    %c5_31 = arith.constant 5 : index
    %c0_32 = arith.constant 0 : index
    %c0_33 = arith.constant 0 : index
    %31 = vector.load %arg2[%c5_31, %c0_32, %c0_33] : memref<9x128x128xbf16, #tpu.memory_space<vmem>>, vector<1x128x128xbf16>
    %32 = vector.shape_cast %31 : vector<1x128x128xbf16> to vector<128x128xbf16>
    %cst_34 = arith.constant dense<0.000000e+00> : vector<3x128xf32>
    %33 = tpu.matmul %30, %32, %cst_34 {dimension_numbers = #tpu.dot_dimension_numbers<[1], [0], [0], [1], [0, 0, 1, 1], [], []>} : vector<3x128xbf16>, vector<128x128xbf16>, vector<3x128xf32> -> vector<3x128xf32>
    %34 = arith.addf %28, %33 : vector<3x128xf32>
    %c0_35 = arith.constant 0 : index
    %c6 = arith.constant 6 : index
    %c0_36 = arith.constant 0 : index
    %35 = vector.load %arg1[%c0_35, %c6, %c0_36] : memref<1x12x128xbf16, #tpu.memory_space<vmem>>, vector<1x3x128xbf16>
    %36 = vector.shape_cast %35 : vector<1x3x128xbf16> to vector<3x128xbf16>
    %c6_37 = arith.constant 6 : index
    %c0_38 = arith.constant 0 : index
    %c0_39 = arith.constant 0 : index
    %37 = vector.load %arg2[%c6_37, %c0_38, %c0_39] : memref<9x128x128xbf16, #tpu.memory_space<vmem>>, vector<1x128x128xbf16>
    %38 = vector.shape_cast %37 : vector<1x128x128xbf16> to vector<128x128xbf16>
    %cst_40 = arith.constant dense<0.000000e+00> : vector<3x128xf32>
    %39 = tpu.matmul %36, %38, %cst_40 {dimension_numbers = #tpu.dot_dimension_numbers<[1], [0], [0], [1], [0, 0, 1, 1], [], []>} : vector<3x128xbf16>, vector<128x128xbf16>, vector<3x128xf32> -> vector<3x128xf32>
    %40 = arith.addf %34, %39 : vector<3x128xf32>
    %c0_41 = arith.constant 0 : index
    %c7 = arith.constant 7 : index
    %c0_42 = arith.constant 0 : index
    %41 = vector.load %arg1[%c0_41, %c7, %c0_42] : memref<1x12x128xbf16, #tpu.memory_space<vmem>>, vector<1x3x128xbf16>
    %42 = vector.shape_cast %41 : vector<1x3x128xbf16> to vector<3x128xbf16>
    %c7_43 = arith.constant 7 : index
    %c0_44 = arith.constant 0 : index
    %c0_45 = arith.constant 0 : index
    %43 = vector.load %arg2[%c7_43, %c0_44, %c0_45] : memref<9x128x128xbf16, #tpu.memory_space<vmem>>, vector<1x128x128xbf16>
    %44 = vector.shape_cast %43 : vector<1x128x128xbf16> to vector<128x128xbf16>
    %cst_46 = arith.constant dense<0.000000e+00> : vector<3x128xf32>
    %45 = tpu.matmul %42, %44, %cst_46 {dimension_numbers = #tpu.dot_dimension_numbers<[1], [0], [0], [1], [0, 0, 1, 1], [], []>} : vector<3x128xbf16>, vector<128x128xbf16>, vector<3x128xf32> -> vector<3x128xf32>
    %46 = arith.addf %40, %45 : vector<3x128xf32>
    %c0_47 = arith.constant 0 : index
    %c8 = arith.constant 8 : index
    %c0_48 = arith.constant 0 : index
    %47 = vector.load %arg1[%c0_47, %c8, %c0_48] : memref<1x12x128xbf16, #tpu.memory_space<vmem>>, vector<1x3x128xbf16>
    %48 = vector.shape_cast %47 : vector<1x3x128xbf16> to vector<3x128xbf16>
    %c8_49 = arith.constant 8 : index
    %c0_50 = arith.constant 0 : index
    %c0_51 = arith.constant 0 : index
    %49 = vector.load %arg2[%c8_49, %c0_50, %c0_51] : memref<9x128x128xbf16, #tpu.memory_space<vmem>>, vector<1x128x128xbf16>
    %50 = vector.shape_cast %49 : vector<1x128x128xbf16> to vector<128x128xbf16>
    %cst_52 = arith.constant dense<0.000000e+00> : vector<3x128xf32>
    %51 = tpu.matmul %48, %50, %cst_52 {dimension_numbers = #tpu.dot_dimension_numbers<[1], [0], [0], [1], [0, 0, 1, 1], [], []>} : vector<3x128xbf16>, vector<128x128xbf16>, vector<3x128xf32> -> vector<3x128xf32>
    %52 = arith.addf %46, %51 : vector<3x128xf32>
    %c0_53 = arith.constant 0 : index
    %c0_54 = arith.constant 0 : index
    %53 = vector.load %arg3[%c0_53, %c0_54] : memref<1x128xf32, #tpu.memory_space<vmem>>, vector<1x128xf32>
    %54 = vector.broadcast %53 : vector<1x128xf32> to vector<3x128xf32>
    %55 = arith.addf %52, %54 : vector<3x128xf32>
    %cst_55 = arith.constant 0.000000e+00 : f32
    %56 = vector.broadcast %cst_55 : f32 to vector<3x128xf32>
    %57 = arith.maximumf %55, %56 : vector<3x128xf32>
    %58 = arith.truncf %57 : vector<3x128xf32> to vector<3x128xbf16>
    %c0_56 = arith.constant 0 : index
    %c0_57 = arith.constant 0 : index
    %c0_58 = arith.constant 0 : index
    %59 = vector.load %arg4[%c0_56, %c0_57, %c0_58] : memref<1x3x128xbf16, #tpu.memory_space<vmem>>, vector<1x3x128xbf16>
    %60 = vector.shape_cast %59 : vector<1x3x128xbf16> to vector<3x128xbf16>
    %61 = vector.shape_cast %58 : vector<3x128xbf16> to vector<1x3x128xbf16>
    tpu.vector_store %arg4[%c0_56, %c0_57, %c0_58], %61 {strides = array<i32>} : memref<1x3x128xbf16, #tpu.memory_space<vmem>>, vector<1x3x128xbf16>,
    return
  }
  func.func @transform_0(%arg0: i32) -> (i32, i32, i32) {
    %c0_i32 = arith.constant 0 : i32
    %c0_i32_0 = arith.constant 0 : i32
    %c0_i32_1 = arith.constant 0 : i32
    return %arg0, %c0_i32, %c0_i32_0 : i32, i32, i32
  }
  func.func @transform_1(%arg0: i32) -> (i32, i32, i32) {
    %c0_i32 = arith.constant 0 : i32
    %c0_i32_0 = arith.constant 0 : i32
    %c0_i32_1 = arith.constant 0 : i32
    %c0_i32_2 = arith.constant 0 : i32
    return %c0_i32, %c0_i32_0, %c0_i32_1 : i32, i32, i32
  }
  func.func @transform_2(%arg0: i32) -> (i32, i32) {
    %c0_i32 = arith.constant 0 : i32
    %c0_i32_0 = arith.constant 0 : i32
    %c0_i32_1 = arith.constant 0 : i32
    return %c0_i32, %c0_i32_0 : i32, i32
  }
  func.func @transform_3(%arg0: i32) -> (i32, i32, i32) {
    %c0_i32 = arith.constant 0 : i32
    %c0_i32_0 = arith.constant 0 : i32
    %c0_i32_1 = arith.constant 0 : i32
    return %arg0, %c0_i32, %c0_i32_0 : i32, i32, i32
  }
}

module attributes {stable_mosaic.version = 11 : i64} {
  func.func @_decoder_kernel(%arg0: memref<2x1x128xf32, #tpu.memory_space<vmem>>, %arg1: memref<128x128xf32, #tpu.memory_space<vmem>>, %arg2: memref<1x128xf32, #tpu.memory_space<vmem>>, %arg3: memref<2x128xf32, #tpu.memory_space<vmem>>) attributes {dimension_semantics = [], scalar_prefetch = 0 : i64, scratch_operands = 0 : i64, tpu.core_type = #tpu.core_type<tc>} {
    %c0 = arith.constant 0 : index
    %c0_0 = arith.constant 0 : index
    %c0_1 = arith.constant 0 : index
    %0 = vector.load %arg0[%c0, %c0_0, %c0_1] : memref<2x1x128xf32, #tpu.memory_space<vmem>>, vector<2x1x128xf32>
    %cst = arith.constant dense<0.000000e+00> : vector<2x128xf32>
    %1 = vector.multi_reduction <add>, %0, %cst [1] : vector<2x1x128xf32> to vector<2x128xf32>
    %cst_2 = arith.constant 1.000000e+00 : f32
    %2 = vector.broadcast %cst_2 : f32 to vector<2x128xf32>
    %3 = arith.divf %1, %2 : vector<2x128xf32>
    %c0_3 = arith.constant 0 : index
    %c0_4 = arith.constant 0 : index
    %4 = vector.load %arg1[%c0_3, %c0_4] : memref<128x128xf32, #tpu.memory_space<vmem>>, vector<128x128xf32>
    %cst_5 = arith.constant dense<0.000000e+00> : vector<2x128xf32>
    %5 = tpu.matmul %3, %4, %cst_5 {dimension_numbers = #tpu.dot_dimension_numbers<[1], [0], [0], [1], [0, 0, 1, 1], [], []>} : vector<2x128xf32>, vector<128x128xf32>, vector<2x128xf32> -> vector<2x128xf32>
    %c0_6 = arith.constant 0 : index
    %c0_7 = arith.constant 0 : index
    %6 = vector.load %arg2[%c0_6, %c0_7] : memref<1x128xf32, #tpu.memory_space<vmem>>, vector<1x128xf32>
    %7 = vector.broadcast %6 : vector<1x128xf32> to vector<2x128xf32>
    %8 = arith.addf %5, %7 : vector<2x128xf32>
    %c0_8 = arith.constant 0 : index
    %c0_9 = arith.constant 0 : index
    %9 = vector.load %arg3[%c0_8, %c0_9] : memref<2x128xf32, #tpu.memory_space<vmem>>, vector<2x128xf32>
    tpu.vector_store %arg3[%c0_8, %c0_9], %8 {strides = array<i32>} : memref<2x128xf32, #tpu.memory_space<vmem>>, vector<2x128xf32>,
    return
  }
}

</mosaic_0001>

<bundles_post_ra>
// kernel: _lambda_.22
= control target key start
LH: loop header
LB: loop body
LE: loop exit
PB: predicated region body
PF: predicated region fallthrough
CT: control target
= control target key end

     0   :  { %s1251_s12 = smov 0   ;;  %s1407_s0 = inlined_call_operand.vmem [shape: bf16[512,147], index: 0, kind: input, shape index: {}]   ;;  %s1408_s1 = inlined_call_operand.vmem [shape: bf16[147,128], index: 1, kind: input, shape index: {}]   ;;  %s1409_s2 = inlined_call_operand.vmem [shape: f32[1,128], index: 2, kind: input, shape index: {}]   ;;  %s1410_s3 = inlined_call_operand.vmem [shape: bf16[512,128], index: 3, kind: output, shape index: {}]  }
   0x1 LB: > { %s902_s13 = sadd.s32 4294967295, %s1227_s12   ;;  %p906_p0 = scmp.ge.s32.totalorder %s1227_s12, 1  ;;  %s1227_s12 = sphi %s1251_s12, %s13_s12  }
   0x2   : > { %p139_p1 = scmp.lt.s32.totalorder %s1227_s12, 3 }
   0x4   : > { %p140_p2 = pnand %p906_p0, %p139_p1 }
   0x5   : > { %v1163_v0 = vld [vmem:[%s1408_s1] sm:$0xff] (!%p140_p2)   ;;  %v1229_v1 = vmov (!%p140_p2), 0   ;;  %v1164_v2 = vld [vmem:[%s1408_s1 + $0x8] sm:$0xff] (!%p140_p2)   ;;  %v1165_v3 = vld [vmem:[%s1408_s1 + $0x10] sm:$0xff] (!%p140_p2)   ;;  %s907_s20 = sshll.u32 (!%p140_p2), %s902_s13, 5  ;;  %vm437_vm0 = vcmask (!%p140_p2), 154624  }
   0x6   : > { %143 = sbr.rel (%p140_p2) target bundleno = 323 (0x143), region = 32  ;;  %493 = vmatprep.subr.bf16.mxu0 (!%p140_p2), %v1229_v1  ;;  %1133 = vmatprep.subr.bf16.mxu1 (!%p140_p2), %v1229_v1  ;;  %p165_p3 = scmp.lt.s32.totalorder (!%p140_p2), %s907_s20, 63  ;;  %v1166_v4 = vld [vmem:[%s1408_s1 + $0x18] sm:$0xff] (!%p140_p2)   ;;  %v1167_v5 = vld [vmem:[%s1408_s1 + $0x20] sm:$0xff] (!%p140_p2)   ;;  %v1168_v8 = vld [vmem:[%s1408_s1 + $0x28] sm:$0xff] (!%p140_p2)   ;;  %vm486_vm1 = vcmask (!%p140_p2), 1040384  }
   0x7   : > { %494 = vmatpush1.bf16.msra.mxu0 (!%p140_p2), %v1163_v0  ;;  %1143 = vmatpush1.bf16.msra.mxu1 (!%p140_p2), %v1163_v0  ;;  %v1169_v9 = vld [vmem:[%s1408_s1 + $0x30] sm:$0xff] (!%p140_p2)   ;;  %v1170_v10 = vld [vmem:[%s1408_s1 + $0x38] sm:$0xff] (!%p140_p2)   ;;  %vm487_vm2 = vcmask (!%p140_p2), 1041408   ;;  %v1230_v11 = vmov (!%p140_p2), 65535   ;;  %v1171_v13 = vld [vmem:[%s1408_s1 + $0x40] sm:$0xff] (!%p140_p2)  }
   0x8   : > { %495 = vmatprep.subr.bf16.mxu0 (!%p140_p2), %v1229_v1  ;;  %1134 = vmatprep.subr.bf16.mxu1 (!%p140_p2), %v1229_v1  ;;  %v488_v12 = vsel (!%p140_p2), %vm486_vm1, 4294967295, %v1230_v11  ;;  %v1172_v14 = vld [vmem:[%s1408_s1 + $0x48] ss:$0 sps:$4 sm:$0x33] (!%p140_p2)   ;;  %v1348_v47 = vld [vmem:[%s1409_s2] ss:$0 sm:$0xff] (!%p140_p2) }
   0x9   : > { %v489_v15 = vsel (!%p140_p2), %vm487_vm2, %v488_v12, 0 }
   0xa   : > { %v491_v16 = vand.u32 (!%p140_p2), %v1172_v14, %v489_v15 }
   0xb   : > { %496 = vmatpush1.bf16.msra.mxu0 (!%p140_p2), %v1164_v2  ;;  %1144 = vmatpush1.bf16.msra.mxu1 (!%p140_p2), %v1164_v2 }
   0xc   : > { %497 = vmatprep.subr.bf16.mxu0 (!%p140_p2), %v1229_v1  ;;  %1135 = vmatprep.subr.bf16.mxu1 (!%p140_p2), %v1229_v1 }
   0xd   : > { %s1412_s20 = smov (!%p165_p3, %s907_s20), 63 }
   0xe   : > { %s1005_s23 = sshll.u32 %s1412_s20, 3  ;;  %s911_s15 = sshll.u32 %s1412_s20, 2 }
   0xf   : > { %498 = vmatpush1.bf16.msra.mxu0 %v1165_v3  ;;  %1145 = vmatpush1.bf16.msra.mxu1 %v1165_v3  ;;  %s1277_s26 = scalar_lea.vmem %s1407_s0, %s1005_s23  ;;  %s1358_s18 = scalar_lea.vmem %s1410_s3, %s911_s15 }
  0x10   : > { %499 = vmatprep.subr.bf16.mxu0 %v1229_v1  ;;  %1136 = vmatprep.subr.bf16.mxu1 %v1229_v1  ;;  %v1175_v6 = vld [vmem:[%s1277_s26 + $0x4] ss:$8 sps:$4 sm:$0xff]   ;;  %v1173_v17 = vld [vmem:[%s1277_s26] ss:$8 sps:$4 sm:$0xff]   ;;  %v1179_v19 = vld [vmem:[%s1277_s26 + $0x14] ss:$8 sps:$4 sm:$0xff]  }
  0x11   : > { %v1178_v7 = vld [vmem:[%s1277_s26 + $0x84] ss:$8 sps:$4 sm:$0xff]   ;;  %955 = vmatprep.mubr.msk.bf16.mxu0 %vm437_vm0, %v1175_v6  ;;  %v1176_v18 = vld [vmem:[%s1277_s26 + $0x80] ss:$8 sps:$4 sm:$0xff]   ;;  %v1181_v20 = vld [vmem:[%s1277_s26 + $0x94] ss:$8 sps:$4 sm:$0xff]  }
  0x12   : > { %963 = vmatprep.mubr.msk.bf16.mxu1 %vm437_vm0, %v1178_v7  ;;  %v1183_v21 = vld [vmem:[%s1277_s26 + $0x10] ss:$8 sps:$4 sm:$0xff]   ;;  %v1185_v23 = vld [vmem:[%s1277_s26 + $0x24] ss:$8 sps:$4 sm:$0xff]   ;;  %v1189_v25 = vld [vmem:[%s1277_s26 + $0x20] ss:$8 sps:$4 sm:$0xff]  }
  0x13   : > { %500 = vmatpush1.bf16.msra.mxu0 %v1166_v4  ;;  %1146 = vmatpush1.bf16.msra.mxu1 %v1166_v4  ;;  %v1184_v22 = vld [vmem:[%s1277_s26 + $0x90] ss:$8 sps:$4 sm:$0xff]   ;;  %v1187_v24 = vld [vmem:[%s1277_s26 + $0xa4] ss:$8 sps:$4 sm:$0xff]   ;;  %v1190_v26 = vld [vmem:[%s1277_s26 + $0xa0] ss:$8 sps:$4 sm:$0xff]  }
  0x14   : > { %501 = vmatprep.subr.bf16.mxu0 %v1229_v1  ;;  %1137 = vmatprep.subr.bf16.mxu1 %v1229_v1  ;;  %v1191_v27 = vld [vmem:[%s1277_s26 + $0x34] ss:$8 sps:$4 sm:$0xff]   ;;  %v1195_v29 = vld [vmem:[%s1277_s26 + $0x30] ss:$8 sps:$4 sm:$0xff]   ;;  %v1197_v31 = vld [vmem:[%s1277_s26 + $0x44] ss:$8 sps:$4 sm:$0xff]  }
  0x15   : > { %v1193_v28 = vld [vmem:[%s1277_s26 + $0xb4] ss:$8 sps:$4 sm:$0xff]   ;;  %v1196_v30 = vld [vmem:[%s1277_s26 + $0xb0] ss:$8 sps:$4 sm:$0xff]   ;;  %v1199_v32 = vld [vmem:[%s1277_s26 + $0xc4] ss:$8 sps:$4 sm:$0xff]  }
  0x16   : > { %v1201_v33 = vld [vmem:[%s1277_s26 + $0x40] ss:$8 sps:$4 sm:$0xff]   ;;  %v1203_v35 = vld [vmem:[%s1277_s26 + $0x54] ss:$8 sps:$4 sm:$0xff]   ;;  %v1207_v37 = vld [vmem:[%s1277_s26 + $0x50] ss:$8 sps:$4 sm:$0xff]  }
  0x17   : > { %502 = vmatpush1.bf16.msra.mxu0 %v1167_v5  ;;  %1147 = vmatpush1.bf16.msra.mxu1 %v1167_v5  ;;  %v1202_v34 = vld [vmem:[%s1277_s26 + $0xc0] ss:$8 sps:$4 sm:$0xff]   ;;  %v1205_v36 = vld [vmem:[%s1277_s26 + $0xd4] ss:$8 sps:$4 sm:$0xff]   ;;  %v1208_v38 = vld [vmem:[%s1277_s26 + $0xd0] ss:$8 sps:$4 sm:$0xff]  }
  0x18   : > { %503 = vmatprep.subr.bf16.mxu0 %v1229_v1  ;;  %1138 = vmatprep.subr.bf16.mxu1 %v1229_v1  ;;  %v1209_v39 = vld [vmem:[%s1277_s26 + $0x64] ss:$8 sps:$4 sm:$0xff]   ;;  %v1213_v41 = vld [vmem:[%s1277_s26 + $0x60] ss:$8 sps:$4 sm:$0xff]   ;;  %v1215_v43 = vld [vmem:[%s1277_s26 + $0x74] ss:$8 sps:$4 sm:$0xff]  }
  0x19   : > { %v1211_v40 = vld [vmem:[%s1277_s26 + $0xe4] ss:$8 sps:$4 sm:$0xff]   ;;  %v1214_v42 = vld [vmem:[%s1277_s26 + $0xe0] ss:$8 sps:$4 sm:$0xff]   ;;  %v1217_v44 = vld [vmem:[%s1277_s26 + $0xf4] ss:$8 sps:$4 sm:$0xff]  }
  0x1a   : > { %v1219_v45 = vld [vmem:[%s1277_s26 + $0x70] ss:$8 sps:$4 sm:$0xff]  }
  0x1b   : > { %504 = vmatpush1.bf16.msra.mxu0 %v1168_v8  ;;  %1148 = vmatpush1.bf16.msra.mxu1 %v1168_v8  ;;  %v1220_v46 = vld [vmem:[%s1277_s26 + $0xf0] ss:$8 sps:$4 sm:$0xff]  }
  0x1c   : > { %505 = vmatprep.subr.bf16.mxu0 %v1229_v1  ;;  %1139 = vmatprep.subr.bf16.mxu1 %v1229_v1 }
  0x1f   : > { %506 = vmatpush1.bf16.msra.mxu0 %v1169_v9  ;;  %1149 = vmatpush1.bf16.msra.mxu1 %v1169_v9 }
  0x20   : > { %507 = vmatprep.subr.bf16.mxu0 %v1229_v1  ;;  %1140 = vmatprep.subr.bf16.mxu1 %v1229_v1 }
  0x23   : > { %508 = vmatpush1.bf16.msra.mxu0 %v1170_v10  ;;  %1150 = vmatpush1.bf16.msra.mxu1 %v1170_v10 }
  0x24   : > { %509 = vmatprep.subr.bf16.mxu0 %v1229_v1  ;;  %1141 = vmatprep.subr.bf16.mxu1 %v1229_v1 }
  0x27   : > { %510 = vmatpush1.bf16.msra.mxu0 %v1171_v13  ;;  %1151 = vmatpush1.bf16.msra.mxu1 %v1171_v13 }
  0x28   : > { %511 = vmatprep.subr.bf16.mxu0 %v1229_v1  ;;  %1142 = vmatprep.subr.bf16.mxu1 %v1229_v1 }
  0x2b   : > { %512 = vmatpush1.bf16.msra.mxu0 %v491_v16  ;;  %1152 = vmatpush1.bf16.msra.mxu1 %v491_v16 }
  0x2e   : > { %526 = vmatmul.mubr.bf16.vlgmr.msra.gmra.mrb[0].mxu0 %v1173_v17  ;;  %590 = vmatmul.mubr.bf16.vlgmr.msra.gmra.mrb[0].mxu1 %v1176_v18 }
  0x2f   : > { %956 = vmatprep.mubr.msk.bf16.mxu0 %vm437_vm0, %v1179_v19  ;;  %964 = vmatprep.mubr.msk.bf16.mxu1 %vm437_vm0, %v1181_v20 }
  0x36   : > { %534 = vmatmul.mubr.bf16.gmra.mrb[4].mxu0 %v1183_v21  ;;  %598 = vmatmul.mubr.bf16.gmra.mrb[4].mxu1 %v1184_v22 }
  0x37   : > { %957 = vmatprep.mubr.msk.bf16.mxu0 %vm437_vm0, %v1185_v23  ;;  %965 = vmatprep.mubr.msk.bf16.mxu1 %vm437_vm0, %v1187_v24 }
  0x3e   : > { %542 = vmatmul.mubr.bf16.gmra.mrb[8].mxu0 %v1189_v25  ;;  %606 = vmatmul.mubr.bf16.gmra.mrb[8].mxu1 %v1190_v26 }
  0x3f   : > { %958 = vmatprep.mubr.msk.bf16.mxu0 %vm437_vm0, %v1191_v27  ;;  %966 = vmatprep.mubr.msk.bf16.mxu1 %vm437_vm0, %v1193_v28 }
  0x46   : > { %550 = vmatmul.mubr.bf16.gmra.mrb[12].mxu0 %v1195_v29  ;;  %614 = vmatmul.mubr.bf16.gmra.mrb[12].mxu1 %v1196_v30 }
  0x47   : > { %959 = vmatprep.mubr.msk.bf16.mxu0 %vm437_vm0, %v1197_v31  ;;  %967 = vmatprep.mubr.msk.bf16.mxu1 %vm437_vm0, %v1199_v32 }
  0x4e   : > { %558 = vmatmul.mubr.bf16.gmra.mrb[16].mxu0 %v1201_v33  ;;  %622 = vmatmul.mubr.bf16.gmra.mrb[16].mxu1 %v1202_v34 }
  0x4f   : > { %960 = vmatprep.mubr.msk.bf16.mxu0 %vm437_vm0, %v1203_v35  ;;  %968 = vmatprep.mubr.msk.bf16.mxu1 %vm437_vm0, %v1205_v36 }
  0x56   : > { %566 = vmatmul.mubr.bf16.gmra.mrb[20].mxu0 %v1207_v37  ;;  %630 = vmatmul.mubr.bf16.gmra.mrb[20].mxu1 %v1208_v38 }
  0x57   : > { %961 = vmatprep.mubr.msk.bf16.mxu0 %vm437_vm0, %v1209_v39  ;;  %969 = vmatprep.mubr.msk.bf16.mxu1 %vm437_vm0, %v1211_v40 }
  0x5e   : > { %574 = vmatmul.mubr.bf16.gmra.mrb[24].mxu0 %v1213_v41  ;;  %638 = vmatmul.mubr.bf16.gmra.mrb[24].mxu1 %v1214_v42 }
  0x5f   : > { %962 = vmatprep.mubr.msk.bf16.mxu0 %vm437_vm0, %v1215_v43  ;;  %970 = vmatprep.mubr.msk.bf16.mxu1 %vm437_vm0, %v1217_v44 }
  0x66   : > { %582 = vmatmul.mubr.bf16.gmra.mrb[28].mxu0 %v1219_v45  ;;  %646 = vmatmul.mubr.bf16.gmra.mrb[28].mxu1 %v1220_v46 }
 0x101   : > { %v527_v48 = vpop.f32.mrb[0].mxu0  ;;  %v591_v49 = vpop.f32.mrb[0].mxu1 }
 0x102   : > { %v528_v50 = vadd.f32 %v1348_v47, %v527_v48  ;;  %v592_v51 = vadd.f32 %v1348_v47, %v591_v49  ;;  %v529_v52 = vpop.f32.mrb[1].mxu0  ;;  %v593_v53 = vpop.f32.mrb[1].mxu1 }
 0x103   : > { %v530_v54 = vpop.f32.mrb[2].mxu0  ;;  %v594_v55 = vpop.f32.mrb[2].mxu1 }
 0x104   : > { %v531_v56 = vadd.f32 %v1348_v47, %v530_v54  ;;  %v595_v57 = vadd.f32 %v1348_v47, %v594_v55  ;;  %v532_v58 = vpop.f32.mrb[3].mxu0  ;;  %v596_v59 = vpop.f32.mrb[3].mxu1  ;;  %v654_v60 = vmax.f32 %v528_v50, 0.0  ;;  %v670_v61 = vmax.f32 %v592_v51, 0.0 }
 0x106   : > { %v655_v62 = vmax.f32 %v531_v56, 0.0  ;;  %v671_v63 = vmax.f32 %v595_v57, 0.0 }
 0x108   : > { %v1041_v0 = vpack.c.bf16 %v655_v62, %v654_v60  ;;  %v1081_v1 = vpack.c.bf16 %v671_v63, %v670_v61 }
 0x109   : > { %v535_v2 = vpop.f32.mrb[4].mxu0  ;;  %v599_v3 = vpop.f32.mrb[4].mxu1 }
 0x10a   : > { %1042 = vst [vmem:[%s1358_s18] sm:$0xff] %v1041_v0   ;;  %1125 = vst [vmem:[%s1358_s18 + $0x40] sm:$0xff] %v1081_v1   ;;  %v536_v4 = vadd.f32 %v1348_v47, %v535_v2  ;;  %v600_v5 = vadd.f32 %v1348_v47, %v599_v3  ;;  %v537_v6 = vpop.f32.mrb[5].mxu0  ;;  %v601_v7 = vpop.f32.mrb[5].mxu1 }
 0x10b   : > { %v538_v8 = vpop.f32.mrb[6].mxu0  ;;  %v602_v9 = vpop.f32.mrb[6].mxu1 }
 0x10c   : > { %v539_v10 = vadd.f32 %v1348_v47, %v538_v8  ;;  %v603_v11 = vadd.f32 %v1348_v47, %v602_v9  ;;  %v540_v12 = vpop.f32.mrb[7].mxu0  ;;  %v604_v13 = vpop.f32.mrb[7].mxu1  ;;  %v656_v14 = vmax.f32 %v536_v4, 0.0  ;;  %v672_v15 = vmax.f32 %v600_v5, 0.0 }
 0x10e   : > { %v657_v16 = vmax.f32 %v539_v10, 0.0  ;;  %v673_v17 = vmax.f32 %v603_v11, 0.0 }
 0x110   : > { %v1046_v18 = vpack.c.bf16 %v657_v16, %v656_v14  ;;  %v1086_v19 = vpack.c.bf16 %v673_v17, %v672_v15 }
 0x111   : > { %v543_v20 = vpop.f32.mrb[8].mxu0  ;;  %v607_v21 = vpop.f32.mrb[8].mxu1 }
 0x112   : > { %1118 = vst [vmem:[%s1358_s18 + $0x8] sm:$0xff] %v1046_v18   ;;  %1126 = vst [vmem:[%s1358_s18 + $0x48] sm:$0xff] %v1086_v19   ;;  %v544_v22 = vadd.f32 %v1348_v47, %v543_v20  ;;  %v608_v23 = vadd.f32 %v1348_v47, %v607_v21  ;;  %v545_v24 = vpop.f32.mrb[9].mxu0  ;;  %v609_v25 = vpop.f32.mrb[9].mxu1 }
 0x113   : > { %v546_v26 = vpop.f32.mrb[10].mxu0  ;;  %v610_v27 = vpop.f32.mrb[10].mxu1 }
 0x114   : > { %v547_v28 = vadd.f32 %v1348_v47, %v546_v26  ;;  %v611_v29 = vadd.f32 %v1348_v47, %v610_v27  ;;  %v548_v30 = vpop.f32.mrb[11].mxu0  ;;  %v612_v31 = vpop.f32.mrb[11].mxu1  ;;  %v658_v32 = vmax.f32 %v544_v22, 0.0  ;;  %v674_v33 = vmax.f32 %v608_v23, 0.0 }
 0x116   : > { %v659_v34 = vmax.f32 %v547_v28, 0.0  ;;  %v675_v35 = vmax.f32 %v611_v29, 0.0 }
 0x118   : > { %v1051_v36 = vpack.c.bf16 %v659_v34, %v658_v32  ;;  %v1091_v37 = vpack.c.bf16 %v675_v35, %v674_v33 }
 0x119   : > { %v551_v38 = vpop.f32.mrb[12].mxu0  ;;  %v615_v39 = vpop.f32.mrb[12].mxu1 }
 0x11a   : > { %1119 = vst [vmem:[%s1358_s18 + $0x10] sm:$0xff] %v1051_v36   ;;  %1127 = vst [vmem:[%s1358_s18 + $0x50] sm:$0xff] %v1091_v37   ;;  %v552_v40 = vadd.f32 %v1348_v47, %v551_v38  ;;  %v616_v41 = vadd.f32 %v1348_v47, %v615_v39  ;;  %v553_v42 = vpop.f32.mrb[13].mxu0  ;;  %v617_v43 = vpop.f32.mrb[13].mxu1 }
 0x11b   : > { %v554_v44 = vpop.f32.mrb[14].mxu0  ;;  %v618_v45 = vpop.f32.mrb[14].mxu1 }
 0x11c   : > { %v555_v46 = vadd.f32 %v1348_v47, %v554_v44  ;;  %v619_v48 = vadd.f32 %v1348_v47, %v618_v45  ;;  %v556_v49 = vpop.f32.mrb[15].mxu0  ;;  %v620_v50 = vpop.f32.mrb[15].mxu1  ;;  %v660_v51 = vmax.f32 %v552_v40, 0.0  ;;  %v676_v52 = vmax.f32 %v616_v41, 0.0 }
 0x11e   : > { %v661_v53 = vmax.f32 %v555_v46, 0.0  ;;  %v677_v54 = vmax.f32 %v619_v48, 0.0 }
 0x120   : > { %v1056_v55 = vpack.c.bf16 %v661_v53, %v660_v51  ;;  %v1096_v56 = vpack.c.bf16 %v677_v54, %v676_v52 }
 0x121   : > { %v559_v57 = vpop.f32.mrb[16].mxu0  ;;  %v623_v58 = vpop.f32.mrb[16].mxu1 }
 0x122   : > { %1120 = vst [vmem:[%s1358_s18 + $0x18] sm:$0xff] %v1056_v55   ;;  %1128 = vst [vmem:[%s1358_s18 + $0x58] sm:$0xff] %v1096_v56   ;;  %v560_v59 = vadd.f32 %v1348_v47, %v559_v57  ;;  %v624_v60 = vadd.f32 %v1348_v47, %v623_v58  ;;  %v561_v61 = vpop.f32.mrb[17].mxu0  ;;  %v625_v62 = vpop.f32.mrb[17].mxu1 }
 0x123   : > { %v562_v63 = vpop.f32.mrb[18].mxu0  ;;  %v626_v0 = vpop.f32.mrb[18].mxu1 }
 0x124   : > { %v563_v1 = vadd.f32 %v1348_v47, %v562_v63  ;;  %v627_v2 = vadd.f32 %v1348_v47, %v626_v0  ;;  %v564_v3 = vpop.f32.mrb[19].mxu0  ;;  %v628_v4 = vpop.f32.mrb[19].mxu1  ;;  %v662_v5 = vmax.f32 %v560_v59, 0.0  ;;  %v678_v6 = vmax.f32 %v624_v60, 0.0 }
 0x126   : > { %v663_v7 = vmax.f32 %v563_v1, 0.0  ;;  %v679_v8 = vmax.f32 %v627_v2, 0.0 }
 0x128   : > { %v1061_v9 = vpack.c.bf16 %v663_v7, %v662_v5  ;;  %v1101_v10 = vpack.c.bf16 %v679_v8, %v678_v6 }
 0x129   : > { %v567_v11 = vpop.f32.mrb[20].mxu0  ;;  %v631_v12 = vpop.f32.mrb[20].mxu1 }
 0x12a   : > { %1121 = vst [vmem:[%s1358_s18 + $0x20] sm:$0xff] %v1061_v9   ;;  %1129 = vst [vmem:[%s1358_s18 + $0x60] sm:$0xff] %v1101_v10   ;;  %v568_v13 = vadd.f32 %v1348_v47, %v567_v11  ;;  %v632_v14 = vadd.f32 %v1348_v47, %v631_v12  ;;  %v569_v15 = vpop.f32.mrb[21].mxu0  ;;  %v633_v16 = vpop.f32.mrb[21].mxu1 }
 0x12b   : > { %v570_v17 = vpop.f32.mrb[22].mxu0  ;;  %v634_v18 = vpop.f32.mrb[22].mxu1 }
 0x12c   : > { %v571_v19 = vadd.f32 %v1348_v47, %v570_v17  ;;  %v635_v20 = vadd.f32 %v1348_v47, %v634_v18  ;;  %v572_v21 = vpop.f32.mrb[23].mxu0  ;;  %v636_v22 = vpop.f32.mrb[23].mxu1  ;;  %v664_v23 = vmax.f32 %v568_v13, 0.0  ;;  %v680_v24 = vmax.f32 %v632_v14, 0.0 }
 0x12e   : > { %v665_v25 = vmax.f32 %v571_v19, 0.0  ;;  %v681_v26 = vmax.f32 %v635_v20, 0.0 }
 0x130   : > { %v1066_v27 = vpack.c.bf16 %v665_v25, %v664_v23  ;;  %v1106_v28 = vpack.c.bf16 %v681_v26, %v680_v24 }
 0x131   : > { %v575_v29 = vpop.f32.mrb[24].mxu0  ;;  %v639_v30 = vpop.f32.mrb[24].mxu1 }
 0x132   : > { %1122 = vst [vmem:[%s1358_s18 + $0x28] sm:$0xff] %v1066_v27   ;;  %1130 = vst [vmem:[%s1358_s18 + $0x68] sm:$0xff] %v1106_v28   ;;  %v576_v31 = vadd.f32 %v1348_v47, %v575_v29  ;;  %v640_v32 = vadd.f32 %v1348_v47, %v639_v30  ;;  %v577_v33 = vpop.f32.mrb[25].mxu0  ;;  %v641_v34 = vpop.f32.mrb[25].mxu1 }
 0x133   : > { %v578_v35 = vpop.f32.mrb[26].mxu0  ;;  %v642_v36 = vpop.f32.mrb[26].mxu1 }
 0x134   : > { %v579_v37 = vadd.f32 %v1348_v47, %v578_v35  ;;  %v643_v38 = vadd.f32 %v1348_v47, %v642_v36  ;;  %v580_v39 = vpop.f32.mrb[27].mxu0  ;;  %v644_v40 = vpop.f32.mrb[27].mxu1  ;;  %v666_v41 = vmax.f32 %v576_v31, 0.0  ;;  %v682_v42 = vmax.f32 %v640_v32, 0.0 }
 0x136   : > { %v667_v43 = vmax.f32 %v579_v37, 0.0  ;;  %v683_v44 = vmax.f32 %v643_v38, 0.0 }
 0x138   : > { %v1071_v45 = vpack.c.bf16 %v667_v43, %v666_v41  ;;  %v1111_v46 = vpack.c.bf16 %v683_v44, %v682_v42 }
 0x139   : > { %v583_v48 = vpop.f32.mrb[28].mxu0  ;;  %v647_v49 = vpop.f32.mrb[28].mxu1 }
 0x13a   : > { %1123 = vst [vmem:[%s1358_s18 + $0x30] sm:$0xff] %v1071_v45   ;;  %1131 = vst [vmem:[%s1358_s18 + $0x70] sm:$0xff] %v1111_v46   ;;  %v584_v50 = vadd.f32 %v1348_v47, %v583_v48  ;;  %v648_v51 = vadd.f32 %v1348_v47, %v647_v49  ;;  %v585_v52 = vpop.f32.mrb[29].mxu0  ;;  %v649_v53 = vpop.f32.mrb[29].mxu1 }
 0x13b   : > { %v586_v54 = vpop.f32.mrb[30].mxu0  ;;  %v650_v55 = vpop.f32.mrb[30].mxu1 }
 0x13c   : > { %v587_v56 = vadd.f32 %v1348_v47, %v586_v54  ;;  %v651_v57 = vadd.f32 %v1348_v47, %v650_v55  ;;  %v588_v58 = vpop.f32.mrb[31].mxu0  ;;  %v652_v59 = vpop.f32.mrb[31].mxu1  ;;  %v668_v60 = vmax.f32 %v584_v50, 0.0  ;;  %v684_v61 = vmax.f32 %v648_v51, 0.0 }
 0x13e   : > { %v669_v62 = vmax.f32 %v587_v56, 0.0  ;;  %v685_v63 = vmax.f32 %v651_v57, 0.0 }
 0x140   : > { %v1076_v0 = vpack.c.bf16 %v669_v62, %v668_v60  ;;  %v1116_v1 = vpack.c.bf16 %v685_v63, %v684_v61 }
 0x142   : > { %1124 = vst [vmem:[%s1358_s18 + $0x38] sm:$0xff] %v1076_v0   ;;  %1132 = vst [vmem:[%s1358_s18 + $0x78] sm:$0xff] %v1116_v1  }
 0x143 PF: > { %s13_s12 = sadd.s32 1, %s1227_s12  }
 0x144   : > { %p10_p4 = scmp.ge.s32.totalorder %s13_s12, 4  }
 0x146   :  { %12 = sbr.rel (!%p10_p4) target bundleno = 1 (0x1), region = 62 }

// kernel: _lambda_.23
= control target key start
LH: loop header
LB: loop body
LE: loop exit
PB: predicated region body
PF: predicated region fallthrough
CT: control target
= control target key end

     0   :  { %s909_s15 = smov 0   ;;  %s1189_s0 = inlined_call_operand.vmem [shape: bf16[2,90,16], index: 0, kind: input, shape index: {}]   ;;  %s1190_s1 = inlined_call_operand.vmem [shape: bf16[2,90,16], index: 1, kind: input, shape index: {}]   ;;  %s1191_s2 = inlined_call_operand.vmem [shape: bf16[2,90,16], index: 2, kind: input, shape index: {}]   ;;  %s1192_s3 = inlined_call_operand.vmem [shape: bf16[2,90,16], index: 3, kind: input, shape index: {}]   ;;  %s1193_s4 = inlined_call_operand.vmem [shape: bf16[2,72,16], index: 4, kind: output, shape index: {}]  }
   0x1 LB: > { %s853_s16 = sadd.s32 4294967295, %s882_s15   ;;  %p857_p0 = scmp.ge.s32.totalorder %s882_s15, 1  ;;  %s882_s15 = sphi %s909_s15, %s14_s15  }
   0x2   : > { %p192_p1 = scmp.lt.s32.totalorder %s882_s15, 3 }
   0x4   : > { %p193_p2 = pnand %p857_p0, %p192_p1 }
   0x5   : > { %p233_p3 = scmp.lt.s32.totalorder (!%p193_p2), %s853_s16, 1  ;;  %vm286_vm0 = vsmask.f32 (!%p193_p2), 3328  ;;  %vm287_vm1 = vsmask.f32 (!%p193_p2), 7440  ;;  %vm703_vm2 = vcmask (!%p193_p2), 1042432  }
   0x6   : > { %196 = sbr.rel (%p193_p2) target bundleno = 105 (0x69), region = 36  ;;  %vm704_vm3 = vcmask (!%p193_p2), 1046532   ;;  %vm960_vm4 = vmor (!%p193_p2), %vm286_vm0, %vm287_vm1  ;;  %vm752_vm6 = vcmask (!%p193_p2), 125952  }
   0x7   : > { %vm973_vm5 = vmor (!%p193_p2), %vm703_vm2, %vm704_vm3 }
   0xd   : > { %s1199_s16 = smov (!%p233_p3, %s853_s16), 1 }
   0xe   : > { %s920_s17 = smul.u32 48, %s1199_s16 }
   0xf   : > { %s867_s30 = smul.u32 36, %s1199_s16 }
  0x10   : > { %s926_s20 = scalar_lea.vmem %s1189_s0, %s920_s17  ;;  %s932_s23 = scalar_lea.vmem %s1190_s1, %s920_s17 }
  0x11   : > { %s938_s26 = scalar_lea.vmem %s1191_s2, %s920_s17  ;;  %v258_v0 = vld [vmem:[%s926_s20] sm:$0xf]  ;;  %v259_v1 = vld [vmem:[%s926_s20 + $0x4] sm:$0xf]  ;;  %v943_v2 = vld [vmem:[%s926_s20 + $0x8] sm:$0xf]  ;;  %s969_s29 = scalar_lea.vmem %s1192_s3, %s920_s17 }
  0x12   : > { %v267_v3 = vld [vmem:[%s932_s23] sm:$0xf]  ;;  %v268_v4 = vld [vmem:[%s932_s23 + $0x4] sm:$0xf]  ;;  %v290_v7 = vshrl.u32 %v258_v0, 16  ;;  %v293_v8 = vshll.u32 %v258_v0, 16  ;;  %s1026_s7 = scalar_lea.vmem %s1193_s4, %s867_s30 }
  0x13   : > { %v276_v5 = vmax.bf16 %v267_v3, %v258_v0  ;;  %v277_v6 = vmax.bf16 %v268_v4, %v259_v1  ;;  %v401_v9 = vld [vmem:[%s938_s26] sm:$0xf]  ;;  %v949_v10 = vld [vmem:[%s938_s26 + $0x4] sm:$0xf]  ;;  %v299_v11 = vshll.u32 %v259_v1, 16  ;;  %v303_v12 = vshrl.u32 %v259_v1, 16 }
  0x14   : > { %v309_v13 = vshll.u32 %v943_v2, 16  ;;  %v439_v14 = vshrl.u32 %v401_v9, 16  ;;  %v292_v15 = vrot.slane %v290_v7, 4  ;;  %v295_v16 = vrot.slane %v293_v8, 5  ;;  %v692_v23 = vld [vmem:[%s926_s20 + $0x4] sm:$0xe] }
  0x15   : > { %v442_v17 = vshll.u32 %v401_v9, 16  ;;  %v448_v18 = vshll.u32 %v949_v10, 16  ;;  %v301_v19 = vrot.slane %v299_v11, 5  ;;  %v305_v20 = vrot.slane %v303_v12, 4  ;;  %v955_v24 = vld [vmem:[%s932_s23 + $0x8] sm:$0xf] }
  0x16   : > { %v311_v21 = vrot.slane %v309_v13, 5  ;;  %v441_v22 = vrot.slane %v439_v14, 4  ;;  %v296_v25 = vor.u32 %v295_v16, %v292_v15  ;;  %v452_v28 = vshrl.u32 %v949_v10, 16  ;;  %v978_v43 = vld [vmem:[%s926_s20 + $0xc] sm:$0xf] }
  0x17   : > { %v444_v26 = vrot.slane %v442_v17, 5  ;;  %v450_v27 = vrot.slane %v448_v18, 5  ;;  %v306_v30 = vor.u32 %v305_v20, %v301_v19  ;;  %v581_v31 = vshrl.u32 %v268_v4, 16  ;;  %v403_v52 = vld [vmem:[%s938_s26 + $0x8] sm:$0xf] }
  0x18   : > { %v584_v32 = vshll.u32 %v268_v4, 16  ;;  %v590_v33 = vshll.u32 %v955_v24, 16  ;;  %v297_v34 = vrot.slane %v296_v25, 4  ;;  %v454_v36 = vrot.slane %v452_v28, 4  ;;  %v419_v54 = vld [vmem:[%s969_s29] sm:$0xf] }
  0x19   : > { %v445_v35 = vor.u32 %v444_v26, %v441_v22  ;;  %v863_v37 = vrot.slane %v692_v23, 9  ;;  %v307_v38 = vrot.slane %v306_v30, 4  ;;  %v583_v39 = vrot.slane %v581_v31, 4  ;;  %v420_v61 = vld [vmem:[%s969_s29 + $0x4] sm:$0xf] }
  0x1a   : > { %v586_v40 = vrot.slane %v584_v32, 5  ;;  %v592_v41 = vrot.slane %v590_v33, 5  ;;  %v302_v44 = vsel %vm960_vm4, %v297_v34, %v301_v19  ;;  %v708_v46 = vrot.slane %v943_v2, 5  ;;  %v1009_v19 = vld [vmem:[%s926_s20 + $0x10] sm:$0xf] }
  0x1b   : > { %v446_v45 = vrot.slane %v445_v35, 4  ;;  %v278_v47 = vmax.bf16 %v955_v24, %v943_v2  ;;  %v312_v48 = vsel %vm960_vm4, %v307_v38, %v311_v21  ;;  %v392_v49 = vmax.bf16 %v302_v44, %v276_v5  ;;  %v1000_v5 = vld [vmem:[%s932_s23 + $0xc] sm:$0xf]  ;;  %v421_v34 = vld [vmem:[%s969_s29 + $0x8] sm:$0xf] }
  0x1c   : > { %v587_v50 = vor.u32 %v586_v40, %v583_v39  ;;  %v313_v51 = vshrl.u32 %v943_v2, 16  ;;  %v393_v53 = vmax.bf16 %v312_v48, %v277_v6  ;;  %v709_v56 = vsel %vm973_vm5, %v863_v37, %v708_v46  ;;  %v1016_v25 = vld [vmem:[%s938_s26 + $0xc] sm:$0xf] }
  0x1d   : > { %v451_v55 = vsel %vm960_vm4, %v446_v45, %v450_v27  ;;  %v319_v57 = vshll.u32 %v978_v43, 16  ;;  %v410_v58 = vmax.bf16 %v401_v9, %v392_v49  ;;  %v455_v62 = vor.u32 %v454_v36, %v450_v27 }
  0x1e   : > { %v588_v59 = vrot.slane %v587_v50, 4  ;;  %v315_v60 = vrot.slane %v313_v51, 4  ;;  %v411_v63 = vmax.bf16 %v949_v10, %v393_v53  ;;  %v458_v1 = vshll.u32 %v403_v52, 16 }
  0x1f   : > { %v321_v0 = vrot.slane %v319_v57, 5  ;;  %v462_v2 = vshrl.u32 %v403_v52, 16  ;;  %v428_v3 = vmax.bf16 %v419_v54, %v410_v58  ;;  %v456_v7 = vrot.slane %v455_v62, 4  ;;  %v1040_v58 = vld [vmem:[%s926_s20 + $0x14] sm:$0xf] }
  0x20   : > { %v593_v4 = vsel %vm960_vm4, %v588_v59, %v592_v41  ;;  %v316_v6 = vor.u32 %v315_v60, %v311_v21  ;;  %v429_v8 = vmax.bf16 %v420_v61, %v411_v63  ;;  %v460_v9 = vrot.slane %v458_v1, 5  ;;  %v405_v63 = vld [vmem:[%s938_s26 + $0x10] sm:$0xf] }
  0x21   : > { %v464_v11 = vrot.slane %v462_v2, 4  ;;  %v594_v10 = vshrl.u32 %v955_v24, 16  ;;  %v541_v12 = vmax.bf16 %v451_v55, %v428_v3  ;;  %v600_v14 = vshll.u32 %v1000_v5, 16 }
  0x22   : > { %v317_v13 = vrot.slane %v316_v6, 4  ;;  %v710_v15 = vrot.slane %v708_v46, 4  ;;  %v461_v16 = vsel %vm960_vm4, %v456_v7, %v460_v9  ;;  %v711_v18 = vrot.slane %v978_v43, 5  ;;  %v271_v46 = vld [vmem:[%s932_s23 + $0x10] sm:$0xf] }
  0x23   : > { %v596_v17 = vrot.slane %v594_v10, 4  ;;  %v279_v20 = vmax.bf16 %v1000_v5, %v978_v43  ;;  %v569_v21 = vmax.bf16 %v541_v12, %v312_v48  ;;  %v542_v23 = vmax.bf16 %v461_v16, %v429_v8 }
  0x24   : > { %v322_v22 = vsel %vm960_vm4, %v317_v13, %v321_v0  ;;  %v602_v24 = vrot.slane %v600_v14, 5  ;;  %v712_v28 = vsel %vm973_vm5, %v710_v15, %v711_v18  ;;  %v323_v30 = vshrl.u32 %v978_v43, 16 }
  0x25   : > { %v394_v26 = vmax.bf16 %v322_v22, %v278_v47  ;;  %v597_v27 = vor.u32 %v596_v17, %v592_v41  ;;  %v683_v31 = vmax.bf16 %v593_v4, %v569_v21  ;;  %v570_v32 = vmax.bf16 %v542_v23, %v322_v22  ;;  %v272_v17 = vld [vmem:[%s932_s23 + $0x14] sm:$0xf] }
  0x26   : > { %v329_v33 = vshll.u32 %v1009_v19, 16  ;;  %v465_v35 = vor.u32 %v464_v11, %v460_v9  ;;  %v325_v38 = vrot.slane %v323_v30, 4  ;;  %v468_v39 = vshll.u32 %v1016_v25, 16  ;;  %v422_v9 = vld [vmem:[%s969_s29 + $0xc] sm:$0xf] }
  0x27   : > { %v412_v36 = vmax.bf16 %v403_v52, %v394_v26  ;;  %v598_v37 = vrot.slane %v597_v27, 4  ;;  %v743_v40 = vmax.bf16 %v709_v56, %v683_v31  ;;  %v472_v44 = vshrl.u32 %v1016_v25, 16 }
  0x28   : > { %v331_v41 = vrot.slane %v329_v33, 5  ;;  %v466_v43 = vrot.slane %v465_v35, 4  ;;  %v326_v47 = vor.u32 %v325_v38, %v321_v0  ;;  %v470_v49 = vrot.slane %v468_v39, 5  ;;  %v1061_v35 = vld [vmem:[%s926_s20 + $0x18] sm:$0xf] }
  0x29   : > { %v603_v45 = vsel %vm960_vm4, %v598_v37, %v602_v24  ;;  %v430_v48 = vmax.bf16 %v421_v34, %v412_v36  ;;  %753 = vst.msk [vmem:[%s1026_s7] sm:$0xf] %vm752_vm6, %v743_v40  ;;  %v474_v51 = vrot.slane %v472_v44, 4  ;;  %v604_v52 = vshrl.u32 %v1000_v5, 16  ;;  %v406_v36 = vld [vmem:[%s938_s26 + $0x14] sm:$0xf] }
  0x2a   : > { %v684_v50 = vmax.bf16 %v603_v45, %v570_v32  ;;  %v610_v53 = vshll.u32 %v271_v46, 16  ;;  %v327_v54 = vrot.slane %v326_v47, 4  ;;  %v471_v55 = vsel %vm960_vm4, %v466_v43, %v470_v49 }
  0x2b   : > { %v713_v56 = vrot.slane %v711_v18, 4  ;;  %v714_v57 = vrot.slane %v1009_v19, 5  ;;  %v543_v60 = vmax.bf16 %v471_v55, %v430_v48  ;;  %v606_v61 = vrot.slane %v604_v52, 4  ;;  %v423_v48 = vld [vmem:[%s969_s29 + $0x10] sm:$0xf] }
  0x2c   : > { %v744_v59 = vmax.bf16 %v712_v28, %v684_v50  ;;  %v612_v62 = vrot.slane %v610_v53, 5  ;;  %v332_v0 = vsel %vm960_vm4, %v327_v54, %v331_v41  ;;  %v280_v2 = vmax.bf16 %v271_v46, %v1009_v19 }
  0x2d   : > { %v715_v1 = vsel %vm973_vm5, %v713_v56, %v714_v57  ;;  %v333_v3 = vshrl.u32 %v1009_v19, 16  ;;  %v395_v4 = vmax.bf16 %v332_v0, %v279_v20  ;;  %v571_v5 = vmax.bf16 %v543_v60, %v332_v0  ;;  %v273_v56 = vld [vmem:[%s932_s23 + $0x18] sm:$0xf] }
  0x2e   : > { %754 = vst.msk [vmem:[%s1026_s7 + $0x4] sm:$0xf] %vm752_vm6, %v744_v59  ;;  %v607_v6 = vor.u32 %v606_v61, %v602_v24  ;;  %v339_v7 = vshll.u32 %v1040_v58, 16  ;;  %v475_v11 = vor.u32 %v474_v51, %v470_v49  ;;  %v478_v10 = vshll.u32 %v405_v63, 16 }
  0x2f   : > { %v335_v8 = vrot.slane %v333_v3, 4  ;;  %v482_v12 = vshrl.u32 %v405_v63, 16  ;;  %v413_v13 = vmax.bf16 %v1016_v25, %v395_v4  ;;  %v614_v16 = vshrl.u32 %v271_v46, 16  ;;  %v1078_v4 = vld [vmem:[%s926_s20 + $0x1c] sm:$0xf] }
  0x30   : > { %v608_v14 = vrot.slane %v607_v6, 4  ;;  %v341_v15 = vrot.slane %v339_v7, 5  ;;  %v476_v19 = vrot.slane %v475_v11, 4  ;;  %v480_v20 = vrot.slane %v478_v10, 5 }
  0x31   : > { %v336_v18 = vor.u32 %v335_v8, %v331_v41  ;;  %v484_v21 = vrot.slane %v482_v12, 4  ;;  %v431_v23 = vmax.bf16 %v422_v9, %v413_v13  ;;  %v616_v24 = vrot.slane %v614_v16, 4  ;;  %v1085_v9 = vld [vmem:[%s938_s26 + $0x18] sm:$0xf] }
  0x32   : > { %v613_v22 = vsel %vm960_vm4, %v608_v14, %v612_v62  ;;  %v620_v26 = vshll.u32 %v272_v17, 16  ;;  %v481_v25 = vsel %vm960_vm4, %v476_v19, %v480_v20  ;;  %v716_v30 = vrot.slane %v714_v57, 4 }
  0x33   : > { %v685_v27 = vmax.bf16 %v613_v22, %v571_v5  ;;  %v337_v28 = vrot.slane %v336_v18, 4  ;;  %v544_v31 = vmax.bf16 %v481_v25, %v431_v23  ;;  %v617_v32 = vor.u32 %v616_v24, %v612_v62  ;;  %v274_v25 = vld [vmem:[%s932_s23 + $0x1c] sm:$0xf] }
  0x34   : > { %v622_v33 = vrot.slane %v620_v26, 5  ;;  %v717_v34 = vrot.slane %v1040_v58, 5  ;;  %v281_v39 = vmax.bf16 %v272_v17, %v1040_v58  ;;  %v343_v40 = vshrl.u32 %v1040_v58, 16 }
  0x35   : > { %v745_v37 = vmax.bf16 %v715_v1, %v685_v27  ;;  %v342_v38 = vsel %vm960_vm4, %v337_v28, %v341_v15  ;;  %v618_v44 = vrot.slane %v617_v32, 4  ;;  %v349_v47 = vshll.u32 %v1061_v35, 16 }
  0x36   : > { %v396_v41 = vmax.bf16 %v342_v38, %v280_v2  ;;  %v572_v43 = vmax.bf16 %v544_v31, %v342_v38  ;;  %v718_v45 = vsel %vm973_vm5, %v716_v30, %v717_v34  ;;  %v345_v46 = vrot.slane %v343_v40, 4  ;;  %v1102_v38 = vld [vmem:[%s932_s23 + $0x20] sm:$0xf] }
  0x37   : > { %755 = vst.msk [vmem:[%s1026_s7 + $0x8] sm:$0xf] %vm752_vm6, %v745_v37  ;;  %v485_v49 = vor.u32 %v484_v21, %v480_v20  ;;  %v488_v50 = vshll.u32 %v406_v36, 16  ;;  %v623_v52 = vsel %vm960_vm4, %v618_v44, %v622_v33  ;;  %v492_v53 = vshrl.u32 %v406_v36, 16  ;;  %v424_v20 = vld [vmem:[%s969_s29 + $0x14] sm:$0xf] }
  0x38   : > { %v414_v51 = vmax.bf16 %v405_v63, %v396_v41  ;;  %v624_v54 = vshrl.u32 %v272_v17, 16  ;;  %v686_v55 = vmax.bf16 %v623_v52, %v572_v43  ;;  %v346_v57 = vor.u32 %v345_v46, %v341_v15  ;;  %v1107_v43 = vld [vmem:[%s926_s20 + $0x20] sm:$0xf] }
  0x39   : > { %v351_v58 = vrot.slane %v349_v47, 5  ;;  %v486_v59 = vrot.slane %v485_v49, 4  ;;  %v490_v61 = vrot.slane %v488_v50, 5  ;;  %v494_v62 = vrot.slane %v492_v53, 4 }
  0x3a   : > { %v432_v60 = vmax.bf16 %v423_v48, %v414_v51  ;;  %v626_v0 = vrot.slane %v624_v54, 4  ;;  %v746_v1 = vmax.bf16 %v718_v45, %v686_v55  ;;  %v347_v2 = vrot.slane %v346_v57, 4  ;;  %v408_v48 = vld [vmem:[%s938_s26 + $0x1c] sm:$0xf] }
  0x3b   : > { %v630_v63 = vshll.u32 %v273_v56, 16  ;;  %v719_v3 = vrot.slane %v717_v34, 4  ;;  %v491_v5 = vsel %vm960_vm4, %v486_v59, %v490_v61  ;;  %v720_v7 = vrot.slane %v1061_v35, 5  ;;  %v425_v59 = vld [vmem:[%s969_s29 + $0x18] sm:$0xf] }
  0x3c   : > { %v627_v6 = vor.u32 %v626_v0, %v622_v33  ;;  %v282_v8 = vmax.bf16 %v273_v56, %v1061_v35  ;;  %756 = vst.msk [vmem:[%s1026_s7 + $0xc] sm:$0xf] %vm752_vm6, %v746_v1  ;;  %v352_v11 = vsel %vm960_vm4, %v347_v2, %v351_v58  ;;  %v545_v10 = vmax.bf16 %v491_v5, %v432_v60 }
  0x3d   : > { %v632_v12 = vrot.slane %v630_v63, 5  ;;  %v353_v13 = vshrl.u32 %v1061_v35, 16  ;;  %v397_v14 = vmax.bf16 %v352_v11, %v281_v39  ;;  %v721_v16 = vsel %vm973_vm5, %v719_v3, %v720_v7 }
  0x3e   : > { %v628_v15 = vrot.slane %v627_v6, 4  ;;  %v359_v17 = vshll.u32 %v1078_v4, 16  ;;  %v573_v18 = vmax.bf16 %v545_v10, %v352_v11  ;;  %v495_v21 = vor.u32 %v494_v62, %v490_v61 }
  0x3f   : > { %v355_v19 = vrot.slane %v353_v13, 4  ;;  %v498_v22 = vshll.u32 %v1085_v9, 16  ;;  %v415_v23 = vmax.bf16 %v406_v36, %v397_v14  ;;  %v502_v27 = vshrl.u32 %v1085_v9, 16 }
  0x40   : > { %v633_v24 = vsel %vm960_vm4, %v628_v15, %v632_v12  ;;  %v361_v26 = vrot.slane %v359_v17, 5  ;;  %v496_v31 = vrot.slane %v495_v21, 4  ;;  %v634_v35 = vshrl.u32 %v273_v56, 16 }
  0x41   : > { %v687_v28 = vmax.bf16 %v633_v24, %v573_v18  ;;  %v356_v30 = vor.u32 %v355_v19, %v351_v58  ;;  %v500_v32 = vrot.slane %v498_v22, 5  ;;  %v433_v33 = vmax.bf16 %v424_v20, %v415_v23  ;;  %v1131_v18 = vld [vmem:[%s938_s26 + $0x20] sm:$0xf]  ;;  %v1134_v19 = vld [vmem:[%s926_s20 + $0x24] sm:$0xf] }
  0x42   : > { %v504_v34 = vrot.slane %v502_v27, 4  ;;  %v640_v37 = vshll.u32 %v274_v25, 16  ;;  %v722_v41 = vrot.slane %v720_v7, 4  ;;  %v636_v45 = vrot.slane %v634_v35, 4 }
  0x43   : > { %v747_v36 = vmax.bf16 %v721_v16, %v687_v28  ;;  %v357_v39 = vrot.slane %v356_v30, 4  ;;  %v501_v40 = vsel %vm960_vm4, %v496_v31, %v500_v32  ;;  %v723_v47 = vrot.slane %v1078_v4, 5  ;;  %v426_v30 = vld [vmem:[%s969_s29 + $0x1c] sm:$0xf] }
  0x44   : > { %v546_v44 = vmax.bf16 %v501_v40, %v433_v33  ;;  %v642_v46 = vrot.slane %v640_v37, 5  ;;  %v283_v50 = vmax.bf16 %v274_v25, %v1078_v4  ;;  %v284_v51 = vmax.bf16 %v1102_v38, %v1107_v43 }
  0x45   : > { %757 = vst.msk [vmem:[%s1026_s7 + $0x10] sm:$0xf] %vm752_vm6, %v747_v36  ;;  %v362_v49 = vsel %vm960_vm4, %v357_v39, %v361_v26  ;;  %v363_v52 = vshrl.u32 %v1078_v4, 16  ;;  %v637_v55 = vor.u32 %v636_v45, %v632_v12  ;;  %v724_v56 = vsel %vm973_vm5, %v722_v41, %v723_v47  ;;  %v578_v36 = vld [vmem:[%s932_s23 + $0x24] sm:$0xf] }
  0x46   : > { %v398_v53 = vmax.bf16 %v362_v49, %v282_v8  ;;  %v574_v54 = vmax.bf16 %v546_v44, %v362_v49  ;;  %v369_v58 = vshll.u32 %v1107_v43, 16  ;;  %v505_v60 = vor.u32 %v504_v34, %v500_v32 }
  0x47   : > { %v365_v57 = vrot.slane %v363_v52, 4  ;;  %v508_v61 = vshll.u32 %v408_v48, 16  ;;  %v638_v0 = vrot.slane %v637_v55, 4  ;;  %v512_v1 = vshrl.u32 %v408_v48, 16 }
  0x48   : > { %v416_v62 = vmax.bf16 %v1085_v9, %v398_v53  ;;  %v644_v2 = vshrl.u32 %v274_v25, 16  ;;  %v371_v3 = vrot.slane %v369_v58, 5  ;;  %v506_v4 = vrot.slane %v505_v60, 4 }
  0x49   : > { %v366_v63 = vor.u32 %v365_v57, %v361_v26  ;;  %v510_v5 = vrot.slane %v508_v61, 5  ;;  %v643_v6 = vsel %vm960_vm4, %v638_v0, %v642_v46  ;;  %v514_v8 = vrot.slane %v512_v1, 4  ;;  %v551_v61 = vld [vmem:[%s926_s20 + $0x28] sm:$0x1] }
  0x4a   : > { %v434_v7 = vmax.bf16 %v425_v59, %v416_v62  ;;  %v646_v11 = vrot.slane %v644_v2, 4  ;;  %v688_v10 = vmax.bf16 %v643_v6, %v574_v54  ;;  %v650_v13 = vshll.u32 %v1102_v38, 16 }
  0x4b   : > { %v367_v12 = vrot.slane %v366_v63, 4  ;;  %v511_v9 = vsel %vm960_vm4, %v506_v4, %v510_v5  ;;  %v725_v16 = vrot.slane %v723_v47, 4  ;;  %v726_v17 = vrot.slane %v1107_v43, 5 }
  0x4c   : > { %v547_v14 = vmax.bf16 %v511_v9, %v434_v7  ;;  %v647_v15 = vor.u32 %v646_v11, %v642_v46  ;;  %v748_v20 = vmax.bf16 %v724_v56, %v688_v10  ;;  %v652_v22 = vrot.slane %v650_v13, 5  ;;  %v437_v56 = vld [vmem:[%s938_s26 + $0x24] sm:$0x1]  ;;  %v579_v11 = vld [vmem:[%s932_s23 + $0x28] sm:$0x1] }
  0x4d   : > { %v372_v21 = vsel %vm960_vm4, %v367_v12, %v371_v3  ;;  %v373_v23 = vshrl.u32 %v1107_v43, 16  ;;  %v727_v28 = vsel %vm973_vm5, %v725_v16, %v726_v17  ;;  %v515_v31 = vor.u32 %v514_v8, %v510_v5 }
  0x4e   : > { %v399_v24 = vmax.bf16 %v372_v21, %v283_v50  ;;  %v575_v26 = vmax.bf16 %v547_v14, %v372_v21  ;;  %v648_v27 = vrot.slane %v647_v15, 4  ;;  %758 = vst.msk [vmem:[%s1026_s7 + $0x14] sm:$0xf] %vm752_vm6, %v748_v20  ;;  %v518_v32 = vshll.u32 %v1131_v18, 16 }
  0x4f   : > { %v375_v25 = vrot.slane %v373_v23, 4  ;;  %v553_v33 = vshll.u32 %v1134_v19, 16  ;;  %v557_v37 = vshrl.u32 %v1134_v19, 16  ;;  %v654_v39 = vshrl.u32 %v1102_v38, 16  ;;  %v427_v23 = vld [vmem:[%s969_s29 + $0x20] sm:$0xf] }
  0x50   : > { %v417_v34 = vmax.bf16 %v408_v48, %v399_v24  ;;  %v653_v35 = vsel %vm960_vm4, %v648_v27, %v652_v22  ;;  %v516_v44 = vrot.slane %v515_v31, 4  ;;  %v520_v45 = vrot.slane %v518_v32, 5  ;;  %v285_v48 = vld [vmem:[%s926_s20 + $0x24] sm:$0x1] }
  0x51   : > { %v689_v40 = vmax.bf16 %v653_v35, %v575_v26  ;;  %v376_v41 = vor.u32 %v375_v25, %v371_v3  ;;  %v555_v47 = vrot.slane %v553_v33, 5  ;;  %v559_v49 = vrot.slane %v557_v37, 4 }
  0x52   : > { %v435_v46 = vmax.bf16 %v426_v30, %v417_v34  ;;  %v656_v50 = vrot.slane %v654_v39, 4  ;;  %v521_v54 = vsel %vm960_vm4, %v516_v44, %v520_v45  ;;  %v660_v55 = vshll.u32 %v578_v36, 16 }
  0x53   : > { %v749_v52 = vmax.bf16 %v727_v28, %v689_v40  ;;  %v377_v53 = vrot.slane %v376_v41, 4  ;;  %v664_v59 = vshrl.u32 %v578_v36, 16  ;;  %v728_v60 = vrot.slane %v726_v17, 4 }
  0x54   : > { %v548_v57 = vmax.bf16 %v521_v54, %v435_v46  ;;  %v657_v58 = vor.u32 %v656_v50, %v652_v22  ;;  %v662_v0 = vrot.slane %v660_v55, 5  ;;  %v729_v1 = vrot.slane %v1134_v19, 5 }
  0x55   : > { %759 = vst.msk [vmem:[%s1026_s7 + $0x18] sm:$0xf] %vm752_vm6, %v749_v52  ;;  %v556_v62 = vsel %vm960_vm4, %v377_v53, %v555_v47  ;;  %v379_v2 = vshll.u32 %v285_v48, 16  ;;  %v522_v4 = vshrl.u32 %v1131_v18, 16  ;;  %v528_v5 = vshll.u32 %v437_v56, 16 }
  0x56   : > { %v576_v63 = vmax.bf16 %v556_v62, %v548_v57  ;;  %v658_v3 = vrot.slane %v657_v58, 4  ;;  %v560_v7 = vor.u32 %v559_v49, %v555_v47  ;;  %v563_v8 = vshll.u32 %v551_v61, 16 }
  0x57   : > { %v381_v6 = vrot.slane %v379_v2, 5  ;;  %v730_v12 = vsel %vm973_vm5, %v728_v60, %v729_v1  ;;  %v524_v9 = vrot.slane %v522_v4, 4  ;;  %v666_v13 = vrot.slane %v664_v59, 4 }
  0x58   : > { %v663_v10 = vsel %vm960_vm4, %v658_v3, %v662_v0  ;;  %v530_v16 = vrot.slane %v528_v5, 5  ;;  %v670_v21 = vshll.u32 %v579_v11, 16  ;;  %v561_v24 = vrot.slane %v560_v7, 4 }
  0x59   : > { %v690_v14 = vmax.bf16 %v663_v10, %v576_v63  ;;  %v382_v15 = vsel %vm960_vm4, %v377_v53, %v381_v6  ;;  %v525_v19 = vor.u32 %v524_v9, %v520_v45  ;;  %v667_v20 = vor.u32 %v666_v13, %v662_v0 }
  0x5a   : > { %v400_v17 = vmax.bf16 %v382_v15, %v284_v51  ;;  %v565_v26 = vrot.slane %v563_v8, 5  ;;  %v672_v30 = vrot.slane %v670_v21, 5  ;;  %v731_v51 = vrot.slane %v729_v1, 4 }
  0x5b   : > { %v750_v22 = vmax.bf16 %v730_v12, %v690_v14  ;;  %v526_v28 = vrot.slane %v525_v19, 4  ;;  %v668_v25 = vrot.slane %v667_v20, 4  ;;  %v732_v32 = vrot.slane %v551_v61, 5 }
  0x5c   : > { %v418_v27 = vmax.bf16 %v1131_v18, %v400_v17  ;;  %v566_v43 = vsel %vm960_vm4, %v561_v24, %v565_v26 }
  0x5d   : > { %760 = vst.msk [vmem:[%s1026_s7 + $0x1c] sm:$0xf] %vm752_vm6, %v750_v22  ;;  %v531_v38 = vsel %vm960_vm4, %v526_v28, %v530_v16  ;;  %v673_v34 = vsel %vm960_vm4, %v668_v25, %v672_v30  ;;  %v733_v35 = vsel %vm973_vm5, %v731_v51, %v732_v32 }
  0x5e   : > { %v436_v31 = vmax.bf16 %v427_v23, %v418_v27 }
  0x60   : > { %v549_v33 = vmax.bf16 %v531_v38, %v436_v31 }
  0x62   : > { %v577_v18 = vmax.bf16 %v566_v43, %v549_v33 }
  0x64   : > { %v691_v37 = vmax.bf16 %v673_v34, %v577_v18 }
  0x66   : > { %v751_v36 = vmax.bf16 %v733_v35, %v691_v37 }
  0x68   : > { %761 = vst.msk [vmem:[%s1026_s7 + $0x20] sm:$0xf] %vm752_vm6, %v751_v36 }
  0x69 PF: > { %s14_s15 = sadd.s32 1, %s882_s15  }
  0x6a   : > { %p11_p4 = scmp.ge.s32.totalorder %s14_s15, 4  }
  0x6c   :  { %13 = sbr.rel (!%p11_p4) target bundleno = 1 (0x1), region = 75 }

// kernel: _lambda_.28
= control target key start
LH: loop header
LB: loop body
LE: loop exit
PB: predicated region body
PF: predicated region fallthrough
CT: control target
= control target key end

     0   :  { %s382_s12 = smov 0   ;;  %s405_s0 = inlined_call_operand.vmem [shape: bf16[32,16], index: 0, kind: input, shape index: {}]   ;;  %s406_s1 = inlined_call_operand.vmem [shape: bf16[16,128], index: 1, kind: input, shape index: {}]   ;;  %s407_s2 = inlined_call_operand.vmem [shape: f32[1,128], index: 2, kind: input, shape index: {}]   ;;  %s408_s3 = inlined_call_operand.vmem [shape: bf16[32,128], index: 3, kind: output, shape index: {}]  }
   0x1 LB: > { %s308_s13 = sadd.s32 4294967295, %s358_s12   ;;  %p312_p0 = scmp.ge.s32.totalorder %s358_s12, 1  ;;  %s358_s12 = sphi %s382_s12, %s13_s12  }
   0x2   : > { %p138_p1 = scmp.lt.s32.totalorder %s358_s12, 3 }
   0x4   : > { %p139_p2 = pnand %p312_p0, %p138_p1 }
   0x5   : > { %v350_v0 = vld [vmem:[%s406_s1] sm:$0xff] (!%p139_p2)   ;;  %v360_v1 = vmov (!%p139_p2), 0.0   ;;  %s313_s16 = sshll.u32 (!%p139_p2), %s308_s13, 1  ;;  %vm361_vm0 = vmmov (!%p139_p2), 0   ;;  %vm197_vm1 = vcmask (!%p139_p2), 130048  }
   0x6   : > { %142 = sbr.rel (%p139_p2) target bundleno = 236 (0xec), region = 32  ;;  %334 = vmatprep.subr.bf16.mxu0 (!%p139_p2), %v360_v1  ;;  %336 = vmatprep.mubr.msk.bf16.mxu0 (!%p139_p2), %vm361_vm0, %v360_v1  ;;  %p163_p3 = scmp.lt.s32.totalorder (!%p139_p2), %s313_s16, 3  ;;  %v317_v3 = vld [vmem:[%s407_s2] ss:$0 sm:$0xff] (!%p139_p2) }
   0x7   : > { %335 = vmatpush3.bf16.msra.mxu0 (!%p139_p2), %v350_v0 }
   0xd   : > { %s410_s16 = smov (!%p163_p3, %s313_s16), 3 }
   0xe   : > { %s314_s17 = sshll.u32 %s410_s16, 2 }
   0xf   : > { %s166_s20 = scalar_lea.vmem %s405_s0, %s314_s17  ;;  %s172_s25 = scalar_lea.vmem %s408_s3, %s314_s17 }
  0x10   : > { %v351_v2 = vld [vmem:[%s166_s20] sm:$0xff]  }
  0x11   : > { %337 = vmatmul.mubr.msk.bf16.vlgmr.msra.gmra.mrb[0].mxu0 %vm197_vm1, %v351_v2 }
  0xe4   : > { %v235_v4 = vpop.f32.mrb[0].mxu0 }
  0xe5   : > { %v338_v5 = vpop.f32.mrb[1].mxu0  ;;  %v236_v7 = vadd.f32 %v317_v3, %v235_v4 }
  0xe6   : > { %v238_v6 = vpop.f32.mrb[2].mxu0 }
  0xe7   : > { %v239_v8 = vadd.f32 %v317_v3, %v238_v6  ;;  %v339_v9 = vpop.f32.mrb[3].mxu0 }
  0xe9   : > { %v330_v10 = vpack.c.bf16 %v239_v8, %v236_v7 }
  0xeb   : > { %331 = vst [vmem:[%s172_s25] sm:$0xff] %v330_v10  }
  0xec PF: > { %s13_s12 = sadd.s32 1, %s358_s12  }
  0xed   : > { %p10_p4 = scmp.ge.s32.totalorder %s13_s12, 4  }
  0xef   :  { %12 = sbr.rel (!%p10_p4) target bundleno = 1 (0x1), region = 62 }

// kernel: _lambda_.25
= control target key start
LH: loop header
LB: loop body
LE: loop exit
PB: predicated region body
PF: predicated region fallthrough
CT: control target
= control target key end

     0   :  { %s2179_s15 = smov 0   ;;  %s2590_s0 = inlined_call_operand.vmem [shape: bf16[2,110,16], index: 0, kind: input, shape index: {}]   ;;  %s2591_s1 = inlined_call_operand.vmem [shape: bf16[9,16,128], index: 1, kind: input, shape index: {}]   ;;  %s2592_s2 = inlined_call_operand.vmem [shape: f32[1,128], index: 2, kind: input, shape index: {}]   ;;  %s2593_s3 = inlined_call_operand.vmem [shape: bf16[2,80,128], index: 3, kind: input, shape index: {}]   ;;  %s2594_s4 = inlined_call_operand.vmem [shape: bf16[2,80,128], index: 4, kind: output, shape index: {}]  }
   0x1 LB: > { %s1669_s16 = sadd.s32 4294967295, %s2150_s15   ;;  %p1673_p0 = scmp.ge.s32.totalorder %s2150_s15, 1  ;;  %s2150_s15 = sphi %s2179_s15, %s14_s15  }
   0x2   : > { %p172_p1 = scmp.lt.s32.totalorder %s2150_s15, 3 }
   0x4   : > { %p173_p2 = pnand %p1673_p0, %p172_p1 }
   0x5   : > { %v2112_v0 = vld [vmem:[%s2591_s1 + $0x8] sm:$0xff] (!%p173_p2)   ;;  %v2152_v1 = vmov (!%p173_p2), 0.0   ;;  %p203_p3 = scmp.lt.s32.totalorder (!%p173_p2), %s1669_s16, 1  ;;  %vm2153_vm0 = vmmov (!%p173_p2), 0   ;;  %vm263_vm1 = vsmask.f32 (!%p173_p2), 7424 }
   0x6   : > { %176 = sbr.rel (%p173_p2) target bundleno = 426 (0x1aa), region = 36  ;;  %1900 = vmatprep.subr.bf16.mxu0 (!%p173_p2), %v2152_v1  ;;  %2098 = vmatprep.subr.bf16.mxu1 (!%p173_p2), %v2152_v1  ;;  %vm314_vm2 = vcmask (!%p173_p2), 130048   ;;  %v2117_v20 = vld [vmem:[%s2591_s1 + $0x10] sm:$0xff] (!%p173_p2)   ;;  %v2118_v24 = vld [vmem:[%s2591_s1] sm:$0xff] (!%p173_p2)   ;;  %vm499_vm3 = vcmask (!%p173_p2), 1046528   ;;  %v2121_v46 = vld [vmem:[%s2591_s1 + $0x18] sm:$0xff] (!%p173_p2)  }
   0x7   : > { %1901 = vmatpush3.bf16.msra.mxu0 (!%p173_p2), %v2112_v0  ;;  %2099 = vmatpush3.bf16.msra.mxu1 (!%p173_p2), %v2112_v0  ;;  %v2123_v50 = vld [vmem:[%s2591_s1 + $0x20] sm:$0xff] (!%p173_p2)   ;;  %vm779_vm4 = vsmask.f32 (!%p173_p2), 6400  ;;  %vm944_vm5 = vcmask (!%p173_p2), 1045504   ;;  %vm1224_vm6 = vsmask.f32 (!%p173_p2), 5376 }
   0x8   : > { %1902 = vmatprep.mubr.msk.bf16.mxu0 (!%p173_p2), %vm2153_vm0, %v2152_v1  ;;  %1914 = vmatprep.mubr.msk.bf16.mxu1 (!%p173_p2), %vm2153_vm0, %v2152_v1  ;;  %vm1389_vm7 = vcmask (!%p173_p2), 1044480  }
   0x9   : > { %1944 = vmatprep.subr.bf16.mxu0 (!%p173_p2), %v2152_v1  ;;  %1922 = vmatprep.subr.bf16.mxu1 (!%p173_p2), %v2152_v1 }
   0xd   : > { %s2596_s16 = smov (!%p203_p3, %s1669_s16), 1 }
   0xe   : > { %s2100_s19 = smul.u32 56, %s2596_s16 }
   0xf   : > { %s2101_s13 = smul.u32 40, %s2596_s16 }
  0x10   : > { %s2204_s22 = scalar_lea.vmem %s2590_s0, %s2100_s19 }
  0x11   : > { %v219_v2 = vld [vmem:[%s2204_s22] sm:$0xf]  ;;  %v220_v3 = vld [vmem:[%s2204_s22 + $0x4] sm:$0xf]  ;;  %v2209_v5 = vld [vmem:[%s2204_s22 + $0x8] sm:$0xff]   ;;  %s2547_s18 = scalar_lea.vmem %s2593_s3, %s2101_s13  ;;  %s2563_s23 = scalar_lea.vmem %s2594_s4, %s2101_s13 }
  0x12   : > { %v1679_v4 = vcombine.low %v219_v2, %v220_v3  ;;  %v272_v8 = vshll.u32 %v2209_v5, 16  ;;  %v2213_v9 = vld [vmem:[%s2204_s22 + $0x18] sm:$0xff]   ;;  %v2216_v10 = vld [vmem:[%s2204_s22 + $0x20] sm:$0xff]   ;;  %v2219_v11 = vld [vmem:[%s2204_s22 + $0x10] sm:$0xff]   ;;  %v276_v21 = vshrl.u32 %v2209_v5, 16  ;;  %v501_v48 = vrot.slane %v2209_v5, 1 }
  0x13   : > { %v288_v14 = vshll.u32 %v2213_v9, 16  ;;  %v292_v15 = vshrl.u32 %v2213_v9, 16  ;;  %v296_v16 = vshll.u32 %v2216_v10, 16  ;;  %v2225_v17 = vld [vmem:[%s2204_s22 + $0x28] ss:$0 sps:$4 sm:$0x11]  }
  0x14   : > { %v265_v6 = vshrl.u32 %v1679_v4, 16  ;;  %v267_v7 = vshll.u32 %v1679_v4, 16  ;;  %v274_v13 = vrot.slane %v272_v8, 1  ;;  %v280_v22 = vshll.u32 %v2219_v11, 16  ;;  %v2250_v36 = vld [vmem:[%s2204_s22 + $0x24] sm:$0xff]   ;;  %v2317_v60 = vld [vmem:[%s2204_s22 + $0xc] sm:$0xff]  }
  0x15   : > { %v290_v19 = vrot.slane %v288_v14, 1  ;;  %v298_v23 = vrot.slane %v296_v16, 1  ;;  %v300_v27 = vshrl.u32 %v2216_v10, 16  ;;  %v304_v28 = vshll.u32 %v2225_v17, 16  ;;  %v492_v40 = vld [vmem:[%s2204_s22] sm:$0xe] }
  0x16   : > { %v269_v12 = vrot.slane %v267_v7, 1  ;;  %v278_v30 = vor.u32 %v276_v21, %v274_v13  ;;  %v282_v31 = vrot.slane %v280_v22, 1  ;;  %v284_v35 = vshrl.u32 %v2219_v11, 16  ;;  %v2131_v37 = vld [vmem:[%s2204_s22 + $0x2c] ss:$0 sps:$4 sm:$0x11]  }
  0x17   : > { %v294_v26 = vor.u32 %v292_v15, %v290_v19  ;;  %v302_v32 = vor.u32 %v300_v27, %v298_v23  ;;  %v306_v33 = vrot.slane %v304_v28, 1  ;;  %v664_v41 = vrot.slane %v2250_v36, 1  ;;  %v615_v56 = vld [vmem:[%s2204_s22 + $0x4] sm:$0xe]  ;;  %v2312_v57 = vld [vmem:[%s2204_s22 + $0x8] sm:$0xf] }
  0x18   : > { %v270_v18 = vor.u32 %v269_v12, %v265_v6  ;;  %v283_v34 = vsel %vm263_vm1, %v278_v30, %v282_v31  ;;  %v286_v39 = vor.u32 %v284_v35, %v282_v31  ;;  %v666_v42 = vrot.slane %v2131_v37, 1  ;;  %v2126_v12 = vld [vmem:[%s2591_s1 + $0x28] sm:$0xff]  }
  0x19   : > { %v299_v29 = vsel %vm263_vm1, %v294_v26, %v298_v23  ;;  %v307_v38 = vsel %vm263_vm1, %v302_v32, %v306_v33  ;;  %v1699_v45 = vcombine.low %v492_v40, %v220_v3  ;;  %v503_v51 = vrot.slane %v2219_v11, 1  ;;  %v2354_v23 = vld [vmem:[%s2204_s22 + $0x1c] sm:$0xff]  }
  0x1a   : > { %v275_v25 = vsel %vm263_vm1, %v270_v18, %v274_v13  ;;  %1915 = vmatmul.mubr.msk.bf16.vlgmr.msra.gmra.mrb[0].mxu1 %vm314_vm2, %v299_v29  ;;  %v2265_v43 = vsel %vm499_vm3, %v664_v41, %v666_v42  ;;  %v291_v44 = vsel %vm263_vm1, %v286_v39, %v290_v19  ;;  %v505_v53 = vrot.slane %v2213_v9, 1  ;;  %v2336_v13 = vld [vmem:[%s2204_s22 + $0x14] sm:$0xff]   ;;  %v2378_v39 = vld [vmem:[%s2204_s22 + $0x2c] ss:$0 sps:$4 sm:$0x33]  }
  0x1b   : > { %1903 = vmatmul.mubr.msk.bf16.vlgmr.msra.gmra.mrb[0].mxu0 %vm314_vm2, %v275_v25  ;;  %1923 = vmatpush3.bf16.msra.mxu1 %v2118_v24  ;;  %v500_v47 = vrot.slane %v1699_v45, 1  ;;  %v504_v52 = vsel %vm499_vm3, %v501_v48, %v503_v51  ;;  %v507_v55 = vrot.slane %v2216_v10, 1  ;;  %v1708_v59 = vcombine.low %v615_v56, %v2312_v57  ;;  %v2128_v19 = vld [vmem:[%s2591_s1 + $0x30] sm:$0xff]  }
  0x1c   : > { %1945 = vmatpush3.bf16.msra.mxu0 %v2117_v20  ;;  %1906 = vmatprep.mubr.msk.bf16.mxu0 %vm2153_vm0, %v2152_v1  ;;  %v506_v54 = vsel %vm499_vm3, %v503_v51, %v505_v53  ;;  %v509_v61 = vrot.slane %v2225_v17, 1  ;;  %v789_v0 = vshrl.u32 %v2317_v60, 16  ;;  %v792_v2 = vshll.u32 %v2317_v60, 16  ;;  %v1060_v51 = vld [vmem:[%s2204_s22 + $0x8] sm:$0xc] }
  0x1d   : > { %1988 = vmatprep.subr.bf16.mxu0 %v2152_v1  ;;  %1918 = vmatprep.mubr.msk.bf16.mxu1 %vm2153_vm0, %v2152_v1  ;;  %v502_v49 = vsel %vm499_vm3, %v500_v47, %v501_v48  ;;  %v508_v58 = vsel %vm499_vm3, %v505_v53, %v507_v55  ;;  %v781_v62 = vshrl.u32 %v1708_v59, 16  ;;  %v784_v63 = vshll.u32 %v1708_v59, 16 }
  0x1e   : > { %1966 = vmatprep.subr.bf16.mxu1 %v2152_v1  ;;  %v657_v3 = vrot.slane %v1708_v59, 1  ;;  %v791_v8 = vrot.slane %v789_v0, 1  ;;  %v798_v15 = vshrl.u32 %v2336_v13, 16  ;;  %v801_v16 = vshll.u32 %v2336_v13, 16  ;;  %v2428_v0 = vld [vmem:[%s2204_s22 + $0x18] sm:$0xff]  }
  0x1f   : > { %v783_v6 = vrot.slane %v781_v62, 1  ;;  %v786_v7 = vrot.slane %v784_v63, 2  ;;  %v660_v17 = vrot.slane %v2336_v13, 1  ;;  %v807_v25 = vshrl.u32 %v2354_v23, 16  ;;  %v2137_v63 = vld [vmem:[%s2591_s1 + $0x40] sm:$0xff]  }
  0x20   : > { %v800_v20 = vrot.slane %v798_v15, 1  ;;  %v803_v21 = vrot.slane %v801_v16, 2  ;;  %v810_v26 = vshll.u32 %v2354_v23, 16  ;;  %v662_v27 = vrot.slane %v2354_v23, 1 }
  0x21   : > { %v809_v29 = vrot.slane %v807_v25, 1  ;;  %v816_v33 = vshrl.u32 %v2250_v36, 16  ;;  %v828_v45 = vshll.u32 %v2378_v39, 16 }
  0x22   : > { %1919 = vmatmul.mubr.msk.bf16.gmra.mrb[4].mxu1 %vm314_vm2, %v307_v38  ;;  %v804_v24 = vor.u32 %v803_v21, %v800_v20  ;;  %v812_v30 = vrot.slane %v810_v26, 2  ;;  %v663_v31 = vsel %vm499_vm3, %v660_v17, %v662_v27  ;;  %v665_v40 = vsel %vm499_vm3, %v662_v27, %v664_v41  ;;  %v1382_v26 = vld [vmem:[%s2204_s22 + $0x8] sm:$0x8] }
  0x23   : > { %1907 = vmatmul.mubr.msk.bf16.gmra.mrb[4].mxu0 %vm314_vm2, %v283_v34  ;;  %1924 = vmatprep.mubr.msk.bf16.mxu1 %vm2153_vm0, %v2152_v1  ;;  %v819_v34 = vshll.u32 %v2250_v36, 16  ;;  %v818_v37 = vrot.slane %v816_v33, 1  ;;  %v830_v48 = vrot.slane %v828_v45, 2 }
  0x24   : > { %1910 = vmatprep.mubr.msk.bf16.mxu0 %vm2153_vm0, %v2152_v1  ;;  %v813_v32 = vor.u32 %v812_v30, %v809_v29  ;;  %v1243_v29 = vshrl.u32 %v2428_v0, 16  ;;  %v1246_v30 = vshll.u32 %v2428_v0, 16 }
  0x25   : > { %v821_v38 = vrot.slane %v819_v34, 2 }
  0x26   : > { %v814_v35 = vsel %vm779_vm4, %v804_v24, %v813_v32  ;;  %v1245_v34 = vrot.slane %v1243_v29, 2 }
  0x27   : > { %v822_v42 = vor.u32 %v821_v38, %v818_v37 }
  0x29   : > { %v823_v41 = vsel %vm779_vm4, %v813_v32, %v822_v42 }
  0x2a   : > { %1925 = vmatmul.mubr.msk.bf16.vlgmr.msra.gmra.mrb[8].mxu1 %vm314_vm2, %v1679_v4  ;;  %v658_v4 = vrot.slane %v2317_v60, 1 }
  0x2b   : > { %1911 = vmatmul.mubr.msk.bf16.gmra.mrb[8].mxu0 %vm314_vm2, %v291_v44  ;;  %1967 = vmatpush3.bf16.msra.mxu1 %v2121_v46  ;;  %v825_v44 = vshrl.u32 %v2378_v39, 16  ;;  %v937_v46 = vld [vmem:[%s2204_s22 + $0x4] sm:$0xc] }
  0x2c   : > { %1946 = vmatprep.mubr.msk.bf16.mxu0 %vm2153_vm0, %v2152_v1  ;;  %1928 = vmatprep.mubr.msk.bf16.mxu1 %vm2153_vm0, %v2152_v1  ;;  %v661_v22 = vsel %vm499_vm3, %v658_v4, %v660_v17 }
  0x2d   : > { %2010 = vmatprep.subr.bf16.mxu1 %v2152_v1  ;;  %v827_v47 = vrot.slane %v825_v44, 1 }
  0x32   : > { %1929 = vmatmul.mubr.msk.bf16.gmra.mrb[12].mxu1 %vm314_vm2, %v2209_v5  ;;  %v510_v5 = vsel %vm499_vm3, %v507_v55, %v509_v61  ;;  %v948_v61 = vrot.slane %v2336_v13, 2 }
  0x33   : > { %1947 = vmatmul.mubr.msk.bf16.vlgmr.msra.gmra.mrb[12].mxu0 %vm314_vm2, %v502_v49  ;;  %1932 = vmatprep.mubr.msk.bf16.mxu1 %vm2153_vm0, %v2152_v1  ;;  %v1731_v49 = vcombine.low %v937_v46, %v2312_v57  ;;  %v2409_v57 = vld [vmem:[%s2204_s22 + $0x10] sm:$0xff]  }
  0x34   : > { %1989 = vmatpush3.bf16.msra.mxu0 %v2123_v50  ;;  %1950 = vmatprep.mubr.msk.bf16.mxu0 %vm2153_vm0, %v2152_v1  ;;  %v831_v50 = vor.u32 %v830_v48, %v827_v47  ;;  %v1234_v16 = vshrl.u32 %v2409_v57, 16  ;;  %v1237_v17 = vshll.u32 %v2409_v57, 16  ;;  %v1391_v38 = vrot.slane %v2409_v57, 3 }
  0x35   : > { %2032 = vmatprep.subr.bf16.mxu0 %v2152_v1  ;;  %v945_v53 = vrot.slane %v1731_v49, 2  ;;  %v1393_v47 = vrot.slane %v2428_v0, 3 }
  0x36   : > { %v832_v55 = vsel %vm779_vm4, %v822_v42, %v831_v50 }
  0x3a   : > { %1933 = vmatmul.mubr.msk.bf16.gmra.mrb[16].mxu1 %vm314_vm2, %v2219_v11  ;;  %v659_v11 = vsel %vm499_vm3, %v657_v3, %v658_v4  ;;  %v1105_v3 = vrot.slane %v2428_v0, 2  ;;  %v950_v4 = vrot.slane %v2354_v23, 2  ;;  %v1236_v23 = vrot.slane %v1234_v16, 2 }
  0x3b   : > { %1951 = vmatmul.mubr.msk.bf16.gmra.mrb[16].mxu0 %vm314_vm2, %v504_v52  ;;  %1936 = vmatprep.mubr.msk.bf16.mxu1 %vm2153_vm0, %v2152_v1  ;;  %v2401_v52 = vld [vmem:[%s2204_s22 + $0xc] sm:$0xf] }
  0x3c   : > { %1954 = vmatprep.mubr.msk.bf16.mxu0 %vm2153_vm0, %v2152_v1  ;;  %v1740_v56 = vcombine.low %v1060_v51, %v2401_v52  ;;  %v1763_v32 = vcombine.low %v1382_v26, %v2401_v52  ;;  %v1394_v51 = vsel %vm1389_vm7, %v1391_v38, %v1393_v47 }
  0x3e   : > { %v1102_v59 = vrot.slane %v1740_v56, 2  ;;  %v1229_v15 = vshll.u32 %v1740_v56, 16  ;;  %v1390_v37 = vrot.slane %v1763_v32, 3 }
  0x40   : > { %v1392_v44 = vsel %vm1389_vm7, %v1390_v37, %v1391_v38 }
  0x42   : > { %1937 = vmatmul.mubr.msk.bf16.gmra.mrb[20].mxu1 %vm314_vm2, %v2213_v9  ;;  %v794_v9 = vrot.slane %v792_v2, 2 }
  0x43   : > { %1955 = vmatmul.mubr.msk.bf16.gmra.mrb[20].mxu0 %vm314_vm2, %v506_v54  ;;  %1940 = vmatprep.mubr.msk.bf16.mxu1 %vm2153_vm0, %v2152_v1  ;;  %v946_v54 = vrot.slane %v2317_v60, 2  ;;  %v1103_v60 = vrot.slane %v2409_v57, 2 }
  0x44   : > { %1958 = vmatprep.mubr.msk.bf16.mxu0 %vm2153_vm0, %v2152_v1  ;;  %v795_v14 = vor.u32 %v794_v9, %v791_v8  ;;  %v952_v9 = vrot.slane %v2250_v36, 2  ;;  %v1226_v36 = vshrl.u32 %v1740_v56, 16 }
  0x45   : > { %v1104_v62 = vsel %vm944_vm5, %v1102_v59, %v1103_v60  ;;  %v949_v2 = vsel %vm944_vm5, %v946_v54, %v948_v61 }
  0x46   : > { %v805_v28 = vsel %vm779_vm4, %v795_v14, %v804_v24  ;;  %v953_v13 = vsel %vm944_vm5, %v950_v4, %v952_v9  ;;  %v1228_v21 = vrot.slane %v1226_v36, 2  ;;  %v1239_v24 = vrot.slane %v1237_v17, 3 }
  0x4a   : > { %1941 = vmatmul.mubr.msk.bf16.gmra.mrb[24].mxu1 %vm314_vm2, %v2216_v10  ;;  %v787_v10 = vor.u32 %v786_v7, %v783_v6  ;;  %v2441_v6 = vld [vmem:[%s2204_s22 + $0x20] sm:$0xff]   ;;  %v951_v7 = vsel %vm944_vm5, %v948_v61, %v950_v4 }
  0x4b   : > { %1959 = vmatmul.mubr.msk.bf16.gmra.mrb[24].mxu0 %vm314_vm2, %v508_v58  ;;  %1968 = vmatprep.mubr.msk.bf16.mxu1 %vm2153_vm0, %v2152_v1  ;;  %v947_v58 = vsel %vm944_vm5, %v945_v53, %v946_v54  ;;  %v1107_v8 = vrot.slane %v2441_v6, 2  ;;  %v1255_v42 = vshll.u32 %v2441_v6, 16  ;;  %v1395_v56 = vrot.slane %v2441_v6, 3 }
  0x4c   : > { %1962 = vmatprep.mubr.msk.bf16.mxu0 %vm2153_vm0, %v2152_v1  ;;  %v796_v18 = vsel %vm779_vm4, %v787_v10, %v795_v14  ;;  %v954_v14 = vrot.slane %v2378_v39, 2 }
  0x4d   : > { %v1396_v59 = vsel %vm1389_vm7, %v1393_v47, %v1395_v56 }
  0x4e   : > { %v955_v20 = vsel %vm944_vm5, %v952_v9, %v954_v14 }
  0x52   : > { %1969 = vmatmul.mubr.msk.bf16.vlgmr.msra.gmra.mrb[28].mxu1 %vm314_vm2, %v659_v11  ;;  %v1108_v11 = vsel %vm944_vm5, %v1105_v3, %v1107_v8 }
  0x53   : > { %1963 = vmatmul.mubr.msk.bf16.gmra.mrb[28].mxu0 %vm314_vm2, %v510_v5  ;;  %2011 = vmatpush3.bf16.msra.mxu1 %v2126_v12  ;;  %v1106_v5 = vsel %vm944_vm5, %v1103_v60, %v1105_v3  ;;  %v2454_v12 = vld [vmem:[%s2204_s22 + $0x28] sm:$0xff]  }
  0x54   : > { %1990 = vmatprep.mubr.msk.bf16.mxu0 %vm2153_vm0, %v2152_v1  ;;  %1972 = vmatprep.mubr.msk.bf16.mxu1 %vm2153_vm0, %v2152_v1  ;;  %v1109_v10 = vrot.slane %v2454_v12, 2  ;;  %v1261_v49 = vshrl.u32 %v2454_v12, 16  ;;  %v1264_v50 = vshll.u32 %v2454_v12, 16 }
  0x55   : > { %2054 = vmatprep.subr.bf16.mxu1 %v2152_v1 }
  0x56   : > { %v1263_v53 = vrot.slane %v1261_v49, 2  ;;  %v1266_v54 = vrot.slane %v1264_v50, 3 }
  0x58   : > { %v1267_v57 = vor.u32 %v1266_v54, %v1263_v53 }
  0x5a   : > { %1973 = vmatmul.mubr.msk.bf16.gmra.mrb[32].mxu1 %vm314_vm2, %v661_v22  ;;  %v1231_v22 = vrot.slane %v1229_v15, 3 }
  0x5b   : > { %1991 = vmatmul.mubr.msk.bf16.vlgmr.msra.gmra.mrb[32].mxu0 %vm314_vm2, %v796_v18  ;;  %1976 = vmatprep.mubr.msk.bf16.mxu1 %vm2153_vm0, %v2152_v1  ;;  %v1110_v18 = vsel %vm944_vm5, %v1107_v8, %v1109_v10 }
  0x5c   : > { %2033 = vmatpush3.bf16.msra.mxu0 %v2128_v19  ;;  %1994 = vmatprep.mubr.msk.bf16.mxu0 %vm2153_vm0, %v2152_v1  ;;  %v2141_v19 = vld [vmem:[%s2204_s22 + $0x30] ss:$0 sps:$4 sm:$0x33]   ;;  %v1232_v27 = vor.u32 %v1231_v22, %v1228_v21 }
  0x5d   : > { %2076 = vmatprep.subr.bf16.mxu0 %v2152_v1  ;;  %v1111_v25 = vrot.slane %v2141_v19, 2 }
  0x62   : > { %1977 = vmatmul.mubr.msk.bf16.gmra.mrb[36].mxu1 %vm314_vm2, %v663_v31  ;;  %v1112_v31 = vsel %vm944_vm5, %v1109_v10, %v1111_v25 }
  0x63   : > { %1995 = vmatmul.mubr.msk.bf16.gmra.mrb[36].mxu0 %vm314_vm2, %v805_v28  ;;  %1980 = vmatprep.mubr.msk.bf16.mxu1 %vm2153_vm0, %v2152_v1  ;;  %v1240_v28 = vor.u32 %v1239_v24, %v1236_v23 }
  0x64   : > { %1998 = vmatprep.mubr.msk.bf16.mxu0 %vm2153_vm0, %v2152_v1 }
  0x65   : > { %v1241_v33 = vsel %vm1224_vm6, %v1232_v27, %v1240_v28 }
  0x6a   : > { %1981 = vmatmul.mubr.msk.bf16.gmra.mrb[40].mxu1 %vm314_vm2, %v665_v40  ;;  %v1252_v40 = vshrl.u32 %v2441_v6, 16 }
  0x6b   : > { %1999 = vmatmul.mubr.msk.bf16.gmra.mrb[40].mxu0 %vm314_vm2, %v814_v35  ;;  %1984 = vmatprep.mubr.msk.bf16.mxu1 %vm2153_vm0, %v2152_v1  ;;  %v1248_v35 = vrot.slane %v1246_v30, 3 }
  0x6c   : > { %2002 = vmatprep.mubr.msk.bf16.mxu0 %vm2153_vm0, %v2152_v1  ;;  %v1254_v46 = vrot.slane %v1252_v40, 2 }
  0x6d   : > { %v1249_v39 = vor.u32 %v1248_v35, %v1245_v34 }
  0x6f   : > { %v1250_v45 = vsel %vm1224_vm6, %v1240_v28, %v1249_v39 }
  0x72   : > { %1985 = vmatmul.mubr.msk.bf16.gmra.mrb[44].mxu1 %vm314_vm2, %v2265_v43  ;;  %v2134_v43 = vld [vmem:[%s2591_s1 + $0x38] sm:$0xff]  }
  0x73   : > { %2003 = vmatmul.mubr.msk.bf16.gmra.mrb[44].mxu0 %vm314_vm2, %v823_v41  ;;  %2012 = vmatprep.mubr.msk.bf16.mxu1 %vm2153_vm0, %v2152_v1  ;;  %v1257_v41 = vrot.slane %v1255_v42, 3 }
  0x74   : > { %2006 = vmatprep.mubr.msk.bf16.mxu0 %vm2153_vm0, %v2152_v1 }
  0x75   : > { %v1258_v48 = vor.u32 %v1257_v41, %v1254_v46 }
  0x77   : > { %v1259_v52 = vsel %vm1224_vm6, %v1249_v39, %v1258_v48  ;;  %v1268_v60 = vsel %vm1224_vm6, %v1258_v48, %v1267_v57 }
  0x7a   : > { %2013 = vmatmul.mubr.msk.bf16.vlgmr.msra.gmra.mrb[48].mxu1 %vm314_vm2, %v947_v58 }
  0x7b   : > { %2007 = vmatmul.mubr.msk.bf16.gmra.mrb[48].mxu0 %vm314_vm2, %v832_v55  ;;  %2055 = vmatpush3.bf16.msra.mxu1 %v2134_v43  ;;  %v2143_v55 = vld [vmem:[%s2204_s22 + $0x30] ss:$0 sps:$4 sm:$0x77]  }
  0x7c   : > { %2034 = vmatprep.mubr.msk.bf16.mxu0 %vm2153_vm0, %v2152_v1  ;;  %2016 = vmatprep.mubr.msk.bf16.mxu1 %vm2153_vm0, %v2152_v1  ;;  %v1270_v58 = vshrl.u32 %v2143_v55, 16  ;;  %v1273_v43 = vshll.u32 %v2143_v55, 16  ;;  %v1399_v4 = vrot.slane %v2143_v55, 3 }
  0x7e   : > { %v1272_v61 = vrot.slane %v1270_v58, 2 }
  0x82   : > { %2017 = vmatmul.mubr.msk.bf16.gmra.mrb[52].mxu1 %vm314_vm2, %v949_v2 }
  0x83   : > { %2035 = vmatmul.mubr.msk.bf16.vlgmr.msra.gmra.mrb[52].mxu0 %vm314_vm2, %v1104_v62  ;;  %2020 = vmatprep.mubr.msk.bf16.mxu1 %vm2153_vm0, %v2152_v1  ;;  %v1275_v62 = vrot.slane %v1273_v43, 3 }
  0x84   : > { %2077 = vmatpush3.bf16.msra.mxu0 %v2137_v63  ;;  %2038 = vmatprep.mubr.msk.bf16.mxu0 %vm2153_vm0, %v2152_v1  ;;  %v1397_v63 = vrot.slane %v2454_v12, 3 }
  0x85   : > { %v1276_v0 = vor.u32 %v1275_v62, %v1272_v61 }
  0x86   : > { %v1398_v2 = vsel %vm1389_vm7, %v1395_v56, %v1397_v63 }
  0x87   : > { %v1277_v3 = vsel %vm1224_vm6, %v1267_v57, %v1276_v0 }
  0x8a   : > { %2021 = vmatmul.mubr.msk.bf16.gmra.mrb[56].mxu1 %vm314_vm2, %v951_v7 }
  0x8b   : > { %2039 = vmatmul.mubr.msk.bf16.gmra.mrb[56].mxu0 %vm314_vm2, %v1106_v5  ;;  %2024 = vmatprep.mubr.msk.bf16.mxu1 %vm2153_vm0, %v2152_v1  ;;  %v1400_v5 = vsel %vm1389_vm7, %v1397_v63, %v1399_v4 }
  0x8c   : > { %2042 = vmatprep.mubr.msk.bf16.mxu0 %vm2153_vm0, %v2152_v1 }
  0x92   : > { %2025 = vmatmul.mubr.msk.bf16.gmra.mrb[60].mxu1 %vm314_vm2, %v953_v13 }
  0x93   : > { %2043 = vmatmul.mubr.msk.bf16.gmra.mrb[60].mxu0 %vm314_vm2, %v1108_v11  ;;  %2028 = vmatprep.mubr.msk.bf16.mxu1 %vm2153_vm0, %v2152_v1 }
  0x94   : > { %2046 = vmatprep.mubr.msk.bf16.mxu0 %vm2153_vm0, %v2152_v1 }
  0x9a   : > { %2029 = vmatmul.mubr.msk.bf16.gmra.mrb[64].mxu1 %vm314_vm2, %v955_v20 }
  0x9b   : > { %2047 = vmatmul.mubr.msk.bf16.gmra.mrb[64].mxu0 %vm314_vm2, %v1110_v18  ;;  %2056 = vmatprep.mubr.msk.bf16.mxu1 %vm2153_vm0, %v2152_v1 }
  0x9c   : > { %2050 = vmatprep.mubr.msk.bf16.mxu0 %vm2153_vm0, %v2152_v1 }
  0xa2   : > { %2057 = vmatmul.mubr.msk.bf16.vlgmr.msra.gmra.mrb[68].mxu1 %vm314_vm2, %v1241_v33 }
  0xa3   : > { %2051 = vmatmul.mubr.msk.bf16.gmra.mrb[68].mxu0 %vm314_vm2, %v1112_v31  ;;  %2060 = vmatprep.mubr.msk.bf16.mxu1 %vm2153_vm0, %v2152_v1 }
  0xa4   : > { %2078 = vmatprep.mubr.msk.bf16.mxu0 %vm2153_vm0, %v2152_v1 }
  0xaa   : > { %2061 = vmatmul.mubr.msk.bf16.gmra.mrb[72].mxu1 %vm314_vm2, %v1250_v45 }
  0xab   : > { %2079 = vmatmul.mubr.msk.bf16.vlgmr.msra.gmra.mrb[72].mxu0 %vm314_vm2, %v1392_v44  ;;  %2064 = vmatprep.mubr.msk.bf16.mxu1 %vm2153_vm0, %v2152_v1 }
  0xac   : > { %2082 = vmatprep.mubr.msk.bf16.mxu0 %vm2153_vm0, %v2152_v1 }
  0xb2   : > { %2065 = vmatmul.mubr.msk.bf16.gmra.mrb[76].mxu1 %vm314_vm2, %v1259_v52 }
  0xb3   : > { %2083 = vmatmul.mubr.msk.bf16.gmra.mrb[76].mxu0 %vm314_vm2, %v1394_v51  ;;  %2068 = vmatprep.mubr.msk.bf16.mxu1 %vm2153_vm0, %v2152_v1 }
  0xb4   : > { %2086 = vmatprep.mubr.msk.bf16.mxu0 %vm2153_vm0, %v2152_v1 }
  0xba   : > { %2069 = vmatmul.mubr.msk.bf16.gmra.mrb[80].mxu1 %vm314_vm2, %v1268_v60 }
  0xbb   : > { %2087 = vmatmul.mubr.msk.bf16.gmra.mrb[80].mxu0 %vm314_vm2, %v1396_v59  ;;  %2072 = vmatprep.mubr.msk.bf16.mxu1 %vm2153_vm0, %v2152_v1 }
  0xbc   : > { %2090 = vmatprep.mubr.msk.bf16.mxu0 %vm2153_vm0, %v2152_v1 }
  0xc2   : > { %2073 = vmatmul.mubr.msk.bf16.gmra.mrb[84].mxu1 %vm314_vm2, %v1277_v3 }
  0xc3   : > { %2091 = vmatmul.mubr.msk.bf16.gmra.mrb[84].mxu0 %vm314_vm2, %v1398_v2 }
  0xc4   : > { %2094 = vmatprep.mubr.msk.bf16.mxu0 %vm2153_vm0, %v2152_v1 }
  0xcb   : > { %2095 = vmatmul.mubr.msk.bf16.gmra.mrb[88].mxu0 %vm314_vm2, %v1400_v5 }
  0xed   : > { %v388_v9 = vpop.f32.mrb[0].mxu1 }
  0xee   : > { %v364_v6 = vpop.f32.mrb[0].mxu0  ;;  %v1916_v12 = vpop.f32.mrb[1].mxu1 }
  0xef   : > { %v1904_v7 = vpop.f32.mrb[1].mxu0  ;;  %v391_v13 = vpop.f32.mrb[2].mxu1 }
  0xf0   : > { %v367_v8 = vpop.f32.mrb[2].mxu0  ;;  %v1917_v10 = vpop.f32.mrb[3].mxu1 }
  0xf1   : > { %v1905_v11 = vpop.f32.mrb[3].mxu0 }
  0xf5   : > { %v396_v16 = vpop.f32.mrb[4].mxu1 }
  0xf6   : > { %v372_v14 = vpop.f32.mrb[4].mxu0  ;;  %v1920_v17 = vpop.f32.mrb[5].mxu1 }
  0xf7   : > { %v1908_v36 = vpop.f32.mrb[5].mxu0  ;;  %v399_v18 = vpop.f32.mrb[6].mxu1 }
  0xf8   : > { %v375_v15 = vpop.f32.mrb[6].mxu0  ;;  %v1921_v19 = vpop.f32.mrb[7].mxu1 }
  0xf9   : > { %v1909_v1 = vpop.f32.mrb[7].mxu0 }
  0xfd   : > { %v453_v22 = vpop.f32.mrb[8].mxu1 }
  0xfe   : > { %v380_v20 = vpop.f32.mrb[8].mxu0  ;;  %v454_v24 = vadd.f32 %v453_v22, %v364_v6  ;;  %v1926_v25 = vpop.f32.mrb[9].mxu1 }
  0xff   : > { %v1912_v21 = vpop.f32.mrb[9].mxu0  ;;  %v456_v27 = vpop.f32.mrb[10].mxu1 }
 0x100   : > { %v383_v23 = vpop.f32.mrb[10].mxu0  ;;  %v457_v28 = vadd.f32 %v456_v27, %v367_v8  ;;  %v1927_v29 = vpop.f32.mrb[11].mxu1 }
 0x101   : > { %v1913_v26 = vpop.f32.mrb[11].mxu0 }
 0x105   : > { %v461_v33 = vpop.f32.mrb[12].mxu1 }
 0x106   : > { %v566_v30 = vpop.f32.mrb[12].mxu0  ;;  %v462_v35 = vadd.f32 %v461_v33, %v372_v14  ;;  %v1930_v37 = vpop.f32.mrb[13].mxu1 }
 0x107   : > { %v605_v31 = vadd.f32 %v566_v30, %v454_v24  ;;  %v1948_v32 = vpop.f32.mrb[13].mxu0  ;;  %v464_v40 = vpop.f32.mrb[14].mxu1 }
 0x108   : > { %v569_v34 = vpop.f32.mrb[14].mxu0  ;;  %v465_v42 = vadd.f32 %v464_v40, %v375_v15  ;;  %v1931_v44 = vpop.f32.mrb[15].mxu1 }
 0x109   : > { %v606_v38 = vadd.f32 %v569_v34, %v457_v28  ;;  %v1949_v39 = vpop.f32.mrb[15].mxu0 }
 0x10d   : > { %v469_v47 = vpop.f32.mrb[16].mxu1 }
 0x10e   : > { %v574_v45 = vpop.f32.mrb[16].mxu0  ;;  %v470_v49 = vadd.f32 %v469_v47, %v380_v20  ;;  %v1934_v50 = vpop.f32.mrb[17].mxu1 }
 0x10f   : > { %v607_v46 = vadd.f32 %v574_v45, %v462_v35  ;;  %v1952_v41 = vpop.f32.mrb[17].mxu0  ;;  %v472_v53 = vpop.f32.mrb[18].mxu1 }
 0x110   : > { %v577_v48 = vpop.f32.mrb[18].mxu0  ;;  %v473_v54 = vadd.f32 %v472_v53, %v383_v23  ;;  %v1935_v55 = vpop.f32.mrb[19].mxu1 }
 0x111   : > { %v608_v51 = vadd.f32 %v577_v48, %v465_v42  ;;  %v1953_v52 = vpop.f32.mrb[19].mxu0 }
 0x115   : > { %v477_v43 = vpop.f32.mrb[20].mxu1 }
 0x116   : > { %v582_v56 = vpop.f32.mrb[20].mxu0  ;;  %v478_v60 = vadd.f32 %v477_v43, %v388_v9  ;;  %v1938_v61 = vpop.f32.mrb[21].mxu1 }
 0x117   : > { %v609_v57 = vadd.f32 %v582_v56, %v470_v49  ;;  %v1956_v58 = vpop.f32.mrb[21].mxu0  ;;  %v480_v0 = vpop.f32.mrb[22].mxu1 }
 0x118   : > { %v585_v59 = vpop.f32.mrb[22].mxu0  ;;  %v481_v2 = vadd.f32 %v480_v0, %v391_v13  ;;  %v1939_v3 = vpop.f32.mrb[23].mxu1 }
 0x119   : > { %v610_v62 = vadd.f32 %v585_v59, %v473_v54  ;;  %v1957_v63 = vpop.f32.mrb[23].mxu0 }
 0x11d   : > { %v485_v7 = vpop.f32.mrb[24].mxu1 }
 0x11e   : > { %v590_v4 = vpop.f32.mrb[24].mxu0  ;;  %v486_v11 = vadd.f32 %v485_v7, %v396_v16  ;;  %v1942_v12 = vpop.f32.mrb[25].mxu1 }
 0x11f   : > { %v611_v5 = vadd.f32 %v590_v4, %v478_v60  ;;  %v1960_v6 = vpop.f32.mrb[25].mxu0  ;;  %v488_v36 = vpop.f32.mrb[26].mxu1 }
 0x120   : > { %v593_v8 = vpop.f32.mrb[26].mxu0  ;;  %v489_v15 = vadd.f32 %v488_v36, %v399_v18  ;;  %v1943_v1 = vpop.f32.mrb[27].mxu1 }
 0x121   : > { %v612_v10 = vadd.f32 %v593_v8, %v481_v2  ;;  %v1961_v14 = vpop.f32.mrb[27].mxu0 }
 0x125   : > { %v723_v20 = vpop.f32.mrb[28].mxu1 }
 0x126   : > { %v598_v17 = vpop.f32.mrb[28].mxu0  ;;  %v762_v22 = vadd.f32 %v723_v20, %v605_v31  ;;  %v1970_v13 = vpop.f32.mrb[29].mxu1 }
 0x127   : > { %v613_v9 = vadd.f32 %v598_v17, %v486_v11  ;;  %v1964_v19 = vpop.f32.mrb[29].mxu0  ;;  %v726_v25 = vpop.f32.mrb[30].mxu1 }
 0x128   : > { %v601_v21 = vpop.f32.mrb[30].mxu0  ;;  %v763_v26 = vadd.f32 %v726_v25, %v606_v38  ;;  %v1971_v27 = vpop.f32.mrb[31].mxu1 }
 0x129   : > { %v614_v23 = vadd.f32 %v601_v21, %v489_v15  ;;  %v1965_v24 = vpop.f32.mrb[31].mxu0 }
 0x12d   : > { %v731_v30 = vpop.f32.mrb[32].mxu1 }
 0x12e   : > { %v888_v28 = vpop.f32.mrb[32].mxu0  ;;  %v764_v33 = vadd.f32 %v731_v30, %v607_v46  ;;  %v1974_v18 = vpop.f32.mrb[33].mxu1 }
 0x12f   : > { %v927_v16 = vadd.f32 %v888_v28, %v762_v22  ;;  %v1992_v29 = vpop.f32.mrb[33].mxu0  ;;  %v734_v37 = vpop.f32.mrb[34].mxu1 }
 0x130   : > { %v891_v32 = vpop.f32.mrb[34].mxu0  ;;  %v765_v39 = vadd.f32 %v734_v37, %v608_v51  ;;  %v1975_v40 = vpop.f32.mrb[35].mxu1 }
 0x131   : > { %v928_v34 = vadd.f32 %v891_v32, %v763_v26  ;;  %v1993_v35 = vpop.f32.mrb[35].mxu0 }
 0x135   : > { %v739_v45 = vpop.f32.mrb[36].mxu1 }
 0x136   : > { %v896_v42 = vpop.f32.mrb[36].mxu0  ;;  %v766_v47 = vadd.f32 %v739_v45, %v609_v57  ;;  %v1978_v38 = vpop.f32.mrb[37].mxu1 }
 0x137   : > { %v929_v31 = vadd.f32 %v896_v42, %v764_v33  ;;  %v1996_v44 = vpop.f32.mrb[37].mxu0  ;;  %v742_v50 = vpop.f32.mrb[38].mxu1 }
 0x138   : > { %v899_v41 = vpop.f32.mrb[38].mxu0  ;;  %v767_v52 = vadd.f32 %v742_v50, %v610_v62  ;;  %v1979_v53 = vpop.f32.mrb[39].mxu1 }
 0x139   : > { %v930_v48 = vadd.f32 %v899_v41, %v765_v39  ;;  %v1997_v49 = vpop.f32.mrb[39].mxu0 }
 0x13d   : > { %v747_v56 = vpop.f32.mrb[40].mxu1 }
 0x13e   : > { %v904_v54 = vpop.f32.mrb[40].mxu0  ;;  %v768_v43 = vadd.f32 %v747_v56, %v611_v5  ;;  %v1982_v51 = vpop.f32.mrb[41].mxu1 }
 0x13f   : > { %v931_v46 = vadd.f32 %v904_v54, %v766_v47  ;;  %v2000_v55 = vpop.f32.mrb[41].mxu0  ;;  %v750_v61 = vpop.f32.mrb[42].mxu1 }
 0x140   : > { %v907_v58 = vpop.f32.mrb[42].mxu0  ;;  %v769_v63 = vadd.f32 %v750_v61, %v612_v10  ;;  %v1983_v0 = vpop.f32.mrb[43].mxu1 }
 0x141   : > { %v932_v59 = vadd.f32 %v907_v58, %v767_v52  ;;  %v2001_v60 = vpop.f32.mrb[43].mxu0 }
 0x145   : > { %v755_v4 = vpop.f32.mrb[44].mxu1 }
 0x146   : > { %v912_v2 = vpop.f32.mrb[44].mxu0  ;;  %v770_v7 = vadd.f32 %v755_v4, %v613_v9  ;;  %v1986_v62 = vpop.f32.mrb[45].mxu1 }
 0x147   : > { %v933_v57 = vadd.f32 %v912_v2, %v768_v43  ;;  %v2004_v3 = vpop.f32.mrb[45].mxu0  ;;  %v758_v12 = vpop.f32.mrb[46].mxu1 }
 0x148   : > { %v915_v6 = vpop.f32.mrb[46].mxu0  ;;  %v771_v14 = vadd.f32 %v758_v12, %v614_v23  ;;  %v1987_v36 = vpop.f32.mrb[47].mxu1 }
 0x149   : > { %v934_v8 = vadd.f32 %v915_v6, %v769_v63  ;;  %v2005_v11 = vpop.f32.mrb[47].mxu0 }
 0x14d   : > { %v1011_v17 = vpop.f32.mrb[48].mxu1 }
 0x14e   : > { %v920_v15 = vpop.f32.mrb[48].mxu0  ;;  %v1050_v20 = vadd.f32 %v1011_v17, %v927_v16  ;;  %v2014_v10 = vpop.f32.mrb[49].mxu1 }
 0x14f   : > { %v935_v5 = vadd.f32 %v920_v15, %v770_v7  ;;  %v2008_v1 = vpop.f32.mrb[49].mxu0  ;;  %v1014_v13 = vpop.f32.mrb[50].mxu1 }
 0x150   : > { %v923_v19 = vpop.f32.mrb[50].mxu0  ;;  %v1051_v24 = vadd.f32 %v1014_v13, %v928_v34  ;;  %v2015_v25 = vpop.f32.mrb[51].mxu1 }
 0x151   : > { %v936_v21 = vadd.f32 %v923_v19, %v771_v14  ;;  %v2009_v22 = vpop.f32.mrb[51].mxu0 }
 0x152   : > { %v1794_v22 = vld [vmem:[%s2547_s18] sm:$0xff]  }
 0x155   : > { %v1019_v28 = vpop.f32.mrb[52].mxu1 }
 0x156   : > { %v1168_v26 = vpop.f32.mrb[52].mxu0  ;;  %v1052_v30 = vadd.f32 %v1019_v28, %v929_v31  ;;  %v2018_v23 = vpop.f32.mrb[53].mxu1 }
 0x157   : > { %v1207_v9 = vadd.f32 %v1168_v26, %v1050_v20  ;;  %v2036_v27 = vpop.f32.mrb[53].mxu0  ;;  %v1022_v18 = vpop.f32.mrb[54].mxu1 }
 0x158   : > { %v1171_v29 = vpop.f32.mrb[54].mxu0  ;;  %v1053_v35 = vadd.f32 %v1022_v18, %v930_v48  ;;  %v2019_v37 = vpop.f32.mrb[55].mxu1  ;;  %v1795_v27 = vunpack.c.l.bf16 %v1794_v22 }
 0x159   : > { %v1208_v32 = vadd.f32 %v1171_v29, %v1051_v24  ;;  %v2037_v33 = vpop.f32.mrb[55].mxu0  ;;  %v2553_v24 = vld [vmem:[%s2592_s2] ss:$0 sm:$0xff] }
 0x15a   : > { %v1796_v33 = vunpack.c.h.bf16 %v1794_v22  ;;  %v1840_v22 = vld [vmem:[%s2547_s18 + $0x18] sm:$0xff]  }
 0x15d   : > { %v1027_v42 = vpop.f32.mrb[56].mxu1 }
 0x15e   : > { %v1176_v39 = vpop.f32.mrb[56].mxu0  ;;  %v1054_v45 = vadd.f32 %v1027_v42, %v931_v46  ;;  %v2022_v34 = vpop.f32.mrb[57].mxu1 }
 0x15f   : > { %v1209_v16 = vadd.f32 %v1176_v39, %v1052_v30  ;;  %v2040_v40 = vpop.f32.mrb[57].mxu0  ;;  %v1030_v38 = vpop.f32.mrb[58].mxu1 }
 0x160   : > { %v1179_v44 = vpop.f32.mrb[58].mxu0  ;;  %v1055_v49 = vadd.f32 %v1030_v38, %v932_v59  ;;  %v2023_v50 = vpop.f32.mrb[59].mxu1 }
 0x161   : > { %v1210_v41 = vadd.f32 %v1179_v44, %v1053_v35  ;;  %v2041_v47 = vpop.f32.mrb[59].mxu0 }
 0x165   : > { %v1035_v54 = vpop.f32.mrb[60].mxu1 }
 0x166   : > { %v1184_v52 = vpop.f32.mrb[60].mxu0  ;;  %v1056_v48 = vadd.f32 %v1035_v54, %v933_v57  ;;  %v2026_v56 = vpop.f32.mrb[61].mxu1 }
 0x167   : > { %v2529_v31 = vadd.f32 %v1184_v52, %v1054_v45  ;;  %v2044_v53 = vpop.f32.mrb[61].mxu0  ;;  %v1038_v51 = vpop.f32.mrb[62].mxu1  ;;  %v1838_v45 = vld [vmem:[%s2547_s18 + $0x8] sm:$0xff]  }
 0x168   : > { %v1187_v55 = vpop.f32.mrb[62].mxu0  ;;  %v1057_v46 = vadd.f32 %v1038_v51, %v934_v8  ;;  %v2027_v60 = vpop.f32.mrb[63].mxu1 }
 0x169   : > { %v2531_v58 = vadd.f32 %v1187_v55, %v1055_v49  ;;  %v2045_v43 = vpop.f32.mrb[63].mxu0 }
 0x16d   : > { %v1043_v0 = vpop.f32.mrb[64].mxu1 }
 0x16e   : > { %v1192_v61 = vpop.f32.mrb[64].mxu0  ;;  %v1058_v3 = vadd.f32 %v1043_v0, %v935_v5  ;;  %v2030_v4 = vpop.f32.mrb[65].mxu1  ;;  %v1839_v0 = vld [vmem:[%s2547_s18 + $0x10] sm:$0xff]  }
 0x16f   : > { %v2533_v63 = vadd.f32 %v1192_v61, %v1056_v48  ;;  %v2048_v59 = vpop.f32.mrb[65].mxu0  ;;  %v1046_v7 = vpop.f32.mrb[66].mxu1  ;;  %v1800_v48 = vunpack.c.h.bf16 %v1838_v45 }
 0x170   : > { %v1195_v2 = vpop.f32.mrb[66].mxu0  ;;  %v1059_v62 = vadd.f32 %v1046_v7, %v936_v21  ;;  %v2031_v11 = vpop.f32.mrb[67].mxu1  ;;  %v1803_v7 = vunpack.c.l.bf16 %v1839_v0 }
 0x171   : > { %v2535_v6 = vadd.f32 %v1195_v2, %v1057_v46  ;;  %v2049_v57 = vpop.f32.mrb[67].mxu0 }
 0x175   : > { %v1333_v36 = vpop.f32.mrb[68].mxu1 }
 0x176   : > { %v1200_v12 = vpop.f32.mrb[68].mxu0  ;;  %v1372_v1 = vadd.f32 %v1333_v36, %v1207_v9  ;;  %v2058_v17 = vpop.f32.mrb[69].mxu1  ;;  %v1804_v36 = vunpack.c.h.bf16 %v1839_v0 }
 0x177   : > { %v2538_v14 = vadd.f32 %v1200_v12, %v1058_v3  ;;  %v2052_v8 = vpop.f32.mrb[69].mxu0  ;;  %v1336_v20 = vpop.f32.mrb[70].mxu1 }
 0x178   : > { %v1203_v15 = vpop.f32.mrb[70].mxu0  ;;  %v1373_v10 = vadd.f32 %v1336_v20, %v1208_v32  ;;  %v2059_v21 = vpop.f32.mrb[71].mxu1 }
 0x179   : > { %v2540_v19 = vadd.f32 %v1203_v15, %v1059_v62  ;;  %v2053_v5 = vpop.f32.mrb[71].mxu0 }
 0x17d   : > { %v1341_v9 = vpop.f32.mrb[72].mxu1 }
 0x17e   : > { %v1456_v13 = vpop.f32.mrb[72].mxu0  ;;  %v1374_v29 = vadd.f32 %v1341_v9, %v1209_v16  ;;  %v2062_v23 = vpop.f32.mrb[73].mxu1 }
 0x17f   : > { %v1495_v25 = vadd.f32 %v1456_v13, %v1372_v1  ;;  %v2080_v26 = vpop.f32.mrb[73].mxu0  ;;  %v1344_v35 = vpop.f32.mrb[74].mxu1 }
 0x180   : > { %v1459_v28 = vpop.f32.mrb[74].mxu0  ;;  %v1375_v37 = vadd.f32 %v1344_v35, %v1210_v41  ;;  %v2063_v40 = vpop.f32.mrb[75].mxu1  ;;  %v1799_v41 = vunpack.c.l.bf16 %v1838_v45  ;;  %v1841_v45 = vld [vmem:[%s2547_s18 + $0x20] sm:$0xff]  }
 0x181   : > { %v1512_v30 = vadd.f32 %v2553_v24, %v1495_v25  ;;  %v1496_v32 = vadd.f32 %v1459_v28, %v1373_v10  ;;  %v2081_v18 = vpop.f32.mrb[75].mxu0 }
 0x183   : > { %v1513_v39 = vadd.f32 %v2553_v24, %v1496_v32  ;;  %v1542_v42 = vadd.f32 %v1795_v27, %v1512_v30  ;;  %v1807_v27 = vunpack.c.l.bf16 %v1840_v22  ;;  %v1808_v32 = vunpack.c.h.bf16 %v1840_v22 }
 0x185   : > { %v1543_v44 = vadd.f32 %v1796_v33, %v1513_v39  ;;  %v1349_v49 = vpop.f32.mrb[76].mxu1 }
 0x186   : > { %v1464_v16 = vpop.f32.mrb[76].mxu0  ;;  %v1376_v52 = vadd.f32 %v1349_v49, %v2529_v31  ;;  %v2066_v54 = vpop.f32.mrb[77].mxu1  ;;  %v1811_v49 = vunpack.c.l.bf16 %v1841_v45 }
 0x187   : > { %v1816_v34 = vpack.c.bf16 %v1543_v44, %v1542_v42  ;;  %v1497_v47 = vadd.f32 %v1464_v16, %v1374_v29  ;;  %v2084_v38 = vpop.f32.mrb[77].mxu0  ;;  %v1352_v43 = vpop.f32.mrb[78].mxu1 }
 0x188   : > { %v1467_v50 = vpop.f32.mrb[78].mxu0  ;;  %v1377_v51 = vadd.f32 %v1352_v43, %v2531_v58  ;;  %v2067_v60 = vpop.f32.mrb[79].mxu1 }
 0x189   : > { %1817 = vst [vmem:[%s2563_s23] sm:$0xff] %v1816_v34   ;;  %v1514_v53 = vadd.f32 %v2553_v24, %v1497_v47  ;;  %v1498_v55 = vadd.f32 %v1467_v50, %v1375_v37  ;;  %v2085_v56 = vpop.f32.mrb[79].mxu0  ;;  %v1812_v50 = vunpack.c.h.bf16 %v1841_v45 }
 0x18b   : > { %v1515_v46 = vadd.f32 %v2553_v24, %v1498_v55  ;;  %v1544_v61 = vadd.f32 %v1799_v41, %v1514_v53 }
 0x18d   : > { %v1545_v59 = vadd.f32 %v1800_v48, %v1515_v46  ;;  %v1357_v57 = vpop.f32.mrb[80].mxu1 }
 0x18e   : > { %v1472_v2 = vpop.f32.mrb[80].mxu0  ;;  %v1378_v11 = vadd.f32 %v1357_v57, %v2533_v63  ;;  %v2070_v58 = vpop.f32.mrb[81].mxu1 }
 0x18f   : > { %v1821_v3 = vpack.c.bf16 %v1545_v59, %v1544_v61  ;;  %v1499_v4 = vadd.f32 %v1472_v2, %v1376_v52  ;;  %v2088_v31 = vpop.f32.mrb[81].mxu0  ;;  %v1360_v1 = vpop.f32.mrb[82].mxu1 }
 0x190   : > { %v1475_v62 = vpop.f32.mrb[82].mxu0  ;;  %v1379_v17 = vadd.f32 %v1360_v1, %v2535_v6  ;;  %v2071_v20 = vpop.f32.mrb[83].mxu1 }
 0x191   : > { %1842 = vst [vmem:[%s2563_s23 + $0x8] sm:$0xff] %v1821_v3   ;;  %v1516_v12 = vadd.f32 %v2553_v24, %v1499_v4  ;;  %v1500_v8 = vadd.f32 %v1475_v62, %v1377_v51  ;;  %v2089_v15 = vpop.f32.mrb[83].mxu0 }
 0x193   : > { %v1517_v5 = vadd.f32 %v2553_v24, %v1500_v8  ;;  %v1546_v10 = vadd.f32 %v1803_v7, %v1516_v12 }
 0x195   : > { %v1547_v21 = vadd.f32 %v1804_v36, %v1517_v5  ;;  %v1365_v9 = vpop.f32.mrb[84].mxu1 }
 0x196   : > { %v1480_v13 = vpop.f32.mrb[84].mxu0  ;;  %v1380_v29 = vadd.f32 %v1365_v9, %v2538_v14  ;;  %v2074_v6 = vpop.f32.mrb[85].mxu1 }
 0x197   : > { %v1826_v25 = vpack.c.bf16 %v1547_v21, %v1546_v10  ;;  %v1501_v26 = vadd.f32 %v1480_v13, %v1378_v11  ;;  %v2092_v63 = vpop.f32.mrb[85].mxu0  ;;  %v1368_v18 = vpop.f32.mrb[86].mxu1 }
 0x198   : > { %v1483_v28 = vpop.f32.mrb[86].mxu0  ;;  %v1381_v35 = vadd.f32 %v1368_v18, %v2540_v19  ;;  %v2075_v39 = vpop.f32.mrb[87].mxu1 }
 0x199   : > { %1843 = vst [vmem:[%s2563_s23 + $0x10] sm:$0xff] %v1826_v25   ;;  %v1518_v30 = vadd.f32 %v2553_v24, %v1501_v26  ;;  %v1502_v23 = vadd.f32 %v1483_v28, %v1379_v17  ;;  %v2093_v33 = vpop.f32.mrb[87].mxu0 }
 0x19b   : > { %v1519_v37 = vadd.f32 %v2553_v24, %v1502_v23  ;;  %v1548_v40 = vadd.f32 %v1807_v27, %v1518_v30 }
 0x19d   : > { %v1549_v42 = vadd.f32 %v1808_v32, %v1519_v37 }
 0x19e   : > { %v1488_v44 = vpop.f32.mrb[88].mxu0 }
 0x19f   : > { %v1831_v16 = vpack.c.bf16 %v1549_v42, %v1548_v40  ;;  %v1503_v14 = vadd.f32 %v1488_v44, %v1380_v29  ;;  %v2096_v34 = vpop.f32.mrb[89].mxu0 }
 0x1a0   : > { %v1491_v47 = vpop.f32.mrb[90].mxu0 }
 0x1a1   : > { %1844 = vst [vmem:[%s2563_s23 + $0x18] sm:$0xff] %v1831_v16   ;;  %v1520_v38 = vadd.f32 %v2553_v24, %v1503_v14  ;;  %v1504_v41 = vadd.f32 %v1491_v47, %v1381_v35  ;;  %v2097_v52 = vpop.f32.mrb[91].mxu0 }
 0x1a3   : > { %v1521_v19 = vadd.f32 %v2553_v24, %v1504_v41  ;;  %v1550_v53 = vadd.f32 %v1811_v49, %v1520_v38 }
 0x1a5   : > { %v1551_v54 = vadd.f32 %v1812_v50, %v1521_v19 }
 0x1a7   : > { %v1836_v55 = vpack.c.bf16 %v1551_v54, %v1550_v53 }
 0x1a9   : > { %1845 = vst [vmem:[%s2563_s23 + $0x20] sm:$0xff] %v1836_v55  }
 0x1aa PF: > { %s14_s15 = sadd.s32 1, %s2150_s15  }
 0x1ab   : > { %p11_p4 = scmp.ge.s32.totalorder %s14_s15, 4  }
 0x1ad   :  { %13 = sbr.rel (!%p11_p4) target bundleno = 1 (0x1), region = 77 }

// kernel: _lambda_.24
= control target key start
LH: loop header
LB: loop body
LE: loop exit
PB: predicated region body
PF: predicated region fallthrough
CT: control target
= control target key end

     0   :  { %s2070_s12 = smov 0   ;;  %s2461_s0 = inlined_call_operand.vmem [shape: bf16[2,110,16], index: 0, kind: input, shape index: {}]   ;;  %s2462_s1 = inlined_call_operand.vmem [shape: bf16[9,16,128], index: 1, kind: input, shape index: {}]   ;;  %s2463_s2 = inlined_call_operand.vmem [shape: f32[1,128], index: 2, kind: input, shape index: {}]   ;;  %s2464_s3 = inlined_call_operand.vmem [shape: bf16[2,80,128], index: 3, kind: output, shape index: {}]  }
   0x1 LB: > { %s1590_s13 = sadd.s32 4294967295, %s2046_s12   ;;  %p1594_p0 = scmp.ge.s32.totalorder %s2046_s12, 1  ;;  %s2046_s12 = sphi %s2070_s12, %s13_s12  }
   0x2   : > { %p137_p1 = scmp.lt.s32.totalorder %s2046_s12, 3 }
   0x4   : > { %p138_p2 = pnand %p1594_p0, %p137_p1 }
   0x5   : > { %v2008_v0 = vld [vmem:[%s2462_s1 + $0x8] sm:$0xff] (!%p138_p2)   ;;  %v2048_v1 = vmov (!%p138_p2), 0.0   ;;  %p161_p3 = scmp.lt.s32.totalorder (!%p138_p2), %s1590_s13, 1  ;;  %vm2049_vm0 = vmmov (!%p138_p2), 0   ;;  %vm216_vm1 = vsmask.f32 (!%p138_p2), 7424 }
   0x6   : > { %141 = sbr.rel (%p138_p2) target bundleno = 426 (0x1aa), region = 32  ;;  %1796 = vmatprep.subr.bf16.mxu0 (!%p138_p2), %v2048_v1  ;;  %1994 = vmatprep.subr.bf16.mxu1 (!%p138_p2), %v2048_v1  ;;  %vm267_vm2 = vcmask (!%p138_p2), 130048   ;;  %v2013_v20 = vld [vmem:[%s2462_s1 + $0x10] sm:$0xff] (!%p138_p2)   ;;  %v2014_v24 = vld [vmem:[%s2462_s1] sm:$0xff] (!%p138_p2)   ;;  %vm452_vm3 = vcmask (!%p138_p2), 1046528   ;;  %v2017_v46 = vld [vmem:[%s2462_s1 + $0x18] sm:$0xff] (!%p138_p2)  }
   0x7   : > { %1797 = vmatpush3.bf16.msra.mxu0 (!%p138_p2), %v2008_v0  ;;  %1995 = vmatpush3.bf16.msra.mxu1 (!%p138_p2), %v2008_v0  ;;  %v2019_v50 = vld [vmem:[%s2462_s1 + $0x20] sm:$0xff] (!%p138_p2)   ;;  %vm732_vm4 = vsmask.f32 (!%p138_p2), 6400  ;;  %vm897_vm5 = vcmask (!%p138_p2), 1045504   ;;  %vm1177_vm6 = vsmask.f32 (!%p138_p2), 5376 }
   0x8   : > { %1798 = vmatprep.mubr.msk.bf16.mxu0 (!%p138_p2), %vm2049_vm0, %v2048_v1  ;;  %1810 = vmatprep.mubr.msk.bf16.mxu1 (!%p138_p2), %vm2049_vm0, %v2048_v1  ;;  %vm1342_vm7 = vcmask (!%p138_p2), 1044480  }
   0x9   : > { %1840 = vmatprep.subr.bf16.mxu0 (!%p138_p2), %v2048_v1  ;;  %1818 = vmatprep.subr.bf16.mxu1 (!%p138_p2), %v2048_v1 }
   0xd   : > { %s2466_s13 = smov (!%p161_p3, %s1590_s13), 1 }
   0xe   : > { %s1996_s16 = smul.u32 56, %s2466_s13 }
   0xf   : > { %s1997_s11 = smul.u32 40, %s2466_s13 }
  0x10   : > { %s2095_s19 = scalar_lea.vmem %s2461_s0, %s1996_s16 }
  0x11   : > { %v172_v2 = vld [vmem:[%s2095_s19] sm:$0xf]  ;;  %v173_v3 = vld [vmem:[%s2095_s19 + $0x4] sm:$0xf]  ;;  %v2100_v5 = vld [vmem:[%s2095_s19 + $0x8] sm:$0xff]   ;;  %s2439_s16 = scalar_lea.vmem %s2464_s3, %s1997_s11 }
  0x12   : > { %v1599_v4 = vcombine.low %v172_v2, %v173_v3  ;;  %v225_v8 = vshll.u32 %v2100_v5, 16  ;;  %v2104_v9 = vld [vmem:[%s2095_s19 + $0x18] sm:$0xff]   ;;  %v2107_v10 = vld [vmem:[%s2095_s19 + $0x20] sm:$0xff]   ;;  %v2110_v11 = vld [vmem:[%s2095_s19 + $0x10] sm:$0xff]   ;;  %v229_v21 = vshrl.u32 %v2100_v5, 16  ;;  %v454_v48 = vrot.slane %v2100_v5, 1 }
  0x13   : > { %v241_v14 = vshll.u32 %v2104_v9, 16  ;;  %v245_v15 = vshrl.u32 %v2104_v9, 16  ;;  %v249_v16 = vshll.u32 %v2107_v10, 16  ;;  %v2116_v17 = vld [vmem:[%s2095_s19 + $0x28] ss:$0 sps:$4 sm:$0x11]  }
  0x14   : > { %v218_v6 = vshrl.u32 %v1599_v4, 16  ;;  %v220_v7 = vshll.u32 %v1599_v4, 16  ;;  %v227_v13 = vrot.slane %v225_v8, 1  ;;  %v233_v22 = vshll.u32 %v2110_v11, 16  ;;  %v2141_v36 = vld [vmem:[%s2095_s19 + $0x24] sm:$0xff]   ;;  %v2208_v60 = vld [vmem:[%s2095_s19 + $0xc] sm:$0xff]  }
  0x15   : > { %v243_v19 = vrot.slane %v241_v14, 1  ;;  %v251_v23 = vrot.slane %v249_v16, 1  ;;  %v253_v27 = vshrl.u32 %v2107_v10, 16  ;;  %v257_v28 = vshll.u32 %v2116_v17, 16  ;;  %v445_v40 = vld [vmem:[%s2095_s19] sm:$0xe] }
  0x16   : > { %v222_v12 = vrot.slane %v220_v7, 1  ;;  %v231_v30 = vor.u32 %v229_v21, %v227_v13  ;;  %v235_v31 = vrot.slane %v233_v22, 1  ;;  %v237_v35 = vshrl.u32 %v2110_v11, 16  ;;  %v2027_v37 = vld [vmem:[%s2095_s19 + $0x2c] ss:$0 sps:$4 sm:$0x11]  }
  0x17   : > { %v247_v26 = vor.u32 %v245_v15, %v243_v19  ;;  %v255_v32 = vor.u32 %v253_v27, %v251_v23  ;;  %v259_v33 = vrot.slane %v257_v28, 1  ;;  %v617_v41 = vrot.slane %v2141_v36, 1  ;;  %v568_v56 = vld [vmem:[%s2095_s19 + $0x4] sm:$0xe]  ;;  %v2203_v57 = vld [vmem:[%s2095_s19 + $0x8] sm:$0xf] }
  0x18   : > { %v223_v18 = vor.u32 %v222_v12, %v218_v6  ;;  %v236_v34 = vsel %vm216_vm1, %v231_v30, %v235_v31  ;;  %v239_v39 = vor.u32 %v237_v35, %v235_v31  ;;  %v619_v42 = vrot.slane %v2027_v37, 1  ;;  %v2022_v12 = vld [vmem:[%s2462_s1 + $0x28] sm:$0xff]  }
  0x19   : > { %v252_v29 = vsel %vm216_vm1, %v247_v26, %v251_v23  ;;  %v260_v38 = vsel %vm216_vm1, %v255_v32, %v259_v33  ;;  %v1619_v45 = vcombine.low %v445_v40, %v173_v3  ;;  %v456_v51 = vrot.slane %v2110_v11, 1  ;;  %v2245_v23 = vld [vmem:[%s2095_s19 + $0x1c] sm:$0xff]  }
  0x1a   : > { %v228_v25 = vsel %vm216_vm1, %v223_v18, %v227_v13  ;;  %1811 = vmatmul.mubr.msk.bf16.vlgmr.msra.gmra.mrb[0].mxu1 %vm267_vm2, %v252_v29  ;;  %v2156_v43 = vsel %vm452_vm3, %v617_v41, %v619_v42  ;;  %v244_v44 = vsel %vm216_vm1, %v239_v39, %v243_v19  ;;  %v458_v53 = vrot.slane %v2104_v9, 1  ;;  %v2227_v13 = vld [vmem:[%s2095_s19 + $0x14] sm:$0xff]   ;;  %v2269_v39 = vld [vmem:[%s2095_s19 + $0x2c] ss:$0 sps:$4 sm:$0x33]  }
  0x1b   : > { %1799 = vmatmul.mubr.msk.bf16.vlgmr.msra.gmra.mrb[0].mxu0 %vm267_vm2, %v228_v25  ;;  %1819 = vmatpush3.bf16.msra.mxu1 %v2014_v24  ;;  %v453_v47 = vrot.slane %v1619_v45, 1  ;;  %v457_v52 = vsel %vm452_vm3, %v454_v48, %v456_v51  ;;  %v460_v55 = vrot.slane %v2107_v10, 1  ;;  %v1628_v59 = vcombine.low %v568_v56, %v2203_v57  ;;  %v2024_v19 = vld [vmem:[%s2462_s1 + $0x30] sm:$0xff]  }
  0x1c   : > { %1841 = vmatpush3.bf16.msra.mxu0 %v2013_v20  ;;  %1802 = vmatprep.mubr.msk.bf16.mxu0 %vm2049_vm0, %v2048_v1  ;;  %v459_v54 = vsel %vm452_vm3, %v456_v51, %v458_v53  ;;  %v462_v61 = vrot.slane %v2116_v17, 1  ;;  %v742_v0 = vshrl.u32 %v2208_v60, 16  ;;  %v745_v2 = vshll.u32 %v2208_v60, 16  ;;  %v1013_v51 = vld [vmem:[%s2095_s19 + $0x8] sm:$0xc] }
  0x1d   : > { %1884 = vmatprep.subr.bf16.mxu0 %v2048_v1  ;;  %1814 = vmatprep.mubr.msk.bf16.mxu1 %vm2049_vm0, %v2048_v1  ;;  %v455_v49 = vsel %vm452_vm3, %v453_v47, %v454_v48  ;;  %v461_v58 = vsel %vm452_vm3, %v458_v53, %v460_v55  ;;  %v734_v62 = vshrl.u32 %v1628_v59, 16  ;;  %v737_v63 = vshll.u32 %v1628_v59, 16 }
  0x1e   : > { %1862 = vmatprep.subr.bf16.mxu1 %v2048_v1  ;;  %v610_v3 = vrot.slane %v1628_v59, 1  ;;  %v744_v8 = vrot.slane %v742_v0, 1  ;;  %v751_v15 = vshrl.u32 %v2227_v13, 16  ;;  %v754_v16 = vshll.u32 %v2227_v13, 16  ;;  %v2319_v0 = vld [vmem:[%s2095_s19 + $0x18] sm:$0xff]  }
  0x1f   : > { %v736_v6 = vrot.slane %v734_v62, 1  ;;  %v739_v7 = vrot.slane %v737_v63, 2  ;;  %v613_v17 = vrot.slane %v2227_v13, 1  ;;  %v760_v25 = vshrl.u32 %v2245_v23, 16  ;;  %v2033_v63 = vld [vmem:[%s2462_s1 + $0x40] sm:$0xff]  }
  0x20   : > { %v753_v20 = vrot.slane %v751_v15, 1  ;;  %v756_v21 = vrot.slane %v754_v16, 2  ;;  %v763_v26 = vshll.u32 %v2245_v23, 16  ;;  %v615_v27 = vrot.slane %v2245_v23, 1 }
  0x21   : > { %v762_v29 = vrot.slane %v760_v25, 1  ;;  %v769_v33 = vshrl.u32 %v2141_v36, 16  ;;  %v781_v45 = vshll.u32 %v2269_v39, 16 }
  0x22   : > { %1815 = vmatmul.mubr.msk.bf16.gmra.mrb[4].mxu1 %vm267_vm2, %v260_v38  ;;  %v757_v24 = vor.u32 %v756_v21, %v753_v20  ;;  %v765_v30 = vrot.slane %v763_v26, 2  ;;  %v616_v31 = vsel %vm452_vm3, %v613_v17, %v615_v27  ;;  %v618_v40 = vsel %vm452_vm3, %v615_v27, %v617_v41  ;;  %v1335_v26 = vld [vmem:[%s2095_s19 + $0x8] sm:$0x8] }
  0x23   : > { %1803 = vmatmul.mubr.msk.bf16.gmra.mrb[4].mxu0 %vm267_vm2, %v236_v34  ;;  %1820 = vmatprep.mubr.msk.bf16.mxu1 %vm2049_vm0, %v2048_v1  ;;  %v772_v34 = vshll.u32 %v2141_v36, 16  ;;  %v771_v37 = vrot.slane %v769_v33, 1  ;;  %v783_v48 = vrot.slane %v781_v45, 2 }
  0x24   : > { %1806 = vmatprep.mubr.msk.bf16.mxu0 %vm2049_vm0, %v2048_v1  ;;  %v766_v32 = vor.u32 %v765_v30, %v762_v29  ;;  %v1196_v29 = vshrl.u32 %v2319_v0, 16  ;;  %v1199_v30 = vshll.u32 %v2319_v0, 16 }
  0x25   : > { %v774_v38 = vrot.slane %v772_v34, 2 }
  0x26   : > { %v767_v35 = vsel %vm732_vm4, %v757_v24, %v766_v32  ;;  %v1198_v34 = vrot.slane %v1196_v29, 2 }
  0x27   : > { %v775_v42 = vor.u32 %v774_v38, %v771_v37 }
  0x29   : > { %v776_v41 = vsel %vm732_vm4, %v766_v32, %v775_v42 }
  0x2a   : > { %1821 = vmatmul.mubr.msk.bf16.vlgmr.msra.gmra.mrb[8].mxu1 %vm267_vm2, %v1599_v4  ;;  %v611_v4 = vrot.slane %v2208_v60, 1 }
  0x2b   : > { %1807 = vmatmul.mubr.msk.bf16.gmra.mrb[8].mxu0 %vm267_vm2, %v244_v44  ;;  %1863 = vmatpush3.bf16.msra.mxu1 %v2017_v46  ;;  %v778_v44 = vshrl.u32 %v2269_v39, 16  ;;  %v890_v46 = vld [vmem:[%s2095_s19 + $0x4] sm:$0xc] }
  0x2c   : > { %1842 = vmatprep.mubr.msk.bf16.mxu0 %vm2049_vm0, %v2048_v1  ;;  %1824 = vmatprep.mubr.msk.bf16.mxu1 %vm2049_vm0, %v2048_v1  ;;  %v614_v22 = vsel %vm452_vm3, %v611_v4, %v613_v17 }
  0x2d   : > { %1906 = vmatprep.subr.bf16.mxu1 %v2048_v1  ;;  %v780_v47 = vrot.slane %v778_v44, 1 }
  0x32   : > { %1825 = vmatmul.mubr.msk.bf16.gmra.mrb[12].mxu1 %vm267_vm2, %v2100_v5  ;;  %v463_v5 = vsel %vm452_vm3, %v460_v55, %v462_v61  ;;  %v901_v61 = vrot.slane %v2227_v13, 2 }
  0x33   : > { %1843 = vmatmul.mubr.msk.bf16.vlgmr.msra.gmra.mrb[12].mxu0 %vm267_vm2, %v455_v49  ;;  %1828 = vmatprep.mubr.msk.bf16.mxu1 %vm2049_vm0, %v2048_v1  ;;  %v1651_v49 = vcombine.low %v890_v46, %v2203_v57  ;;  %v2300_v57 = vld [vmem:[%s2095_s19 + $0x10] sm:$0xff]  }
  0x34   : > { %1885 = vmatpush3.bf16.msra.mxu0 %v2019_v50  ;;  %1846 = vmatprep.mubr.msk.bf16.mxu0 %vm2049_vm0, %v2048_v1  ;;  %v784_v50 = vor.u32 %v783_v48, %v780_v47  ;;  %v1187_v16 = vshrl.u32 %v2300_v57, 16  ;;  %v1190_v17 = vshll.u32 %v2300_v57, 16  ;;  %v1344_v38 = vrot.slane %v2300_v57, 3 }
  0x35   : > { %1928 = vmatprep.subr.bf16.mxu0 %v2048_v1  ;;  %v898_v53 = vrot.slane %v1651_v49, 2  ;;  %v1346_v47 = vrot.slane %v2319_v0, 3 }
  0x36   : > { %v785_v55 = vsel %vm732_vm4, %v775_v42, %v784_v50 }
  0x3a   : > { %1829 = vmatmul.mubr.msk.bf16.gmra.mrb[16].mxu1 %vm267_vm2, %v2110_v11  ;;  %v612_v11 = vsel %vm452_vm3, %v610_v3, %v611_v4  ;;  %v1058_v3 = vrot.slane %v2319_v0, 2  ;;  %v903_v4 = vrot.slane %v2245_v23, 2  ;;  %v1189_v23 = vrot.slane %v1187_v16, 2 }
  0x3b   : > { %1847 = vmatmul.mubr.msk.bf16.gmra.mrb[16].mxu0 %vm267_vm2, %v457_v52  ;;  %1832 = vmatprep.mubr.msk.bf16.mxu1 %vm2049_vm0, %v2048_v1  ;;  %v2292_v52 = vld [vmem:[%s2095_s19 + $0xc] sm:$0xf] }
  0x3c   : > { %1850 = vmatprep.mubr.msk.bf16.mxu0 %vm2049_vm0, %v2048_v1  ;;  %v1660_v56 = vcombine.low %v1013_v51, %v2292_v52  ;;  %v1683_v32 = vcombine.low %v1335_v26, %v2292_v52  ;;  %v1347_v51 = vsel %vm1342_vm7, %v1344_v38, %v1346_v47 }
  0x3e   : > { %v1055_v59 = vrot.slane %v1660_v56, 2  ;;  %v1182_v15 = vshll.u32 %v1660_v56, 16  ;;  %v1343_v37 = vrot.slane %v1683_v32, 3 }
  0x40   : > { %v1345_v44 = vsel %vm1342_vm7, %v1343_v37, %v1344_v38 }
  0x42   : > { %1833 = vmatmul.mubr.msk.bf16.gmra.mrb[20].mxu1 %vm267_vm2, %v2104_v9  ;;  %v747_v9 = vrot.slane %v745_v2, 2 }
  0x43   : > { %1851 = vmatmul.mubr.msk.bf16.gmra.mrb[20].mxu0 %vm267_vm2, %v459_v54  ;;  %1836 = vmatprep.mubr.msk.bf16.mxu1 %vm2049_vm0, %v2048_v1  ;;  %v899_v54 = vrot.slane %v2208_v60, 2  ;;  %v1056_v60 = vrot.slane %v2300_v57, 2 }
  0x44   : > { %1854 = vmatprep.mubr.msk.bf16.mxu0 %vm2049_vm0, %v2048_v1  ;;  %v748_v14 = vor.u32 %v747_v9, %v744_v8  ;;  %v905_v9 = vrot.slane %v2141_v36, 2  ;;  %v1179_v36 = vshrl.u32 %v1660_v56, 16 }
  0x45   : > { %v1057_v62 = vsel %vm897_vm5, %v1055_v59, %v1056_v60  ;;  %v902_v2 = vsel %vm897_vm5, %v899_v54, %v901_v61 }
  0x46   : > { %v758_v28 = vsel %vm732_vm4, %v748_v14, %v757_v24  ;;  %v906_v13 = vsel %vm897_vm5, %v903_v4, %v905_v9  ;;  %v1181_v21 = vrot.slane %v1179_v36, 2  ;;  %v1192_v24 = vrot.slane %v1190_v17, 3 }
  0x4a   : > { %1837 = vmatmul.mubr.msk.bf16.gmra.mrb[24].mxu1 %vm267_vm2, %v2107_v10  ;;  %v740_v10 = vor.u32 %v739_v7, %v736_v6  ;;  %v2332_v6 = vld [vmem:[%s2095_s19 + $0x20] sm:$0xff]   ;;  %v904_v7 = vsel %vm897_vm5, %v901_v61, %v903_v4 }
  0x4b   : > { %1855 = vmatmul.mubr.msk.bf16.gmra.mrb[24].mxu0 %vm267_vm2, %v461_v58  ;;  %1864 = vmatprep.mubr.msk.bf16.mxu1 %vm2049_vm0, %v2048_v1  ;;  %v900_v58 = vsel %vm897_vm5, %v898_v53, %v899_v54  ;;  %v1060_v8 = vrot.slane %v2332_v6, 2  ;;  %v1208_v42 = vshll.u32 %v2332_v6, 16  ;;  %v1348_v56 = vrot.slane %v2332_v6, 3 }
  0x4c   : > { %1858 = vmatprep.mubr.msk.bf16.mxu0 %vm2049_vm0, %v2048_v1  ;;  %v749_v18 = vsel %vm732_vm4, %v740_v10, %v748_v14  ;;  %v907_v14 = vrot.slane %v2269_v39, 2 }
  0x4d   : > { %v1349_v59 = vsel %vm1342_vm7, %v1346_v47, %v1348_v56 }
  0x4e   : > { %v908_v20 = vsel %vm897_vm5, %v905_v9, %v907_v14 }
  0x52   : > { %1865 = vmatmul.mubr.msk.bf16.vlgmr.msra.gmra.mrb[28].mxu1 %vm267_vm2, %v612_v11  ;;  %v1061_v11 = vsel %vm897_vm5, %v1058_v3, %v1060_v8 }
  0x53   : > { %1859 = vmatmul.mubr.msk.bf16.gmra.mrb[28].mxu0 %vm267_vm2, %v463_v5  ;;  %1907 = vmatpush3.bf16.msra.mxu1 %v2022_v12  ;;  %v1059_v5 = vsel %vm897_vm5, %v1056_v60, %v1058_v3  ;;  %v2345_v12 = vld [vmem:[%s2095_s19 + $0x28] sm:$0xff]  }
  0x54   : > { %1886 = vmatprep.mubr.msk.bf16.mxu0 %vm2049_vm0, %v2048_v1  ;;  %1868 = vmatprep.mubr.msk.bf16.mxu1 %vm2049_vm0, %v2048_v1  ;;  %v1062_v10 = vrot.slane %v2345_v12, 2  ;;  %v1214_v49 = vshrl.u32 %v2345_v12, 16  ;;  %v1217_v50 = vshll.u32 %v2345_v12, 16 }
  0x55   : > { %1950 = vmatprep.subr.bf16.mxu1 %v2048_v1 }
  0x56   : > { %v1216_v53 = vrot.slane %v1214_v49, 2  ;;  %v1219_v54 = vrot.slane %v1217_v50, 3 }
  0x58   : > { %v1220_v57 = vor.u32 %v1219_v54, %v1216_v53 }
  0x5a   : > { %1869 = vmatmul.mubr.msk.bf16.gmra.mrb[32].mxu1 %vm267_vm2, %v614_v22  ;;  %v1184_v22 = vrot.slane %v1182_v15, 3 }
  0x5b   : > { %1887 = vmatmul.mubr.msk.bf16.vlgmr.msra.gmra.mrb[32].mxu0 %vm267_vm2, %v749_v18  ;;  %1872 = vmatprep.mubr.msk.bf16.mxu1 %vm2049_vm0, %v2048_v1  ;;  %v1063_v18 = vsel %vm897_vm5, %v1060_v8, %v1062_v10 }
  0x5c   : > { %1929 = vmatpush3.bf16.msra.mxu0 %v2024_v19  ;;  %1890 = vmatprep.mubr.msk.bf16.mxu0 %vm2049_vm0, %v2048_v1  ;;  %v2037_v19 = vld [vmem:[%s2095_s19 + $0x30] ss:$0 sps:$4 sm:$0x33]   ;;  %v1185_v27 = vor.u32 %v1184_v22, %v1181_v21 }
  0x5d   : > { %1972 = vmatprep.subr.bf16.mxu0 %v2048_v1  ;;  %v1064_v25 = vrot.slane %v2037_v19, 2 }
  0x62   : > { %1873 = vmatmul.mubr.msk.bf16.gmra.mrb[36].mxu1 %vm267_vm2, %v616_v31  ;;  %v1065_v31 = vsel %vm897_vm5, %v1062_v10, %v1064_v25 }
  0x63   : > { %1891 = vmatmul.mubr.msk.bf16.gmra.mrb[36].mxu0 %vm267_vm2, %v758_v28  ;;  %1876 = vmatprep.mubr.msk.bf16.mxu1 %vm2049_vm0, %v2048_v1  ;;  %v1193_v28 = vor.u32 %v1192_v24, %v1189_v23 }
  0x64   : > { %1894 = vmatprep.mubr.msk.bf16.mxu0 %vm2049_vm0, %v2048_v1 }
  0x65   : > { %v1194_v33 = vsel %vm1177_vm6, %v1185_v27, %v1193_v28 }
  0x6a   : > { %1877 = vmatmul.mubr.msk.bf16.gmra.mrb[40].mxu1 %vm267_vm2, %v618_v40  ;;  %v1205_v40 = vshrl.u32 %v2332_v6, 16 }
  0x6b   : > { %1895 = vmatmul.mubr.msk.bf16.gmra.mrb[40].mxu0 %vm267_vm2, %v767_v35  ;;  %1880 = vmatprep.mubr.msk.bf16.mxu1 %vm2049_vm0, %v2048_v1  ;;  %v1201_v35 = vrot.slane %v1199_v30, 3 }
  0x6c   : > { %1898 = vmatprep.mubr.msk.bf16.mxu0 %vm2049_vm0, %v2048_v1  ;;  %v1207_v46 = vrot.slane %v1205_v40, 2 }
  0x6d   : > { %v1202_v39 = vor.u32 %v1201_v35, %v1198_v34 }
  0x6f   : > { %v1203_v45 = vsel %vm1177_vm6, %v1193_v28, %v1202_v39 }
  0x72   : > { %1881 = vmatmul.mubr.msk.bf16.gmra.mrb[44].mxu1 %vm267_vm2, %v2156_v43  ;;  %v2030_v43 = vld [vmem:[%s2462_s1 + $0x38] sm:$0xff]  }
  0x73   : > { %1899 = vmatmul.mubr.msk.bf16.gmra.mrb[44].mxu0 %vm267_vm2, %v776_v41  ;;  %1908 = vmatprep.mubr.msk.bf16.mxu1 %vm2049_vm0, %v2048_v1  ;;  %v1210_v41 = vrot.slane %v1208_v42, 3 }
  0x74   : > { %1902 = vmatprep.mubr.msk.bf16.mxu0 %vm2049_vm0, %v2048_v1 }
  0x75   : > { %v1211_v48 = vor.u32 %v1210_v41, %v1207_v46 }
  0x77   : > { %v1212_v52 = vsel %vm1177_vm6, %v1202_v39, %v1211_v48  ;;  %v1221_v60 = vsel %vm1177_vm6, %v1211_v48, %v1220_v57 }
  0x7a   : > { %1909 = vmatmul.mubr.msk.bf16.vlgmr.msra.gmra.mrb[48].mxu1 %vm267_vm2, %v900_v58 }
  0x7b   : > { %1903 = vmatmul.mubr.msk.bf16.gmra.mrb[48].mxu0 %vm267_vm2, %v785_v55  ;;  %1951 = vmatpush3.bf16.msra.mxu1 %v2030_v43  ;;  %v2039_v55 = vld [vmem:[%s2095_s19 + $0x30] ss:$0 sps:$4 sm:$0x77]  }
  0x7c   : > { %1930 = vmatprep.mubr.msk.bf16.mxu0 %vm2049_vm0, %v2048_v1  ;;  %1912 = vmatprep.mubr.msk.bf16.mxu1 %vm2049_vm0, %v2048_v1  ;;  %v1223_v58 = vshrl.u32 %v2039_v55, 16  ;;  %v1226_v43 = vshll.u32 %v2039_v55, 16  ;;  %v1352_v4 = vrot.slane %v2039_v55, 3 }
  0x7e   : > { %v1225_v61 = vrot.slane %v1223_v58, 2 }
  0x82   : > { %1913 = vmatmul.mubr.msk.bf16.gmra.mrb[52].mxu1 %vm267_vm2, %v902_v2 }
  0x83   : > { %1931 = vmatmul.mubr.msk.bf16.vlgmr.msra.gmra.mrb[52].mxu0 %vm267_vm2, %v1057_v62  ;;  %1916 = vmatprep.mubr.msk.bf16.mxu1 %vm2049_vm0, %v2048_v1  ;;  %v1228_v62 = vrot.slane %v1226_v43, 3 }
  0x84   : > { %1973 = vmatpush3.bf16.msra.mxu0 %v2033_v63  ;;  %1934 = vmatprep.mubr.msk.bf16.mxu0 %vm2049_vm0, %v2048_v1  ;;  %v1350_v63 = vrot.slane %v2345_v12, 3 }
  0x85   : > { %v1229_v0 = vor.u32 %v1228_v62, %v1225_v61 }
  0x86   : > { %v1351_v2 = vsel %vm1342_vm7, %v1348_v56, %v1350_v63 }
  0x87   : > { %v1230_v3 = vsel %vm1177_vm6, %v1220_v57, %v1229_v0 }
  0x8a   : > { %1917 = vmatmul.mubr.msk.bf16.gmra.mrb[56].mxu1 %vm267_vm2, %v904_v7 }
  0x8b   : > { %1935 = vmatmul.mubr.msk.bf16.gmra.mrb[56].mxu0 %vm267_vm2, %v1059_v5  ;;  %1920 = vmatprep.mubr.msk.bf16.mxu1 %vm2049_vm0, %v2048_v1  ;;  %v1353_v5 = vsel %vm1342_vm7, %v1350_v63, %v1352_v4 }
  0x8c   : > { %1938 = vmatprep.mubr.msk.bf16.mxu0 %vm2049_vm0, %v2048_v1 }
  0x92   : > { %1921 = vmatmul.mubr.msk.bf16.gmra.mrb[60].mxu1 %vm267_vm2, %v906_v13 }
  0x93   : > { %1939 = vmatmul.mubr.msk.bf16.gmra.mrb[60].mxu0 %vm267_vm2, %v1061_v11  ;;  %1924 = vmatprep.mubr.msk.bf16.mxu1 %vm2049_vm0, %v2048_v1 }
  0x94   : > { %1942 = vmatprep.mubr.msk.bf16.mxu0 %vm2049_vm0, %v2048_v1 }
  0x9a   : > { %1925 = vmatmul.mubr.msk.bf16.gmra.mrb[64].mxu1 %vm267_vm2, %v908_v20 }
  0x9b   : > { %1943 = vmatmul.mubr.msk.bf16.gmra.mrb[64].mxu0 %vm267_vm2, %v1063_v18  ;;  %1952 = vmatprep.mubr.msk.bf16.mxu1 %vm2049_vm0, %v2048_v1 }
  0x9c   : > { %1946 = vmatprep.mubr.msk.bf16.mxu0 %vm2049_vm0, %v2048_v1 }
  0xa2   : > { %1953 = vmatmul.mubr.msk.bf16.vlgmr.msra.gmra.mrb[68].mxu1 %vm267_vm2, %v1194_v33 }
  0xa3   : > { %1947 = vmatmul.mubr.msk.bf16.gmra.mrb[68].mxu0 %vm267_vm2, %v1065_v31  ;;  %1956 = vmatprep.mubr.msk.bf16.mxu1 %vm2049_vm0, %v2048_v1 }
  0xa4   : > { %1974 = vmatprep.mubr.msk.bf16.mxu0 %vm2049_vm0, %v2048_v1 }
  0xaa   : > { %1957 = vmatmul.mubr.msk.bf16.gmra.mrb[72].mxu1 %vm267_vm2, %v1203_v45 }
  0xab   : > { %1975 = vmatmul.mubr.msk.bf16.vlgmr.msra.gmra.mrb[72].mxu0 %vm267_vm2, %v1345_v44  ;;  %1960 = vmatprep.mubr.msk.bf16.mxu1 %vm2049_vm0, %v2048_v1 }
  0xac   : > { %1978 = vmatprep.mubr.msk.bf16.mxu0 %vm2049_vm0, %v2048_v1 }
  0xb2   : > { %1961 = vmatmul.mubr.msk.bf16.gmra.mrb[76].mxu1 %vm267_vm2, %v1212_v52 }
  0xb3   : > { %1979 = vmatmul.mubr.msk.bf16.gmra.mrb[76].mxu0 %vm267_vm2, %v1347_v51  ;;  %1964 = vmatprep.mubr.msk.bf16.mxu1 %vm2049_vm0, %v2048_v1 }
  0xb4   : > { %1982 = vmatprep.mubr.msk.bf16.mxu0 %vm2049_vm0, %v2048_v1 }
  0xba   : > { %1965 = vmatmul.mubr.msk.bf16.gmra.mrb[80].mxu1 %vm267_vm2, %v1221_v60 }
  0xbb   : > { %1983 = vmatmul.mubr.msk.bf16.gmra.mrb[80].mxu0 %vm267_vm2, %v1349_v59  ;;  %1968 = vmatprep.mubr.msk.bf16.mxu1 %vm2049_vm0, %v2048_v1 }
  0xbc   : > { %1986 = vmatprep.mubr.msk.bf16.mxu0 %vm2049_vm0, %v2048_v1 }
  0xc2   : > { %1969 = vmatmul.mubr.msk.bf16.gmra.mrb[84].mxu1 %vm267_vm2, %v1230_v3 }
  0xc3   : > { %1987 = vmatmul.mubr.msk.bf16.gmra.mrb[84].mxu0 %vm267_vm2, %v1351_v2 }
  0xc4   : > { %1990 = vmatprep.mubr.msk.bf16.mxu0 %vm2049_vm0, %v2048_v1 }
  0xcb   : > { %1991 = vmatmul.mubr.msk.bf16.gmra.mrb[88].mxu0 %vm267_vm2, %v1353_v5 }
  0xed   : > { %v341_v9 = vpop.f32.mrb[0].mxu1 }
  0xee   : > { %v317_v6 = vpop.f32.mrb[0].mxu0  ;;  %v1812_v12 = vpop.f32.mrb[1].mxu1 }
  0xef   : > { %v1800_v7 = vpop.f32.mrb[1].mxu0  ;;  %v344_v13 = vpop.f32.mrb[2].mxu1 }
  0xf0   : > { %v320_v8 = vpop.f32.mrb[2].mxu0  ;;  %v1813_v10 = vpop.f32.mrb[3].mxu1 }
  0xf1   : > { %v1801_v11 = vpop.f32.mrb[3].mxu0 }
  0xf5   : > { %v349_v16 = vpop.f32.mrb[4].mxu1 }
  0xf6   : > { %v325_v14 = vpop.f32.mrb[4].mxu0  ;;  %v1816_v17 = vpop.f32.mrb[5].mxu1 }
  0xf7   : > { %v1804_v36 = vpop.f32.mrb[5].mxu0  ;;  %v352_v18 = vpop.f32.mrb[6].mxu1 }
  0xf8   : > { %v328_v15 = vpop.f32.mrb[6].mxu0  ;;  %v1817_v19 = vpop.f32.mrb[7].mxu1 }
  0xf9   : > { %v1805_v1 = vpop.f32.mrb[7].mxu0 }
  0xfd   : > { %v406_v22 = vpop.f32.mrb[8].mxu1 }
  0xfe   : > { %v333_v20 = vpop.f32.mrb[8].mxu0  ;;  %v407_v24 = vadd.f32 %v406_v22, %v317_v6  ;;  %v1822_v25 = vpop.f32.mrb[9].mxu1 }
  0xff   : > { %v1808_v21 = vpop.f32.mrb[9].mxu0  ;;  %v409_v27 = vpop.f32.mrb[10].mxu1 }
 0x100   : > { %v336_v23 = vpop.f32.mrb[10].mxu0  ;;  %v410_v28 = vadd.f32 %v409_v27, %v320_v8  ;;  %v1823_v29 = vpop.f32.mrb[11].mxu1 }
 0x101   : > { %v1809_v26 = vpop.f32.mrb[11].mxu0 }
 0x105   : > { %v414_v33 = vpop.f32.mrb[12].mxu1 }
 0x106   : > { %v519_v30 = vpop.f32.mrb[12].mxu0  ;;  %v415_v35 = vadd.f32 %v414_v33, %v325_v14  ;;  %v1826_v37 = vpop.f32.mrb[13].mxu1 }
 0x107   : > { %v558_v31 = vadd.f32 %v519_v30, %v407_v24  ;;  %v1844_v32 = vpop.f32.mrb[13].mxu0  ;;  %v417_v40 = vpop.f32.mrb[14].mxu1 }
 0x108   : > { %v522_v34 = vpop.f32.mrb[14].mxu0  ;;  %v418_v42 = vadd.f32 %v417_v40, %v328_v15  ;;  %v1827_v44 = vpop.f32.mrb[15].mxu1 }
 0x109   : > { %v559_v38 = vadd.f32 %v522_v34, %v410_v28  ;;  %v1845_v39 = vpop.f32.mrb[15].mxu0 }
 0x10d   : > { %v422_v47 = vpop.f32.mrb[16].mxu1 }
 0x10e   : > { %v527_v45 = vpop.f32.mrb[16].mxu0  ;;  %v423_v49 = vadd.f32 %v422_v47, %v333_v20  ;;  %v1830_v50 = vpop.f32.mrb[17].mxu1 }
 0x10f   : > { %v560_v46 = vadd.f32 %v527_v45, %v415_v35  ;;  %v1848_v41 = vpop.f32.mrb[17].mxu0  ;;  %v425_v53 = vpop.f32.mrb[18].mxu1 }
 0x110   : > { %v530_v48 = vpop.f32.mrb[18].mxu0  ;;  %v426_v54 = vadd.f32 %v425_v53, %v336_v23  ;;  %v1831_v55 = vpop.f32.mrb[19].mxu1 }
 0x111   : > { %v561_v51 = vadd.f32 %v530_v48, %v418_v42  ;;  %v1849_v52 = vpop.f32.mrb[19].mxu0 }
 0x115   : > { %v430_v43 = vpop.f32.mrb[20].mxu1 }
 0x116   : > { %v535_v56 = vpop.f32.mrb[20].mxu0  ;;  %v431_v60 = vadd.f32 %v430_v43, %v341_v9  ;;  %v1834_v61 = vpop.f32.mrb[21].mxu1 }
 0x117   : > { %v562_v57 = vadd.f32 %v535_v56, %v423_v49  ;;  %v1852_v58 = vpop.f32.mrb[21].mxu0  ;;  %v433_v0 = vpop.f32.mrb[22].mxu1 }
 0x118   : > { %v538_v59 = vpop.f32.mrb[22].mxu0  ;;  %v434_v2 = vadd.f32 %v433_v0, %v344_v13  ;;  %v1835_v3 = vpop.f32.mrb[23].mxu1 }
 0x119   : > { %v563_v62 = vadd.f32 %v538_v59, %v426_v54  ;;  %v1853_v63 = vpop.f32.mrb[23].mxu0 }
 0x11d   : > { %v438_v7 = vpop.f32.mrb[24].mxu1 }
 0x11e   : > { %v543_v4 = vpop.f32.mrb[24].mxu0  ;;  %v439_v11 = vadd.f32 %v438_v7, %v349_v16  ;;  %v1838_v12 = vpop.f32.mrb[25].mxu1 }
 0x11f   : > { %v564_v5 = vadd.f32 %v543_v4, %v431_v60  ;;  %v1856_v6 = vpop.f32.mrb[25].mxu0  ;;  %v441_v36 = vpop.f32.mrb[26].mxu1 }
 0x120   : > { %v546_v8 = vpop.f32.mrb[26].mxu0  ;;  %v442_v15 = vadd.f32 %v441_v36, %v352_v18  ;;  %v1839_v1 = vpop.f32.mrb[27].mxu1 }
 0x121   : > { %v565_v10 = vadd.f32 %v546_v8, %v434_v2  ;;  %v1857_v14 = vpop.f32.mrb[27].mxu0 }
 0x125   : > { %v676_v20 = vpop.f32.mrb[28].mxu1 }
 0x126   : > { %v551_v17 = vpop.f32.mrb[28].mxu0  ;;  %v715_v22 = vadd.f32 %v676_v20, %v558_v31  ;;  %v1866_v13 = vpop.f32.mrb[29].mxu1 }
 0x127   : > { %v566_v9 = vadd.f32 %v551_v17, %v439_v11  ;;  %v1860_v19 = vpop.f32.mrb[29].mxu0  ;;  %v679_v25 = vpop.f32.mrb[30].mxu1 }
 0x128   : > { %v554_v21 = vpop.f32.mrb[30].mxu0  ;;  %v716_v26 = vadd.f32 %v679_v25, %v559_v38  ;;  %v1867_v27 = vpop.f32.mrb[31].mxu1 }
 0x129   : > { %v567_v23 = vadd.f32 %v554_v21, %v442_v15  ;;  %v1861_v24 = vpop.f32.mrb[31].mxu0 }
 0x12d   : > { %v684_v30 = vpop.f32.mrb[32].mxu1 }
 0x12e   : > { %v841_v28 = vpop.f32.mrb[32].mxu0  ;;  %v717_v33 = vadd.f32 %v684_v30, %v560_v46  ;;  %v1870_v18 = vpop.f32.mrb[33].mxu1 }
 0x12f   : > { %v880_v16 = vadd.f32 %v841_v28, %v715_v22  ;;  %v1888_v29 = vpop.f32.mrb[33].mxu0  ;;  %v687_v37 = vpop.f32.mrb[34].mxu1 }
 0x130   : > { %v844_v32 = vpop.f32.mrb[34].mxu0  ;;  %v718_v39 = vadd.f32 %v687_v37, %v561_v51  ;;  %v1871_v40 = vpop.f32.mrb[35].mxu1 }
 0x131   : > { %v881_v34 = vadd.f32 %v844_v32, %v716_v26  ;;  %v1889_v35 = vpop.f32.mrb[35].mxu0 }
 0x135   : > { %v692_v45 = vpop.f32.mrb[36].mxu1 }
 0x136   : > { %v849_v42 = vpop.f32.mrb[36].mxu0  ;;  %v719_v47 = vadd.f32 %v692_v45, %v562_v57  ;;  %v1874_v38 = vpop.f32.mrb[37].mxu1 }
 0x137   : > { %v882_v31 = vadd.f32 %v849_v42, %v717_v33  ;;  %v1892_v44 = vpop.f32.mrb[37].mxu0  ;;  %v695_v50 = vpop.f32.mrb[38].mxu1 }
 0x138   : > { %v852_v41 = vpop.f32.mrb[38].mxu0  ;;  %v720_v52 = vadd.f32 %v695_v50, %v563_v62  ;;  %v1875_v53 = vpop.f32.mrb[39].mxu1 }
 0x139   : > { %v883_v48 = vadd.f32 %v852_v41, %v718_v39  ;;  %v1893_v49 = vpop.f32.mrb[39].mxu0 }
 0x13d   : > { %v700_v56 = vpop.f32.mrb[40].mxu1 }
 0x13e   : > { %v857_v54 = vpop.f32.mrb[40].mxu0  ;;  %v721_v43 = vadd.f32 %v700_v56, %v564_v5  ;;  %v1878_v51 = vpop.f32.mrb[41].mxu1 }
 0x13f   : > { %v884_v46 = vadd.f32 %v857_v54, %v719_v47  ;;  %v1896_v55 = vpop.f32.mrb[41].mxu0  ;;  %v703_v61 = vpop.f32.mrb[42].mxu1 }
 0x140   : > { %v860_v58 = vpop.f32.mrb[42].mxu0  ;;  %v722_v63 = vadd.f32 %v703_v61, %v565_v10  ;;  %v1879_v0 = vpop.f32.mrb[43].mxu1 }
 0x141   : > { %v885_v59 = vadd.f32 %v860_v58, %v720_v52  ;;  %v1897_v60 = vpop.f32.mrb[43].mxu0 }
 0x145   : > { %v708_v4 = vpop.f32.mrb[44].mxu1 }
 0x146   : > { %v865_v2 = vpop.f32.mrb[44].mxu0  ;;  %v723_v7 = vadd.f32 %v708_v4, %v566_v9  ;;  %v1882_v62 = vpop.f32.mrb[45].mxu1 }
 0x147   : > { %v886_v57 = vadd.f32 %v865_v2, %v721_v43  ;;  %v1900_v3 = vpop.f32.mrb[45].mxu0  ;;  %v711_v12 = vpop.f32.mrb[46].mxu1 }
 0x148   : > { %v868_v6 = vpop.f32.mrb[46].mxu0  ;;  %v724_v14 = vadd.f32 %v711_v12, %v567_v23  ;;  %v1883_v36 = vpop.f32.mrb[47].mxu1 }
 0x149   : > { %v887_v8 = vadd.f32 %v868_v6, %v722_v63  ;;  %v1901_v11 = vpop.f32.mrb[47].mxu0 }
 0x14d   : > { %v964_v17 = vpop.f32.mrb[48].mxu1 }
 0x14e   : > { %v873_v15 = vpop.f32.mrb[48].mxu0  ;;  %v1003_v20 = vadd.f32 %v964_v17, %v880_v16  ;;  %v1910_v10 = vpop.f32.mrb[49].mxu1 }
 0x14f   : > { %v888_v5 = vadd.f32 %v873_v15, %v723_v7  ;;  %v1904_v1 = vpop.f32.mrb[49].mxu0  ;;  %v967_v13 = vpop.f32.mrb[50].mxu1 }
 0x150   : > { %v876_v19 = vpop.f32.mrb[50].mxu0  ;;  %v1004_v24 = vadd.f32 %v967_v13, %v881_v34  ;;  %v1911_v25 = vpop.f32.mrb[51].mxu1 }
 0x151   : > { %v889_v21 = vadd.f32 %v876_v19, %v724_v14  ;;  %v1905_v22 = vpop.f32.mrb[51].mxu0 }
 0x155   : > { %v972_v28 = vpop.f32.mrb[52].mxu1 }
 0x156   : > { %v1121_v26 = vpop.f32.mrb[52].mxu0  ;;  %v1005_v30 = vadd.f32 %v972_v28, %v882_v31  ;;  %v1914_v23 = vpop.f32.mrb[53].mxu1 }
 0x157   : > { %v1160_v9 = vadd.f32 %v1121_v26, %v1003_v20  ;;  %v1932_v27 = vpop.f32.mrb[53].mxu0  ;;  %v975_v18 = vpop.f32.mrb[54].mxu1 }
 0x158   : > { %v1124_v29 = vpop.f32.mrb[54].mxu0  ;;  %v1006_v35 = vadd.f32 %v975_v18, %v883_v48  ;;  %v1915_v37 = vpop.f32.mrb[55].mxu1 }
 0x159   : > { %v1161_v32 = vadd.f32 %v1124_v29, %v1004_v24  ;;  %v1933_v33 = vpop.f32.mrb[55].mxu0 }
 0x15d   : > { %v980_v42 = vpop.f32.mrb[56].mxu1 }
 0x15e   : > { %v1129_v39 = vpop.f32.mrb[56].mxu0  ;;  %v1007_v45 = vadd.f32 %v980_v42, %v884_v46  ;;  %v1918_v34 = vpop.f32.mrb[57].mxu1 }
 0x15f   : > { %v1162_v16 = vadd.f32 %v1129_v39, %v1005_v30  ;;  %v1936_v40 = vpop.f32.mrb[57].mxu0  ;;  %v983_v38 = vpop.f32.mrb[58].mxu1 }
 0x160   : > { %v1132_v44 = vpop.f32.mrb[58].mxu0  ;;  %v1008_v49 = vadd.f32 %v983_v38, %v885_v59  ;;  %v1919_v50 = vpop.f32.mrb[59].mxu1 }
 0x161   : > { %v1163_v41 = vadd.f32 %v1132_v44, %v1006_v35  ;;  %v1937_v47 = vpop.f32.mrb[59].mxu0 }
 0x165   : > { %v988_v54 = vpop.f32.mrb[60].mxu1 }
 0x166   : > { %v1137_v52 = vpop.f32.mrb[60].mxu0  ;;  %v1009_v56 = vadd.f32 %v988_v54, %v886_v57  ;;  %v1922_v48 = vpop.f32.mrb[61].mxu1 }
 0x167   : > { %v1164_v31 = vadd.f32 %v1137_v52, %v1007_v45  ;;  %v1940_v53 = vpop.f32.mrb[61].mxu0  ;;  %v991_v51 = vpop.f32.mrb[62].mxu1 }
 0x168   : > { %v1140_v55 = vpop.f32.mrb[62].mxu0  ;;  %v1010_v60 = vadd.f32 %v991_v51, %v887_v8  ;;  %v1923_v61 = vpop.f32.mrb[63].mxu1 }
 0x169   : > { %v1165_v58 = vadd.f32 %v1140_v55, %v1008_v49  ;;  %v1941_v43 = vpop.f32.mrb[63].mxu0 }
 0x16d   : > { %v996_v2 = vpop.f32.mrb[64].mxu1 }
 0x16e   : > { %v1145_v63 = vpop.f32.mrb[64].mxu0  ;;  %v1011_v59 = vadd.f32 %v996_v2, %v888_v5  ;;  %v1926_v4 = vpop.f32.mrb[65].mxu1 }
 0x16f   : > { %v2420_v46 = vadd.f32 %v1145_v63, %v1009_v56  ;;  %v1944_v0 = vpop.f32.mrb[65].mxu0  ;;  %v999_v62 = vpop.f32.mrb[66].mxu1 }
 0x170   : > { %v1148_v3 = vpop.f32.mrb[66].mxu0  ;;  %v1012_v11 = vadd.f32 %v999_v62, %v889_v21  ;;  %v1927_v57 = vpop.f32.mrb[67].mxu1  ;;  %v2431_v21 = vld [vmem:[%s2463_s2] ss:$0 sm:$0xff] }
 0x171   : > { %v2422_v6 = vadd.f32 %v1148_v3, %v1010_v60  ;;  %v1945_v7 = vpop.f32.mrb[67].mxu0 }
 0x175   : > { %v1286_v8 = vpop.f32.mrb[68].mxu1 }
 0x176   : > { %v1153_v12 = vpop.f32.mrb[68].mxu0  ;;  %v1325_v1 = vadd.f32 %v1286_v8, %v1160_v9  ;;  %v1954_v17 = vpop.f32.mrb[69].mxu1 }
 0x177   : > { %v2424_v14 = vadd.f32 %v1153_v12, %v1011_v59  ;;  %v1948_v36 = vpop.f32.mrb[69].mxu0  ;;  %v1289_v5 = vpop.f32.mrb[70].mxu1 }
 0x178   : > { %v1156_v15 = vpop.f32.mrb[70].mxu0  ;;  %v1326_v10 = vadd.f32 %v1289_v5, %v1161_v32  ;;  %v1955_v22 = vpop.f32.mrb[71].mxu1 }
 0x179   : > { %v2426_v19 = vadd.f32 %v1156_v15, %v1012_v11  ;;  %v1949_v20 = vpop.f32.mrb[71].mxu0 }
 0x17d   : > { %v1294_v26 = vpop.f32.mrb[72].mxu1 }
 0x17e   : > { %v1409_v13 = vpop.f32.mrb[72].mxu0  ;;  %v1327_v28 = vadd.f32 %v1294_v26, %v1162_v16  ;;  %v1958_v29 = vpop.f32.mrb[73].mxu1 }
 0x17f   : > { %v1448_v24 = vadd.f32 %v1409_v13, %v1325_v1  ;;  %v1976_v25 = vpop.f32.mrb[73].mxu0  ;;  %v1297_v33 = vpop.f32.mrb[74].mxu1 }
 0x180   : > { %v1412_v27 = vpop.f32.mrb[74].mxu0  ;;  %v1328_v32 = vadd.f32 %v1297_v33, %v1163_v41  ;;  %v1959_v35 = vpop.f32.mrb[75].mxu1 }
 0x181   : > { %v1465_v9 = vadd.f32 %v2431_v21, %v1448_v24  ;;  %v1449_v30 = vadd.f32 %v1412_v27, %v1326_v10  ;;  %v1977_v23 = vpop.f32.mrb[75].mxu0 }
 0x183   : > { %v1466_v18 = vadd.f32 %v2431_v21, %v1449_v30  ;;  %v1475_v37 = vmax.f32 %v1465_v9, 0.0 }
 0x185   : > { %v1476_v39 = vmax.f32 %v1466_v18, 0.0  ;;  %v1302_v45 = vpop.f32.mrb[76].mxu1 }
 0x186   : > { %v1417_v16 = vpop.f32.mrb[76].mxu0  ;;  %v1329_v47 = vadd.f32 %v1302_v45, %v1164_v31  ;;  %v1962_v38 = vpop.f32.mrb[77].mxu1 }
 0x187   : > { %v1716_v40 = vpack.c.bf16 %v1476_v39, %v1475_v37  ;;  %v1450_v42 = vadd.f32 %v1417_v16, %v1327_v28  ;;  %v1980_v44 = vpop.f32.mrb[77].mxu0  ;;  %v1305_v52 = vpop.f32.mrb[78].mxu1 }
 0x188   : > { %v1420_v34 = vpop.f32.mrb[78].mxu0  ;;  %v1330_v53 = vadd.f32 %v1305_v52, %v1165_v58  ;;  %v1963_v55 = vpop.f32.mrb[79].mxu1 }
 0x189   : > { %1717 = vst [vmem:[%s2439_s16] sm:$0xff] %v1716_v40   ;;  %v1467_v41 = vadd.f32 %v2431_v21, %v1450_v42  ;;  %v1451_v49 = vadd.f32 %v1420_v34, %v1328_v32  ;;  %v1981_v50 = vpop.f32.mrb[79].mxu0 }
 0x18b   : > { %v1468_v54 = vadd.f32 %v2431_v21, %v1451_v49  ;;  %v1477_v56 = vmax.f32 %v1467_v41, 0.0 }
 0x18d   : > { %v1478_v48 = vmax.f32 %v1468_v54, 0.0  ;;  %v1310_v63 = vpop.f32.mrb[80].mxu1 }
 0x18e   : > { %v1425_v43 = vpop.f32.mrb[80].mxu0  ;;  %v1331_v31 = vadd.f32 %v1310_v63, %v2420_v46  ;;  %v1966_v3 = vpop.f32.mrb[81].mxu1 }
 0x18f   : > { %v1721_v51 = vpack.c.bf16 %v1478_v48, %v1477_v56  ;;  %v1452_v60 = vadd.f32 %v1425_v43, %v1329_v47  ;;  %v1984_v61 = vpop.f32.mrb[81].mxu0  ;;  %v1313_v4 = vpop.f32.mrb[82].mxu1 }
 0x190   : > { %v1428_v0 = vpop.f32.mrb[82].mxu0  ;;  %v1332_v7 = vadd.f32 %v1313_v4, %v2422_v6  ;;  %v1967_v11 = vpop.f32.mrb[83].mxu1 }
 0x191   : > { %1738 = vst [vmem:[%s2439_s16 + $0x8] sm:$0xff] %v1721_v51   ;;  %v1469_v2 = vadd.f32 %v2431_v21, %v1452_v60  ;;  %v1453_v59 = vadd.f32 %v1428_v0, %v1330_v53  ;;  %v1985_v58 = vpop.f32.mrb[83].mxu0 }
 0x193   : > { %v1470_v62 = vadd.f32 %v2431_v21, %v1453_v59  ;;  %v1479_v57 = vmax.f32 %v1469_v2, 0.0 }
 0x195   : > { %v1480_v12 = vmax.f32 %v1470_v62, 0.0  ;;  %v1318_v17 = vpop.f32.mrb[84].mxu1 }
 0x196   : > { %v1433_v36 = vpop.f32.mrb[84].mxu0  ;;  %v1333_v20 = vadd.f32 %v1318_v17, %v2424_v14  ;;  %v1970_v10 = vpop.f32.mrb[85].mxu1 }
 0x197   : > { %v1726_v8 = vpack.c.bf16 %v1480_v12, %v1479_v57  ;;  %v1454_v15 = vadd.f32 %v1433_v36, %v1331_v31  ;;  %v1988_v1 = vpop.f32.mrb[85].mxu0  ;;  %v1321_v13 = vpop.f32.mrb[86].mxu1 }
 0x198   : > { %v1436_v46 = vpop.f32.mrb[86].mxu0  ;;  %v1334_v24 = vadd.f32 %v1321_v13, %v2426_v19  ;;  %v1971_v26 = vpop.f32.mrb[87].mxu1 }
 0x199   : > { %1739 = vst [vmem:[%s2439_s16 + $0x10] sm:$0xff] %v1726_v8   ;;  %v1471_v5 = vadd.f32 %v2431_v21, %v1454_v15  ;;  %v1455_v22 = vadd.f32 %v1436_v46, %v1332_v7  ;;  %v1989_v6 = vpop.f32.mrb[87].mxu0 }
 0x19b   : > { %v1472_v25 = vadd.f32 %v2431_v21, %v1455_v22  ;;  %v1481_v27 = vmax.f32 %v1471_v5, 0.0 }
 0x19d   : > { %v1482_v28 = vmax.f32 %v1472_v25, 0.0 }
 0x19e   : > { %v1441_v9 = vpop.f32.mrb[88].mxu0 }
 0x19f   : > { %v1731_v29 = vpack.c.bf16 %v1482_v28, %v1481_v27  ;;  %v1456_v30 = vadd.f32 %v1441_v9, %v1333_v20  ;;  %v1992_v23 = vpop.f32.mrb[89].mxu0 }
 0x1a0   : > { %v1444_v14 = vpop.f32.mrb[90].mxu0 }
 0x1a1   : > { %1740 = vst [vmem:[%s2439_s16 + $0x18] sm:$0xff] %v1731_v29   ;;  %v1473_v33 = vadd.f32 %v2431_v21, %v1456_v30  ;;  %v1457_v32 = vadd.f32 %v1444_v14, %v1334_v24  ;;  %v1993_v18 = vpop.f32.mrb[91].mxu0 }
 0x1a3   : > { %v1474_v35 = vadd.f32 %v2431_v21, %v1457_v32  ;;  %v1483_v37 = vmax.f32 %v1473_v33, 0.0 }
 0x1a5   : > { %v1484_v19 = vmax.f32 %v1474_v35, 0.0 }
 0x1a7   : > { %v1736_v39 = vpack.c.bf16 %v1484_v19, %v1483_v37 }
 0x1a9   : > { %1741 = vst [vmem:[%s2439_s16 + $0x20] sm:$0xff] %v1736_v39  }
 0x1aa PF: > { %s13_s12 = sadd.s32 1, %s2046_s12  }
 0x1ab   : > { %p10_p4 = scmp.ge.s32.totalorder %s13_s12, 4  }
 0x1ad   :  { %12 = sbr.rel (!%p10_p4) target bundleno = 1 (0x1), region = 70 }

// kernel: _lambda_.29
= control target key start
LH: loop header
LB: loop body
LE: loop exit
PB: predicated region body
PF: predicated region fallthrough
CT: control target
= control target key end

     0   :  { %s1420_s21 = smov 0   ;;  %s1526_s0 = inlined_call_operand.vmem [shape: bf16[2,30,16], index: 0, kind: input, shape index: {}]   ;;  %s1527_s1 = inlined_call_operand.vmem [shape: bf16[2,30,16], index: 1, kind: input, shape index: {}]   ;;  %s1528_s2 = inlined_call_operand.vmem [shape: bf16[2,30,16], index: 2, kind: input, shape index: {}]   ;;  %s1529_s3 = inlined_call_operand.vmem [shape: bf16[2,30,16], index: 3, kind: input, shape index: {}]   ;;  %s1530_s4 = inlined_call_operand.vmem [shape: bf16[9,16,128], index: 4, kind: input, shape index: {}]   ;;  %s1531_s5 = inlined_call_operand.vmem [shape: f32[1,128], index: 5, kind: input, shape index: {}]   ;;  %s1532_s6 = inlined_call_operand.vmem [shape: bf16[2,20,128], index: 6, kind: output, shape index: {}]  }
   0x1 LB: > { %s1173_s22 = sadd.s32 4294967295, %s1383_s21   ;;  %p1177_p0 = scmp.ge.s32.totalorder %s1383_s21, 1  ;;  %s1383_s21 = sphi %s1420_s21, %s16_s21  }
   0x2   : > { %p242_p1 = scmp.lt.s32.totalorder %s1383_s21, 3 }
   0x4   : > { %p243_p2 = pnand %p1177_p0, %p242_p1 }
   0x5   : > { %v1353_v0 = vld [vmem:[%s1530_s4 + $0x8] sm:$0xff] (!%p243_p2)   ;;  %p287_p3 = scmp.lt.s32.totalorder (!%p243_p2), %s1173_s22, 1  ;;  %v1354_v1 = vld [vmem:[%s1530_s4] sm:$0xff] (!%p243_p2)   ;;  %v1357_v2 = vld [vmem:[%s1530_s4 + $0x10] sm:$0xff] (!%p243_p2)   ;;  %vm338_vm0 = vcmask (!%p243_p2), 130048   ;;  %vm986_vm3 = vcmask (!%p243_p2), 1044480  }
   0x6   : > { %246 = sbr.rel (%p243_p2) target bundleno = 274 (0x112), region = 44  ;;  %1290 = vmatprep.subr.bf16.mxu0 (!%p243_p2), %v1353_v0  ;;  %1296 = vmatprep.subr.bf16.mxu1 (!%p243_p2), %v1354_v1  ;;  %v1360_v3 = vld [vmem:[%s1530_s4 + $0x18] sm:$0xff] (!%p243_p2)   ;;  %v1362_v5 = vld [vmem:[%s1530_s4 + $0x20] sm:$0xff] (!%p243_p2)   ;;  %v1365_v14 = vld [vmem:[%s1530_s4 + $0x28] sm:$0xff] (!%p243_p2)   ;;  %vm468_vm1 = vsmask.f32 (!%p243_p2), 7424 }
   0x7   : > { %1291 = vmatpush3.bf16.msra.mxu0 (!%p243_p2), %v1353_v0  ;;  %1297 = vmatpush3.bf16.msra.mxu1 (!%p243_p2), %v1354_v1  ;;  %v1367_v21 = vld [vmem:[%s1530_s4 + $0x30] sm:$0xff] (!%p243_p2)   ;;  %v1370_v30 = vld [vmem:[%s1530_s4 + $0x38] sm:$0xff] (!%p243_p2)   ;;  %vm801_vm2 = vsmask.f32 (!%p243_p2), 5376  ;;  %v1373_v41 = vld [vmem:[%s1530_s4 + $0x40] sm:$0xff] (!%p243_p2)  }
   0x8   : > { %1302 = vmatprep.subr.bf16.mxu0 (!%p243_p2), %v1357_v2  ;;  %1308 = vmatprep.subr.bf16.mxu1 (!%p243_p2), %v1360_v3 }
   0xd   : > { %s1534_s22 = smov (!%p287_p3, %s1173_s22), 1 }
   0xe   : > { %s1251_s7 = sshll.u32 %s1534_s22, 4 }
   0xf   : > { %s1446_s10 = scalar_lea.vmem %s1526_s0, %s1251_s7  ;;  %s1451_s13 = scalar_lea.vmem %s1527_s1, %s1251_s7 }
  0x10   : > { %v1355_v4 = vld [vmem:[%s1451_s13] sm:$0xff]   ;;  %s1460_s18 = scalar_lea.vmem %s1528_s2, %s1251_s7  ;;  %v1358_v7 = vld [vmem:[%s1451_s13 + $0x8] ss:$0 sps:$4 sm:$0x33]   ;;  %s1476_s25 = scalar_lea.vmem %s1529_s3, %s1251_s7 }
  0x11   : > { %v1356_v6 = vld [vmem:[%s1446_s10] sm:$0xff]   ;;  %1292 = vmatprep.mubr.msk.bf16.mxu0 %vm338_vm0, %v1355_v4  ;;  %v1359_v11 = vld [vmem:[%s1446_s10 + $0x8] ss:$0 sps:$4 sm:$0x33]  }
  0x12   : > { %v1363_v8 = vld [vmem:[%s1460_s18] sm:$0xff]   ;;  %1298 = vmatprep.mubr.msk.bf16.mxu1 %vm338_vm0, %v1356_v6  ;;  %v469_v9 = vshrl.u32 %v1356_v6, 16  ;;  %v471_v10 = vshll.u32 %v1356_v6, 16  ;;  %1293 = vmatmul.mubr.msk.bf16.vlgmr.msra.gmra.mrb[0].mxu0 %vm338_vm0, %v1358_v7  ;;  %v1361_v12 = vld [vmem:[%s1446_s10 + $0x8] ss:$0 sps:$4 sm:$0x77]  }
  0x13   : > { %1303 = vmatpush3.bf16.msra.mxu0 %v1357_v2  ;;  %1299 = vmatmul.mubr.msk.bf16.vlgmr.msra.gmra.mrb[0].mxu1 %vm338_vm0, %v1359_v11  ;;  %v476_v15 = vshll.u32 %v1361_v12, 16  ;;  %v480_v16 = vshrl.u32 %v1361_v12, 16  ;;  %v1364_v19 = vld [vmem:[%s1460_s18 + $0x8] ss:$0 sps:$4 sm:$0x33]   ;;  %v1366_v20 = vld [vmem:[%s1476_s25] sm:$0xff]  }
  0x14   : > { %v473_v13 = vrot.slane %v471_v10, 1  ;;  %1314 = vmatprep.subr.bf16.mxu0 %v1362_v5  ;;  %1309 = vmatpush3.bf16.msra.mxu1 %v1360_v3  ;;  %v707_v22 = vshrl.u32 %v1363_v8, 16  ;;  %v1369_v25 = vld [vmem:[%s1460_s18 + $0x8] ss:$0 sps:$4 sm:$0x77]   ;;  %v709_v26 = vshll.u32 %v1363_v8, 16 }
  0x15   : > { %1310 = vmatprep.mubr.msk.bf16.mxu1 %vm338_vm0, %v1363_v8  ;;  %v478_v18 = vrot.slane %v476_v15, 1  ;;  %1320 = vmatprep.subr.bf16.mxu1 %v1365_v14  ;;  %v714_v28 = vshll.u32 %v1369_v25, 16  ;;  %v718_v29 = vshrl.u32 %v1369_v25, 16  ;;  %v784_v31 = vld [vmem:[%s1446_s10] sm:$0xc] }
  0x16   : > { %v474_v17 = vor.u32 %v473_v13, %v469_v9  ;;  %v711_v27 = vrot.slane %v709_v26, 1  ;;  %v785_v32 = vld [vmem:[%s1446_s10 + $0x4] sm:$0xf]  ;;  %v1368_v33 = vld [vmem:[%s1476_s25 + $0x8] ss:$0 sps:$4 sm:$0x33]  }
  0x17   : > { %v482_v24 = vor.u32 %v480_v16, %v478_v18  ;;  %v716_v35 = vrot.slane %v714_v28, 1  ;;  %v1227_v36 = vcombine.low %v784_v31, %v785_v32  ;;  %v1372_v37 = vld [vmem:[%s1446_s10 + $0x8] sm:$0x1f]   ;;  %v1374_v44 = vld [vmem:[%s1451_s13] sm:$0xfc]  }
  0x18   : > { %v479_v23 = vsel %vm468_vm1, %v474_v17, %v478_v18  ;;  %v712_v34 = vor.u32 %v711_v27, %v707_v22  ;;  %v811_v42 = vshrl.u32 %v1372_v37, 16  ;;  %v814_v43 = vshll.u32 %v1372_v37, 16  ;;  %v1375_v48 = vld [vmem:[%s1451_s13 + $0x8] sm:$0x1f]   ;;  %v979_v49 = vld [vmem:[%s1446_s10] sm:$0x8] }
  0x19   : > { %1304 = vmatprep.mubr.msk.bf16.mxu0 %vm338_vm0, %v479_v23  ;;  %v803_v39 = vshrl.u32 %v1227_v36, 16  ;;  %v806_v40 = vshll.u32 %v1227_v36, 16  ;;  %v720_v45 = vor.u32 %v718_v29, %v716_v35  ;;  %v900_v52 = vshrl.u32 %v1374_v44, 16  ;;  %s1344_s10 = smul.u32 12, %s1534_s22 }
  0x1a   : > { %1305 = vmatmul.mubr.msk.bf16.vlgmr.msra.gmra.mrb[4].mxu0 %vm338_vm0, %v482_v24  ;;  %v717_v38 = vsel %vm468_vm1, %v712_v34, %v716_v35  ;;  %v813_v50 = vrot.slane %v811_v42, 2  ;;  %v816_v51 = vrot.slane %v814_v43, 3  ;;  %v903_v53 = vshll.u32 %v1374_v44, 16 }
  0x1b   : > { %1315 = vmatpush3.bf16.msra.mxu0 %v1362_v5  ;;  %1316 = vmatprep.mubr.msk.bf16.mxu0 %vm338_vm0, %v1366_v20  ;;  %v805_v46 = vrot.slane %v803_v39, 2  ;;  %v808_v47 = vrot.slane %v806_v40, 3  ;;  %v908_v55 = vshrl.u32 %v1375_v48, 16  ;;  %v911_v56 = vshll.u32 %v1375_v48, 16  ;;  %s311_s13 = scalar_lea.vmem %s1532_s6, %s1344_s10 }
  0x1c   : > { %1311 = vmatmul.mubr.msk.bf16.vlgmr.msra.gmra.mrb[4].mxu1 %vm338_vm0, %v1364_v19  ;;  %1326 = vmatprep.subr.bf16.mxu0 %v1367_v21  ;;  %v1241_v57 = vcombine.low %v979_v49, %v785_v32  ;;  %v817_v58 = vor.u32 %v816_v51, %v813_v50  ;;  %v902_v59 = vrot.slane %v900_v52, 2  ;;  %v905_v60 = vrot.slane %v903_v53, 3 }
  0x1d   : > { %1321 = vmatpush3.bf16.msra.mxu1 %v1365_v14  ;;  %1322 = vmatprep.mubr.msk.bf16.mxu1 %vm338_vm0, %v717_v38  ;;  %v809_v54 = vor.u32 %v808_v47, %v805_v46  ;;  %v910_v61 = vrot.slane %v908_v55, 2  ;;  %v913_v62 = vrot.slane %v911_v56, 3  ;;  %v988_v0 = vrot.slane %v1372_v37, 3 }
  0x1e   : > { %1332 = vmatprep.subr.bf16.mxu1 %v1370_v30  ;;  %v987_v63 = vrot.slane %v1241_v57, 3  ;;  %v906_v2 = vor.u32 %v905_v60, %v902_v59  ;;  %v1245_v60 = vld [vmem:[%s1531_s5] ss:$0 sm:$0xff] }
  0x1f   : > { %v818_v1 = vsel %vm801_vm2, %v809_v54, %v817_v58  ;;  %v914_v3 = vor.u32 %v913_v62, %v910_v61 }
  0x20   : > { %v989_v5 = vsel %vm986_vm3, %v987_v63, %v988_v0 }
  0x21   : > { %v915_v4 = vsel %vm801_vm2, %v906_v2, %v914_v3 }
  0x22   : > { %1317 = vmatmul.mubr.msk.bf16.vlgmr.msra.gmra.mrb[8].mxu0 %vm338_vm0, %v1368_v33 }
  0x23   : > { %1327 = vmatpush3.bf16.msra.mxu0 %v1367_v21  ;;  %1328 = vmatprep.mubr.msk.bf16.mxu0 %vm338_vm0, %v818_v1 }
  0x24   : > { %1323 = vmatmul.mubr.msk.bf16.vlgmr.msra.gmra.mrb[8].mxu1 %vm338_vm0, %v720_v45  ;;  %1338 = vmatprep.subr.bf16.mxu0 %v1373_v41 }
  0x25   : > { %1333 = vmatpush3.bf16.msra.mxu1 %v1370_v30  ;;  %1334 = vmatprep.mubr.msk.bf16.mxu1 %vm338_vm0, %v915_v4 }
  0x2a   : > { %1329 = vmatmul.mubr.msk.bf16.vlgmr.msra.gmra.mrb[12].mxu0 %vm338_vm0, %v817_v58 }
  0x2b   : > { %1339 = vmatpush3.bf16.msra.mxu0 %v1373_v41  ;;  %1340 = vmatprep.mubr.msk.bf16.mxu0 %vm338_vm0, %v989_v5 }
  0x2c   : > { %1335 = vmatmul.mubr.msk.bf16.vlgmr.msra.gmra.mrb[12].mxu1 %vm338_vm0, %v914_v3 }
  0x32   : > { %1341 = vmatmul.mubr.msk.bf16.vlgmr.msra.gmra.mrb[16].mxu0 %vm338_vm0, %v988_v0 }
  0xe5   : > { %v1294_v6 = vpop.f32.mrb[0].mxu0 }
  0xe6   : > { %v379_v7 = vpop.f32.mrb[1].mxu0  ;;  %v1300_v8 = vpop.f32.mrb[0].mxu1 }
  0xe7   : > { %v1295_v9 = vpop.f32.mrb[2].mxu0  ;;  %v456_v10 = vadd.f32 %v1300_v8, %v1294_v6  ;;  %v447_v11 = vpop.f32.mrb[1].mxu1 }
  0xe8   : > { %v382_v12 = vpop.f32.mrb[3].mxu0  ;;  %v448_v13 = vadd.f32 %v447_v11, %v379_v7  ;;  %v1301_v14 = vpop.f32.mrb[2].mxu1 }
  0xe9   : > { %v450_v15 = vpop.f32.mrb[3].mxu1 }
  0xea   : > { %v451_v16 = vadd.f32 %v450_v15, %v382_v12 }
  0xed   : > { %v1306_v17 = vpop.f32.mrb[4].mxu0 }
  0xee   : > { %v545_v18 = vadd.f32 %v1306_v17, %v456_v10  ;;  %v529_v19 = vpop.f32.mrb[5].mxu0 }
  0xef   : > { %v543_v20 = vadd.f32 %v529_v19, %v448_v13  ;;  %v1307_v21 = vpop.f32.mrb[6].mxu0  ;;  %v1312_v22 = vpop.f32.mrb[4].mxu1 }
  0xf0   : > { %v622_v23 = vadd.f32 %v1312_v22, %v545_v18  ;;  %v532_v24 = vpop.f32.mrb[7].mxu0  ;;  %v606_v25 = vpop.f32.mrb[5].mxu1 }
  0xf1   : > { %v544_v26 = vadd.f32 %v532_v24, %v451_v16  ;;  %v620_v27 = vadd.f32 %v606_v25, %v543_v20  ;;  %v1313_v28 = vpop.f32.mrb[6].mxu1 }
  0xf2   : > { %v609_v29 = vpop.f32.mrb[7].mxu1 }
  0xf3   : > { %v621_v30 = vadd.f32 %v609_v29, %v544_v26 }
  0xf5   : > { %v1318_v31 = vpop.f32.mrb[8].mxu0 }
  0xf6   : > { %v699_v32 = vadd.f32 %v1318_v31, %v622_v23  ;;  %v683_v33 = vpop.f32.mrb[9].mxu0 }
  0xf7   : > { %v697_v34 = vadd.f32 %v683_v33, %v620_v27  ;;  %v1319_v35 = vpop.f32.mrb[10].mxu0  ;;  %v1324_v36 = vpop.f32.mrb[8].mxu1 }
  0xf8   : > { %v783_v37 = vadd.f32 %v1324_v36, %v699_v32  ;;  %v686_v38 = vpop.f32.mrb[11].mxu0  ;;  %v767_v39 = vpop.f32.mrb[9].mxu1 }
  0xf9   : > { %v698_v40 = vadd.f32 %v686_v38, %v621_v30  ;;  %v781_v41 = vadd.f32 %v767_v39, %v697_v34  ;;  %v1325_v42 = vpop.f32.mrb[10].mxu1 }
  0xfa   : > { %v770_v43 = vpop.f32.mrb[11].mxu1 }
  0xfb   : > { %v782_v44 = vadd.f32 %v770_v43, %v698_v40 }
  0xfd   : > { %v1330_v45 = vpop.f32.mrb[12].mxu0 }
  0xfe   : > { %v881_v46 = vadd.f32 %v1330_v45, %v783_v37  ;;  %v865_v47 = vpop.f32.mrb[13].mxu0 }
  0xff   : > { %v879_v48 = vadd.f32 %v865_v47, %v781_v41  ;;  %v1331_v49 = vpop.f32.mrb[14].mxu0  ;;  %v1336_v50 = vpop.f32.mrb[12].mxu1 }
 0x100   : > { %v978_v51 = vadd.f32 %v1336_v50, %v881_v46  ;;  %v868_v52 = vpop.f32.mrb[15].mxu0  ;;  %v962_v53 = vpop.f32.mrb[13].mxu1 }
 0x101   : > { %v880_v54 = vadd.f32 %v868_v52, %v782_v44  ;;  %v976_v55 = vadd.f32 %v962_v53, %v879_v48  ;;  %v1337_v56 = vpop.f32.mrb[14].mxu1 }
 0x102   : > { %v965_v57 = vpop.f32.mrb[15].mxu1 }
 0x103   : > { %v977_v58 = vadd.f32 %v965_v57, %v880_v54 }
 0x105   : > { %v1342_v59 = vpop.f32.mrb[16].mxu0 }
 0x106   : > { %v1052_v61 = vadd.f32 %v1342_v59, %v978_v51  ;;  %v1036_v62 = vpop.f32.mrb[17].mxu0 }
 0x107   : > { %v1050_v63 = vadd.f32 %v1036_v62, %v976_v55  ;;  %v1343_v0 = vpop.f32.mrb[18].mxu0 }
 0x108   : > { %v1062_v1 = vadd.f32 %v1245_v60, %v1052_v61  ;;  %v1039_v2 = vpop.f32.mrb[19].mxu0 }
 0x109   : > { %v1060_v3 = vadd.f32 %v1245_v60, %v1050_v63  ;;  %v1051_v4 = vadd.f32 %v1039_v2, %v977_v58 }
 0x10a   : > { %v1065_v5 = vmax.f32 %v1062_v1, 0.0 }
 0x10b   : > { %v1061_v6 = vadd.f32 %v1245_v60, %v1051_v4  ;;  %v1063_v8 = vmax.f32 %v1060_v3, 0.0 }
 0x10c   : > { %v1257_v7 = vpack.c.bf16 %v1065_v5, %v1065_v5 }
 0x10d   : > { %v1064_v9 = vmax.f32 %v1061_v6, 0.0 }
 0x10e   : > { %1081 = vst [vmem:[%s311_s13 + $0x8] sm:$0x3] %v1257_v7 }
 0x10f   : > { %v1261_v10 = vpack.c.bf16 %v1064_v9, %v1063_v8 }
 0x111   : > { %1262 = vst [vmem:[%s311_s13] sm:$0xff] %v1261_v10  }
 0x112 PF: > { %s16_s21 = sadd.s32 1, %s1383_s21  }
 0x113   : > { %p13_p4 = scmp.ge.s32.totalorder %s16_s21, 4  }
 0x115   :  { %15 = sbr.rel (!%p13_p4) target bundleno = 1 (0x1), region = 91 }

// kernel: _lambda_.33
= control target key start
LH: loop header
LB: loop body
LE: loop exit
PB: predicated region body
PF: predicated region fallthrough
CT: control target
= control target key end

     0   :  { %s356_s12 = smov 0   ;;  %s382_s0 = inlined_call_operand.vmem [shape: bf16[16,32], index: 0, kind: input, shape index: {}]   ;;  %s383_s1 = inlined_call_operand.vmem [shape: bf16[32,128], index: 1, kind: input, shape index: {}]   ;;  %s384_s2 = inlined_call_operand.vmem [shape: f32[1,128], index: 2, kind: input, shape index: {}]   ;;  %s385_s3 = inlined_call_operand.vmem [shape: bf16[16,128], index: 3, kind: output, shape index: {}]  }
   0x1 LB: > { %s290_s13 = sadd.s32 4294967295, %s332_s12   ;;  %p294_p0 = scmp.ge.s32.totalorder %s332_s12, 1  ;;  %s332_s12 = sphi %s356_s12, %s13_s12  }
   0x2   : > { %p136_p1 = scmp.lt.s32.totalorder %s332_s12, 3 }
   0x4   : > { %p137_p2 = pnand %p294_p0, %p136_p1 }
   0x5   : > { %v324_v0 = vld [vmem:[%s383_s1] sm:$0xff] (!%p137_p2)   ;;  %v334_v1 = vmov (!%p137_p2), 0.0   ;;  %v325_v2 = vld [vmem:[%s383_s1 + $0x8] sm:$0xff] (!%p137_p2)   ;;  %vm335_vm0 = vmmov (!%p137_p2), 0   ;;  %p158_p3 = scmp.lt.s32.totalorder (!%p137_p2), %s290_s13, 1  ;;  %vm191_vm1 = vcmask (!%p137_p2), 261120  }
   0x6   : > { %140 = sbr.rel (%p137_p2) target bundleno = 234 (0xea), region = 32  ;;  %306 = vmatprep.subr.bf16.mxu0 (!%p137_p2), %v334_v1  ;;  %310 = vmatprep.mubr.msk.bf16.mxu0 (!%p137_p2), %vm335_vm0, %v334_v1  ;;  %v297_v4 = vld [vmem:[%s384_s2] ss:$0 sm:$0xff] (!%p137_p2) }
   0x7   : > { %307 = vmatpush3.bf16.msra.mxu0 (!%p137_p2), %v324_v0 }
   0x8   : > { %308 = vmatprep.subr.bf16.mxu0 (!%p137_p2), %v334_v1 }
   0xb   : > { %309 = vmatpush3.bf16.msra.mxu0 (!%p137_p2), %v325_v2 }
   0xd   : > { %s387_s13 = smov (!%p158_p3, %s290_s13), 1 }
   0xe   : > { %s295_s18 = sshll.u32 %s387_s13, 2 }
   0xf   : > { %s161_s21 = scalar_lea.vmem %s382_s0, %s295_s18  ;;  %s165_s26 = scalar_lea.vmem %s385_s3, %s295_s18 }
  0x10   : > { %v167_v3 = vld [vmem:[%s161_s21] sm:$0xf] }
  0x11   : > { %311 = vmatmul.mubr.msk.bf16.vlgmr.msra.gmra.mrb[0].mxu0 %vm191_vm1, %v167_v3 }
  0xe4   : > { %v229_v5 = vpop.f32.mrb[0].mxu0 }
  0xe5   : > { %v230_v6 = vadd.f32 %v297_v4, %v229_v5  ;;  %v312_v7 = vpop.f32.mrb[1].mxu0 }
  0xe6   : > { %v232_v8 = vpop.f32.mrb[2].mxu0 }
  0xe7   : > { %v235_v9 = vpack.c.bf16 %v230_v6, %v230_v6  ;;  %v313_v10 = vpop.f32.mrb[3].mxu0 }
  0xe9   : > { %236 = vst [vmem:[%s165_s26] sm:$0xf] %v235_v9 }
  0xea PF: > { %s13_s12 = sadd.s32 1, %s332_s12  }
  0xeb   : > { %p10_p4 = scmp.ge.s32.totalorder %s13_s12, 4  }
  0xed   :  { %12 = sbr.rel (!%p10_p4) target bundleno = 1 (0x1), region = 62 }

// kernel: _lambda_.30
= control target key start
LH: loop header
LB: loop body
LE: loop exit
PB: predicated region body
PF: predicated region fallthrough
CT: control target
= control target key end

     0   :  { %s1391_s15 = smov 0   ;;  %s1534_s0 = inlined_call_operand.vmem [shape: bf16[2,42,32], index: 0, kind: input, shape index: {}]   ;;  %s1535_s1 = inlined_call_operand.vmem [shape: bf16[9,32,128], index: 1, kind: input, shape index: {}]   ;;  %s1536_s2 = inlined_call_operand.vmem [shape: f32[1,128], index: 2, kind: input, shape index: {}]   ;;  %s1537_s3 = inlined_call_operand.vmem [shape: bf16[2,24,128], index: 3, kind: input, shape index: {}]   ;;  %s1538_s4 = inlined_call_operand.vmem [shape: bf16[2,24,128], index: 4, kind: output, shape index: {}]  }
   0x1 LB: > { %s1102_s16 = sadd.s32 4294967295, %s1364_s15   ;;  %p1106_p0 = scmp.ge.s32.totalorder %s1364_s15, 1  ;;  %s1364_s15 = sphi %s1391_s15, %s14_s15  }
   0x2   : > { %p172_p1 = scmp.lt.s32.totalorder %s1364_s15, 3 }
   0x4   : > { %p173_p2 = pnand %p1106_p0, %p172_p1 }
   0x5   : > { %v1327_v0 = vld [vmem:[%s1535_s1 + $0x10] sm:$0xff] (!%p173_p2)   ;;  %p203_p3 = scmp.lt.s32.totalorder (!%p173_p2), %s1102_s16, 1  ;;  %v1328_v1 = vld [vmem:[%s1535_s1] sm:$0xff] (!%p173_p2)   ;;  %v1329_v2 = vld [vmem:[%s1535_s1 + $0x18] sm:$0xff] (!%p173_p2)   ;;  %vm270_vm0 = vcmask (!%p173_p2), 261120   ;;  %vm400_vm2 = vcmask (!%p173_p2), 1046528  }
   0x6   : > { %176 = sbr.rel (%p173_p2) target bundleno = 284 (0x11c), region = 36  ;;  %1245 = vmatprep.subr.bf16.mxu0 (!%p173_p2), %v1327_v0  ;;  %1253 = vmatprep.subr.bf16.mxu1 (!%p173_p2), %v1328_v1  ;;  %v1330_v3 = vld [vmem:[%s1535_s1 + $0x8] sm:$0xff] (!%p173_p2)   ;;  %v1333_v4 = vld [vmem:[%s1535_s1 + $0x20] sm:$0xff] (!%p173_p2)   ;;  %v1335_v5 = vld [vmem:[%s1535_s1 + $0x30] sm:$0xff] (!%p173_p2)   ;;  %vm242_vm1 = vsmask.f32 (!%p173_p2), 7424 }
   0x7   : > { %1246 = vmatpush3.bf16.msra.mxu0 (!%p173_p2), %v1327_v0  ;;  %1254 = vmatpush3.bf16.msra.mxu1 (!%p173_p2), %v1328_v1  ;;  %v1337_v13 = vld [vmem:[%s1535_s1 + $0x38] sm:$0xff] (!%p173_p2)   ;;  %v1342_v28 = vld [vmem:[%s1535_s1 + $0x50] sm:$0xff] (!%p173_p2)   ;;  %vm486_vm3 = vcmask (!%p173_p2), 1044480   ;;  %v1336_v36 = vld [vmem:[%s1535_s1 + $0x28] sm:$0xff] (!%p173_p2)   ;;  %vm568_vm4 = vsmask.f32 (!%p173_p2), 4352 }
   0x8   : > { %1247 = vmatprep.subr.bf16.mxu0 (!%p173_p2), %v1329_v2  ;;  %1255 = vmatprep.subr.bf16.mxu1 (!%p173_p2), %v1330_v3  ;;  %v1344_v42 = vld [vmem:[%s1535_s1 + $0x58] sm:$0xff] (!%p173_p2)   ;;  %v1339_v46 = vld [vmem:[%s1535_s1 + $0x40] sm:$0xff] (!%p173_p2)   ;;  %v1349_v50 = vld [vmem:[%s1535_s1 + $0x70] sm:$0xff] (!%p173_p2)   ;;  %vm832_vm5 = vsmask.f32 (!%p173_p2), 5376  ;;  %vm750_vm6 = vcmask (!%p173_p2), 1045504  }
   0x9   : > { %v1343_v61 = vld [vmem:[%s1535_s1 + $0x48] sm:$0xff] (!%p173_p2)  }
   0xb   : > { %1248 = vmatpush3.bf16.msra.mxu0 (!%p173_p2), %v1329_v2  ;;  %1256 = vmatpush3.bf16.msra.mxu1 (!%p173_p2), %v1330_v3 }
   0xc   : > { %1261 = vmatprep.subr.bf16.mxu0 (!%p173_p2), %v1333_v4  ;;  %1269 = vmatprep.subr.bf16.mxu1 (!%p173_p2), %v1335_v5 }
   0xd   : > { %s1540_s16 = smov (!%p203_p3, %s1102_s16), 1 }
   0xe   : > { %s1317_s25 = smul.u32 24, %s1540_s16 }
   0xf   : > { %s1318_s7 = smul.u32 12, %s1540_s16 }
  0x10   : > { %s1420_s30 = scalar_lea.vmem %s1534_s0, %s1317_s25 }
  0x11   : > { %v219_v6 = vld [vmem:[%s1420_s30] sm:$0xf]  ;;  %v1427_v7 = vld [vmem:[%s1420_s30 + $0x4] sm:$0xf]  ;;  %v1430_v8 = vld [vmem:[%s1420_s30 + $0x8] sm:$0xf]  ;;  %s212_s10 = scalar_lea.vmem %s1537_s3, %s1318_s7  ;;  %s217_s14 = scalar_lea.vmem %s1538_s4, %s1318_s7 }
  0x12   : > { %v226_v9 = vld [vmem:[%s1420_s30 + $0xc] sm:$0x1]  ;;  %v1114_v10 = vcombine.low %v219_v6, %v1427_v7  ;;  %v1120_v11 = vcombine.low %v1430_v8, %v1430_v8  ;;  %v391_v14 = vld [vmem:[%s1420_s30] sm:$0xe]  ;;  %v1157_v41 = vcombine.low %v1427_v7, %v1430_v8  ;;  %v731_v52 = vld [vmem:[%s1420_s30 + $0x4] sm:$0xc] }
  0x13   : > { %v1437_v12 = vcombine.low %v1430_v8, %v226_v9  ;;  %v1129_v17 = vcombine.low %v391_v14, %v1427_v7  ;;  %v473_v21 = vld [vmem:[%s1420_s30] sm:$0x8]  ;;  %v474_v24 = vld [vmem:[%s1420_s30 + $0xc] sm:$0x7]  ;;  %v732_v53 = vld [vmem:[%s1420_s30 + $0x8] sm:$0xf] }
  0x14   : > { %v244_v15 = vshrl.u32 %v1114_v10, 16  ;;  %v246_v16 = vshll.u32 %v1114_v10, 16  ;;  %1257 = vmatprep.mubr.msk.bf16.mxu1 %vm270_vm0, %v1114_v10  ;;  %v1138_v25 = vcombine.low %v473_v21, %v1427_v7  ;;  %v1139_v27 = vcombine.low %v1430_v8, %v474_v24  ;;  %v559_v34 = vld [vmem:[%s1420_s30 + $0xc] sm:$0xf]  ;;  %v734_v56 = vld [vmem:[%s1420_s30 + $0x10] sm:$0x3] }
  0x15   : > { %v251_v18 = vshll.u32 %v1437_v12, 16  ;;  %v255_v19 = vshrl.u32 %v1437_v12, 16  ;;  %1258 = vmatmul.mubr.msk.bf16.vlgmr.msra.gmra.mrb[0].mxu1 %vm270_vm0, %v1120_v11  ;;  %v402_v20 = vrot.slane %v1437_v12, 1  ;;  %v401_v23 = vrot.slane %v1129_v17, 1  ;;  %v733_v54 = vld [vmem:[%s1420_s30 + $0xc] sm:$0xf] }
  0x16   : > { %v248_v22 = vrot.slane %v246_v16, 1  ;;  %1270 = vmatpush3.bf16.msra.mxu1 %v1335_v5  ;;  %v487_v30 = vrot.slane %v1138_v25, 3  ;;  %v488_v33 = vrot.slane %v1139_v27, 3  ;;  %v1148_v37 = vcombine.low %v1430_v8, %v559_v34  ;;  %v823_v58 = vld [vmem:[%s1420_s30 + $0x10] sm:$0x7]  ;;  %v1346_v9 = vld [vmem:[%s1535_s1 + $0x60] sm:$0xff]  }
  0x17   : > { %v253_v26 = vrot.slane %v251_v18, 1  ;;  %1271 = vmatprep.subr.bf16.mxu1 %v1337_v13  ;;  %v403_v32 = vsel %vm400_vm2, %v401_v23, %v402_v20  ;;  %v570_v38 = vshrl.u32 %v1138_v25, 16  ;;  %v573_v40 = vshll.u32 %v1138_v25, 16  ;;  %v919_v14 = vld [vmem:[%s1420_s30 + $0x4] sm:$0x8]  ;;  %v1350_v16 = vld [vmem:[%s1535_s1 + $0x68] sm:$0xff]  }
  0x18   : > { %v249_v29 = vor.u32 %v248_v22, %v244_v15  ;;  %v489_v39 = vsel %vm486_vm3, %v487_v30, %v488_v33  ;;  %v578_v44 = vshrl.u32 %v1148_v37, 16  ;;  %v581_v45 = vshll.u32 %v1148_v37, 16  ;;  %v1356_v22 = vld [vmem:[%s1535_s1 + $0x88] sm:$0xff]  }
  0x19   : > { %v257_v31 = vor.u32 %v255_v19, %v253_v26  ;;  %1273 = vmatprep.mubr.msk.bf16.mxu1 %vm270_vm0, %v489_v39  ;;  %v572_v43 = vrot.slane %v570_v38, 3  ;;  %v575_v47 = vrot.slane %v573_v40, 4  ;;  %v1167_v57 = vcombine.low %v731_v52, %v732_v53  ;;  %v1355_v19 = vld [vmem:[%s1535_s1 + $0x80] sm:$0xff]  }
  0x1a   : > { %v254_v35 = vsel %vm242_vm1, %v249_v29, %v253_v26  ;;  %1272 = vmatpush3.bf16.msra.mxu1 %v1337_v13  ;;  %v580_v48 = vrot.slane %v578_v44, 3  ;;  %v583_v49 = vrot.slane %v581_v45, 4  ;;  %v1158_v59 = vcombine.low %v559_v34, %v559_v34 }
  0x1b   : > { %1249 = vmatprep.mubr.msk.bf16.mxu0 %vm270_vm0, %v254_v35  ;;  %1285 = vmatprep.subr.bf16.mxu1 %v1342_v28  ;;  %v576_v51 = vor.u32 %v575_v47, %v572_v43  ;;  %v1177_v60 = vcombine.low %v733_v54, %v823_v58  ;;  %v1168_v63 = vcombine.low %v733_v54, %v734_v56  ;;  %v834_v0 = vshrl.u32 %v1167_v57, 16 }
  0x1c   : > { %1250 = vmatmul.mubr.msk.bf16.vlgmr.msra.gmra.mrb[0].mxu0 %vm270_vm0, %v257_v31  ;;  %v584_v55 = vor.u32 %v583_v49, %v580_v48  ;;  %v837_v1 = vshll.u32 %v1167_v57, 16  ;;  %v751_v10 = vrot.slane %v1167_v57, 2  ;;  %v1186_v18 = vcombine.low %v919_v14, %v732_v53 }
  0x1d   : > { %1262 = vmatpush3.bf16.msra.mxu0 %v1333_v4  ;;  %1265 = vmatprep.mubr.msk.bf16.mxu0 %vm270_vm0, %v403_v32  ;;  %v842_v2 = vshrl.u32 %v1177_v60, 16  ;;  %v845_v3 = vshll.u32 %v1177_v60, 16  ;;  %v1351_v4 = vld [vmem:[%s1535_s1 + $0x78] sm:$0xff]   ;;  %v836_v5 = vrot.slane %v834_v0, 2  ;;  %v752_v11 = vrot.slane %v1168_v63, 2 }
  0x1e   : > { %1263 = vmatprep.subr.bf16.mxu0 %v1336_v36  ;;  %1274 = vmatmul.mubr.msk.bf16.vlgmr.msra.gmra.mrb[4].mxu1 %vm270_vm0, %v488_v33  ;;  %v585_v62 = vsel %vm568_vm4, %v576_v51, %v584_v55  ;;  %v839_v6 = vrot.slane %v837_v1, 3  ;;  %v929_v21 = vrot.slane %v1177_v60, 3 }
  0x1f   : > { %1286 = vmatpush3.bf16.msra.mxu1 %v1342_v28  ;;  %1289 = vmatprep.mubr.msk.bf16.mxu1 %vm270_vm0, %v1157_v41  ;;  %v844_v7 = vrot.slane %v842_v2, 2  ;;  %v847_v8 = vrot.slane %v845_v3, 3  ;;  %v753_v17 = vsel %vm750_vm6, %v751_v10, %v752_v11 }
  0x20   : > { %1287 = vmatprep.subr.bf16.mxu1 %v1344_v42  ;;  %v840_v12 = vor.u32 %v839_v6, %v836_v5 }
  0x21   : > { %1264 = vmatpush3.bf16.msra.mxu0 %v1336_v36  ;;  %v848_v13 = vor.u32 %v847_v8, %v844_v7 }
  0x22   : > { %1277 = vmatprep.subr.bf16.mxu0 %v1339_v46 }
  0x23   : > { %1288 = vmatpush3.bf16.msra.mxu1 %v1344_v42  ;;  %v849_v15 = vsel %vm832_vm5, %v840_v12, %v848_v13 }
  0x24   : > { %1266 = vmatmul.mubr.msk.bf16.vlgmr.msra.gmra.mrb[4].mxu0 %vm270_vm0, %v402_v20  ;;  %1301 = vmatprep.subr.bf16.mxu1 %v1349_v50  ;;  %v928_v20 = vrot.slane %v1186_v18, 3 }
  0x25   : > { %1278 = vmatpush3.bf16.msra.mxu0 %v1339_v46  ;;  %1281 = vmatprep.mubr.msk.bf16.mxu0 %vm270_vm0, %v585_v62 }
  0x26   : > { %1279 = vmatprep.subr.bf16.mxu0 %v1343_v61  ;;  %1290 = vmatmul.mubr.msk.bf16.vlgmr.msra.gmra.mrb[8].mxu1 %vm270_vm0, %v1158_v59  ;;  %v930_v23 = vsel %vm486_vm3, %v928_v20, %v929_v21 }
  0x27   : > { %1302 = vmatpush3.bf16.msra.mxu1 %v1349_v50  ;;  %1305 = vmatprep.mubr.msk.bf16.mxu1 %vm270_vm0, %v849_v15  ;;  %v1191_v15 = vld [vmem:[%s1536_s2] ss:$0 sm:$0xff] }
  0x28   : > { %1303 = vmatprep.subr.bf16.mxu1 %v1351_v4 }
  0x29   : > { %1280 = vmatpush3.bf16.msra.mxu0 %v1343_v61 }
  0x2a   : > { %1293 = vmatprep.subr.bf16.mxu0 %v1346_v9 }
  0x2b   : > { %1304 = vmatpush3.bf16.msra.mxu1 %v1351_v4 }
  0x2c   : > { %1282 = vmatmul.mubr.msk.bf16.vlgmr.msra.gmra.mrb[8].mxu0 %vm270_vm0, %v584_v55 }
  0x2d   : > { %1294 = vmatpush3.bf16.msra.mxu0 %v1346_v9  ;;  %1297 = vmatprep.mubr.msk.bf16.mxu0 %vm270_vm0, %v753_v17 }
  0x2e   : > { %1295 = vmatprep.subr.bf16.mxu0 %v1350_v16  ;;  %1306 = vmatmul.mubr.msk.bf16.vlgmr.msra.gmra.mrb[12].mxu1 %vm270_vm0, %v848_v13  ;;  %v1012_v13 = vld [vmem:[%s212_s10 + $0x8] sm:$0xf] }
  0x2f   : > { %v1015_v17 = vunpack.c.l.bf16 %v1012_v13 }
  0x31   : > { %1296 = vmatpush3.bf16.msra.mxu0 %v1350_v16 }
  0x32   : > { %1309 = vmatprep.subr.bf16.mxu0 %v1355_v19 }
  0x34   : > { %1298 = vmatmul.mubr.msk.bf16.vlgmr.msra.gmra.mrb[12].mxu0 %vm270_vm0, %v752_v11 }
  0x35   : > { %1310 = vmatpush3.bf16.msra.mxu0 %v1355_v19  ;;  %1313 = vmatprep.mubr.msk.bf16.mxu0 %vm270_vm0, %v930_v23  ;;  %v1201_v19 = vld [vmem:[%s212_s10] sm:$0xff]  }
  0x36   : > { %1311 = vmatprep.subr.bf16.mxu0 %v1356_v22 }
  0x39   : > { %1312 = vmatpush3.bf16.msra.mxu0 %v1356_v22 }
  0x3c   : > { %1314 = vmatmul.mubr.msk.bf16.vlgmr.msra.gmra.mrb[16].mxu0 %vm270_vm0, %v929_v21 }
  0xe8   : > { %v1259_v24 = vpop.f32.mrb[0].mxu1 }
  0xe9   : > { %v377_v25 = vpop.f32.mrb[1].mxu1 }
  0xea   : > { %v1260_v26 = vpop.f32.mrb[2].mxu1 }
  0xeb   : > { %v380_v27 = vpop.f32.mrb[3].mxu1 }
  0xef   : > { %v1251_v28 = vpop.f32.mrb[0].mxu0 }
  0xf0   : > { %v386_v29 = vadd.f32 %v1259_v24, %v1251_v28  ;;  %v311_v30 = vpop.f32.mrb[1].mxu0 }
  0xf1   : > { %v378_v31 = vadd.f32 %v377_v25, %v311_v30  ;;  %v1252_v32 = vpop.f32.mrb[2].mxu0  ;;  %v1275_v33 = vpop.f32.mrb[4].mxu1  ;;  %v1202_v25 = vunpack.c.l.bf16 %v1201_v19 }
  0xf2   : > { %v314_v34 = vpop.f32.mrb[3].mxu0  ;;  %v542_v35 = vpop.f32.mrb[5].mxu1 }
  0xf3   : > { %v381_v36 = vadd.f32 %v380_v27, %v314_v34  ;;  %v1276_v37 = vpop.f32.mrb[6].mxu1  ;;  %v1203_v27 = vunpack.c.h.bf16 %v1201_v19 }
  0xf4   : > { %v545_v38 = vpop.f32.mrb[7].mxu1 }
  0xf7   : > { %v1267_v39 = vpop.f32.mrb[4].mxu0 }
  0xf8   : > { %v472_v40 = vadd.f32 %v1267_v39, %v386_v29  ;;  %v456_v41 = vpop.f32.mrb[5].mxu0 }
  0xf9   : > { %v470_v42 = vadd.f32 %v456_v41, %v378_v31  ;;  %v1268_v43 = vpop.f32.mrb[6].mxu0  ;;  %v1291_v44 = vpop.f32.mrb[8].mxu1 }
  0xfa   : > { %v558_v45 = vadd.f32 %v1275_v33, %v472_v40  ;;  %v459_v46 = vpop.f32.mrb[7].mxu0  ;;  %v714_v47 = vpop.f32.mrb[9].mxu1 }
  0xfb   : > { %v471_v48 = vadd.f32 %v459_v46, %v381_v36  ;;  %v556_v49 = vadd.f32 %v542_v35, %v470_v42  ;;  %v1292_v50 = vpop.f32.mrb[10].mxu1 }
  0xfc   : > { %v717_v51 = vpop.f32.mrb[11].mxu1 }
  0xfd   : > { %v557_v52 = vadd.f32 %v545_v38, %v471_v48 }
  0xff   : > { %v1283_v53 = vpop.f32.mrb[8].mxu0 }
 0x100   : > { %v654_v54 = vadd.f32 %v1283_v53, %v558_v45  ;;  %v638_v55 = vpop.f32.mrb[9].mxu0 }
 0x101   : > { %v652_v56 = vadd.f32 %v638_v55, %v556_v49  ;;  %v1284_v57 = vpop.f32.mrb[10].mxu0  ;;  %v1307_v58 = vpop.f32.mrb[12].mxu1 }
 0x102   : > { %v730_v59 = vadd.f32 %v1291_v44, %v654_v54  ;;  %v641_v60 = vpop.f32.mrb[11].mxu0  ;;  %v902_v61 = vpop.f32.mrb[13].mxu1 }
 0x103   : > { %v653_v62 = vadd.f32 %v641_v60, %v557_v52  ;;  %v728_v63 = vadd.f32 %v714_v47, %v652_v56  ;;  %v1308_v0 = vpop.f32.mrb[14].mxu1 }
 0x104   : > { %v905_v1 = vpop.f32.mrb[15].mxu1 }
 0x105   : > { %v729_v2 = vadd.f32 %v717_v51, %v653_v62 }
 0x107   : > { %v1299_v3 = vpop.f32.mrb[12].mxu0 }
 0x108   : > { %v822_v4 = vadd.f32 %v1299_v3, %v730_v59  ;;  %v806_v5 = vpop.f32.mrb[13].mxu0 }
 0x109   : > { %v820_v6 = vadd.f32 %v806_v5, %v728_v63  ;;  %v1300_v7 = vpop.f32.mrb[14].mxu0 }
 0x10a   : > { %v918_v8 = vadd.f32 %v1307_v58, %v822_v4  ;;  %v809_v9 = vpop.f32.mrb[15].mxu0 }
 0x10b   : > { %v821_v10 = vadd.f32 %v809_v9, %v729_v2  ;;  %v916_v11 = vadd.f32 %v902_v61, %v820_v6 }
 0x10d   : > { %v917_v12 = vadd.f32 %v905_v1, %v821_v10 }
 0x10f   : > { %v1315_v14 = vpop.f32.mrb[16].mxu0 }
 0x110   : > { %v999_v16 = vadd.f32 %v1315_v14, %v918_v8  ;;  %v983_v18 = vpop.f32.mrb[17].mxu0 }
 0x111   : > { %v997_v20 = vadd.f32 %v983_v18, %v916_v11  ;;  %v1316_v21 = vpop.f32.mrb[18].mxu0 }
 0x112   : > { %v1009_v22 = vadd.f32 %v1191_v15, %v999_v16  ;;  %v986_v23 = vpop.f32.mrb[19].mxu0 }
 0x113   : > { %v1007_v24 = vadd.f32 %v1191_v15, %v997_v20  ;;  %v998_v26 = vadd.f32 %v986_v23, %v917_v12 }
 0x114   : > { %v1018_v28 = vadd.f32 %v1015_v17, %v1009_v22 }
 0x115   : > { %v1008_v29 = vadd.f32 %v1191_v15, %v998_v26  ;;  %v1016_v31 = vadd.f32 %v1202_v25, %v1007_v24 }
 0x116   : > { %v1199_v30 = vpack.c.bf16 %v1018_v28, %v1018_v28 }
 0x117   : > { %v1017_v32 = vadd.f32 %v1203_v27, %v1008_v29 }
 0x118   : > { %1034 = vst [vmem:[%s217_s14 + $0x8] sm:$0xf] %v1199_v30 }
 0x119   : > { %v1207_v33 = vpack.c.bf16 %v1017_v32, %v1016_v31 }
 0x11b   : > { %1208 = vst [vmem:[%s217_s14] sm:$0xff] %v1207_v33  }
 0x11c PF: > { %s14_s15 = sadd.s32 1, %s1364_s15  }
 0x11d   : > { %p11_p4 = scmp.ge.s32.totalorder %s14_s15, 4  }
 0x11f   :  { %13 = sbr.rel (!%p11_p4) target bundleno = 1 (0x1), region = 77 }

// kernel: _lambda_.31
= control target key start
LH: loop header
LB: loop body
LE: loop exit
PB: predicated region body
PF: predicated region fallthrough
CT: control target
= control target key end

     0   :  { %s1316_s12 = smov 0   ;;  %s1456_s0 = inlined_call_operand.vmem [shape: bf16[2,42,32], index: 0, kind: input, shape index: {}]   ;;  %s1457_s1 = inlined_call_operand.vmem [shape: bf16[9,32,128], index: 1, kind: input, shape index: {}]   ;;  %s1458_s2 = inlined_call_operand.vmem [shape: f32[1,128], index: 2, kind: input, shape index: {}]   ;;  %s1459_s3 = inlined_call_operand.vmem [shape: bf16[2,24,128], index: 3, kind: output, shape index: {}]  }
   0x1 LB: > { %s1037_s13 = sadd.s32 4294967295, %s1294_s12   ;;  %p1041_p0 = scmp.ge.s32.totalorder %s1294_s12, 1  ;;  %s1294_s12 = sphi %s1316_s12, %s13_s12  }
   0x2   : > { %p137_p1 = scmp.lt.s32.totalorder %s1294_s12, 3 }
   0x4   : > { %p138_p2 = pnand %p1041_p0, %p137_p1 }
   0x5   : > { %v1257_v0 = vld [vmem:[%s1457_s1 + $0x10] sm:$0xff] (!%p138_p2)   ;;  %p161_p3 = scmp.lt.s32.totalorder (!%p138_p2), %s1037_s13, 1  ;;  %v1258_v1 = vld [vmem:[%s1457_s1] sm:$0xff] (!%p138_p2)   ;;  %v1259_v2 = vld [vmem:[%s1457_s1 + $0x18] sm:$0xff] (!%p138_p2)   ;;  %vm223_vm0 = vcmask (!%p138_p2), 261120   ;;  %vm353_vm2 = vcmask (!%p138_p2), 1046528  }
   0x6   : > { %141 = sbr.rel (%p138_p2) target bundleno = 284 (0x11c), region = 32  ;;  %1175 = vmatprep.subr.bf16.mxu0 (!%p138_p2), %v1257_v0  ;;  %1183 = vmatprep.subr.bf16.mxu1 (!%p138_p2), %v1258_v1  ;;  %v1260_v3 = vld [vmem:[%s1457_s1 + $0x8] sm:$0xff] (!%p138_p2)   ;;  %v1263_v4 = vld [vmem:[%s1457_s1 + $0x20] sm:$0xff] (!%p138_p2)   ;;  %v1265_v5 = vld [vmem:[%s1457_s1 + $0x30] sm:$0xff] (!%p138_p2)   ;;  %vm195_vm1 = vsmask.f32 (!%p138_p2), 7424 }
   0x7   : > { %1176 = vmatpush3.bf16.msra.mxu0 (!%p138_p2), %v1257_v0  ;;  %1184 = vmatpush3.bf16.msra.mxu1 (!%p138_p2), %v1258_v1  ;;  %v1267_v13 = vld [vmem:[%s1457_s1 + $0x38] sm:$0xff] (!%p138_p2)   ;;  %v1272_v28 = vld [vmem:[%s1457_s1 + $0x50] sm:$0xff] (!%p138_p2)   ;;  %vm439_vm3 = vcmask (!%p138_p2), 1044480   ;;  %v1266_v36 = vld [vmem:[%s1457_s1 + $0x28] sm:$0xff] (!%p138_p2)   ;;  %vm521_vm4 = vsmask.f32 (!%p138_p2), 4352 }
   0x8   : > { %1177 = vmatprep.subr.bf16.mxu0 (!%p138_p2), %v1259_v2  ;;  %1185 = vmatprep.subr.bf16.mxu1 (!%p138_p2), %v1260_v3  ;;  %v1274_v42 = vld [vmem:[%s1457_s1 + $0x58] sm:$0xff] (!%p138_p2)   ;;  %v1269_v46 = vld [vmem:[%s1457_s1 + $0x40] sm:$0xff] (!%p138_p2)   ;;  %v1279_v50 = vld [vmem:[%s1457_s1 + $0x70] sm:$0xff] (!%p138_p2)   ;;  %vm785_vm5 = vsmask.f32 (!%p138_p2), 5376  ;;  %vm703_vm6 = vcmask (!%p138_p2), 1045504  }
   0x9   : > { %v1273_v61 = vld [vmem:[%s1457_s1 + $0x48] sm:$0xff] (!%p138_p2)  }
   0xb   : > { %1178 = vmatpush3.bf16.msra.mxu0 (!%p138_p2), %v1259_v2  ;;  %1186 = vmatpush3.bf16.msra.mxu1 (!%p138_p2), %v1260_v3 }
   0xc   : > { %1191 = vmatprep.subr.bf16.mxu0 (!%p138_p2), %v1263_v4  ;;  %1199 = vmatprep.subr.bf16.mxu1 (!%p138_p2), %v1265_v5 }
   0xd   : > { %s1461_s13 = smov (!%p161_p3, %s1037_s13), 1 }
   0xe   : > { %s1247_s22 = smul.u32 24, %s1461_s13 }
   0xf   : > { %s1248_s4 = smul.u32 12, %s1461_s13 }
  0x10   : > { %s1345_s27 = scalar_lea.vmem %s1456_s0, %s1247_s22 }
  0x11   : > { %v172_v6 = vld [vmem:[%s1345_s27] sm:$0xf]  ;;  %v1352_v7 = vld [vmem:[%s1345_s27 + $0x4] sm:$0xf]  ;;  %v1355_v8 = vld [vmem:[%s1345_s27 + $0x8] sm:$0xf]  ;;  %s170_s7 = scalar_lea.vmem %s1459_s3, %s1248_s4 }
  0x12   : > { %v179_v9 = vld [vmem:[%s1345_s27 + $0xc] sm:$0x1]  ;;  %v1048_v10 = vcombine.low %v172_v6, %v1352_v7  ;;  %v1054_v11 = vcombine.low %v1355_v8, %v1355_v8  ;;  %v344_v14 = vld [vmem:[%s1345_s27] sm:$0xe]  ;;  %v1091_v41 = vcombine.low %v1352_v7, %v1355_v8  ;;  %v684_v52 = vld [vmem:[%s1345_s27 + $0x4] sm:$0xc] }
  0x13   : > { %v1362_v12 = vcombine.low %v1355_v8, %v179_v9  ;;  %v1063_v17 = vcombine.low %v344_v14, %v1352_v7  ;;  %v426_v21 = vld [vmem:[%s1345_s27] sm:$0x8]  ;;  %v427_v24 = vld [vmem:[%s1345_s27 + $0xc] sm:$0x7]  ;;  %v685_v53 = vld [vmem:[%s1345_s27 + $0x8] sm:$0xf] }
  0x14   : > { %v197_v15 = vshrl.u32 %v1048_v10, 16  ;;  %v199_v16 = vshll.u32 %v1048_v10, 16  ;;  %1187 = vmatprep.mubr.msk.bf16.mxu1 %vm223_vm0, %v1048_v10  ;;  %v1072_v25 = vcombine.low %v426_v21, %v1352_v7  ;;  %v1073_v27 = vcombine.low %v1355_v8, %v427_v24  ;;  %v512_v34 = vld [vmem:[%s1345_s27 + $0xc] sm:$0xf]  ;;  %v687_v56 = vld [vmem:[%s1345_s27 + $0x10] sm:$0x3] }
  0x15   : > { %v204_v18 = vshll.u32 %v1362_v12, 16  ;;  %v208_v19 = vshrl.u32 %v1362_v12, 16  ;;  %1188 = vmatmul.mubr.msk.bf16.vlgmr.msra.gmra.mrb[0].mxu1 %vm223_vm0, %v1054_v11  ;;  %v355_v20 = vrot.slane %v1362_v12, 1  ;;  %v354_v23 = vrot.slane %v1063_v17, 1  ;;  %v686_v54 = vld [vmem:[%s1345_s27 + $0xc] sm:$0xf] }
  0x16   : > { %v201_v22 = vrot.slane %v199_v16, 1  ;;  %1200 = vmatpush3.bf16.msra.mxu1 %v1265_v5  ;;  %v440_v30 = vrot.slane %v1072_v25, 3  ;;  %v441_v33 = vrot.slane %v1073_v27, 3  ;;  %v1082_v37 = vcombine.low %v1355_v8, %v512_v34  ;;  %v776_v58 = vld [vmem:[%s1345_s27 + $0x10] sm:$0x7]  ;;  %v1276_v9 = vld [vmem:[%s1457_s1 + $0x60] sm:$0xff]  }
  0x17   : > { %v206_v26 = vrot.slane %v204_v18, 1  ;;  %1201 = vmatprep.subr.bf16.mxu1 %v1267_v13  ;;  %v356_v32 = vsel %vm353_vm2, %v354_v23, %v355_v20  ;;  %v523_v38 = vshrl.u32 %v1072_v25, 16  ;;  %v526_v40 = vshll.u32 %v1072_v25, 16  ;;  %v872_v14 = vld [vmem:[%s1345_s27 + $0x4] sm:$0x8]  ;;  %v1280_v16 = vld [vmem:[%s1457_s1 + $0x68] sm:$0xff]  }
  0x18   : > { %v202_v29 = vor.u32 %v201_v22, %v197_v15  ;;  %v442_v39 = vsel %vm439_vm3, %v440_v30, %v441_v33  ;;  %v531_v44 = vshrl.u32 %v1082_v37, 16  ;;  %v534_v45 = vshll.u32 %v1082_v37, 16  ;;  %v1286_v22 = vld [vmem:[%s1457_s1 + $0x88] sm:$0xff]  }
  0x19   : > { %v210_v31 = vor.u32 %v208_v19, %v206_v26  ;;  %1203 = vmatprep.mubr.msk.bf16.mxu1 %vm223_vm0, %v442_v39  ;;  %v525_v43 = vrot.slane %v523_v38, 3  ;;  %v528_v47 = vrot.slane %v526_v40, 4  ;;  %v1101_v57 = vcombine.low %v684_v52, %v685_v53  ;;  %v1285_v19 = vld [vmem:[%s1457_s1 + $0x80] sm:$0xff]  }
  0x1a   : > { %v207_v35 = vsel %vm195_vm1, %v202_v29, %v206_v26  ;;  %1202 = vmatpush3.bf16.msra.mxu1 %v1267_v13  ;;  %v533_v48 = vrot.slane %v531_v44, 3  ;;  %v536_v49 = vrot.slane %v534_v45, 4  ;;  %v1092_v59 = vcombine.low %v512_v34, %v512_v34 }
  0x1b   : > { %1179 = vmatprep.mubr.msk.bf16.mxu0 %vm223_vm0, %v207_v35  ;;  %1215 = vmatprep.subr.bf16.mxu1 %v1272_v28  ;;  %v529_v51 = vor.u32 %v528_v47, %v525_v43  ;;  %v1111_v60 = vcombine.low %v686_v54, %v776_v58  ;;  %v1102_v63 = vcombine.low %v686_v54, %v687_v56  ;;  %v787_v0 = vshrl.u32 %v1101_v57, 16 }
  0x1c   : > { %1180 = vmatmul.mubr.msk.bf16.vlgmr.msra.gmra.mrb[0].mxu0 %vm223_vm0, %v210_v31  ;;  %v537_v55 = vor.u32 %v536_v49, %v533_v48  ;;  %v790_v1 = vshll.u32 %v1101_v57, 16  ;;  %v704_v10 = vrot.slane %v1101_v57, 2  ;;  %v1120_v18 = vcombine.low %v872_v14, %v685_v53  ;;  %v1125_v14 = vld [vmem:[%s1458_s2] ss:$0 sm:$0xff] }
  0x1d   : > { %1192 = vmatpush3.bf16.msra.mxu0 %v1263_v4  ;;  %1195 = vmatprep.mubr.msk.bf16.mxu0 %vm223_vm0, %v356_v32  ;;  %v795_v2 = vshrl.u32 %v1111_v60, 16  ;;  %v798_v3 = vshll.u32 %v1111_v60, 16  ;;  %v1281_v4 = vld [vmem:[%s1457_s1 + $0x78] sm:$0xff]   ;;  %v789_v5 = vrot.slane %v787_v0, 2  ;;  %v705_v11 = vrot.slane %v1102_v63, 2 }
  0x1e   : > { %1193 = vmatprep.subr.bf16.mxu0 %v1266_v36  ;;  %1204 = vmatmul.mubr.msk.bf16.vlgmr.msra.gmra.mrb[4].mxu1 %vm223_vm0, %v441_v33  ;;  %v538_v62 = vsel %vm521_vm4, %v529_v51, %v537_v55  ;;  %v792_v6 = vrot.slane %v790_v1, 3  ;;  %v882_v21 = vrot.slane %v1111_v60, 3 }
  0x1f   : > { %1216 = vmatpush3.bf16.msra.mxu1 %v1272_v28  ;;  %1219 = vmatprep.mubr.msk.bf16.mxu1 %vm223_vm0, %v1091_v41  ;;  %v797_v7 = vrot.slane %v795_v2, 2  ;;  %v800_v8 = vrot.slane %v798_v3, 3  ;;  %v706_v17 = vsel %vm703_vm6, %v704_v10, %v705_v11 }
  0x20   : > { %1217 = vmatprep.subr.bf16.mxu1 %v1274_v42  ;;  %v793_v12 = vor.u32 %v792_v6, %v789_v5 }
  0x21   : > { %1194 = vmatpush3.bf16.msra.mxu0 %v1266_v36  ;;  %v801_v13 = vor.u32 %v800_v8, %v797_v7 }
  0x22   : > { %1207 = vmatprep.subr.bf16.mxu0 %v1269_v46 }
  0x23   : > { %1218 = vmatpush3.bf16.msra.mxu1 %v1274_v42  ;;  %v802_v15 = vsel %vm785_vm5, %v793_v12, %v801_v13 }
  0x24   : > { %1196 = vmatmul.mubr.msk.bf16.vlgmr.msra.gmra.mrb[4].mxu0 %vm223_vm0, %v355_v20  ;;  %1231 = vmatprep.subr.bf16.mxu1 %v1279_v50  ;;  %v881_v20 = vrot.slane %v1120_v18, 3 }
  0x25   : > { %1208 = vmatpush3.bf16.msra.mxu0 %v1269_v46  ;;  %1211 = vmatprep.mubr.msk.bf16.mxu0 %vm223_vm0, %v538_v62 }
  0x26   : > { %1209 = vmatprep.subr.bf16.mxu0 %v1273_v61  ;;  %1220 = vmatmul.mubr.msk.bf16.vlgmr.msra.gmra.mrb[8].mxu1 %vm223_vm0, %v1092_v59  ;;  %v883_v23 = vsel %vm439_vm3, %v881_v20, %v882_v21 }
  0x27   : > { %1232 = vmatpush3.bf16.msra.mxu1 %v1279_v50  ;;  %1235 = vmatprep.mubr.msk.bf16.mxu1 %vm223_vm0, %v802_v15 }
  0x28   : > { %1233 = vmatprep.subr.bf16.mxu1 %v1281_v4 }
  0x29   : > { %1210 = vmatpush3.bf16.msra.mxu0 %v1273_v61 }
  0x2a   : > { %1223 = vmatprep.subr.bf16.mxu0 %v1276_v9 }
  0x2b   : > { %1234 = vmatpush3.bf16.msra.mxu1 %v1281_v4 }
  0x2c   : > { %1212 = vmatmul.mubr.msk.bf16.vlgmr.msra.gmra.mrb[8].mxu0 %vm223_vm0, %v537_v55 }
  0x2d   : > { %1224 = vmatpush3.bf16.msra.mxu0 %v1276_v9  ;;  %1227 = vmatprep.mubr.msk.bf16.mxu0 %vm223_vm0, %v706_v17 }
  0x2e   : > { %1225 = vmatprep.subr.bf16.mxu0 %v1280_v16  ;;  %1236 = vmatmul.mubr.msk.bf16.vlgmr.msra.gmra.mrb[12].mxu1 %vm223_vm0, %v801_v13 }
  0x31   : > { %1226 = vmatpush3.bf16.msra.mxu0 %v1280_v16 }
  0x32   : > { %1239 = vmatprep.subr.bf16.mxu0 %v1285_v19 }
  0x34   : > { %1228 = vmatmul.mubr.msk.bf16.vlgmr.msra.gmra.mrb[12].mxu0 %vm223_vm0, %v705_v11 }
  0x35   : > { %1240 = vmatpush3.bf16.msra.mxu0 %v1285_v19  ;;  %1243 = vmatprep.mubr.msk.bf16.mxu0 %vm223_vm0, %v883_v23 }
  0x36   : > { %1241 = vmatprep.subr.bf16.mxu0 %v1286_v22 }
  0x39   : > { %1242 = vmatpush3.bf16.msra.mxu0 %v1286_v22 }
  0x3c   : > { %1244 = vmatmul.mubr.msk.bf16.vlgmr.msra.gmra.mrb[16].mxu0 %vm223_vm0, %v882_v21 }
  0xe8   : > { %v1189_v24 = vpop.f32.mrb[0].mxu1 }
  0xe9   : > { %v330_v25 = vpop.f32.mrb[1].mxu1 }
  0xea   : > { %v1190_v26 = vpop.f32.mrb[2].mxu1 }
  0xeb   : > { %v333_v27 = vpop.f32.mrb[3].mxu1 }
  0xef   : > { %v1181_v28 = vpop.f32.mrb[0].mxu0 }
  0xf0   : > { %v339_v29 = vadd.f32 %v1189_v24, %v1181_v28  ;;  %v264_v30 = vpop.f32.mrb[1].mxu0 }
  0xf1   : > { %v331_v31 = vadd.f32 %v330_v25, %v264_v30  ;;  %v1182_v32 = vpop.f32.mrb[2].mxu0  ;;  %v1205_v33 = vpop.f32.mrb[4].mxu1 }
  0xf2   : > { %v267_v34 = vpop.f32.mrb[3].mxu0  ;;  %v495_v35 = vpop.f32.mrb[5].mxu1 }
  0xf3   : > { %v334_v36 = vadd.f32 %v333_v27, %v267_v34  ;;  %v1206_v37 = vpop.f32.mrb[6].mxu1 }
  0xf4   : > { %v498_v38 = vpop.f32.mrb[7].mxu1 }
  0xf7   : > { %v1197_v39 = vpop.f32.mrb[4].mxu0 }
  0xf8   : > { %v425_v40 = vadd.f32 %v1197_v39, %v339_v29  ;;  %v409_v41 = vpop.f32.mrb[5].mxu0 }
  0xf9   : > { %v423_v42 = vadd.f32 %v409_v41, %v331_v31  ;;  %v1198_v43 = vpop.f32.mrb[6].mxu0  ;;  %v1221_v44 = vpop.f32.mrb[8].mxu1 }
  0xfa   : > { %v511_v45 = vadd.f32 %v1205_v33, %v425_v40  ;;  %v412_v46 = vpop.f32.mrb[7].mxu0  ;;  %v667_v47 = vpop.f32.mrb[9].mxu1 }
  0xfb   : > { %v424_v48 = vadd.f32 %v412_v46, %v334_v36  ;;  %v509_v49 = vadd.f32 %v495_v35, %v423_v42  ;;  %v1222_v50 = vpop.f32.mrb[10].mxu1 }
  0xfc   : > { %v670_v51 = vpop.f32.mrb[11].mxu1 }
  0xfd   : > { %v510_v52 = vadd.f32 %v498_v38, %v424_v48 }
  0xff   : > { %v1213_v53 = vpop.f32.mrb[8].mxu0 }
 0x100   : > { %v607_v54 = vadd.f32 %v1213_v53, %v511_v45  ;;  %v591_v55 = vpop.f32.mrb[9].mxu0 }
 0x101   : > { %v605_v56 = vadd.f32 %v591_v55, %v509_v49  ;;  %v1214_v57 = vpop.f32.mrb[10].mxu0  ;;  %v1237_v58 = vpop.f32.mrb[12].mxu1 }
 0x102   : > { %v683_v59 = vadd.f32 %v1221_v44, %v607_v54  ;;  %v594_v60 = vpop.f32.mrb[11].mxu0  ;;  %v855_v61 = vpop.f32.mrb[13].mxu1 }
 0x103   : > { %v606_v62 = vadd.f32 %v594_v60, %v510_v52  ;;  %v681_v63 = vadd.f32 %v667_v47, %v605_v56  ;;  %v1238_v0 = vpop.f32.mrb[14].mxu1 }
 0x104   : > { %v858_v1 = vpop.f32.mrb[15].mxu1 }
 0x105   : > { %v682_v2 = vadd.f32 %v670_v51, %v606_v62 }
 0x107   : > { %v1229_v3 = vpop.f32.mrb[12].mxu0 }
 0x108   : > { %v775_v4 = vadd.f32 %v1229_v3, %v683_v59  ;;  %v759_v5 = vpop.f32.mrb[13].mxu0 }
 0x109   : > { %v773_v6 = vadd.f32 %v759_v5, %v681_v63  ;;  %v1230_v7 = vpop.f32.mrb[14].mxu0 }
 0x10a   : > { %v871_v8 = vadd.f32 %v1237_v58, %v775_v4  ;;  %v762_v9 = vpop.f32.mrb[15].mxu0 }
 0x10b   : > { %v774_v10 = vadd.f32 %v762_v9, %v682_v2  ;;  %v869_v11 = vadd.f32 %v855_v61, %v773_v6 }
 0x10d   : > { %v870_v12 = vadd.f32 %v858_v1, %v774_v10 }
 0x10f   : > { %v1245_v13 = vpop.f32.mrb[16].mxu0 }
 0x110   : > { %v952_v15 = vadd.f32 %v1245_v13, %v871_v8  ;;  %v936_v16 = vpop.f32.mrb[17].mxu0 }
 0x111   : > { %v950_v17 = vadd.f32 %v936_v16, %v869_v11  ;;  %v1246_v18 = vpop.f32.mrb[18].mxu0 }
 0x112   : > { %v962_v19 = vadd.f32 %v1125_v14, %v952_v15  ;;  %v939_v20 = vpop.f32.mrb[19].mxu0 }
 0x113   : > { %v960_v21 = vadd.f32 %v1125_v14, %v950_v17  ;;  %v951_v22 = vadd.f32 %v939_v20, %v870_v12 }
 0x114   : > { %v965_v23 = vmax.f32 %v962_v19, 0.0 }
 0x115   : > { %v961_v24 = vadd.f32 %v1125_v14, %v951_v22  ;;  %v963_v26 = vmax.f32 %v960_v21, 0.0 }
 0x116   : > { %v1133_v25 = vpack.c.bf16 %v965_v23, %v965_v23 }
 0x117   : > { %v964_v27 = vmax.f32 %v961_v24, 0.0 }
 0x118   : > { %981 = vst [vmem:[%s170_s7 + $0x8] sm:$0xf] %v1133_v25 }
 0x119   : > { %v1137_v28 = vpack.c.bf16 %v964_v27, %v963_v26 }
 0x11b   : > { %1138 = vst [vmem:[%s170_s7] sm:$0xff] %v1137_v28  }
 0x11c PF: > { %s13_s12 = sadd.s32 1, %s1294_s12  }
 0x11d   : > { %p10_p4 = scmp.ge.s32.totalorder %s13_s12, 4  }
 0x11f   :  { %12 = sbr.rel (!%p10_p4) target bundleno = 1 (0x1), region = 70 }

// kernel: _lambda_.38
= control target key start
LH: loop header
LB: loop body
LE: loop exit
PB: predicated region body
PF: predicated region fallthrough
CT: control target
= control target key end

     0   :  { %s382_s12 = smov 0   ;;  %s414_s0 = inlined_call_operand.vmem [shape: bf16[16,64], index: 0, kind: input, shape index: {}]   ;;  %s415_s1 = inlined_call_operand.vmem [shape: bf16[64,128], index: 1, kind: input, shape index: {}]   ;;  %s416_s2 = inlined_call_operand.vmem [shape: f32[1,128], index: 2, kind: input, shape index: {}]   ;;  %s417_s3 = inlined_call_operand.vmem [shape: bf16[16,128], index: 3, kind: output, shape index: {}]  }
   0x1 LB: > { %s306_s13 = sadd.s32 4294967295, %s358_s12   ;;  %p310_p0 = scmp.ge.s32.totalorder %s358_s12, 1  ;;  %s358_s12 = sphi %s382_s12, %s13_s12  }
   0x2   : > { %p136_p1 = scmp.lt.s32.totalorder %s358_s12, 3 }
   0x4   : > { %p137_p2 = pnand %p310_p0, %p136_p1 }
   0x5   : > { %v348_v0 = vld [vmem:[%s415_s1] sm:$0xff] (!%p137_p2)   ;;  %v360_v1 = vmov (!%p137_p2), 0.0   ;;  %v349_v2 = vld [vmem:[%s415_s1 + $0x8] sm:$0xff] (!%p137_p2)   ;;  %vm361_vm0 = vmmov (!%p137_p2), 0   ;;  %p158_p3 = scmp.lt.s32.totalorder (!%p137_p2), %s306_s13, 1  ;;  %v350_v3 = vld [vmem:[%s415_s1 + $0x10] sm:$0xff] (!%p137_p2)  }
   0x6   : > { %140 = sbr.rel (%p137_p2) target bundleno = 239 (0xef), region = 32  ;;  %326 = vmatprep.subr.bf16.mxu0 (!%p137_p2), %v360_v1  ;;  %334 = vmatprep.mubr.msk.bf16.mxu0 (!%p137_p2), %vm361_vm0, %v360_v1  ;;  %v351_v4 = vld [vmem:[%s415_s1 + $0x18] sm:$0xff] (!%p137_p2)   ;;  %vm207_vm1 = vcmask (!%p137_p2), 523264   ;;  %v313_v6 = vld [vmem:[%s416_s2] ss:$0 sm:$0xff] (!%p137_p2) }
   0x7   : > { %327 = vmatpush3.bf16.msra.mxu0 (!%p137_p2), %v348_v0 }
   0x8   : > { %328 = vmatprep.subr.bf16.mxu0 (!%p137_p2), %v360_v1 }
   0xb   : > { %329 = vmatpush3.bf16.msra.mxu0 (!%p137_p2), %v349_v2 }
   0xc   : > { %330 = vmatprep.subr.bf16.mxu0 (!%p137_p2), %v360_v1 }
   0xd   : > { %s419_s13 = smov (!%p158_p3, %s306_s13), 1 }
   0xe   : > { %s311_s20 = sshll.u32 %s419_s13, 2 }
   0xf   : > { %331 = vmatpush3.bf16.msra.mxu0 %v350_v3  ;;  %s161_s25 = scalar_lea.vmem %s414_s0, %s311_s20  ;;  %s165_s30 = scalar_lea.vmem %s417_s3, %s311_s20 }
  0x10   : > { %332 = vmatprep.subr.bf16.mxu0 %v360_v1  ;;  %v167_v5 = vld [vmem:[%s161_s25] sm:$0xf] }
  0x13   : > { %333 = vmatpush3.bf16.msra.mxu0 %v351_v4 }
  0x16   : > { %335 = vmatmul.mubr.msk.bf16.vlgmr.msra.gmra.mrb[0].mxu0 %vm207_vm1, %v167_v5 }
  0xe9   : > { %v245_v7 = vpop.f32.mrb[0].mxu0 }
  0xea   : > { %v246_v8 = vadd.f32 %v313_v6, %v245_v7  ;;  %v336_v9 = vpop.f32.mrb[1].mxu0 }
  0xeb   : > { %v248_v10 = vpop.f32.mrb[2].mxu0 }
  0xec   : > { %v251_v11 = vpack.c.bf16 %v246_v8, %v246_v8  ;;  %v337_v12 = vpop.f32.mrb[3].mxu0 }
  0xee   : > { %252 = vst [vmem:[%s165_s30] sm:$0xf] %v251_v11 }
  0xef PF: > { %s13_s12 = sadd.s32 1, %s358_s12  }
  0xf0   : > { %p10_p4 = scmp.ge.s32.totalorder %s13_s12, 4  }
  0xf2   :  { %12 = sbr.rel (!%p10_p4) target bundleno = 1 (0x1), region = 62 }

// kernel: _lambda_.35
= control target key start
LH: loop header
LB: loop body
LE: loop exit
PB: predicated region body
PF: predicated region fallthrough
CT: control target
= control target key end

     0   :  { %s1416_s15 = smov 0   ;;  %s1627_s0 = inlined_call_operand.vmem [shape: bf16[2,20,64], index: 0, kind: input, shape index: {}]   ;;  %s1628_s1 = inlined_call_operand.vmem [shape: bf16[9,64,128], index: 1, kind: input, shape index: {}]   ;;  %s1629_s2 = inlined_call_operand.vmem [shape: f32[1,128], index: 2, kind: input, shape index: {}]   ;;  %s1630_s3 = inlined_call_operand.vmem [shape: bf16[2,8,128], index: 3, kind: input, shape index: {}]   ;;  %s1631_s4 = inlined_call_operand.vmem [shape: bf16[2,8,128], index: 4, kind: output, shape index: {}]  }
   0x1 LB: > { %s1047_s16 = sadd.s32 4294967295, %s1387_s15   ;;  %p1051_p0 = scmp.ge.s32.totalorder %s1387_s15, 1  ;;  %s1387_s15 = sphi %s1416_s15, %s14_s15  }
   0x2   : > { %p171_p1 = scmp.lt.s32.totalorder %s1387_s15, 3 }
   0x4   : > { %p172_p2 = pnand %p1051_p0, %p171_p1 }
   0x5   : > { %v1338_v0 = vld [vmem:[%s1628_s1 + $0x20] sm:$0xff] (!%p172_p2)   ;;  %v1389_v1 = vmov (!%p172_p2), 0.0   ;;  %v1340_v3 = vld [vmem:[%s1628_s1 + $0x28] sm:$0xff] (!%p172_p2)   ;;  %vm1390_vm0 = vmmov (!%p172_p2), 0   ;;  %p200_p3 = scmp.lt.s32.totalorder (!%p172_p2), %s1047_s16, 1  ;;  %v1342_v5 = vld [vmem:[%s1628_s1 + $0x30] sm:$0xff] (!%p172_p2)  }
   0x6   : > { %175 = sbr.rel (%p172_p2) target bundleno = 311 (0x137), region = 36  ;;  %1219 = vmatprep.subr.bf16.mxu0 (!%p172_p2), %v1389_v1  ;;  %1231 = vmatprep.subr.bf16.mxu1 (!%p172_p2), %v1389_v1  ;;  %v1339_v2 = vld [vmem:[%s1628_s1] sm:$0xff] (!%p172_p2)   ;;  %v1341_v4 = vld [vmem:[%s1628_s1 + $0x8] sm:$0xff] (!%p172_p2)   ;;  %v1343_v6 = vld [vmem:[%s1628_s1 + $0x10] sm:$0xff] (!%p172_p2)   ;;  %vm269_vm1 = vcmask (!%p172_p2), 523264  }
   0x7   : > { %1220 = vmatpush3.bf16.msra.mxu0 (!%p172_p2), %v1338_v0  ;;  %1227 = vmatprep.mubr.msk.bf16.mxu0 (!%p172_p2), %vm1390_vm0, %v1389_v1  ;;  %v1344_v9 = vld [vmem:[%s1628_s1 + $0x38] sm:$0xff] (!%p172_p2)   ;;  %v1347_v15 = vld [vmem:[%s1628_s1 + $0x40] sm:$0xff] (!%p172_p2)   ;;  %v1349_v18 = vld [vmem:[%s1628_s1 + $0x48] sm:$0xff] (!%p172_p2)  }
   0x8   : > { %1232 = vmatpush3.bf16.msra.mxu1 (!%p172_p2), %v1339_v2  ;;  %1221 = vmatprep.subr.bf16.mxu0 (!%p172_p2), %v1389_v1  ;;  %v1345_v11 = vld [vmem:[%s1628_s1 + $0x18] sm:$0xff] (!%p172_p2)   ;;  %v1348_v16 = vld [vmem:[%s1628_s1 + $0x60] sm:$0xff] (!%p172_p2)   ;;  %v1350_v19 = vld [vmem:[%s1628_s1 + $0x68] sm:$0xff] (!%p172_p2)  }
   0x9   : > { %1233 = vmatprep.subr.bf16.mxu1 (!%p172_p2), %v1389_v1  ;;  %1239 = vmatprep.mubr.msk.bf16.mxu1 (!%p172_p2), %vm1390_vm0, %v1389_v1  ;;  %v1351_v20 = vld [vmem:[%s1628_s1 + $0x50] sm:$0xff] (!%p172_p2)   ;;  %v1353_v25 = vld [vmem:[%s1628_s1 + $0x58] sm:$0xff] (!%p172_p2)   ;;  %v1356_v29 = vld [vmem:[%s1628_s1 + $0x80] sm:$0xff] (!%p172_p2)  }
   0xa   : > { %v1352_v21 = vld [vmem:[%s1628_s1 + $0x70] sm:$0xff] (!%p172_p2)   ;;  %v1354_v28 = vld [vmem:[%s1628_s1 + $0x78] sm:$0xff] (!%p172_p2)   ;;  %v1359_v33 = vld [vmem:[%s1628_s1 + $0xa0] sm:$0xff] (!%p172_p2)  }
   0xb   : > { %1222 = vmatpush3.bf16.msra.mxu0 (!%p172_p2), %v1340_v3  ;;  %v1360_v35 = vld [vmem:[%s1628_s1 + $0x88] sm:$0xff] (!%p172_p2)   ;;  %v1362_v39 = vld [vmem:[%s1628_s1 + $0x90] sm:$0xff] (!%p172_p2)   ;;  %v1364_v45 = vld [vmem:[%s1628_s1 + $0x98] sm:$0xff] (!%p172_p2)  }
   0xc   : > { %1234 = vmatpush3.bf16.msra.mxu1 (!%p172_p2), %v1341_v4  ;;  %1223 = vmatprep.subr.bf16.mxu0 (!%p172_p2), %v1389_v1  ;;  %v1361_v36 = vld [vmem:[%s1628_s1 + $0xa8] sm:$0xff] (!%p172_p2)   ;;  %v1363_v40 = vld [vmem:[%s1628_s1 + $0xb0] sm:$0xff] (!%p172_p2)   ;;  %v1365_v46 = vld [vmem:[%s1628_s1 + $0xb8] sm:$0xff] (!%p172_p2)  }
   0xd   : > { %s1633_s16 = smov (!%p200_p3, %s1047_s16), 1  ;;  %1235 = vmatprep.subr.bf16.mxu1 %v1389_v1  ;;  %v1366_v48 = vld [vmem:[%s1628_s1 + $0xc0] sm:$0xff]   ;;  %v1369_v54 = vld [vmem:[%s1628_s1 + $0xc8] sm:$0xff]   ;;  %v1371_v57 = vld [vmem:[%s1628_s1 + $0xd0] sm:$0xff]  }
   0xe   : > { %s1327_s27 = smul.u32 12, %s1633_s16  ;;  %v1368_v50 = vld [vmem:[%s1628_s1 + $0xe0] sm:$0xff]   ;;  %v1370_v55 = vld [vmem:[%s1628_s1 + $0xe8] sm:$0xff]   ;;  %v1372_v58 = vld [vmem:[%s1628_s1 + $0xf0] sm:$0xff]  }
   0xf   : > { %1224 = vmatpush3.bf16.msra.mxu0 %v1342_v5  ;;  %v1373_v61 = vld [vmem:[%s1628_s1 + $0xd8] sm:$0xff]   ;;  %v1375_v2 = vld [vmem:[%s1628_s1 + $0x100] sm:$0xff]   ;;  %v1377_v3 = vld [vmem:[%s1628_s1 + $0x108] sm:$0xff]  }
  0x10   : > { %s1458_s6 = scalar_lea.vmem %s1627_s0, %s1327_s27  ;;  %1236 = vmatpush3.bf16.msra.mxu1 %v1343_v6  ;;  %1225 = vmatprep.subr.bf16.mxu0 %v1389_v1  ;;  %v1374_v62 = vld [vmem:[%s1628_s1 + $0xf8] sm:$0xff]   ;;  %v1378_v4 = vld [vmem:[%s1628_s1 + $0x110] sm:$0xff]  }
  0x11   : > { %v214_v7 = vld [vmem:[%s1458_s6] sm:$0xf]  ;;  %v223_v8 = vld [vmem:[%s1458_s6 + $0x4] sm:$0x1]  ;;  %1237 = vmatprep.subr.bf16.mxu1 %v1389_v1  ;;  %v797_v52 = vld [vmem:[%s1458_s6 + $0x8] sm:$0x1] }
  0x12   : > { %v1063_v10 = vcombine.low %v214_v7, %v223_v8  ;;  %v380_v22 = vld [vmem:[%s1458_s6] sm:$0xe]  ;;  %v463_v24 = vld [vmem:[%s1458_s6 + $0x4] sm:$0x3] }
  0x13   : > { %1226 = vmatpush3.bf16.msra.mxu0 %v1344_v9  ;;  %v462_v23 = vld [vmem:[%s1458_s6] sm:$0xc]  ;;  %v1082_v26 = vcombine.low %v380_v22, %v223_v8  ;;  %v547_v30 = vld [vmem:[%s1458_s6 + $0x4] sm:$0x7] }
  0x14   : > { %v239_v12 = vshrl.u32 %v1063_v10, 16  ;;  %v241_v13 = vshll.u32 %v1063_v10, 16  ;;  %1238 = vmatpush3.bf16.msra.mxu1 %v1345_v11  ;;  %1243 = vmatprep.subr.bf16.mxu0 %v1389_v1  ;;  %v1096_v27 = vcombine.low %v462_v23, %v463_v24  ;;  %v1110_v34 = vcombine.low %v462_v23, %v547_v30  ;;  %v636_v41 = vld [vmem:[%s1458_s6] sm:$0x8]  ;;  %v796_v51 = vld [vmem:[%s1458_s6 + $0x4] sm:$0xf] }
  0x15   : > { %1255 = vmatprep.subr.bf16.mxu1 %v1389_v1  ;;  %v393_v31 = vrot.slane %v1082_v26, 1  ;;  %v1124_v44 = vcombine.low %v636_v41, %v547_v30  ;;  %v1151_v53 = vcombine.low %v796_v51, %v797_v52  ;;  %v718_v0 = vld [vmem:[%s1458_s6 + $0x4] sm:$0xf] }
  0x16   : > { %v243_v14 = vrot.slane %v241_v13, 1  ;;  %v478_v32 = vrot.slane %v1096_v27, 2  ;;  %v561_v37 = vshrl.u32 %v1110_v34, 16  ;;  %v564_v38 = vshll.u32 %v1110_v34, 16  ;;  %v887_v5 = vld [vmem:[%s1458_s6 + $0x4] sm:$0xe] }
  0x17   : > { %1240 = vmatmul.mubr.msk.bf16.vlgmr.msra.gmra.mrb[0].mxu1 %vm269_vm1, %v214_v7  ;;  %v649_v49 = vrot.slane %v1124_v44, 3  ;;  %v815_v56 = vshll.u32 %v1151_v53, 16  ;;  %v813_v59 = vshrl.u32 %v1151_v53, 16  ;;  %v1165_v6 = vcombine.low %v887_v5, %v797_v52  ;;  %v1379_v7 = vld [vmem:[%s1628_s1 + $0x118] sm:$0xff]   ;;  %s1053_s6 = sshll.u32 %s1633_s16, 2 }
  0x18   : > { %v244_v17 = vor.u32 %v243_v14, %v239_v12  ;;  %1256 = vmatpush3.bf16.msra.mxu1 %v1348_v16  ;;  %1263 = vmatprep.mubr.msk.bf16.mxu1 %vm1390_vm0, %v1389_v1  ;;  %v563_v42 = vrot.slane %v561_v37, 2  ;;  %v566_v43 = vrot.slane %v564_v38, 3  ;;  %s208_s25 = scalar_lea.vmem %s1630_s3, %s1053_s6  ;;  %s212_s16 = scalar_lea.vmem %s1631_s4, %s1053_s6 }
  0x19   : > { %1257 = vmatprep.subr.bf16.mxu1 %v1389_v1  ;;  %v817_v60 = vrot.slane %v815_v56, 1  ;;  %v900_v8 = vrot.slane %v1165_v6, 1 }
  0x1a   : > { %1228 = vmatmul.mubr.msk.bf16.vlgmr.msra.gmra.mrb[0].mxu0 %vm269_vm1, %v244_v17  ;;  %v567_v47 = vor.u32 %v566_v43, %v563_v42 }
  0x1b   : > { %1244 = vmatpush3.bf16.msra.mxu0 %v1347_v15  ;;  %1251 = vmatprep.mubr.msk.bf16.mxu0 %vm1390_vm0, %v1389_v1  ;;  %v818_v63 = vor.u32 %v817_v60, %v813_v59 }
  0x1c   : > { %1245 = vmatprep.subr.bf16.mxu0 %v1389_v1  ;;  %1258 = vmatpush3.bf16.msra.mxu1 %v1350_v19 }
  0x1d   : > { %1259 = vmatprep.subr.bf16.mxu1 %v1389_v1 }
  0x1f   : > { %1246 = vmatpush3.bf16.msra.mxu0 %v1349_v18 }
  0x20   : > { %1247 = vmatprep.subr.bf16.mxu0 %v1389_v1  ;;  %1260 = vmatpush3.bf16.msra.mxu1 %v1352_v21 }
  0x21   : > { %1261 = vmatprep.subr.bf16.mxu1 %v1389_v1 }
  0x23   : > { %1248 = vmatpush3.bf16.msra.mxu0 %v1351_v20 }
  0x24   : > { %1249 = vmatprep.subr.bf16.mxu0 %v1389_v1  ;;  %1262 = vmatpush3.bf16.msra.mxu1 %v1354_v28 }
  0x25   : > { %1279 = vmatprep.subr.bf16.mxu1 %v1389_v1 }
  0x27   : > { %1250 = vmatpush3.bf16.msra.mxu0 %v1353_v25  ;;  %1264 = vmatmul.mubr.msk.bf16.vlgmr.msra.gmra.mrb[4].mxu1 %vm269_vm1, %v478_v32 }
  0x28   : > { %1267 = vmatprep.subr.bf16.mxu0 %v1389_v1  ;;  %1280 = vmatpush3.bf16.msra.mxu1 %v1359_v33 }
  0x29   : > { %1281 = vmatprep.subr.bf16.mxu1 %v1389_v1  ;;  %1287 = vmatprep.mubr.msk.bf16.mxu1 %vm1390_vm0, %v1389_v1 }
  0x2a   : > { %1252 = vmatmul.mubr.msk.bf16.vlgmr.msra.gmra.mrb[4].mxu0 %vm269_vm1, %v393_v31 }
  0x2b   : > { %1268 = vmatpush3.bf16.msra.mxu0 %v1356_v29  ;;  %1275 = vmatprep.mubr.msk.bf16.mxu0 %vm1390_vm0, %v1389_v1 }
  0x2c   : > { %1269 = vmatprep.subr.bf16.mxu0 %v1389_v1  ;;  %1282 = vmatpush3.bf16.msra.mxu1 %v1361_v36 }
  0x2d   : > { %1283 = vmatprep.subr.bf16.mxu1 %v1389_v1 }
  0x2f   : > { %1270 = vmatpush3.bf16.msra.mxu0 %v1360_v35 }
  0x30   : > { %1271 = vmatprep.subr.bf16.mxu0 %v1389_v1  ;;  %1284 = vmatpush3.bf16.msra.mxu1 %v1363_v40 }
  0x31   : > { %1285 = vmatprep.subr.bf16.mxu1 %v1389_v1 }
  0x33   : > { %1272 = vmatpush3.bf16.msra.mxu0 %v1362_v39 }
  0x34   : > { %1273 = vmatprep.subr.bf16.mxu0 %v1389_v1  ;;  %1286 = vmatpush3.bf16.msra.mxu1 %v1365_v46 }
  0x35   : > { %1303 = vmatprep.subr.bf16.mxu1 %v1389_v1 }
  0x37   : > { %1274 = vmatpush3.bf16.msra.mxu0 %v1364_v45  ;;  %1288 = vmatmul.mubr.msk.bf16.vlgmr.msra.gmra.mrb[8].mxu1 %vm269_vm1, %v649_v49  ;;  %v1171_v49 = vld [vmem:[%s1629_s2] ss:$0 sm:$0xff] }
  0x38   : > { %1291 = vmatprep.subr.bf16.mxu0 %v1389_v1  ;;  %1304 = vmatpush3.bf16.msra.mxu1 %v1368_v50 }
  0x39   : > { %1305 = vmatprep.subr.bf16.mxu1 %v1389_v1  ;;  %1311 = vmatprep.mubr.msk.bf16.mxu1 %vm1390_vm0, %v1389_v1 }
  0x3a   : > { %1276 = vmatmul.mubr.msk.bf16.vlgmr.msra.gmra.mrb[8].mxu0 %vm269_vm1, %v567_v47  ;;  %v977_v47 = vld [vmem:[%s208_s25] sm:$0xf] }
  0x3b   : > { %1292 = vmatpush3.bf16.msra.mxu0 %v1366_v48  ;;  %1299 = vmatprep.mubr.msk.bf16.mxu0 %vm1390_vm0, %v1389_v1  ;;  %v978_v51 = vunpack.c.l.bf16 %v977_v47 }
  0x3c   : > { %1293 = vmatprep.subr.bf16.mxu0 %v1389_v1  ;;  %1306 = vmatpush3.bf16.msra.mxu1 %v1370_v55 }
  0x3d   : > { %1307 = vmatprep.subr.bf16.mxu1 %v1389_v1 }
  0x3f   : > { %1294 = vmatpush3.bf16.msra.mxu0 %v1369_v54 }
  0x40   : > { %1295 = vmatprep.subr.bf16.mxu0 %v1389_v1  ;;  %1308 = vmatpush3.bf16.msra.mxu1 %v1372_v58 }
  0x41   : > { %1309 = vmatprep.subr.bf16.mxu1 %v1389_v1 }
  0x43   : > { %1296 = vmatpush3.bf16.msra.mxu0 %v1371_v57 }
  0x44   : > { %1297 = vmatprep.subr.bf16.mxu0 %v1389_v1  ;;  %1310 = vmatpush3.bf16.msra.mxu1 %v1374_v62 }
  0x47   : > { %1298 = vmatpush3.bf16.msra.mxu0 %v1373_v61  ;;  %1312 = vmatmul.mubr.msk.bf16.vlgmr.msra.gmra.mrb[12].mxu1 %vm269_vm1, %v818_v63 }
  0x48   : > { %1315 = vmatprep.subr.bf16.mxu0 %v1389_v1 }
  0x4a   : > { %1300 = vmatmul.mubr.msk.bf16.vlgmr.msra.gmra.mrb[12].mxu0 %vm269_vm1, %v718_v0 }
  0x4b   : > { %1316 = vmatpush3.bf16.msra.mxu0 %v1375_v2  ;;  %1323 = vmatprep.mubr.msk.bf16.mxu0 %vm1390_vm0, %v1389_v1 }
  0x4c   : > { %1317 = vmatprep.subr.bf16.mxu0 %v1389_v1 }
  0x4f   : > { %1318 = vmatpush3.bf16.msra.mxu0 %v1377_v3 }
  0x50   : > { %1319 = vmatprep.subr.bf16.mxu0 %v1389_v1 }
  0x53   : > { %1320 = vmatpush3.bf16.msra.mxu0 %v1378_v4 }
  0x54   : > { %1321 = vmatprep.subr.bf16.mxu0 %v1389_v1 }
  0x57   : > { %1322 = vmatpush3.bf16.msra.mxu0 %v1379_v7 }
  0x5a   : > { %1324 = vmatmul.mubr.msk.bf16.vlgmr.msra.gmra.mrb[16].mxu0 %vm269_vm1, %v900_v8 }
  0xea   : > { %v374_v10 = vpop.f32.mrb[0].mxu1 }
  0xeb   : > { %v1241_v13 = vpop.f32.mrb[1].mxu1 }
  0xec   : > { %v377_v15 = vpop.f32.mrb[2].mxu1 }
  0xed   : > { %v307_v9 = vpop.f32.mrb[0].mxu0  ;;  %v1242_v17 = vpop.f32.mrb[3].mxu1 }
  0xee   : > { %v1229_v11 = vpop.f32.mrb[1].mxu0  ;;  %v375_v12 = vadd.f32 %v374_v10, %v307_v9 }
  0xef   : > { %v310_v14 = vpop.f32.mrb[2].mxu0 }
  0xf0   : > { %v1230_v16 = vpop.f32.mrb[3].mxu0 }
  0xfa   : > { %v540_v19 = vpop.f32.mrb[4].mxu1 }
  0xfb   : > { %v1265_v22 = vpop.f32.mrb[5].mxu1 }
  0xfc   : > { %v543_v1 = vpop.f32.mrb[6].mxu1 }
  0xfd   : > { %v455_v18 = vpop.f32.mrb[4].mxu0  ;;  %v1266_v26 = vpop.f32.mrb[7].mxu1 }
  0xfe   : > { %v461_v20 = vadd.f32 %v455_v18, %v375_v12  ;;  %v1253_v21 = vpop.f32.mrb[5].mxu0 }
  0xff   : > { %v458_v23 = vpop.f32.mrb[6].mxu0 }
 0x100   : > { %v546_v24 = vadd.f32 %v540_v19, %v461_v20  ;;  %v1254_v25 = vpop.f32.mrb[7].mxu0 }
 0x10a   : > { %v711_v28 = vpop.f32.mrb[8].mxu1 }
 0x10b   : > { %v1289_v31 = vpop.f32.mrb[9].mxu1 }
 0x10c   : > { %v714_v33 = vpop.f32.mrb[10].mxu1 }
 0x10d   : > { %v629_v27 = vpop.f32.mrb[8].mxu0  ;;  %v1290_v36 = vpop.f32.mrb[11].mxu1 }
 0x10e   : > { %v635_v29 = vadd.f32 %v629_v27, %v546_v24  ;;  %v1277_v30 = vpop.f32.mrb[9].mxu0 }
 0x10f   : > { %v632_v32 = vpop.f32.mrb[10].mxu0 }
 0x110   : > { %v717_v34 = vadd.f32 %v711_v28, %v635_v29  ;;  %v1278_v35 = vpop.f32.mrb[11].mxu0 }
 0x11a   : > { %v880_v38 = vpop.f32.mrb[12].mxu1 }
 0x11b   : > { %v1313_v41 = vpop.f32.mrb[13].mxu1 }
 0x11c   : > { %v883_v43 = vpop.f32.mrb[14].mxu1 }
 0x11d   : > { %v789_v37 = vpop.f32.mrb[12].mxu0  ;;  %v1314_v46 = vpop.f32.mrb[15].mxu1 }
 0x11e   : > { %v795_v39 = vadd.f32 %v789_v37, %v717_v34  ;;  %v1301_v40 = vpop.f32.mrb[13].mxu0 }
 0x11f   : > { %v792_v42 = vpop.f32.mrb[14].mxu0 }
 0x120   : > { %v886_v44 = vadd.f32 %v880_v38, %v795_v39  ;;  %v1302_v45 = vpop.f32.mrb[15].mxu0 }
 0x12d   : > { %v962_v48 = vpop.f32.mrb[16].mxu0 }
 0x12e   : > { %v968_v50 = vadd.f32 %v962_v48, %v886_v44  ;;  %v1325_v52 = vpop.f32.mrb[17].mxu0 }
 0x12f   : > { %v965_v53 = vpop.f32.mrb[18].mxu0 }
 0x130   : > { %v976_v54 = vadd.f32 %v1171_v49, %v968_v50  ;;  %v1326_v55 = vpop.f32.mrb[19].mxu0 }
 0x132   : > { %v979_v56 = vadd.f32 %v978_v51, %v976_v54 }
 0x134   : > { %v980_v57 = vpack.c.bf16 %v979_v56, %v979_v56 }
 0x136   : > { %981 = vst [vmem:[%s212_s16] sm:$0xf] %v980_v57 }
 0x137 PF: > { %s14_s15 = sadd.s32 1, %s1387_s15  }
 0x138   : > { %p11_p4 = scmp.ge.s32.totalorder %s14_s15, 4  }
 0x13a   :  { %13 = sbr.rel (!%p11_p4) target bundleno = 1 (0x1), region = 77 }

// kernel: _lambda_.34
= control target key start
LH: loop header
LB: loop body
LE: loop exit
PB: predicated region body
PF: predicated region fallthrough
CT: control target
= control target key end

     0   :  { %s1281_s21 = smov 0   ;;  %s1434_s0 = inlined_call_operand.vmem [shape: bf16[2,12,32], index: 0, kind: input, shape index: {}]   ;;  %s1435_s1 = inlined_call_operand.vmem [shape: bf16[2,12,32], index: 1, kind: input, shape index: {}]   ;;  %s1436_s2 = inlined_call_operand.vmem [shape: bf16[2,12,32], index: 2, kind: input, shape index: {}]   ;;  %s1437_s3 = inlined_call_operand.vmem [shape: bf16[2,12,32], index: 3, kind: input, shape index: {}]   ;;  %s1438_s4 = inlined_call_operand.vmem [shape: bf16[9,32,128], index: 4, kind: input, shape index: {}]   ;;  %s1439_s5 = inlined_call_operand.vmem [shape: f32[1,128], index: 5, kind: input, shape index: {}]   ;;  %s1440_s6 = inlined_call_operand.vmem [shape: bf16[2,6,128], index: 6, kind: output, shape index: {}]  }
   0x1 LB: > { %s1019_s22 = sadd.s32 4294967295, %s1242_s21   ;;  %p1023_p0 = scmp.ge.s32.totalorder %s1242_s21, 1  ;;  %s1242_s21 = sphi %s1281_s21, %s16_s21  }
   0x2   : > { %p242_p1 = scmp.lt.s32.totalorder %s1242_s21, 3 }
   0x4   : > { %p243_p2 = pnand %p1023_p0, %p242_p1 }
   0x5   : > { %v1213_v0 = vld [vmem:[%s1438_s4 + $0x10] sm:$0xff] (!%p243_p2)   ;;  %v1244_v1 = vmov (!%p243_p2), 0.0   ;;  %v1214_v2 = vld [vmem:[%s1438_s4] sm:$0xff] (!%p243_p2)   ;;  %v1215_v3 = vld [vmem:[%s1438_s4 + $0x18] sm:$0xff] (!%p243_p2)   ;;  %vm1245_vm0 = vmmov (!%p243_p2), 0   ;;  %p286_p3 = scmp.lt.s32.totalorder (!%p243_p2), %s1019_s22, 1 }
   0x6   : > { %246 = sbr.rel (%p243_p2) target bundleno = 270 (0x10e), region = 44  ;;  %1131 = vmatprep.subr.bf16.mxu0 (!%p243_p2), %v1244_v1  ;;  %1139 = vmatprep.subr.bf16.mxu1 (!%p243_p2), %v1244_v1  ;;  %v1216_v4 = vld [vmem:[%s1438_s4 + $0x8] sm:$0xff] (!%p243_p2)   ;;  %vm334_vm1 = vcmask (!%p243_p2), 261120   ;;  %v1218_v5 = vld [vmem:[%s1438_s4 + $0x20] sm:$0xff] (!%p243_p2)   ;;  %v1219_v6 = vld [vmem:[%s1438_s4 + $0x30] sm:$0xff] (!%p243_p2)  }
   0x7   : > { %1132 = vmatpush3.bf16.msra.mxu0 (!%p243_p2), %v1213_v0  ;;  %1135 = vmatprep.mubr.msk.bf16.mxu0 (!%p243_p2), %vm1245_vm0, %v1244_v1  ;;  %v1220_v9 = vld [vmem:[%s1438_s4 + $0x28] sm:$0xff] (!%p243_p2)   ;;  %v1221_v11 = vld [vmem:[%s1438_s4 + $0x38] sm:$0xff] (!%p243_p2)   ;;  %v1223_v19 = vld [vmem:[%s1438_s4 + $0x40] sm:$0xff] (!%p243_p2)  }
   0x8   : > { %1140 = vmatpush3.bf16.msra.mxu1 (!%p243_p2), %v1214_v2  ;;  %1133 = vmatprep.subr.bf16.mxu0 (!%p243_p2), %v1244_v1  ;;  %v1225_v21 = vld [vmem:[%s1438_s4 + $0x50] sm:$0xff] (!%p243_p2)   ;;  %v1226_v26 = vld [vmem:[%s1438_s4 + $0x48] sm:$0xff] (!%p243_p2)   ;;  %v1227_v28 = vld [vmem:[%s1438_s4 + $0x58] sm:$0xff] (!%p243_p2)  }
   0x9   : > { %1141 = vmatprep.subr.bf16.mxu1 (!%p243_p2), %v1244_v1  ;;  %1143 = vmatprep.mubr.msk.bf16.mxu1 (!%p243_p2), %vm1245_vm0, %v1244_v1  ;;  %v1228_v35 = vld [vmem:[%s1438_s4 + $0x60] sm:$0xff] (!%p243_p2)   ;;  %v1229_v36 = vld [vmem:[%s1438_s4 + $0x70] sm:$0xff] (!%p243_p2)   ;;  %v1230_v41 = vld [vmem:[%s1438_s4 + $0x68] sm:$0xff] (!%p243_p2)  }
   0xa   : > { %v1231_v42 = vld [vmem:[%s1438_s4 + $0x78] sm:$0xff] (!%p243_p2)   ;;  %v1233_v45 = vld [vmem:[%s1438_s4 + $0x80] sm:$0xff] (!%p243_p2)   ;;  %v1234_v48 = vld [vmem:[%s1438_s4 + $0x88] sm:$0xff] (!%p243_p2)  }
   0xb   : > { %1134 = vmatpush3.bf16.msra.mxu0 (!%p243_p2), %v1215_v3 }
   0xc   : > { %1142 = vmatpush3.bf16.msra.mxu1 (!%p243_p2), %v1216_v4  ;;  %1147 = vmatprep.subr.bf16.mxu0 (!%p243_p2), %v1244_v1 }
   0xd   : > { %s1442_s22 = smov (!%p286_p3, %s1019_s22), 1  ;;  %1155 = vmatprep.subr.bf16.mxu1 %v1244_v1 }
   0xe   : > { %s1312_s7 = sshll.u32 %s1442_s22, 3  ;;  %s1032_s30 = sshll.u32 %s1442_s22, 2 }
   0xf   : > { %s1321_s12 = scalar_lea.vmem %s1435_s1, %s1312_s7  ;;  %s1328_s15 = scalar_lea.vmem %s1434_s0, %s1312_s7 }
  0x10   : > { %v316_v7 = vld [vmem:[%s1321_s12] sm:$0x7]  ;;  %s300_s24 = scalar_lea.vmem %s1436_s2, %s1312_s7  ;;  %v1355_v15 = vld [vmem:[%s1328_s15 + $0x4] sm:$0x1]  ;;  %s305_s14 = scalar_lea.vmem %s1437_s3, %s1312_s7 }
  0x11   : > { %1136 = vmatmul.mubr.msk.bf16.vlgmr.msra.gmra.mrb[0].mxu0 %vm334_vm1, %v316_v7  ;;  %v311_v8 = vld [vmem:[%s1328_s15] sm:$0x7]  ;;  %s309_s10 = scalar_lea.vmem %s1440_s6, %s1032_s30 }
  0x12   : > { %1144 = vmatmul.mubr.msk.bf16.vlgmr.msra.gmra.mrb[0].mxu1 %vm334_vm1, %v311_v8  ;;  %1148 = vmatpush3.bf16.msra.mxu0 %v1218_v5  ;;  %v1222_v10 = vld [vmem:[%s1328_s15] ss:$0 sps:$4 sm:$0xff]   ;;  %v701_v14 = vld [vmem:[%s1328_s15] sm:$0xe] }
  0x13   : > { %1156 = vmatpush3.bf16.msra.mxu1 %v1219_v6  ;;  %1149 = vmatprep.subr.bf16.mxu0 %v1244_v1  ;;  %v443_v12 = vshrl.u32 %v1222_v10, 16  ;;  %v445_v13 = vshll.u32 %v1222_v10, 16  ;;  %v505_v16 = vld [vmem:[%s300_s24] sm:$0x7]  ;;  %v1077_v27 = vcombine.low %v701_v14, %v1355_v15 }
  0x14   : > { %1157 = vmatprep.subr.bf16.mxu1 %v1244_v1  ;;  %1151 = vmatprep.mubr.msk.bf16.mxu0 %vm1245_vm0, %v1244_v1  ;;  %v1224_v17 = vld [vmem:[%s300_s24] ss:$0 sps:$4 sm:$0xff]   ;;  %v1217_v22 = vld [vmem:[%s1321_s12] sm:$0x1e]  }
  0x15   : > { %1159 = vmatprep.mubr.msk.bf16.mxu1 %vm1245_vm0, %v1244_v1  ;;  %v447_v18 = vrot.slane %v445_v13, 1  ;;  %v641_v20 = vshll.u32 %v1224_v17, 16  ;;  %v639_v24 = vshrl.u32 %v1224_v17, 16  ;;  %v790_v29 = vshrl.u32 %v1217_v22, 16  ;;  %v567_v34 = vld [vmem:[%s305_s14] sm:$0x7] }
  0x16   : > { %1150 = vmatpush3.bf16.msra.mxu0 %v1220_v9  ;;  %v793_v30 = vshll.u32 %v1217_v22, 16  ;;  %v714_v32 = vshrl.u32 %v1077_v27, 16  ;;  %v717_v33 = vshll.u32 %v1077_v27, 16  ;;  %v853_v46 = vld [vmem:[%s1328_s15] sm:$0xc] }
  0x17   : > { %1158 = vmatpush3.bf16.msra.mxu1 %v1221_v11  ;;  %1163 = vmatprep.subr.bf16.mxu0 %v1244_v1  ;;  %v448_v23 = vor.u32 %v447_v18, %v443_v12  ;;  %v643_v25 = vrot.slane %v641_v20, 1  ;;  %v792_v37 = vrot.slane %v790_v29, 1  ;;  %v1093_v47 = vcombine.low %v853_v46, %v1355_v15 }
  0x18   : > { %1171 = vmatprep.subr.bf16.mxu1 %v1244_v1  ;;  %v795_v38 = vrot.slane %v793_v30, 2  ;;  %v716_v39 = vrot.slane %v714_v32, 1  ;;  %v719_v40 = vrot.slane %v717_v33, 2 }
  0x19   : > { %1152 = vmatmul.mubr.msk.bf16.vlgmr.msra.gmra.mrb[4].mxu0 %vm334_vm1, %v448_v23  ;;  %v644_v31 = vor.u32 %v643_v25, %v639_v24  ;;  %v862_v49 = vrot.slane %v1093_v47, 2 }
  0x1a   : > { %1160 = vmatmul.mubr.msk.bf16.vlgmr.msra.gmra.mrb[4].mxu1 %vm334_vm1, %v505_v16  ;;  %1164 = vmatpush3.bf16.msra.mxu0 %v1223_v19  ;;  %v720_v43 = vor.u32 %v719_v40, %v716_v39  ;;  %v796_v44 = vor.u32 %v795_v38, %v792_v37 }
  0x1b   : > { %1172 = vmatpush3.bf16.msra.mxu1 %v1225_v21  ;;  %1165 = vmatprep.subr.bf16.mxu0 %v1244_v1 }
  0x1c   : > { %1173 = vmatprep.subr.bf16.mxu1 %v1244_v1  ;;  %1167 = vmatprep.mubr.msk.bf16.mxu0 %vm1245_vm0, %v1244_v1 }
  0x1d   : > { %1175 = vmatprep.mubr.msk.bf16.mxu1 %vm1245_vm0, %v1244_v1 }
  0x1e   : > { %1166 = vmatpush3.bf16.msra.mxu0 %v1226_v26  ;;  %v1097_v26 = vld [vmem:[%s1439_s5] ss:$0 sm:$0xff] }
  0x1f   : > { %1174 = vmatpush3.bf16.msra.mxu1 %v1227_v28  ;;  %1179 = vmatprep.subr.bf16.mxu0 %v1244_v1 }
  0x20   : > { %1187 = vmatprep.subr.bf16.mxu1 %v1244_v1 }
  0x21   : > { %1168 = vmatmul.mubr.msk.bf16.vlgmr.msra.gmra.mrb[8].mxu0 %vm334_vm1, %v567_v34 }
  0x22   : > { %1176 = vmatmul.mubr.msk.bf16.vlgmr.msra.gmra.mrb[8].mxu1 %vm334_vm1, %v644_v31  ;;  %1180 = vmatpush3.bf16.msra.mxu0 %v1228_v35 }
  0x23   : > { %1188 = vmatpush3.bf16.msra.mxu1 %v1229_v36  ;;  %1181 = vmatprep.subr.bf16.mxu0 %v1244_v1 }
  0x24   : > { %1189 = vmatprep.subr.bf16.mxu1 %v1244_v1  ;;  %1183 = vmatprep.mubr.msk.bf16.mxu0 %vm1245_vm0, %v1244_v1 }
  0x25   : > { %1191 = vmatprep.mubr.msk.bf16.mxu1 %vm1245_vm0, %v1244_v1 }
  0x26   : > { %1182 = vmatpush3.bf16.msra.mxu0 %v1230_v41 }
  0x27   : > { %1190 = vmatpush3.bf16.msra.mxu1 %v1231_v42  ;;  %1195 = vmatprep.subr.bf16.mxu0 %v1244_v1 }
  0x29   : > { %1184 = vmatmul.mubr.msk.bf16.vlgmr.msra.gmra.mrb[12].mxu0 %vm334_vm1, %v720_v43 }
  0x2a   : > { %1192 = vmatmul.mubr.msk.bf16.vlgmr.msra.gmra.mrb[12].mxu1 %vm334_vm1, %v796_v44  ;;  %1196 = vmatpush3.bf16.msra.mxu0 %v1233_v45 }
  0x2b   : > { %1199 = vmatprep.mubr.msk.bf16.mxu0 %vm1245_vm0, %v1244_v1  ;;  %1197 = vmatprep.subr.bf16.mxu0 %v1244_v1 }
  0x2e   : > { %1198 = vmatpush3.bf16.msra.mxu0 %v1234_v48 }
  0x31   : > { %1200 = vmatmul.mubr.msk.bf16.vlgmr.msra.gmra.mrb[16].mxu0 %vm334_vm1, %v862_v49 }
  0xe4   : > { %v372_v50 = vpop.f32.mrb[0].mxu0 }
  0xe5   : > { %v1137_v51 = vpop.f32.mrb[1].mxu0  ;;  %v427_v52 = vpop.f32.mrb[0].mxu1 }
  0xe6   : > { %v428_v53 = vadd.f32 %v427_v52, %v372_v50  ;;  %v375_v54 = vpop.f32.mrb[2].mxu0  ;;  %v1145_v55 = vpop.f32.mrb[1].mxu1 }
  0xe7   : > { %v1138_v56 = vpop.f32.mrb[3].mxu0  ;;  %v430_v57 = vpop.f32.mrb[2].mxu1 }
  0xe8   : > { %v1146_v58 = vpop.f32.mrb[3].mxu1 }
  0xec   : > { %v498_v59 = vpop.f32.mrb[4].mxu0 }
  0xed   : > { %v560_v60 = vpop.f32.mrb[4].mxu1  ;;  %v504_v61 = vadd.f32 %v498_v59, %v428_v53  ;;  %v1153_v62 = vpop.f32.mrb[5].mxu0 }
  0xee   : > { %v1161_v63 = vpop.f32.mrb[5].mxu1  ;;  %v501_v0 = vpop.f32.mrb[6].mxu0 }
  0xef   : > { %v563_v1 = vpop.f32.mrb[6].mxu1  ;;  %v566_v2 = vadd.f32 %v560_v60, %v504_v61  ;;  %v1154_v3 = vpop.f32.mrb[7].mxu0 }
  0xf0   : > { %v1162_v4 = vpop.f32.mrb[7].mxu1 }
  0xf4   : > { %v622_v5 = vpop.f32.mrb[8].mxu0 }
  0xf5   : > { %v694_v6 = vpop.f32.mrb[8].mxu1  ;;  %v628_v7 = vadd.f32 %v622_v5, %v566_v2  ;;  %v1169_v8 = vpop.f32.mrb[9].mxu0 }
  0xf6   : > { %v1177_v9 = vpop.f32.mrb[9].mxu1  ;;  %v625_v10 = vpop.f32.mrb[10].mxu0 }
  0xf7   : > { %v697_v11 = vpop.f32.mrb[10].mxu1  ;;  %v700_v12 = vadd.f32 %v694_v6, %v628_v7  ;;  %v1170_v13 = vpop.f32.mrb[11].mxu0 }
  0xf8   : > { %v1178_v14 = vpop.f32.mrb[11].mxu1 }
  0xfc   : > { %v770_v15 = vpop.f32.mrb[12].mxu0 }
  0xfd   : > { %v846_v16 = vpop.f32.mrb[12].mxu1  ;;  %v776_v17 = vadd.f32 %v770_v15, %v700_v12  ;;  %v1185_v18 = vpop.f32.mrb[13].mxu0 }
  0xfe   : > { %v1193_v19 = vpop.f32.mrb[13].mxu1  ;;  %v773_v20 = vpop.f32.mrb[14].mxu0 }
  0xff   : > { %v849_v21 = vpop.f32.mrb[14].mxu1  ;;  %v852_v22 = vadd.f32 %v846_v16, %v776_v17  ;;  %v1186_v23 = vpop.f32.mrb[15].mxu0 }
 0x100   : > { %v1194_v24 = vpop.f32.mrb[15].mxu1 }
 0x104   : > { %v912_v25 = vpop.f32.mrb[16].mxu0 }
 0x105   : > { %v918_v27 = vadd.f32 %v912_v25, %v852_v22  ;;  %v1201_v28 = vpop.f32.mrb[17].mxu0 }
 0x106   : > { %v915_v29 = vpop.f32.mrb[18].mxu0 }
 0x107   : > { %v926_v30 = vadd.f32 %v1097_v26, %v918_v27  ;;  %v1202_v31 = vpop.f32.mrb[19].mxu0 }
 0x109   : > { %v927_v32 = vmax.f32 %v926_v30, 0.0 }
 0x10b   : > { %v928_v33 = vpack.c.bf16 %v927_v32, %v927_v32 }
 0x10d   : > { %929 = vst [vmem:[%s309_s10] sm:$0x7] %v928_v33 }
 0x10e PF: > { %s16_s21 = sadd.s32 1, %s1242_s21  }
 0x10f   : > { %p13_p4 = scmp.ge.s32.totalorder %s16_s21, 4  }
 0x111   :  { %15 = sbr.rel (!%p13_p4) target bundleno = 1 (0x1), region = 91 }

// kernel: _lambda_.36
= control target key start
LH: loop header
LB: loop body
LE: loop exit
PB: predicated region body
PF: predicated region fallthrough
CT: control target
= control target key end

     0   :  { %s1352_s12 = smov 0   ;;  %s1560_s0 = inlined_call_operand.vmem [shape: bf16[2,20,64], index: 0, kind: input, shape index: {}]   ;;  %s1561_s1 = inlined_call_operand.vmem [shape: bf16[9,64,128], index: 1, kind: input, shape index: {}]   ;;  %s1562_s2 = inlined_call_operand.vmem [shape: f32[1,128], index: 2, kind: input, shape index: {}]   ;;  %s1563_s3 = inlined_call_operand.vmem [shape: bf16[2,8,128], index: 3, kind: output, shape index: {}]  }
   0x1 LB: > { %s989_s13 = sadd.s32 4294967295, %s1328_s12   ;;  %p993_p0 = scmp.ge.s32.totalorder %s1328_s12, 1  ;;  %s1328_s12 = sphi %s1352_s12, %s13_s12  }
   0x2   : > { %p137_p1 = scmp.lt.s32.totalorder %s1328_s12, 3 }
   0x4   : > { %p138_p2 = pnand %p993_p0, %p137_p1 }
   0x5   : > { %v1279_v0 = vld [vmem:[%s1561_s1 + $0x20] sm:$0xff] (!%p138_p2)   ;;  %v1330_v1 = vmov (!%p138_p2), 0.0   ;;  %v1281_v3 = vld [vmem:[%s1561_s1 + $0x28] sm:$0xff] (!%p138_p2)   ;;  %vm1331_vm0 = vmmov (!%p138_p2), 0   ;;  %p160_p3 = scmp.lt.s32.totalorder (!%p138_p2), %s989_s13, 1  ;;  %v1283_v5 = vld [vmem:[%s1561_s1 + $0x30] sm:$0xff] (!%p138_p2)  }
   0x6   : > { %141 = sbr.rel (%p138_p2) target bundleno = 311 (0x137), region = 32  ;;  %1160 = vmatprep.subr.bf16.mxu0 (!%p138_p2), %v1330_v1  ;;  %1172 = vmatprep.subr.bf16.mxu1 (!%p138_p2), %v1330_v1  ;;  %v1280_v2 = vld [vmem:[%s1561_s1] sm:$0xff] (!%p138_p2)   ;;  %v1282_v4 = vld [vmem:[%s1561_s1 + $0x8] sm:$0xff] (!%p138_p2)   ;;  %v1284_v6 = vld [vmem:[%s1561_s1 + $0x10] sm:$0xff] (!%p138_p2)   ;;  %vm225_vm1 = vcmask (!%p138_p2), 523264  }
   0x7   : > { %1161 = vmatpush3.bf16.msra.mxu0 (!%p138_p2), %v1279_v0  ;;  %1168 = vmatprep.mubr.msk.bf16.mxu0 (!%p138_p2), %vm1331_vm0, %v1330_v1  ;;  %v1285_v9 = vld [vmem:[%s1561_s1 + $0x38] sm:$0xff] (!%p138_p2)   ;;  %v1288_v15 = vld [vmem:[%s1561_s1 + $0x40] sm:$0xff] (!%p138_p2)   ;;  %v1290_v18 = vld [vmem:[%s1561_s1 + $0x48] sm:$0xff] (!%p138_p2)  }
   0x8   : > { %1173 = vmatpush3.bf16.msra.mxu1 (!%p138_p2), %v1280_v2  ;;  %1162 = vmatprep.subr.bf16.mxu0 (!%p138_p2), %v1330_v1  ;;  %v1286_v11 = vld [vmem:[%s1561_s1 + $0x18] sm:$0xff] (!%p138_p2)   ;;  %v1289_v16 = vld [vmem:[%s1561_s1 + $0x60] sm:$0xff] (!%p138_p2)   ;;  %v1291_v19 = vld [vmem:[%s1561_s1 + $0x68] sm:$0xff] (!%p138_p2)  }
   0x9   : > { %1174 = vmatprep.subr.bf16.mxu1 (!%p138_p2), %v1330_v1  ;;  %1180 = vmatprep.mubr.msk.bf16.mxu1 (!%p138_p2), %vm1331_vm0, %v1330_v1  ;;  %v1292_v20 = vld [vmem:[%s1561_s1 + $0x50] sm:$0xff] (!%p138_p2)   ;;  %v1294_v25 = vld [vmem:[%s1561_s1 + $0x58] sm:$0xff] (!%p138_p2)   ;;  %v1297_v29 = vld [vmem:[%s1561_s1 + $0x80] sm:$0xff] (!%p138_p2)  }
   0xa   : > { %v1293_v21 = vld [vmem:[%s1561_s1 + $0x70] sm:$0xff] (!%p138_p2)   ;;  %v1295_v28 = vld [vmem:[%s1561_s1 + $0x78] sm:$0xff] (!%p138_p2)   ;;  %v1300_v33 = vld [vmem:[%s1561_s1 + $0xa0] sm:$0xff] (!%p138_p2)  }
   0xb   : > { %1163 = vmatpush3.bf16.msra.mxu0 (!%p138_p2), %v1281_v3  ;;  %v1301_v35 = vld [vmem:[%s1561_s1 + $0x88] sm:$0xff] (!%p138_p2)   ;;  %v1303_v39 = vld [vmem:[%s1561_s1 + $0x90] sm:$0xff] (!%p138_p2)   ;;  %v1305_v45 = vld [vmem:[%s1561_s1 + $0x98] sm:$0xff] (!%p138_p2)  }
   0xc   : > { %1175 = vmatpush3.bf16.msra.mxu1 (!%p138_p2), %v1282_v4  ;;  %1164 = vmatprep.subr.bf16.mxu0 (!%p138_p2), %v1330_v1  ;;  %v1302_v36 = vld [vmem:[%s1561_s1 + $0xa8] sm:$0xff] (!%p138_p2)   ;;  %v1304_v40 = vld [vmem:[%s1561_s1 + $0xb0] sm:$0xff] (!%p138_p2)   ;;  %v1306_v46 = vld [vmem:[%s1561_s1 + $0xb8] sm:$0xff] (!%p138_p2)  }
   0xd   : > { %s1565_s13 = smov (!%p160_p3, %s989_s13), 1  ;;  %1176 = vmatprep.subr.bf16.mxu1 %v1330_v1  ;;  %v1307_v48 = vld [vmem:[%s1561_s1 + $0xc0] sm:$0xff]   ;;  %v1310_v54 = vld [vmem:[%s1561_s1 + $0xc8] sm:$0xff]   ;;  %v1312_v57 = vld [vmem:[%s1561_s1 + $0xd0] sm:$0xff]  }
   0xe   : > { %s1268_s24 = smul.u32 12, %s1565_s13  ;;  %v1309_v50 = vld [vmem:[%s1561_s1 + $0xe0] sm:$0xff]   ;;  %v1311_v55 = vld [vmem:[%s1561_s1 + $0xe8] sm:$0xff]   ;;  %v1313_v58 = vld [vmem:[%s1561_s1 + $0xf0] sm:$0xff]   ;;  %s995_s18 = sshll.u32 %s1565_s13, 2 }
   0xf   : > { %1165 = vmatpush3.bf16.msra.mxu0 %v1283_v5  ;;  %v1314_v61 = vld [vmem:[%s1561_s1 + $0xd8] sm:$0xff]   ;;  %v1316_v2 = vld [vmem:[%s1561_s1 + $0x100] sm:$0xff]   ;;  %v1318_v3 = vld [vmem:[%s1561_s1 + $0x108] sm:$0xff]   ;;  %s168_s21 = scalar_lea.vmem %s1563_s3, %s995_s18 }
  0x10   : > { %s1394_s29 = scalar_lea.vmem %s1560_s0, %s1268_s24  ;;  %1177 = vmatpush3.bf16.msra.mxu1 %v1284_v6  ;;  %1166 = vmatprep.subr.bf16.mxu0 %v1330_v1  ;;  %v1315_v62 = vld [vmem:[%s1561_s1 + $0xf8] sm:$0xff]   ;;  %v1319_v4 = vld [vmem:[%s1561_s1 + $0x110] sm:$0xff]  }
  0x11   : > { %v170_v7 = vld [vmem:[%s1394_s29] sm:$0xf]  ;;  %v179_v8 = vld [vmem:[%s1394_s29 + $0x4] sm:$0x1]  ;;  %1178 = vmatprep.subr.bf16.mxu1 %v1330_v1  ;;  %v753_v52 = vld [vmem:[%s1394_s29 + $0x8] sm:$0x1] }
  0x12   : > { %v1004_v10 = vcombine.low %v170_v7, %v179_v8  ;;  %v336_v22 = vld [vmem:[%s1394_s29] sm:$0xe]  ;;  %v419_v24 = vld [vmem:[%s1394_s29 + $0x4] sm:$0x3] }
  0x13   : > { %1167 = vmatpush3.bf16.msra.mxu0 %v1285_v9  ;;  %v418_v23 = vld [vmem:[%s1394_s29] sm:$0xc]  ;;  %v1023_v26 = vcombine.low %v336_v22, %v179_v8  ;;  %v503_v30 = vld [vmem:[%s1394_s29 + $0x4] sm:$0x7] }
  0x14   : > { %v195_v12 = vshrl.u32 %v1004_v10, 16  ;;  %v197_v13 = vshll.u32 %v1004_v10, 16  ;;  %1179 = vmatpush3.bf16.msra.mxu1 %v1286_v11  ;;  %1184 = vmatprep.subr.bf16.mxu0 %v1330_v1  ;;  %v1037_v27 = vcombine.low %v418_v23, %v419_v24  ;;  %v1051_v34 = vcombine.low %v418_v23, %v503_v30  ;;  %v592_v41 = vld [vmem:[%s1394_s29] sm:$0x8]  ;;  %v752_v51 = vld [vmem:[%s1394_s29 + $0x4] sm:$0xf] }
  0x15   : > { %1196 = vmatprep.subr.bf16.mxu1 %v1330_v1  ;;  %v349_v31 = vrot.slane %v1023_v26, 1  ;;  %v1065_v44 = vcombine.low %v592_v41, %v503_v30  ;;  %v1092_v53 = vcombine.low %v752_v51, %v753_v52  ;;  %v674_v0 = vld [vmem:[%s1394_s29 + $0x4] sm:$0xf] }
  0x16   : > { %v199_v14 = vrot.slane %v197_v13, 1  ;;  %v434_v32 = vrot.slane %v1037_v27, 2  ;;  %v517_v37 = vshrl.u32 %v1051_v34, 16  ;;  %v520_v38 = vshll.u32 %v1051_v34, 16  ;;  %v843_v5 = vld [vmem:[%s1394_s29 + $0x4] sm:$0xe] }
  0x17   : > { %1181 = vmatmul.mubr.msk.bf16.vlgmr.msra.gmra.mrb[0].mxu1 %vm225_vm1, %v170_v7  ;;  %v605_v49 = vrot.slane %v1065_v44, 3  ;;  %v771_v56 = vshll.u32 %v1092_v53, 16  ;;  %v769_v59 = vshrl.u32 %v1092_v53, 16  ;;  %v1106_v6 = vcombine.low %v843_v5, %v753_v52  ;;  %v1320_v7 = vld [vmem:[%s1561_s1 + $0x118] sm:$0xff]  }
  0x18   : > { %v200_v17 = vor.u32 %v199_v14, %v195_v12  ;;  %1197 = vmatpush3.bf16.msra.mxu1 %v1289_v16  ;;  %1204 = vmatprep.mubr.msk.bf16.mxu1 %vm1331_vm0, %v1330_v1  ;;  %v519_v42 = vrot.slane %v517_v37, 2  ;;  %v522_v43 = vrot.slane %v520_v38, 3 }
  0x19   : > { %1198 = vmatprep.subr.bf16.mxu1 %v1330_v1  ;;  %v773_v60 = vrot.slane %v771_v56, 1  ;;  %v856_v8 = vrot.slane %v1106_v6, 1 }
  0x1a   : > { %1169 = vmatmul.mubr.msk.bf16.vlgmr.msra.gmra.mrb[0].mxu0 %vm225_vm1, %v200_v17  ;;  %v523_v47 = vor.u32 %v522_v43, %v519_v42 }
  0x1b   : > { %1185 = vmatpush3.bf16.msra.mxu0 %v1288_v15  ;;  %1192 = vmatprep.mubr.msk.bf16.mxu0 %vm1331_vm0, %v1330_v1  ;;  %v774_v63 = vor.u32 %v773_v60, %v769_v59 }
  0x1c   : > { %1186 = vmatprep.subr.bf16.mxu0 %v1330_v1  ;;  %1199 = vmatpush3.bf16.msra.mxu1 %v1291_v19 }
  0x1d   : > { %1200 = vmatprep.subr.bf16.mxu1 %v1330_v1 }
  0x1f   : > { %1187 = vmatpush3.bf16.msra.mxu0 %v1290_v18 }
  0x20   : > { %1188 = vmatprep.subr.bf16.mxu0 %v1330_v1  ;;  %1201 = vmatpush3.bf16.msra.mxu1 %v1293_v21 }
  0x21   : > { %1202 = vmatprep.subr.bf16.mxu1 %v1330_v1 }
  0x23   : > { %1189 = vmatpush3.bf16.msra.mxu0 %v1292_v20 }
  0x24   : > { %1190 = vmatprep.subr.bf16.mxu0 %v1330_v1  ;;  %1203 = vmatpush3.bf16.msra.mxu1 %v1295_v28 }
  0x25   : > { %1220 = vmatprep.subr.bf16.mxu1 %v1330_v1 }
  0x27   : > { %1191 = vmatpush3.bf16.msra.mxu0 %v1294_v25  ;;  %1205 = vmatmul.mubr.msk.bf16.vlgmr.msra.gmra.mrb[4].mxu1 %vm225_vm1, %v434_v32 }
  0x28   : > { %1208 = vmatprep.subr.bf16.mxu0 %v1330_v1  ;;  %1221 = vmatpush3.bf16.msra.mxu1 %v1300_v33 }
  0x29   : > { %1222 = vmatprep.subr.bf16.mxu1 %v1330_v1  ;;  %1228 = vmatprep.mubr.msk.bf16.mxu1 %vm1331_vm0, %v1330_v1 }
  0x2a   : > { %1193 = vmatmul.mubr.msk.bf16.vlgmr.msra.gmra.mrb[4].mxu0 %vm225_vm1, %v349_v31 }
  0x2b   : > { %1209 = vmatpush3.bf16.msra.mxu0 %v1297_v29  ;;  %1216 = vmatprep.mubr.msk.bf16.mxu0 %vm1331_vm0, %v1330_v1 }
  0x2c   : > { %1210 = vmatprep.subr.bf16.mxu0 %v1330_v1  ;;  %1223 = vmatpush3.bf16.msra.mxu1 %v1302_v36 }
  0x2d   : > { %1224 = vmatprep.subr.bf16.mxu1 %v1330_v1 }
  0x2f   : > { %1211 = vmatpush3.bf16.msra.mxu0 %v1301_v35 }
  0x30   : > { %1212 = vmatprep.subr.bf16.mxu0 %v1330_v1  ;;  %1225 = vmatpush3.bf16.msra.mxu1 %v1304_v40 }
  0x31   : > { %1226 = vmatprep.subr.bf16.mxu1 %v1330_v1 }
  0x33   : > { %1213 = vmatpush3.bf16.msra.mxu0 %v1303_v39 }
  0x34   : > { %1214 = vmatprep.subr.bf16.mxu0 %v1330_v1  ;;  %1227 = vmatpush3.bf16.msra.mxu1 %v1306_v46 }
  0x35   : > { %1244 = vmatprep.subr.bf16.mxu1 %v1330_v1 }
  0x37   : > { %1215 = vmatpush3.bf16.msra.mxu0 %v1305_v45  ;;  %1229 = vmatmul.mubr.msk.bf16.vlgmr.msra.gmra.mrb[8].mxu1 %vm225_vm1, %v605_v49 }
  0x38   : > { %1232 = vmatprep.subr.bf16.mxu0 %v1330_v1  ;;  %1245 = vmatpush3.bf16.msra.mxu1 %v1309_v50 }
  0x39   : > { %1246 = vmatprep.subr.bf16.mxu1 %v1330_v1  ;;  %1252 = vmatprep.mubr.msk.bf16.mxu1 %vm1331_vm0, %v1330_v1 }
  0x3a   : > { %1217 = vmatmul.mubr.msk.bf16.vlgmr.msra.gmra.mrb[8].mxu0 %vm225_vm1, %v523_v47 }
  0x3b   : > { %1233 = vmatpush3.bf16.msra.mxu0 %v1307_v48  ;;  %1240 = vmatprep.mubr.msk.bf16.mxu0 %vm1331_vm0, %v1330_v1  ;;  %v1112_v48 = vld [vmem:[%s1562_s2] ss:$0 sm:$0xff] }
  0x3c   : > { %1234 = vmatprep.subr.bf16.mxu0 %v1330_v1  ;;  %1247 = vmatpush3.bf16.msra.mxu1 %v1311_v55 }
  0x3d   : > { %1248 = vmatprep.subr.bf16.mxu1 %v1330_v1 }
  0x3f   : > { %1235 = vmatpush3.bf16.msra.mxu0 %v1310_v54 }
  0x40   : > { %1236 = vmatprep.subr.bf16.mxu0 %v1330_v1  ;;  %1249 = vmatpush3.bf16.msra.mxu1 %v1313_v58 }
  0x41   : > { %1250 = vmatprep.subr.bf16.mxu1 %v1330_v1 }
  0x43   : > { %1237 = vmatpush3.bf16.msra.mxu0 %v1312_v57 }
  0x44   : > { %1238 = vmatprep.subr.bf16.mxu0 %v1330_v1  ;;  %1251 = vmatpush3.bf16.msra.mxu1 %v1315_v62 }
  0x47   : > { %1239 = vmatpush3.bf16.msra.mxu0 %v1314_v61  ;;  %1253 = vmatmul.mubr.msk.bf16.vlgmr.msra.gmra.mrb[12].mxu1 %vm225_vm1, %v774_v63 }
  0x48   : > { %1256 = vmatprep.subr.bf16.mxu0 %v1330_v1 }
  0x4a   : > { %1241 = vmatmul.mubr.msk.bf16.vlgmr.msra.gmra.mrb[12].mxu0 %vm225_vm1, %v674_v0 }
  0x4b   : > { %1257 = vmatpush3.bf16.msra.mxu0 %v1316_v2  ;;  %1264 = vmatprep.mubr.msk.bf16.mxu0 %vm1331_vm0, %v1330_v1 }
  0x4c   : > { %1258 = vmatprep.subr.bf16.mxu0 %v1330_v1 }
  0x4f   : > { %1259 = vmatpush3.bf16.msra.mxu0 %v1318_v3 }
  0x50   : > { %1260 = vmatprep.subr.bf16.mxu0 %v1330_v1 }
  0x53   : > { %1261 = vmatpush3.bf16.msra.mxu0 %v1319_v4 }
  0x54   : > { %1262 = vmatprep.subr.bf16.mxu0 %v1330_v1 }
  0x57   : > { %1263 = vmatpush3.bf16.msra.mxu0 %v1320_v7 }
  0x5a   : > { %1265 = vmatmul.mubr.msk.bf16.vlgmr.msra.gmra.mrb[16].mxu0 %vm225_vm1, %v856_v8 }
  0xea   : > { %v330_v10 = vpop.f32.mrb[0].mxu1 }
  0xeb   : > { %v1182_v13 = vpop.f32.mrb[1].mxu1 }
  0xec   : > { %v333_v15 = vpop.f32.mrb[2].mxu1 }
  0xed   : > { %v263_v9 = vpop.f32.mrb[0].mxu0  ;;  %v1183_v17 = vpop.f32.mrb[3].mxu1 }
  0xee   : > { %v1170_v11 = vpop.f32.mrb[1].mxu0  ;;  %v331_v12 = vadd.f32 %v330_v10, %v263_v9 }
  0xef   : > { %v266_v14 = vpop.f32.mrb[2].mxu0 }
  0xf0   : > { %v1171_v16 = vpop.f32.mrb[3].mxu0 }
  0xfa   : > { %v496_v19 = vpop.f32.mrb[4].mxu1 }
  0xfb   : > { %v1206_v22 = vpop.f32.mrb[5].mxu1 }
  0xfc   : > { %v499_v1 = vpop.f32.mrb[6].mxu1 }
  0xfd   : > { %v411_v18 = vpop.f32.mrb[4].mxu0  ;;  %v1207_v26 = vpop.f32.mrb[7].mxu1 }
  0xfe   : > { %v417_v20 = vadd.f32 %v411_v18, %v331_v12  ;;  %v1194_v21 = vpop.f32.mrb[5].mxu0 }
  0xff   : > { %v414_v23 = vpop.f32.mrb[6].mxu0 }
 0x100   : > { %v502_v24 = vadd.f32 %v496_v19, %v417_v20  ;;  %v1195_v25 = vpop.f32.mrb[7].mxu0 }
 0x10a   : > { %v667_v28 = vpop.f32.mrb[8].mxu1 }
 0x10b   : > { %v1230_v31 = vpop.f32.mrb[9].mxu1 }
 0x10c   : > { %v670_v33 = vpop.f32.mrb[10].mxu1 }
 0x10d   : > { %v585_v27 = vpop.f32.mrb[8].mxu0  ;;  %v1231_v36 = vpop.f32.mrb[11].mxu1 }
 0x10e   : > { %v591_v29 = vadd.f32 %v585_v27, %v502_v24  ;;  %v1218_v30 = vpop.f32.mrb[9].mxu0 }
 0x10f   : > { %v588_v32 = vpop.f32.mrb[10].mxu0 }
 0x110   : > { %v673_v34 = vadd.f32 %v667_v28, %v591_v29  ;;  %v1219_v35 = vpop.f32.mrb[11].mxu0 }
 0x11a   : > { %v836_v38 = vpop.f32.mrb[12].mxu1 }
 0x11b   : > { %v1254_v41 = vpop.f32.mrb[13].mxu1 }
 0x11c   : > { %v839_v43 = vpop.f32.mrb[14].mxu1 }
 0x11d   : > { %v745_v37 = vpop.f32.mrb[12].mxu0  ;;  %v1255_v46 = vpop.f32.mrb[15].mxu1 }
 0x11e   : > { %v751_v39 = vadd.f32 %v745_v37, %v673_v34  ;;  %v1242_v40 = vpop.f32.mrb[13].mxu0 }
 0x11f   : > { %v748_v42 = vpop.f32.mrb[14].mxu0 }
 0x120   : > { %v842_v44 = vadd.f32 %v836_v38, %v751_v39  ;;  %v1243_v45 = vpop.f32.mrb[15].mxu0 }
 0x12d   : > { %v918_v47 = vpop.f32.mrb[16].mxu0 }
 0x12e   : > { %v924_v49 = vadd.f32 %v918_v47, %v842_v44  ;;  %v1266_v50 = vpop.f32.mrb[17].mxu0 }
 0x12f   : > { %v921_v51 = vpop.f32.mrb[18].mxu0 }
 0x130   : > { %v932_v52 = vadd.f32 %v1112_v48, %v924_v49  ;;  %v1267_v53 = vpop.f32.mrb[19].mxu0 }
 0x132   : > { %v933_v54 = vmax.f32 %v932_v52, 0.0 }
 0x134   : > { %v934_v55 = vpack.c.bf16 %v933_v54, %v933_v54 }
 0x136   : > { %935 = vst [vmem:[%s168_s21] sm:$0xf] %v934_v55 }
 0x137 PF: > { %s13_s12 = sadd.s32 1, %s1328_s12  }
 0x138   : > { %p10_p4 = scmp.ge.s32.totalorder %s13_s12, 4  }
 0x13a   :  { %12 = sbr.rel (!%p10_p4) target bundleno = 1 (0x1), region = 70 }

// kernel: _lambda_.43
= control target key start
LH: loop header
LB: loop body
LE: loop exit
PB: predicated region body
PF: predicated region fallthrough
CT: control target
= control target key end

     0   :  { %v251_v3 = vmov 0.0|0.0   ;;  %vm252_vm0 = vmmov 0   ;;  %v253_v6 = vmov 0.0   ;;  %s345_s0 = inlined_call_operand.vmem [shape: f32[2,1,128], index: 0, kind: input, shape index: {}]   ;;  %s346_s1 = inlined_call_operand.vmem [shape: f32[128,128], index: 1, kind: input, shape index: {}]   ;;  %s347_s2 = inlined_call_operand.vmem [shape: f32[1,128], index: 2, kind: input, shape index: {}]   ;;  %s348_s3 = inlined_call_operand.hbm [shape: f32[2,128], index: 3, kind: output, shape index: {}]  }
   0x1   :  { %v19_v0 = vld [vmem:[%s346_s1] sm:$0xff]  ;;  %v20_v1 = vld [vmem:[%s346_s1 + $0x8] sm:$0xff]  ;;  %v21_v2 = vld [vmem:[%s346_s1 + $0x10] sm:$0xff]  ;;  %198 = vmatprep.subr.bf16.mxu0 %v251_v3  ;;  %195 = vmatprep.mubr.msk.f32.mxu0 %vm252_vm0, %v253_v6 }
   0x2   :  { %v199_v4 = vpack.c.bf16 %v20_v1, %v19_v0  ;;  %v22_v5 = vld [vmem:[%s346_s1 + $0x18] sm:$0xff]  ;;  %v23_v8 = vld [vmem:[%s346_s1 + $0x20] sm:$0xff]  ;;  %v24_v9 = vld [vmem:[%s346_s1 + $0x28] sm:$0xff] }
   0x3   :  { %v202_v7 = vpack.c.bf16 %v22_v5, %v21_v2 }
   0x4   :  { %200 = vmatpush3.bf16.msra.mxu0 %v199_v4 }
   0x5   :  { %201 = vmatprep.subr.bf16.mxu0 %v251_v3 }
   0x6   :  { %8 = vsyncpa [#allocation3], 0  ;;  %v205_v10 = vpack.c.bf16 %v24_v9, %v23_v8  ;;  %v25_v11 = vld [vmem:[%s346_s1 + $0x30] sm:$0xff]  ;;  %v26_v12 = vld [vmem:[%s346_s1 + $0x38] sm:$0xff]  ;;  %v254_v16 = vmov 1966171168   ;;  %v48_v18 = vlaneseq }
   0x7   :  { %v208_v13 = vpack.c.bf16 %v26_v12, %v25_v11  ;;  %v27_v14 = vld [vmem:[%s346_s1 + $0x40] sm:$0xff]  ;;  %v28_v15 = vld [vmem:[%s346_s1 + $0x48] sm:$0xff]  ;;  %v46_v17 = vunpack.c.l.s4 %v254_v16  ;;  %v29_v20 = vld [vmem:[%s346_s1 + $0x50] sm:$0xff]  ;;  %s255_s22 = smov [#allocation2]  }
   0x8   :  { %203 = vmatpush3.bf16.msra.mxu0 %v202_v7  ;;  %v211_v19 = vpack.c.bf16 %v28_v15, %v27_v14  ;;  %v30_v21 = vld [vmem:[%s346_s1 + $0x58] sm:$0xff]  ;;  %v49_v23 = vshrl.u32 %v48_v18, 7  ;;  %v15_v25 = vld [vmem:[%s345_s0] sm:$0x1]  ;;  %v16_v26 = vld [vmem:[%s345_s0 + $0x1] sm:$0x1] }
   0x9   :  { %204 = vmatprep.subr.bf16.mxu0 %v251_v3  ;;  %v47_v22 = vunpack.c.0.s8 %v46_v17  ;;  %v214_v24 = vpack.c.bf16 %v30_v21, %v29_v20  ;;  %v31_v27 = vld [vmem:[%s346_s1 + $0x60] sm:$0xff]  ;;  %v32_v28 = vld [vmem:[%s346_s1 + $0x68] sm:$0xff]  ;;  %v44_v29 = vcombine.low %v15_v25, %v16_v26  ;;  %v33_v32 = vld [vmem:[%s346_s1 + $0x70] sm:$0xff]  ;;  %s137_s23 = sshll.u32 %s255_s22, 4  ;;  %s138_s23 = int_to_ptr.vmem [resolvable:$true] %s137_s23 }
   0xa   :  { %v217_v31 = vpack.c.bf16 %v32_v28, %v31_v27  ;;  %v34_v33 = vld [vmem:[%s346_s1 + $0x78] sm:$0xff]  ;;  %v145_v37 = vld [vmem:[%s347_s2] ss:$0 sm:$0xff]  ;;  %s227_s24 = scalar_lea.vmem %s138_s23, 32  ;;  %p232_p1 = scmp.lt.s32.totalorder %s138_s23, %s138_s23 }
   0xb   :  { %v50_v30 = vsub.s32 %v47_v22, %v49_v23  ;;  %v220_v35 = vpack.c.bf16 %v34_v33, %v33_v32  ;;  %p228_p0 = scmp.ne.s32.totalorder %s138_s23, %s227_s24  ;;  %p233_p2 = scmp.lt.s32.totalorder %s227_s24, %s227_s24 }
   0xc   :  { %206 = vmatpush3.bf16.msra.mxu0 %v205_v10 }
   0xd   :  { %207 = vmatprep.subr.bf16.mxu0 %v251_v3  ;;  %v51_v34 = vrot.slane %v44_v29, %v50_v30  ;;  %p234_p3 = por %p233_p2, %p232_p1 }
   0xf   :  { %v58_v36 = vrot.slane %v51_v34, %v50_v30  ;;  %p235_p4 = pnand %p234_p3, %p228_p0 }
  0x10   :  { %209 = vmatpush3.bf16.msra.mxu0 %v208_v13 }
  0x11   :  { %210 = vmatprep.subr.bf16.mxu0 %v251_v3 }
  0x14   :  { %212 = vmatpush3.bf16.msra.mxu0 %v211_v19 }
  0x15   :  { %213 = vmatprep.subr.bf16.mxu0 %v251_v3 }
  0x18   :  { %215 = vmatpush3.bf16.msra.mxu0 %v214_v24 }
  0x19   :  { %216 = vmatprep.subr.bf16.mxu0 %v251_v3 }
  0x1c   :  { %218 = vmatpush3.bf16.msra.mxu0 %v217_v31 }
  0x1d   :  { %219 = vmatprep.subr.bf16.mxu0 %v251_v3 }
  0x20   :  { %221 = vmatpush3.bf16.msra.mxu0 %v220_v35 }
  0x23   :  { %196 = vmatmul.mubr.f32.vlgmr.msra.gmra.mrb[0].mxu0 %v58_v36 }
  0xf6   :  { %v126_v38 = vpop.f32.mrb[0].mxu0 }
  0xf7   :  { %v127_v39 = vadd.f32 %v145_v37, %v126_v38  ;;  %v197_v40 = vpop.f32.mrb[1].mxu0 }
  0xf9   :  { %130 = vst [vmem:[#allocation2] sm:$0x3] %v127_v39 }
  0xfa   :  { %238 = shalt.err (!%p235_p4)
}
  0xfb   :  { %s239_s26 = scalar_lea.hbm %s348_s3, 32 }
  0xfc   :  { %p240_p5 = scmp.ne.s32.totalorder %s348_s3, %s239_s26  ;;  %p243_p6 = scmp.lt.u32.totalorder %s239_s26, %s348_s3 }
  0xfe   :  { %p245_p7 = pnand %p243_p6, %p240_p5 }
 0x100   :  { %248 = shalt.err (!%p245_p7)
}
 0x101   :  { %140 = dma.vmem_to_hbm [thread:$0]  %s138_s23, 32, %s348_s3, [#allocation3]  }
 0x102   :  { %249 = dma.done.wait [#allocation3], 32  }
 0x103   :  { %250 = vsyncadd [#allocation3], 4294967264 }
 0x104   :  { %144 = vsyncpa [#allocation3], 1 }

// kernel: _lambda_.39
= control target key start
LH: loop header
LB: loop body
LE: loop exit
PB: predicated region body
PF: predicated region fallthrough
CT: control target
= control target key end

     0   :  { %s1505_s21 = smov 0   ;;  %s1725_s0 = inlined_call_operand.vmem [shape: bf16[2,6,64], index: 0, kind: input, shape index: {}]   ;;  %s1726_s1 = inlined_call_operand.vmem [shape: bf16[2,6,64], index: 1, kind: input, shape index: {}]   ;;  %s1727_s2 = inlined_call_operand.vmem [shape: bf16[2,6,64], index: 2, kind: input, shape index: {}]   ;;  %s1728_s3 = inlined_call_operand.vmem [shape: bf16[2,6,64], index: 3, kind: input, shape index: {}]   ;;  %s1729_s4 = inlined_call_operand.vmem [shape: bf16[9,64,128], index: 4, kind: input, shape index: {}]   ;;  %s1730_s5 = inlined_call_operand.vmem [shape: f32[1,128], index: 5, kind: input, shape index: {}]   ;;  %s1731_s6 = inlined_call_operand.vmem [shape: bf16[2,2,128], index: 6, kind: output, shape index: {}]  }
   0x1 LB: > { %s1130_s22 = sadd.s32 4294967295, %s1466_s21   ;;  %p1134_p0 = scmp.ge.s32.totalorder %s1466_s21, 1  ;;  %s1466_s21 = sphi %s1505_s21, %s16_s21  }
   0x2   : > { %p238_p1 = scmp.lt.s32.totalorder %s1466_s21, 3 }
   0x4   : > { %p239_p2 = pnand %p1134_p0, %p238_p1 }
   0x5   : > { %v1419_v0 = vld [vmem:[%s1729_s4 + $0x20] sm:$0xff] (!%p239_p2)   ;;  %v1468_v1 = vmov (!%p239_p2), 0.0   ;;  %v1421_v3 = vld [vmem:[%s1729_s4 + $0x28] sm:$0xff] (!%p239_p2)   ;;  %vm1469_vm0 = vmmov (!%p239_p2), 0   ;;  %p277_p3 = scmp.lt.s32.totalorder (!%p239_p2), %s1130_s22, 1  ;;  %v1423_v5 = vld [vmem:[%s1729_s4 + $0x30] sm:$0xff] (!%p239_p2)  }
   0x6   : > { %242 = sbr.rel (%p239_p2) target bundleno = 307 (0x133), region = 44  ;;  %1301 = vmatprep.subr.bf16.mxu0 (!%p239_p2), %v1468_v1  ;;  %1313 = vmatprep.subr.bf16.mxu1 (!%p239_p2), %v1468_v1  ;;  %v1420_v2 = vld [vmem:[%s1729_s4] sm:$0xff] (!%p239_p2)   ;;  %v1422_v4 = vld [vmem:[%s1729_s4 + $0x8] sm:$0xff] (!%p239_p2)   ;;  %v1424_v6 = vld [vmem:[%s1729_s4 + $0x10] sm:$0xff] (!%p239_p2)   ;;  %vm340_vm1 = vcmask (!%p239_p2), 523264  }
   0x7   : > { %1302 = vmatpush3.bf16.msra.mxu0 (!%p239_p2), %v1419_v0  ;;  %1309 = vmatprep.mubr.msk.bf16.mxu0 (!%p239_p2), %vm1469_vm0, %v1468_v1  ;;  %v1425_v7 = vld [vmem:[%s1729_s4 + $0x38] sm:$0xff] (!%p239_p2)   ;;  %v1431_v10 = vld [vmem:[%s1729_s4 + $0x40] sm:$0xff] (!%p239_p2)   ;;  %v1433_v14 = vld [vmem:[%s1729_s4 + $0x48] sm:$0xff] (!%p239_p2)  }
   0x8   : > { %1314 = vmatpush3.bf16.msra.mxu1 (!%p239_p2), %v1420_v2  ;;  %1303 = vmatprep.subr.bf16.mxu0 (!%p239_p2), %v1468_v1  ;;  %v1426_v8 = vld [vmem:[%s1729_s4 + $0x18] sm:$0xff] (!%p239_p2)   ;;  %v1432_v13 = vld [vmem:[%s1729_s4 + $0x60] sm:$0xff] (!%p239_p2)   ;;  %v1434_v15 = vld [vmem:[%s1729_s4 + $0x68] sm:$0xff] (!%p239_p2)  }
   0x9   : > { %1315 = vmatprep.subr.bf16.mxu1 (!%p239_p2), %v1468_v1  ;;  %1321 = vmatprep.mubr.msk.bf16.mxu1 (!%p239_p2), %vm1469_vm0, %v1468_v1  ;;  %v1435_v17 = vld [vmem:[%s1729_s4 + $0x50] sm:$0xff] (!%p239_p2)   ;;  %v1437_v21 = vld [vmem:[%s1729_s4 + $0x58] sm:$0xff] (!%p239_p2)   ;;  %v1439_v24 = vld [vmem:[%s1729_s4 + $0x80] sm:$0xff] (!%p239_p2)  }
   0xa   : > { %v1436_v18 = vld [vmem:[%s1729_s4 + $0x70] sm:$0xff] (!%p239_p2)   ;;  %v1438_v22 = vld [vmem:[%s1729_s4 + $0x78] sm:$0xff] (!%p239_p2)   ;;  %v1441_v26 = vld [vmem:[%s1729_s4 + $0xa0] sm:$0xff] (!%p239_p2)  }
   0xb   : > { %1304 = vmatpush3.bf16.msra.mxu0 (!%p239_p2), %v1421_v3  ;;  %v1442_v28 = vld [vmem:[%s1729_s4 + $0x88] sm:$0xff] (!%p239_p2)   ;;  %v1444_v31 = vld [vmem:[%s1729_s4 + $0x90] sm:$0xff] (!%p239_p2)   ;;  %v1446_v35 = vld [vmem:[%s1729_s4 + $0x98] sm:$0xff] (!%p239_p2)  }
   0xc   : > { %1316 = vmatpush3.bf16.msra.mxu1 (!%p239_p2), %v1422_v4  ;;  %1305 = vmatprep.subr.bf16.mxu0 (!%p239_p2), %v1468_v1  ;;  %v1443_v29 = vld [vmem:[%s1729_s4 + $0xa8] sm:$0xff] (!%p239_p2)   ;;  %v1445_v32 = vld [vmem:[%s1729_s4 + $0xb0] sm:$0xff] (!%p239_p2)   ;;  %v1447_v36 = vld [vmem:[%s1729_s4 + $0xb8] sm:$0xff] (!%p239_p2)  }
   0xd   : > { %s1733_s22 = smov (!%p277_p3, %s1130_s22), 1  ;;  %1317 = vmatprep.subr.bf16.mxu1 %v1468_v1  ;;  %v1448_v38 = vld [vmem:[%s1729_s4 + $0xc0] sm:$0xff]   ;;  %v1450_v41 = vld [vmem:[%s1729_s4 + $0xc8] sm:$0xff]   ;;  %v1452_v43 = vld [vmem:[%s1729_s4 + $0xd0] sm:$0xff]  }
   0xe   : > { %s1539_s9 = sshll.u32 %s1733_s22, 2  ;;  %v1449_v40 = vld [vmem:[%s1729_s4 + $0xe0] sm:$0xff]   ;;  %v1451_v42 = vld [vmem:[%s1729_s4 + $0xe8] sm:$0xff]   ;;  %v1453_v44 = vld [vmem:[%s1729_s4 + $0xf0] sm:$0xff]   ;;  %s295_s29 = scalar_lea.vmem %s1731_s6, %s1733_s22 }
   0xf   : > { %s1549_s14 = scalar_lea.vmem %s1726_s1, %s1539_s9  ;;  %s1556_s17 = scalar_lea.vmem %s1725_s0, %s1539_s9  ;;  %1306 = vmatpush3.bf16.msra.mxu0 %v1423_v5  ;;  %v1454_v47 = vld [vmem:[%s1729_s4 + $0xd8] sm:$0xff]   ;;  %v1456_v51 = vld [vmem:[%s1729_s4 + $0x100] sm:$0xff]   ;;  %v1457_v53 = vld [vmem:[%s1729_s4 + $0x108] sm:$0xff]  }
  0x10   : > { %1318 = vmatpush3.bf16.msra.mxu1 %v1424_v6  ;;  %1307 = vmatprep.subr.bf16.mxu0 %v1468_v1  ;;  %v306_v9 = vld [vmem:[%s1549_s14] sm:$0x1]  ;;  %s288_s11 = scalar_lea.vmem %s1727_s2, %s1539_s9  ;;  %s292_s23 = scalar_lea.vmem %s1728_s3, %s1539_s9  ;;  %v1455_v48 = vld [vmem:[%s1729_s4 + $0xf8] sm:$0xff]   ;;  %v1458_v56 = vld [vmem:[%s1729_s4 + $0x110] sm:$0xff]  }
  0x11   : > { %1319 = vmatprep.subr.bf16.mxu1 %v1468_v1  ;;  %v297_v11 = vld [vmem:[%s1556_s17] sm:$0x1]  ;;  %v1459_v59 = vld [vmem:[%s1729_s4 + $0x118] sm:$0xff]  }
  0x12   : > { %v1428_v12 = vld [vmem:[%s1556_s17] ss:$0 sps:$4 sm:$0x33]  }
  0x13   : > { %1308 = vmatpush3.bf16.msra.mxu0 %v1425_v7  ;;  %v467_v16 = vshll.u32 %v1428_v12, 16  ;;  %v465_v19 = vshrl.u32 %v1428_v12, 16  ;;  %v539_v25 = vld [vmem:[%s288_s11] sm:$0x1] }
  0x14   : > { %1320 = vmatpush3.bf16.msra.mxu1 %v1426_v8  ;;  %1325 = vmatprep.subr.bf16.mxu0 %v1468_v1  ;;  %v1440_v27 = vld [vmem:[%s288_s11] ss:$0 sps:$4 sm:$0x33]  }
  0x15   : > { %1337 = vmatprep.subr.bf16.mxu1 %v1468_v1  ;;  %v469_v20 = vrot.slane %v467_v16, 1  ;;  %v711_v30 = vshll.u32 %v1440_v27, 16  ;;  %v709_v33 = vshrl.u32 %v1440_v27, 16  ;;  %v617_v37 = vld [vmem:[%s292_s23] sm:$0x1] }
  0x16   : > { %1310 = vmatmul.mubr.msk.bf16.vlgmr.msra.gmra.mrb[0].mxu0 %vm340_vm1, %v306_v9  ;;  %v1429_v45 = vld [vmem:[%s1556_s17] ss:$0 sps:$4 sm:$0x22]  }
  0x17   : > { %1322 = vmatmul.mubr.msk.bf16.vlgmr.msra.gmra.mrb[0].mxu1 %vm340_vm1, %v297_v11  ;;  %1326 = vmatpush3.bf16.msra.mxu0 %v1431_v10  ;;  %v470_v23 = vor.u32 %v469_v20, %v465_v19  ;;  %v713_v34 = vrot.slane %v711_v30, 1  ;;  %v1427_v46 = vld [vmem:[%s1549_s14] ss:$0 sps:$4 sm:$0x22]   ;;  %v796_v49 = vrot.slane %v1429_v45, 1 }
  0x18   : > { %1338 = vmatpush3.bf16.msra.mxu1 %v1432_v13  ;;  %1327 = vmatprep.subr.bf16.mxu0 %v1468_v1  ;;  %v878_v50 = vrot.slane %v1427_v46, 1  ;;  %v1430_v52 = vld [vmem:[%s1556_s17] ss:$0 sps:$4 sm:$0x66]  }
  0x19   : > { %1339 = vmatprep.subr.bf16.mxu1 %v1468_v1  ;;  %1333 = vmatprep.mubr.msk.bf16.mxu0 %vm1469_vm0, %v1468_v1  ;;  %v714_v39 = vor.u32 %v713_v34, %v709_v33  ;;  %v961_v54 = vshrl.u32 %v1430_v52, 16  ;;  %v964_v55 = vshll.u32 %v1430_v52, 16 }
  0x1a   : > { %1345 = vmatprep.mubr.msk.bf16.mxu1 %vm1469_vm0, %v1468_v1 }
  0x1b   : > { %1328 = vmatpush3.bf16.msra.mxu0 %v1433_v14  ;;  %v963_v57 = vrot.slane %v961_v54, 1  ;;  %v966_v58 = vrot.slane %v964_v55, 2 }
  0x1c   : > { %1340 = vmatpush3.bf16.msra.mxu1 %v1434_v15  ;;  %1329 = vmatprep.subr.bf16.mxu0 %v1468_v1 }
  0x1d   : > { %1341 = vmatprep.subr.bf16.mxu1 %v1468_v1  ;;  %v967_v60 = vor.u32 %v966_v58, %v963_v57 }
  0x1f   : > { %1330 = vmatpush3.bf16.msra.mxu0 %v1435_v17 }
  0x20   : > { %1342 = vmatpush3.bf16.msra.mxu1 %v1436_v18  ;;  %1331 = vmatprep.subr.bf16.mxu0 %v1468_v1 }
  0x21   : > { %1343 = vmatprep.subr.bf16.mxu1 %v1468_v1 }
  0x23   : > { %1332 = vmatpush3.bf16.msra.mxu0 %v1437_v21 }
  0x24   : > { %1344 = vmatpush3.bf16.msra.mxu1 %v1438_v22  ;;  %1349 = vmatprep.subr.bf16.mxu0 %v1468_v1 }
  0x25   : > { %1361 = vmatprep.subr.bf16.mxu1 %v1468_v1 }
  0x26   : > { %1334 = vmatmul.mubr.msk.bf16.vlgmr.msra.gmra.mrb[4].mxu0 %vm340_vm1, %v470_v23 }
  0x27   : > { %1350 = vmatpush3.bf16.msra.mxu0 %v1439_v24  ;;  %1346 = vmatmul.mubr.msk.bf16.vlgmr.msra.gmra.mrb[4].mxu1 %vm340_vm1, %v539_v25 }
  0x28   : > { %1362 = vmatpush3.bf16.msra.mxu1 %v1441_v26  ;;  %1351 = vmatprep.subr.bf16.mxu0 %v1468_v1 }
  0x29   : > { %1363 = vmatprep.subr.bf16.mxu1 %v1468_v1  ;;  %1357 = vmatprep.mubr.msk.bf16.mxu0 %vm1469_vm0, %v1468_v1 }
  0x2a   : > { %1369 = vmatprep.mubr.msk.bf16.mxu1 %vm1469_vm0, %v1468_v1 }
  0x2b   : > { %1352 = vmatpush3.bf16.msra.mxu0 %v1442_v28 }
  0x2c   : > { %1364 = vmatpush3.bf16.msra.mxu1 %v1443_v29  ;;  %1353 = vmatprep.subr.bf16.mxu0 %v1468_v1 }
  0x2d   : > { %1365 = vmatprep.subr.bf16.mxu1 %v1468_v1 }
  0x2f   : > { %1354 = vmatpush3.bf16.msra.mxu0 %v1444_v31 }
  0x30   : > { %1366 = vmatpush3.bf16.msra.mxu1 %v1445_v32  ;;  %1355 = vmatprep.subr.bf16.mxu0 %v1468_v1 }
  0x31   : > { %1367 = vmatprep.subr.bf16.mxu1 %v1468_v1 }
  0x33   : > { %1356 = vmatpush3.bf16.msra.mxu0 %v1446_v35 }
  0x34   : > { %1368 = vmatpush3.bf16.msra.mxu1 %v1447_v36  ;;  %1373 = vmatprep.subr.bf16.mxu0 %v1468_v1 }
  0x35   : > { %1385 = vmatprep.subr.bf16.mxu1 %v1468_v1 }
  0x36   : > { %1358 = vmatmul.mubr.msk.bf16.vlgmr.msra.gmra.mrb[8].mxu0 %vm340_vm1, %v617_v37  ;;  %v1253_v37 = vld [vmem:[%s1730_s5] ss:$0 sm:$0xff] }
  0x37   : > { %1374 = vmatpush3.bf16.msra.mxu0 %v1448_v38  ;;  %1370 = vmatmul.mubr.msk.bf16.vlgmr.msra.gmra.mrb[8].mxu1 %vm340_vm1, %v714_v39 }
  0x38   : > { %1386 = vmatpush3.bf16.msra.mxu1 %v1449_v40  ;;  %1375 = vmatprep.subr.bf16.mxu0 %v1468_v1 }
  0x39   : > { %1387 = vmatprep.subr.bf16.mxu1 %v1468_v1  ;;  %1381 = vmatprep.mubr.msk.bf16.mxu0 %vm1469_vm0, %v1468_v1 }
  0x3a   : > { %1393 = vmatprep.mubr.msk.bf16.mxu1 %vm1469_vm0, %v1468_v1 }
  0x3b   : > { %1376 = vmatpush3.bf16.msra.mxu0 %v1450_v41 }
  0x3c   : > { %1388 = vmatpush3.bf16.msra.mxu1 %v1451_v42  ;;  %1377 = vmatprep.subr.bf16.mxu0 %v1468_v1 }
  0x3d   : > { %1389 = vmatprep.subr.bf16.mxu1 %v1468_v1 }
  0x3f   : > { %1378 = vmatpush3.bf16.msra.mxu0 %v1452_v43 }
  0x40   : > { %1390 = vmatpush3.bf16.msra.mxu1 %v1453_v44  ;;  %1379 = vmatprep.subr.bf16.mxu0 %v1468_v1 }
  0x41   : > { %1391 = vmatprep.subr.bf16.mxu1 %v1468_v1 }
  0x43   : > { %1380 = vmatpush3.bf16.msra.mxu0 %v1454_v47 }
  0x44   : > { %1392 = vmatpush3.bf16.msra.mxu1 %v1455_v48  ;;  %1397 = vmatprep.subr.bf16.mxu0 %v1468_v1 }
  0x46   : > { %1382 = vmatmul.mubr.msk.bf16.vlgmr.msra.gmra.mrb[12].mxu0 %vm340_vm1, %v796_v49 }
  0x47   : > { %1398 = vmatpush3.bf16.msra.mxu0 %v1456_v51  ;;  %1394 = vmatmul.mubr.msk.bf16.vlgmr.msra.gmra.mrb[12].mxu1 %vm340_vm1, %v878_v50 }
  0x48   : > { %1399 = vmatprep.subr.bf16.mxu0 %v1468_v1  ;;  %1405 = vmatprep.mubr.msk.bf16.mxu0 %vm1469_vm0, %v1468_v1 }
  0x4b   : > { %1400 = vmatpush3.bf16.msra.mxu0 %v1457_v53 }
  0x4c   : > { %1401 = vmatprep.subr.bf16.mxu0 %v1468_v1 }
  0x4f   : > { %1402 = vmatpush3.bf16.msra.mxu0 %v1458_v56 }
  0x50   : > { %1403 = vmatprep.subr.bf16.mxu0 %v1468_v1 }
  0x53   : > { %1404 = vmatpush3.bf16.msra.mxu0 %v1459_v59 }
  0x56   : > { %1406 = vmatmul.mubr.msk.bf16.vlgmr.msra.gmra.mrb[16].mxu0 %vm340_vm1, %v967_v60 }
  0xe9   : > { %v378_v61 = vpop.f32.mrb[0].mxu0 }
  0xea   : > { %v1311_v62 = vpop.f32.mrb[1].mxu0  ;;  %v445_v63 = vpop.f32.mrb[0].mxu1 }
  0xeb   : > { %v446_v0 = vadd.f32 %v445_v63, %v378_v61  ;;  %v381_v2 = vpop.f32.mrb[2].mxu0  ;;  %v1323_v3 = vpop.f32.mrb[1].mxu1 }
  0xec   : > { %v1312_v4 = vpop.f32.mrb[3].mxu0  ;;  %v448_v5 = vpop.f32.mrb[2].mxu1 }
  0xed   : > { %v1324_v6 = vpop.f32.mrb[3].mxu1 }
  0xf9   : > { %v532_v7 = vpop.f32.mrb[4].mxu0 }
  0xfa   : > { %v538_v8 = vadd.f32 %v532_v7, %v446_v0  ;;  %v1335_v9 = vpop.f32.mrb[5].mxu0  ;;  %v610_v10 = vpop.f32.mrb[4].mxu1 }
  0xfb   : > { %v535_v11 = vpop.f32.mrb[6].mxu0  ;;  %v1347_v12 = vpop.f32.mrb[5].mxu1 }
  0xfc   : > { %v616_v1 = vadd.f32 %v610_v10, %v538_v8  ;;  %v1336_v13 = vpop.f32.mrb[7].mxu0  ;;  %v613_v14 = vpop.f32.mrb[6].mxu1 }
  0xfd   : > { %v1348_v15 = vpop.f32.mrb[7].mxu1 }
 0x109   : > { %v688_v16 = vpop.f32.mrb[8].mxu0 }
 0x10a   : > { %v694_v17 = vadd.f32 %v688_v16, %v616_v1  ;;  %v1359_v18 = vpop.f32.mrb[9].mxu0  ;;  %v776_v19 = vpop.f32.mrb[8].mxu1 }
 0x10b   : > { %v691_v20 = vpop.f32.mrb[10].mxu0  ;;  %v1371_v21 = vpop.f32.mrb[9].mxu1 }
 0x10c   : > { %v782_v22 = vadd.f32 %v776_v19, %v694_v17  ;;  %v1360_v23 = vpop.f32.mrb[11].mxu0  ;;  %v779_v24 = vpop.f32.mrb[10].mxu1 }
 0x10d   : > { %v1372_v25 = vpop.f32.mrb[11].mxu1 }
 0x119   : > { %v858_v26 = vpop.f32.mrb[12].mxu0 }
 0x11a   : > { %v864_v27 = vadd.f32 %v858_v26, %v782_v22  ;;  %v1383_v28 = vpop.f32.mrb[13].mxu0  ;;  %v940_v29 = vpop.f32.mrb[12].mxu1 }
 0x11b   : > { %v861_v30 = vpop.f32.mrb[14].mxu0  ;;  %v1395_v31 = vpop.f32.mrb[13].mxu1 }
 0x11c   : > { %v946_v32 = vadd.f32 %v940_v29, %v864_v27  ;;  %v1384_v33 = vpop.f32.mrb[15].mxu0  ;;  %v943_v34 = vpop.f32.mrb[14].mxu1 }
 0x11d   : > { %v1396_v35 = vpop.f32.mrb[15].mxu1 }
 0x129   : > { %v1029_v36 = vpop.f32.mrb[16].mxu0 }
 0x12a   : > { %v1035_v38 = vadd.f32 %v1029_v36, %v946_v32  ;;  %v1407_v39 = vpop.f32.mrb[17].mxu0 }
 0x12b   : > { %v1032_v40 = vpop.f32.mrb[18].mxu0 }
 0x12c   : > { %v1043_v41 = vadd.f32 %v1253_v37, %v1035_v38  ;;  %v1408_v42 = vpop.f32.mrb[19].mxu0 }
 0x12e   : > { %v1044_v43 = vmax.f32 %v1043_v41, 0.0 }
 0x130   : > { %v1045_v44 = vpack.c.bf16 %v1044_v43, %v1044_v43 }
 0x132   : > { %1046 = vst [vmem:[%s295_s29] sm:$0x1] %v1045_v44 }
 0x133 PF: > { %s16_s21 = sadd.s32 1, %s1466_s21  }
 0x134   : > { %p13_p4 = scmp.ge.s32.totalorder %s16_s21, 4  }
 0x136   :  { %15 = sbr.rel (!%p13_p4) target bundleno = 1 (0x1), region = 91 }

// kernel: _lambda_.41
= control target key start
LH: loop header
LB: loop body
LE: loop exit
PB: predicated region body
PF: predicated region fallthrough
CT: control target
= control target key end

     0   :  { %s1844_s12 = smov 0   ;;  %s2181_s0 = inlined_call_operand.vmem [shape: bf16[2,12,128], index: 0, kind: input, shape index: {}]   ;;  %s2182_s1 = inlined_call_operand.vmem [shape: bf16[9,128,128], index: 1, kind: input, shape index: {}]   ;;  %s2183_s2 = inlined_call_operand.vmem [shape: f32[1,128], index: 2, kind: input, shape index: {}]   ;;  %s2184_s3 = inlined_call_operand.vmem [shape: bf16[2,3,128], index: 3, kind: output, shape index: {}]  }
   0x1 LB: > { %s1251_s13 = sadd.s32 4294967295, %s1820_s12   ;;  %p1255_p0 = scmp.ge.s32.totalorder %s1820_s12, 1  ;;  %s1820_s12 = sphi %s1844_s12, %s13_s12  }
   0x2   : > { %p137_p1 = scmp.lt.s32.totalorder %s1820_s12, 3 }
   0x4   : > { %p138_p2 = pnand %p1255_p0, %p137_p1 }
   0x5   : > { %v1738_v0 = vld [vmem:[%s2182_s1 + $0x40] sm:$0xff] (!%p138_p2)   ;;  %v1822_v1 = vmov (!%p138_p2), 0.0   ;;  %v1740_v3 = vld [vmem:[%s2182_s1 + $0x48] sm:$0xff] (!%p138_p2)   ;;  %vm1823_vm0 = vmmov (!%p138_p2), 0   ;;  %p160_p3 = scmp.lt.s32.totalorder (!%p138_p2), %s1251_s13, 1  ;;  %v1742_v5 = vld [vmem:[%s2182_s1 + $0x50] sm:$0xff] (!%p138_p2)  }
   0x6   : > { %141 = sbr.rel (%p138_p2) target bundleno = 388 (0x184), region = 32  ;;  %1548 = vmatprep.subr.bf16.mxu0 (!%p138_p2), %v1822_v1  ;;  %1568 = vmatprep.subr.bf16.mxu1 (!%p138_p2), %v1822_v1  ;;  %v1739_v2 = vld [vmem:[%s2182_s1] sm:$0xff] (!%p138_p2)   ;;  %v1741_v4 = vld [vmem:[%s2182_s1 + $0x8] sm:$0xff] (!%p138_p2)   ;;  %v1743_v6 = vld [vmem:[%s2182_s1 + $0x10] sm:$0xff] (!%p138_p2)   ;;  %vm1192_vm1 = vcmask (!%p138_p2), 1041408  }
   0x7   : > { %1549 = vmatpush3.bf16.msra.mxu0 (!%p138_p2), %v1738_v0  ;;  %1564 = vmatprep.mubr.msk.bf16.mxu0 (!%p138_p2), %vm1823_vm0, %v1822_v1  ;;  %v1744_v7 = vld [vmem:[%s2182_s1 + $0x58] sm:$0xff] (!%p138_p2)   ;;  %v1746_v9 = vld [vmem:[%s2182_s1 + $0x60] sm:$0xff] (!%p138_p2)   ;;  %v1748_v13 = vld [vmem:[%s2182_s1 + $0x68] sm:$0xff] (!%p138_p2)   ;;  %vm1193_vm2 = vsmask.f32 (!%p138_p2), 1280 }
   0x8   : > { %1569 = vmatpush3.bf16.msra.mxu1 (!%p138_p2), %v1739_v2  ;;  %1550 = vmatprep.subr.bf16.mxu0 (!%p138_p2), %v1822_v1  ;;  %v1745_v8 = vld [vmem:[%s2182_s1 + $0x18] sm:$0xff] (!%p138_p2)   ;;  %v1747_v10 = vld [vmem:[%s2182_s1 + $0x20] sm:$0xff] (!%p138_p2)   ;;  %v1749_v14 = vld [vmem:[%s2182_s1 + $0x28] sm:$0xff] (!%p138_p2)  }
   0x9   : > { %1570 = vmatprep.subr.bf16.mxu1 (!%p138_p2), %v1822_v1  ;;  %1584 = vmatprep.mubr.msk.bf16.mxu1 (!%p138_p2), %vm1823_vm0, %v1822_v1  ;;  %v1750_v16 = vld [vmem:[%s2182_s1 + $0x70] sm:$0xff] (!%p138_p2)   ;;  %v1752_v20 = vld [vmem:[%s2182_s1 + $0x78] sm:$0xff] (!%p138_p2)   ;;  %v1755_v23 = vld [vmem:[%s2182_s1 + $0x80] sm:$0xff] (!%p138_p2)  }
   0xa   : > { %v1751_v17 = vld [vmem:[%s2182_s1 + $0x30] sm:$0xff] (!%p138_p2)   ;;  %v1753_v21 = vld [vmem:[%s2182_s1 + $0x38] sm:$0xff] (!%p138_p2)   ;;  %v1756_v24 = vld [vmem:[%s2182_s1 + $0xc0] sm:$0xff] (!%p138_p2)  }
   0xb   : > { %1551 = vmatpush3.bf16.msra.mxu0 (!%p138_p2), %v1740_v3  ;;  %v1757_v25 = vld [vmem:[%s2182_s1 + $0x88] sm:$0xff] (!%p138_p2)   ;;  %v1759_v27 = vld [vmem:[%s2182_s1 + $0x90] sm:$0xff] (!%p138_p2)   ;;  %v1761_v29 = vld [vmem:[%s2182_s1 + $0x98] sm:$0xff] (!%p138_p2)  }
   0xc   : > { %1571 = vmatpush3.bf16.msra.mxu1 (!%p138_p2), %v1741_v4  ;;  %1552 = vmatprep.subr.bf16.mxu0 (!%p138_p2), %v1822_v1  ;;  %v1758_v26 = vld [vmem:[%s2182_s1 + $0xc8] sm:$0xff] (!%p138_p2)   ;;  %v1760_v28 = vld [vmem:[%s2182_s1 + $0xd0] sm:$0xff] (!%p138_p2)   ;;  %v1762_v30 = vld [vmem:[%s2182_s1 + $0xd8] sm:$0xff] (!%p138_p2)  }
   0xd   : > { %s2186_s13 = smov (!%p160_p3, %s1251_s13), 1  ;;  %1572 = vmatprep.subr.bf16.mxu1 %v1822_v1  ;;  %v1763_v31 = vld [vmem:[%s2182_s1 + $0xa0] sm:$0xff]   ;;  %v1765_v34 = vld [vmem:[%s2182_s1 + $0xa8] sm:$0xff]   ;;  %v1767_v36 = vld [vmem:[%s2182_s1 + $0xb0] sm:$0xff]  }
   0xe   : > { %s1466_s28 = sshll.u32 %s2186_s13, 3  ;;  %v1764_v32 = vld [vmem:[%s2182_s1 + $0xe0] sm:$0xff]   ;;  %v1766_v35 = vld [vmem:[%s2182_s1 + $0xe8] sm:$0xff]   ;;  %v1768_v39 = vld [vmem:[%s2182_s1 + $0xf0] sm:$0xff]  }
   0xf   : > { %1553 = vmatpush3.bf16.msra.mxu0 %v1742_v5  ;;  %s1894_s6 = scalar_lea.vmem %s2181_s0, %s1466_s28  ;;  %v1769_v40 = vld [vmem:[%s2182_s1 + $0xb8] sm:$0xff]   ;;  %v1772_v45 = vld [vmem:[%s2182_s1 + $0x100] sm:$0xff]   ;;  %v1774_v48 = vld [vmem:[%s2182_s1 + $0x108] sm:$0xff]  }
  0x10   : > { %1573 = vmatpush3.bf16.msra.mxu1 %v1743_v6  ;;  %1554 = vmatprep.subr.bf16.mxu0 %v1822_v1  ;;  %v170_v11 = vld [vmem:[%s1894_s6] sm:$0x3]  ;;  %v1770_v43 = vld [vmem:[%s2182_s1 + $0xf8] sm:$0xff]   ;;  %v1775_v49 = vld [vmem:[%s2182_s1 + $0x148] sm:$0xff]  }
  0x11   : > { %1574 = vmatprep.subr.bf16.mxu1 %v1822_v1  ;;  %v1275_v12 = vcombine.low %v170_v11, %v170_v11  ;;  %v1771_v33 = vld [vmem:[%s1894_s6] ss:$0 sps:$4 sm:$0x66]   ;;  %v1776_v50 = vld [vmem:[%s2182_s1 + $0x110] sm:$0xff]   ;;  %v1778_v52 = vld [vmem:[%s2182_s1 + $0x118] sm:$0xff]  }
  0x12   : > { %v521_v37 = vshrl.u32 %v1771_v33, 16  ;;  %v524_v38 = vshll.u32 %v1771_v33, 16  ;;  %v412_v44 = vrot.slane %v1771_v33, 1  ;;  %v1773_v47 = vld [vmem:[%s2182_s1 + $0x140] sm:$0xff]   ;;  %v1777_v51 = vld [vmem:[%s2182_s1 + $0x150] sm:$0xff]   ;;  %v1779_v53 = vld [vmem:[%s2182_s1 + $0x158] sm:$0xff]  }
  0x13   : > { %1555 = vmatpush3.bf16.msra.mxu0 %v1744_v7  ;;  %v210_v15 = vshll.u32 %v1275_v12, 16  ;;  %v208_v18 = vshrl.u32 %v1275_v12, 16  ;;  %v1780_v54 = vld [vmem:[%s2182_s1 + $0x120] sm:$0xff]   ;;  %v1782_v56 = vld [vmem:[%s2182_s1 + $0x128] sm:$0xff]   ;;  %v1784_v59 = vld [vmem:[%s2182_s1 + $0x130] sm:$0xff]  }
  0x14   : > { %1575 = vmatpush3.bf16.msra.mxu1 %v1745_v8  ;;  %1556 = vmatprep.subr.bf16.mxu0 %v1822_v1  ;;  %v523_v41 = vrot.slane %v521_v37, 1  ;;  %v526_v42 = vrot.slane %v524_v38, 2  ;;  %v1781_v55 = vld [vmem:[%s2182_s1 + $0x160] sm:$0xff]   ;;  %v1783_v58 = vld [vmem:[%s2182_s1 + $0x168] sm:$0xff]   ;;  %v1785_v62 = vld [vmem:[%s2182_s1 + $0x170] sm:$0xff]  }
  0x15   : > { %1576 = vmatprep.subr.bf16.mxu1 %v1822_v1  ;;  %v212_v19 = vrot.slane %v210_v15, 1  ;;  %v1788_v57 = vld [vmem:[%s1894_s6] ss:$0 sps:$4 sm:$0xcc]   ;;  %v1786_v63 = vld [vmem:[%s2182_s1 + $0x138] sm:$0xff]   ;;  %v1791_v8 = vld [vmem:[%s2182_s1 + $0x188] sm:$0xff]  }
  0x16   : > { %v527_v46 = vor.u32 %v526_v42, %v523_v41  ;;  %v748_v60 = vshrl.u32 %v1788_v57, 16  ;;  %v751_v61 = vshll.u32 %v1788_v57, 16  ;;  %v1787_v3 = vld [vmem:[%s2182_s1 + $0x178] sm:$0xff]   ;;  %v639_v4 = vrot.slane %v1788_v57, 2  ;;  %v1789_v5 = vld [vmem:[%s2182_s1 + $0x180] sm:$0xff]   ;;  %vm1194_vm3 = vmand %vm1192_vm1, %vm1193_vm2 }
  0x17   : > { %1557 = vmatpush3.bf16.msra.mxu0 %v1746_v9  ;;  %v213_v22 = vor.u32 %v212_v19, %v208_v18  ;;  %v1790_v7 = vld [vmem:[%s2182_s1 + $0x1c0] sm:$0xff]   ;;  %v1792_v9 = vld [vmem:[%s2182_s1 + $0x1c8] sm:$0xff]   ;;  %v1795_v12 = vld [vmem:[%s2182_s1 + $0x198] sm:$0xff]  }
  0x18   : > { %1577 = vmatpush3.bf16.msra.mxu1 %v1747_v10  ;;  %1558 = vmatprep.subr.bf16.mxu0 %v1822_v1  ;;  %v750_v0 = vrot.slane %v748_v60, 2  ;;  %v753_v2 = vrot.slane %v751_v61, 3  ;;  %v1793_v10 = vld [vmem:[%s2182_s1 + $0x190] sm:$0xff]   ;;  %v1798_v15 = vld [vmem:[%s2182_s1 + $0x1e0] sm:$0xff]   ;;  %v1800_v18 = vld [vmem:[%s2182_s1 + $0x1e8] sm:$0xff]  }
  0x19   : > { %1578 = vmatprep.subr.bf16.mxu1 %v1822_v1  ;;  %v1801_v19 = vld [vmem:[%s2182_s1 + $0x1b0] sm:$0xff]   ;;  %v1810_v33 = vld [vmem:[%s2182_s1 + $0x220] sm:$0xff]  }
  0x1a   : > { %v754_v6 = vor.u32 %v753_v2, %v750_v0  ;;  %v1075_v37 = vld [vmem:[%s1894_s6 + $0x4] sm:$0x3] }
  0x1b   : > { %1559 = vmatpush3.bf16.msra.mxu0 %v1748_v13  ;;  %v1796_v13 = vld [vmem:[%s2182_s1 + $0x1d8] sm:$0xff]  }
  0x1c   : > { %1579 = vmatpush3.bf16.msra.mxu1 %v1749_v14  ;;  %1560 = vmatprep.subr.bf16.mxu0 %v1822_v1  ;;  %v1797_v14 = vld [vmem:[%s2182_s1 + $0x1a0] sm:$0xff]  }
  0x1d   : > { %1580 = vmatprep.subr.bf16.mxu1 %v1822_v1 }
  0x1f   : > { %1561 = vmatpush3.bf16.msra.mxu0 %v1750_v16  ;;  %v1799_v16 = vld [vmem:[%s2182_s1 + $0x1a8] sm:$0xff]  }
  0x20   : > { %1581 = vmatpush3.bf16.msra.mxu1 %v1751_v17  ;;  %1562 = vmatprep.subr.bf16.mxu0 %v1822_v1  ;;  %v1805_v17 = vld [vmem:[%s1894_s6] sm:$0x18]   ;;  %s1258_s6 = sshll.u32 %s2186_s13, 1 }
  0x21   : > { %1582 = vmatprep.subr.bf16.mxu1 %v1822_v1  ;;  %s168_s21 = scalar_lea.vmem %s2184_s3, %s1258_s6 }
  0x23   : > { %1563 = vmatpush3.bf16.msra.mxu0 %v1752_v20  ;;  %v978_v20 = vshrl.u32 %v1805_v17, 16 }
  0x24   : > { %1583 = vmatpush3.bf16.msra.mxu1 %v1753_v21  ;;  %1588 = vmatprep.subr.bf16.mxu0 %v1822_v1  ;;  %v981_v21 = vshll.u32 %v1805_v17, 16 }
  0x25   : > { %1608 = vmatprep.subr.bf16.mxu1 %v1822_v1 }
  0x26   : > { %1565 = vmatmul.mubr.bf16.vlgmr.msra.gmra.mrb[0].mxu0 %v213_v22  ;;  %v1802_v22 = vld [vmem:[%s2182_s1 + $0x1f0] sm:$0xff]  }
  0x27   : > { %1585 = vmatmul.mubr.bf16.vlgmr.msra.gmra.mrb[0].mxu1 %v170_v11  ;;  %1589 = vmatpush3.bf16.msra.mxu0 %v1755_v23  ;;  %v1794_v11 = vld [vmem:[%s2182_s1 + $0x1d0] sm:$0xff]   ;;  %v1803_v23 = vld [vmem:[%s2182_s1 + $0x1b8] sm:$0xff]  }
  0x28   : > { %1609 = vmatpush3.bf16.msra.mxu1 %v1756_v24  ;;  %1590 = vmatprep.subr.bf16.mxu0 %v1822_v1  ;;  %v980_v24 = vrot.slane %v978_v20, 3 }
  0x29   : > { %1610 = vmatprep.subr.bf16.mxu1 %v1822_v1  ;;  %1604 = vmatprep.mubr.msk.bf16.mxu0 %vm1823_vm0, %v1822_v1 }
  0x2a   : > { %1624 = vmatprep.mubr.msk.bf16.mxu1 %vm1823_vm0, %v1822_v1 }
  0x2b   : > { %1591 = vmatpush3.bf16.msra.mxu0 %v1757_v25  ;;  %v983_v25 = vrot.slane %v981_v21, 4  ;;  %v1195_v21 = vld [vmem:[%s168_s21] sm:$0x3] }
  0x2c   : > { %1611 = vmatpush3.bf16.msra.mxu1 %v1758_v26  ;;  %1592 = vmatprep.subr.bf16.mxu0 %v1822_v1  ;;  %v1804_v26 = vld [vmem:[%s2182_s1 + $0x1f8] sm:$0xff]  }
  0x2d   : > { %1612 = vmatprep.subr.bf16.mxu1 %v1822_v1 }
  0x2f   : > { %1593 = vmatpush3.bf16.msra.mxu0 %v1759_v27  ;;  %v869_v27 = vrot.slane %v1805_v17, 3 }
  0x30   : > { %1613 = vmatpush3.bf16.msra.mxu1 %v1760_v28  ;;  %1594 = vmatprep.subr.bf16.mxu0 %v1822_v1  ;;  %v1806_v28 = vld [vmem:[%s2182_s1 + $0x200] sm:$0xff]  }
  0x31   : > { %1614 = vmatprep.subr.bf16.mxu1 %v1822_v1 }
  0x33   : > { %1595 = vmatpush3.bf16.msra.mxu0 %v1761_v29  ;;  %v984_v29 = vor.u32 %v983_v25, %v980_v24 }
  0x34   : > { %1615 = vmatpush3.bf16.msra.mxu1 %v1762_v30  ;;  %1596 = vmatprep.subr.bf16.mxu0 %v1822_v1  ;;  %v1807_v30 = vld [vmem:[%s2182_s1 + $0x208] sm:$0xff]  }
  0x35   : > { %1616 = vmatprep.subr.bf16.mxu1 %v1822_v1 }
  0x37   : > { %1597 = vmatpush3.bf16.msra.mxu0 %v1763_v31  ;;  %v1808_v31 = vld [vmem:[%s2182_s1 + $0x210] sm:$0xff]  }
  0x38   : > { %1617 = vmatpush3.bf16.msra.mxu1 %v1764_v32  ;;  %1598 = vmatprep.subr.bf16.mxu0 %v1822_v1  ;;  %v1809_v32 = vld [vmem:[%s2182_s1 + $0x218] sm:$0xff]  }
  0x39   : > { %1618 = vmatprep.subr.bf16.mxu1 %v1822_v1 }
  0x3b   : > { %1599 = vmatpush3.bf16.msra.mxu0 %v1765_v34  ;;  %v1811_v34 = vld [vmem:[%s2182_s1 + $0x228] sm:$0xff]  }
  0x3c   : > { %1619 = vmatpush3.bf16.msra.mxu1 %v1766_v35  ;;  %1600 = vmatprep.subr.bf16.mxu0 %v1822_v1  ;;  %v1812_v35 = vld [vmem:[%s2182_s1 + $0x230] sm:$0xff]  }
  0x3d   : > { %1620 = vmatprep.subr.bf16.mxu1 %v1822_v1 }
  0x3f   : > { %1601 = vmatpush3.bf16.msra.mxu0 %v1767_v36  ;;  %v1813_v36 = vld [vmem:[%s2182_s1 + $0x238] sm:$0xff]  }
  0x40   : > { %1621 = vmatpush3.bf16.msra.mxu1 %v1768_v39  ;;  %1602 = vmatprep.subr.bf16.mxu0 %v1822_v1 }
  0x41   : > { %1622 = vmatprep.subr.bf16.mxu1 %v1822_v1 }
  0x43   : > { %1603 = vmatpush3.bf16.msra.mxu0 %v1769_v40 }
  0x44   : > { %1623 = vmatpush3.bf16.msra.mxu1 %v1770_v43  ;;  %1628 = vmatprep.subr.bf16.mxu0 %v1822_v1 }
  0x45   : > { %1648 = vmatprep.subr.bf16.mxu1 %v1822_v1 }
  0x46   : > { %1605 = vmatmul.mubr.bf16.vlgmr.msra.gmra.mrb[4].mxu0 %v412_v44 }
  0x47   : > { %1629 = vmatpush3.bf16.msra.mxu0 %v1772_v45  ;;  %1625 = vmatmul.mubr.bf16.vlgmr.msra.gmra.mrb[4].mxu1 %v527_v46 }
  0x48   : > { %1649 = vmatpush3.bf16.msra.mxu1 %v1773_v47  ;;  %1630 = vmatprep.subr.bf16.mxu0 %v1822_v1 }
  0x49   : > { %1650 = vmatprep.subr.bf16.mxu1 %v1822_v1  ;;  %1644 = vmatprep.mubr.msk.bf16.mxu0 %vm1823_vm0, %v1822_v1 }
  0x4a   : > { %1664 = vmatprep.mubr.msk.bf16.mxu1 %vm1823_vm0, %v1822_v1 }
  0x4b   : > { %1631 = vmatpush3.bf16.msra.mxu0 %v1774_v48 }
  0x4c   : > { %1651 = vmatpush3.bf16.msra.mxu1 %v1775_v49  ;;  %1632 = vmatprep.subr.bf16.mxu0 %v1822_v1 }
  0x4d   : > { %1652 = vmatprep.subr.bf16.mxu1 %v1822_v1 }
  0x4f   : > { %1633 = vmatpush3.bf16.msra.mxu0 %v1776_v50 }
  0x50   : > { %1653 = vmatpush3.bf16.msra.mxu1 %v1777_v51  ;;  %1634 = vmatprep.subr.bf16.mxu0 %v1822_v1 }
  0x51   : > { %1654 = vmatprep.subr.bf16.mxu1 %v1822_v1 }
  0x53   : > { %1635 = vmatpush3.bf16.msra.mxu0 %v1778_v52 }
  0x54   : > { %1655 = vmatpush3.bf16.msra.mxu1 %v1779_v53  ;;  %1636 = vmatprep.subr.bf16.mxu0 %v1822_v1 }
  0x55   : > { %1656 = vmatprep.subr.bf16.mxu1 %v1822_v1 }
  0x57   : > { %1637 = vmatpush3.bf16.msra.mxu0 %v1780_v54 }
  0x58   : > { %1657 = vmatpush3.bf16.msra.mxu1 %v1781_v55  ;;  %1638 = vmatprep.subr.bf16.mxu0 %v1822_v1 }
  0x59   : > { %1658 = vmatprep.subr.bf16.mxu1 %v1822_v1 }
  0x5b   : > { %1639 = vmatpush3.bf16.msra.mxu0 %v1782_v56 }
  0x5c   : > { %1659 = vmatpush3.bf16.msra.mxu1 %v1783_v58  ;;  %1640 = vmatprep.subr.bf16.mxu0 %v1822_v1 }
  0x5d   : > { %1660 = vmatprep.subr.bf16.mxu1 %v1822_v1 }
  0x5f   : > { %1641 = vmatpush3.bf16.msra.mxu0 %v1784_v59 }
  0x60   : > { %1661 = vmatpush3.bf16.msra.mxu1 %v1785_v62  ;;  %1642 = vmatprep.subr.bf16.mxu0 %v1822_v1 }
  0x61   : > { %1662 = vmatprep.subr.bf16.mxu1 %v1822_v1 }
  0x63   : > { %1643 = vmatpush3.bf16.msra.mxu0 %v1786_v63 }
  0x64   : > { %1663 = vmatpush3.bf16.msra.mxu1 %v1787_v3  ;;  %1668 = vmatprep.subr.bf16.mxu0 %v1822_v1 }
  0x65   : > { %1688 = vmatprep.subr.bf16.mxu1 %v1822_v1 }
  0x66   : > { %1645 = vmatmul.mubr.bf16.vlgmr.msra.gmra.mrb[8].mxu0 %v639_v4 }
  0x67   : > { %1669 = vmatpush3.bf16.msra.mxu0 %v1789_v5  ;;  %1665 = vmatmul.mubr.bf16.vlgmr.msra.gmra.mrb[8].mxu1 %v754_v6 }
  0x68   : > { %1689 = vmatpush3.bf16.msra.mxu1 %v1790_v7  ;;  %1670 = vmatprep.subr.bf16.mxu0 %v1822_v1 }
  0x69   : > { %1690 = vmatprep.subr.bf16.mxu1 %v1822_v1  ;;  %1684 = vmatprep.mubr.msk.bf16.mxu0 %vm1823_vm0, %v1822_v1 }
  0x6a   : > { %1704 = vmatprep.mubr.msk.bf16.mxu1 %vm1823_vm0, %v1822_v1 }
  0x6b   : > { %1671 = vmatpush3.bf16.msra.mxu0 %v1791_v8 }
  0x6c   : > { %1691 = vmatpush3.bf16.msra.mxu1 %v1792_v9  ;;  %1672 = vmatprep.subr.bf16.mxu0 %v1822_v1 }
  0x6d   : > { %1692 = vmatprep.subr.bf16.mxu1 %v1822_v1 }
  0x6f   : > { %1673 = vmatpush3.bf16.msra.mxu0 %v1793_v10 }
  0x70   : > { %1693 = vmatpush3.bf16.msra.mxu1 %v1794_v11  ;;  %1674 = vmatprep.subr.bf16.mxu0 %v1822_v1 }
  0x71   : > { %1694 = vmatprep.subr.bf16.mxu1 %v1822_v1 }
  0x73   : > { %1675 = vmatpush3.bf16.msra.mxu0 %v1795_v12 }
  0x74   : > { %1695 = vmatpush3.bf16.msra.mxu1 %v1796_v13  ;;  %1676 = vmatprep.subr.bf16.mxu0 %v1822_v1 }
  0x75   : > { %1696 = vmatprep.subr.bf16.mxu1 %v1822_v1 }
  0x77   : > { %1677 = vmatpush3.bf16.msra.mxu0 %v1797_v14  ;;  %v1463_v14 = vld [vmem:[%s2183_s2] ss:$0 sm:$0xff] }
  0x78   : > { %1697 = vmatpush3.bf16.msra.mxu1 %v1798_v15  ;;  %1678 = vmatprep.subr.bf16.mxu0 %v1822_v1 }
  0x79   : > { %1698 = vmatprep.subr.bf16.mxu1 %v1822_v1 }
  0x7b   : > { %1679 = vmatpush3.bf16.msra.mxu0 %v1799_v16 }
  0x7c   : > { %1699 = vmatpush3.bf16.msra.mxu1 %v1800_v18  ;;  %1680 = vmatprep.subr.bf16.mxu0 %v1822_v1 }
  0x7d   : > { %1700 = vmatprep.subr.bf16.mxu1 %v1822_v1 }
  0x7f   : > { %1681 = vmatpush3.bf16.msra.mxu0 %v1801_v19 }
  0x80   : > { %1701 = vmatpush3.bf16.msra.mxu1 %v1802_v22  ;;  %1682 = vmatprep.subr.bf16.mxu0 %v1822_v1 }
  0x81   : > { %1702 = vmatprep.subr.bf16.mxu1 %v1822_v1 }
  0x83   : > { %1683 = vmatpush3.bf16.msra.mxu0 %v1803_v23 }
  0x84   : > { %1703 = vmatpush3.bf16.msra.mxu1 %v1804_v26  ;;  %1708 = vmatprep.subr.bf16.mxu0 %v1822_v1 }
  0x86   : > { %1685 = vmatmul.mubr.bf16.vlgmr.msra.gmra.mrb[12].mxu0 %v869_v27 }
  0x87   : > { %1709 = vmatpush3.bf16.msra.mxu0 %v1806_v28  ;;  %1705 = vmatmul.mubr.bf16.vlgmr.msra.gmra.mrb[12].mxu1 %v984_v29 }
  0x88   : > { %1710 = vmatprep.subr.bf16.mxu0 %v1822_v1  ;;  %1724 = vmatprep.mubr.msk.bf16.mxu0 %vm1823_vm0, %v1822_v1 }
  0x8b   : > { %1711 = vmatpush3.bf16.msra.mxu0 %v1807_v30 }
  0x8c   : > { %1712 = vmatprep.subr.bf16.mxu0 %v1822_v1 }
  0x8f   : > { %1713 = vmatpush3.bf16.msra.mxu0 %v1808_v31 }
  0x90   : > { %1714 = vmatprep.subr.bf16.mxu0 %v1822_v1 }
  0x93   : > { %1715 = vmatpush3.bf16.msra.mxu0 %v1809_v32 }
  0x94   : > { %1716 = vmatprep.subr.bf16.mxu0 %v1822_v1 }
  0x97   : > { %1717 = vmatpush3.bf16.msra.mxu0 %v1810_v33 }
  0x98   : > { %1718 = vmatprep.subr.bf16.mxu0 %v1822_v1 }
  0x9b   : > { %1719 = vmatpush3.bf16.msra.mxu0 %v1811_v34 }
  0x9c   : > { %1720 = vmatprep.subr.bf16.mxu0 %v1822_v1 }
  0x9f   : > { %1721 = vmatpush3.bf16.msra.mxu0 %v1812_v35 }
  0xa0   : > { %1722 = vmatprep.subr.bf16.mxu0 %v1822_v1 }
  0xa3   : > { %1723 = vmatpush3.bf16.msra.mxu0 %v1813_v36 }
  0xa6   : > { %1725 = vmatmul.mubr.bf16.vlgmr.msra.gmra.mrb[16].mxu0 %v1075_v37 }
  0xf9   : > { %v297_v38 = vpop.f32.mrb[0].mxu0 }
  0xfa   : > { %v1566_v39 = vpop.f32.mrb[1].mxu0  ;;  %v385_v40 = vpop.f32.mrb[0].mxu1 }
  0xfb   : > { %v386_v41 = vadd.f32 %v385_v40, %v297_v38  ;;  %v300_v42 = vpop.f32.mrb[2].mxu0  ;;  %v1586_v43 = vpop.f32.mrb[1].mxu1 }
  0xfc   : > { %v1567_v44 = vpop.f32.mrb[3].mxu0  ;;  %v388_v45 = vpop.f32.mrb[2].mxu1 }
  0xfd   : > { %v1587_v46 = vpop.f32.mrb[3].mxu1 }
 0x119   : > { %v496_v47 = vpop.f32.mrb[4].mxu0 }
 0x11a   : > { %v502_v48 = vadd.f32 %v496_v47, %v386_v41  ;;  %v1606_v49 = vpop.f32.mrb[5].mxu0  ;;  %v611_v50 = vpop.f32.mrb[4].mxu1 }
 0x11b   : > { %v499_v51 = vpop.f32.mrb[6].mxu0  ;;  %v1626_v52 = vpop.f32.mrb[5].mxu1 }
 0x11c   : > { %v617_v53 = vadd.f32 %v611_v50, %v502_v48  ;;  %v1607_v1 = vpop.f32.mrb[7].mxu0  ;;  %v614_v54 = vpop.f32.mrb[6].mxu1 }
 0x11d   : > { %v1627_v55 = vpop.f32.mrb[7].mxu1 }
 0x139   : > { %v723_v56 = vpop.f32.mrb[8].mxu0 }
 0x13a   : > { %v729_v57 = vadd.f32 %v723_v56, %v617_v53  ;;  %v1646_v58 = vpop.f32.mrb[9].mxu0  ;;  %v838_v59 = vpop.f32.mrb[8].mxu1 }
 0x13b   : > { %v726_v60 = vpop.f32.mrb[10].mxu0  ;;  %v1666_v61 = vpop.f32.mrb[9].mxu1 }
 0x13c   : > { %v844_v62 = vadd.f32 %v838_v59, %v729_v57  ;;  %v1647_v63 = vpop.f32.mrb[11].mxu0  ;;  %v841_v0 = vpop.f32.mrb[10].mxu1 }
 0x13d   : > { %v1667_v2 = vpop.f32.mrb[11].mxu1 }
 0x159   : > { %v953_v3 = vpop.f32.mrb[12].mxu0 }
 0x15a   : > { %v959_v4 = vadd.f32 %v953_v3, %v844_v62  ;;  %v1686_v5 = vpop.f32.mrb[13].mxu0  ;;  %v1068_v6 = vpop.f32.mrb[12].mxu1 }
 0x15b   : > { %v956_v7 = vpop.f32.mrb[14].mxu0  ;;  %v1706_v8 = vpop.f32.mrb[13].mxu1 }
 0x15c   : > { %v1074_v9 = vadd.f32 %v1068_v6, %v959_v4  ;;  %v1687_v10 = vpop.f32.mrb[15].mxu0  ;;  %v1071_v11 = vpop.f32.mrb[14].mxu1 }
 0x15d   : > { %v1707_v12 = vpop.f32.mrb[15].mxu1 }
 0x179   : > { %v1175_v13 = vpop.f32.mrb[16].mxu0 }
 0x17a   : > { %v1181_v15 = vadd.f32 %v1175_v13, %v1074_v9  ;;  %v1726_v16 = vpop.f32.mrb[17].mxu0 }
 0x17b   : > { %v1178_v17 = vpop.f32.mrb[18].mxu0 }
 0x17c   : > { %v1189_v18 = vadd.f32 %v1463_v14, %v1181_v15  ;;  %v1727_v19 = vpop.f32.mrb[19].mxu0 }
 0x17e   : > { %v1190_v20 = vmax.f32 %v1189_v18, 0.0 }
 0x180   : > { %v1191_v22 = vpack.c.bf16 %v1190_v20, %v1190_v20 }
 0x182   : > { %v1196_v23 = vsel %vm1194_vm3, %v1191_v22, %v1195_v21 }
 0x183   : > { %1197 = vst [vmem:[%s168_s21] sm:$0x3] %v1196_v23 }
 0x184 PF: > { %s13_s12 = sadd.s32 1, %s1820_s12  }
 0x185   : > { %p10_p4 = scmp.ge.s32.totalorder %s13_s12, 4  }
 0x187   :  { %12 = sbr.rel (!%p10_p4) target bundleno = 1 (0x1), region = 70 }

// kernel: _lambda_.40
= control target key start
LH: loop header
LB: loop body
LE: loop exit
PB: predicated region body
PF: predicated region fallthrough
CT: control target
= control target key end

     0   :  { %s1908_s15 = smov 0   ;;  %s2248_s0 = inlined_call_operand.vmem [shape: bf16[2,12,128], index: 0, kind: input, shape index: {}]   ;;  %s2249_s1 = inlined_call_operand.vmem [shape: bf16[9,128,128], index: 1, kind: input, shape index: {}]   ;;  %s2250_s2 = inlined_call_operand.vmem [shape: f32[1,128], index: 2, kind: input, shape index: {}]   ;;  %s2251_s3 = inlined_call_operand.vmem [shape: bf16[2,3,128], index: 3, kind: input, shape index: {}]   ;;  %s2252_s4 = inlined_call_operand.vmem [shape: bf16[2,3,128], index: 4, kind: output, shape index: {}]  }
   0x1 LB: > { %s1309_s16 = sadd.s32 4294967295, %s1879_s15   ;;  %p1313_p0 = scmp.ge.s32.totalorder %s1879_s15, 1  ;;  %s1879_s15 = sphi %s1908_s15, %s14_s15  }
   0x2   : > { %p171_p1 = scmp.lt.s32.totalorder %s1879_s15, 3 }
   0x4   : > { %p172_p2 = pnand %p1313_p0, %p171_p1 }
   0x5   : > { %v1797_v0 = vld [vmem:[%s2249_s1 + $0x40] sm:$0xff] (!%p172_p2)   ;;  %v1881_v1 = vmov (!%p172_p2), 0.0   ;;  %v1799_v3 = vld [vmem:[%s2249_s1 + $0x48] sm:$0xff] (!%p172_p2)   ;;  %vm1882_vm0 = vmmov (!%p172_p2), 0   ;;  %p200_p3 = scmp.lt.s32.totalorder (!%p172_p2), %s1309_s16, 1  ;;  %v1801_v5 = vld [vmem:[%s2249_s1 + $0x50] sm:$0xff] (!%p172_p2)  }
   0x6   : > { %175 = sbr.rel (%p172_p2) target bundleno = 388 (0x184), region = 36  ;;  %1607 = vmatprep.subr.bf16.mxu0 (!%p172_p2), %v1881_v1  ;;  %1627 = vmatprep.subr.bf16.mxu1 (!%p172_p2), %v1881_v1  ;;  %v1798_v2 = vld [vmem:[%s2249_s1] sm:$0xff] (!%p172_p2)   ;;  %v1800_v4 = vld [vmem:[%s2249_s1 + $0x8] sm:$0xff] (!%p172_p2)   ;;  %v1802_v6 = vld [vmem:[%s2249_s1 + $0x10] sm:$0xff] (!%p172_p2)   ;;  %vm1238_vm1 = vcmask (!%p172_p2), 1041408  }
   0x7   : > { %1608 = vmatpush3.bf16.msra.mxu0 (!%p172_p2), %v1797_v0  ;;  %1623 = vmatprep.mubr.msk.bf16.mxu0 (!%p172_p2), %vm1882_vm0, %v1881_v1  ;;  %v1803_v7 = vld [vmem:[%s2249_s1 + $0x58] sm:$0xff] (!%p172_p2)   ;;  %v1805_v9 = vld [vmem:[%s2249_s1 + $0x60] sm:$0xff] (!%p172_p2)   ;;  %v1807_v13 = vld [vmem:[%s2249_s1 + $0x68] sm:$0xff] (!%p172_p2)   ;;  %vm1239_vm2 = vsmask.f32 (!%p172_p2), 1280 }
   0x8   : > { %1628 = vmatpush3.bf16.msra.mxu1 (!%p172_p2), %v1798_v2  ;;  %1609 = vmatprep.subr.bf16.mxu0 (!%p172_p2), %v1881_v1  ;;  %v1804_v8 = vld [vmem:[%s2249_s1 + $0x18] sm:$0xff] (!%p172_p2)   ;;  %v1806_v10 = vld [vmem:[%s2249_s1 + $0x20] sm:$0xff] (!%p172_p2)   ;;  %v1808_v14 = vld [vmem:[%s2249_s1 + $0x28] sm:$0xff] (!%p172_p2)  }
   0x9   : > { %1629 = vmatprep.subr.bf16.mxu1 (!%p172_p2), %v1881_v1  ;;  %1643 = vmatprep.mubr.msk.bf16.mxu1 (!%p172_p2), %vm1882_vm0, %v1881_v1  ;;  %v1809_v16 = vld [vmem:[%s2249_s1 + $0x70] sm:$0xff] (!%p172_p2)   ;;  %v1811_v20 = vld [vmem:[%s2249_s1 + $0x78] sm:$0xff] (!%p172_p2)   ;;  %v1814_v23 = vld [vmem:[%s2249_s1 + $0x80] sm:$0xff] (!%p172_p2)  }
   0xa   : > { %v1810_v17 = vld [vmem:[%s2249_s1 + $0x30] sm:$0xff] (!%p172_p2)   ;;  %v1812_v21 = vld [vmem:[%s2249_s1 + $0x38] sm:$0xff] (!%p172_p2)   ;;  %v1815_v24 = vld [vmem:[%s2249_s1 + $0xc0] sm:$0xff] (!%p172_p2)  }
   0xb   : > { %1610 = vmatpush3.bf16.msra.mxu0 (!%p172_p2), %v1799_v3  ;;  %v1816_v25 = vld [vmem:[%s2249_s1 + $0x88] sm:$0xff] (!%p172_p2)   ;;  %v1818_v27 = vld [vmem:[%s2249_s1 + $0x90] sm:$0xff] (!%p172_p2)   ;;  %v1820_v29 = vld [vmem:[%s2249_s1 + $0x98] sm:$0xff] (!%p172_p2)  }
   0xc   : > { %1630 = vmatpush3.bf16.msra.mxu1 (!%p172_p2), %v1800_v4  ;;  %1611 = vmatprep.subr.bf16.mxu0 (!%p172_p2), %v1881_v1  ;;  %v1817_v26 = vld [vmem:[%s2249_s1 + $0xc8] sm:$0xff] (!%p172_p2)   ;;  %v1819_v28 = vld [vmem:[%s2249_s1 + $0xd0] sm:$0xff] (!%p172_p2)   ;;  %v1821_v30 = vld [vmem:[%s2249_s1 + $0xd8] sm:$0xff] (!%p172_p2)  }
   0xd   : > { %s2254_s16 = smov (!%p200_p3, %s1309_s16), 1  ;;  %1631 = vmatprep.subr.bf16.mxu1 %v1881_v1  ;;  %v1822_v31 = vld [vmem:[%s2249_s1 + $0xa0] sm:$0xff]   ;;  %v1824_v34 = vld [vmem:[%s2249_s1 + $0xa8] sm:$0xff]   ;;  %v1826_v36 = vld [vmem:[%s2249_s1 + $0xb0] sm:$0xff]  }
   0xe   : > { %s1525_s5 = sshll.u32 %s2254_s16, 3  ;;  %v1823_v32 = vld [vmem:[%s2249_s1 + $0xe0] sm:$0xff]   ;;  %v1825_v35 = vld [vmem:[%s2249_s1 + $0xe8] sm:$0xff]   ;;  %v1827_v39 = vld [vmem:[%s2249_s1 + $0xf0] sm:$0xff]  }
   0xf   : > { %1612 = vmatpush3.bf16.msra.mxu0 %v1801_v5  ;;  %s1958_s10 = scalar_lea.vmem %s2248_s0, %s1525_s5  ;;  %v1828_v40 = vld [vmem:[%s2249_s1 + $0xb8] sm:$0xff]   ;;  %v1831_v45 = vld [vmem:[%s2249_s1 + $0x100] sm:$0xff]   ;;  %v1833_v48 = vld [vmem:[%s2249_s1 + $0x108] sm:$0xff]  }
  0x10   : > { %1632 = vmatpush3.bf16.msra.mxu1 %v1802_v6  ;;  %1613 = vmatprep.subr.bf16.mxu0 %v1881_v1  ;;  %v214_v11 = vld [vmem:[%s1958_s10] sm:$0x3]  ;;  %v1829_v43 = vld [vmem:[%s2249_s1 + $0xf8] sm:$0xff]   ;;  %v1834_v49 = vld [vmem:[%s2249_s1 + $0x148] sm:$0xff]  }
  0x11   : > { %1633 = vmatprep.subr.bf16.mxu1 %v1881_v1  ;;  %v1334_v12 = vcombine.low %v214_v11, %v214_v11  ;;  %v1830_v33 = vld [vmem:[%s1958_s10] ss:$0 sps:$4 sm:$0x66]   ;;  %v1835_v50 = vld [vmem:[%s2249_s1 + $0x110] sm:$0xff]   ;;  %v1837_v52 = vld [vmem:[%s2249_s1 + $0x118] sm:$0xff]  }
  0x12   : > { %v565_v37 = vshrl.u32 %v1830_v33, 16  ;;  %v568_v38 = vshll.u32 %v1830_v33, 16  ;;  %v456_v44 = vrot.slane %v1830_v33, 1  ;;  %v1832_v47 = vld [vmem:[%s2249_s1 + $0x140] sm:$0xff]   ;;  %v1836_v51 = vld [vmem:[%s2249_s1 + $0x150] sm:$0xff]   ;;  %v1838_v53 = vld [vmem:[%s2249_s1 + $0x158] sm:$0xff]  }
  0x13   : > { %1614 = vmatpush3.bf16.msra.mxu0 %v1803_v7  ;;  %v254_v15 = vshll.u32 %v1334_v12, 16  ;;  %v252_v18 = vshrl.u32 %v1334_v12, 16  ;;  %v1839_v54 = vld [vmem:[%s2249_s1 + $0x120] sm:$0xff]   ;;  %v1841_v56 = vld [vmem:[%s2249_s1 + $0x128] sm:$0xff]   ;;  %v1843_v59 = vld [vmem:[%s2249_s1 + $0x130] sm:$0xff]  }
  0x14   : > { %1634 = vmatpush3.bf16.msra.mxu1 %v1804_v8  ;;  %1615 = vmatprep.subr.bf16.mxu0 %v1881_v1  ;;  %v567_v41 = vrot.slane %v565_v37, 1  ;;  %v570_v42 = vrot.slane %v568_v38, 2  ;;  %v1840_v55 = vld [vmem:[%s2249_s1 + $0x160] sm:$0xff]   ;;  %v1842_v58 = vld [vmem:[%s2249_s1 + $0x168] sm:$0xff]   ;;  %v1844_v62 = vld [vmem:[%s2249_s1 + $0x170] sm:$0xff]  }
  0x15   : > { %1635 = vmatprep.subr.bf16.mxu1 %v1881_v1  ;;  %v256_v19 = vrot.slane %v254_v15, 1  ;;  %v1847_v57 = vld [vmem:[%s1958_s10] ss:$0 sps:$4 sm:$0xcc]   ;;  %v1845_v63 = vld [vmem:[%s2249_s1 + $0x138] sm:$0xff]   ;;  %v1850_v8 = vld [vmem:[%s2249_s1 + $0x188] sm:$0xff]  }
  0x16   : > { %v571_v46 = vor.u32 %v570_v42, %v567_v41  ;;  %v792_v60 = vshrl.u32 %v1847_v57, 16  ;;  %v795_v61 = vshll.u32 %v1847_v57, 16  ;;  %v1846_v3 = vld [vmem:[%s2249_s1 + $0x178] sm:$0xff]   ;;  %v683_v4 = vrot.slane %v1847_v57, 2  ;;  %v1848_v5 = vld [vmem:[%s2249_s1 + $0x180] sm:$0xff]   ;;  %vm1240_vm3 = vmand %vm1238_vm1, %vm1239_vm2 }
  0x17   : > { %1616 = vmatpush3.bf16.msra.mxu0 %v1805_v9  ;;  %v257_v22 = vor.u32 %v256_v19, %v252_v18  ;;  %v1849_v7 = vld [vmem:[%s2249_s1 + $0x1c0] sm:$0xff]   ;;  %v1851_v9 = vld [vmem:[%s2249_s1 + $0x1c8] sm:$0xff]   ;;  %v1854_v12 = vld [vmem:[%s2249_s1 + $0x198] sm:$0xff]  }
  0x18   : > { %1636 = vmatpush3.bf16.msra.mxu1 %v1806_v10  ;;  %1617 = vmatprep.subr.bf16.mxu0 %v1881_v1  ;;  %v794_v0 = vrot.slane %v792_v60, 2  ;;  %v797_v2 = vrot.slane %v795_v61, 3  ;;  %v1852_v10 = vld [vmem:[%s2249_s1 + $0x190] sm:$0xff]   ;;  %v1857_v15 = vld [vmem:[%s2249_s1 + $0x1e0] sm:$0xff]   ;;  %v1859_v18 = vld [vmem:[%s2249_s1 + $0x1e8] sm:$0xff]  }
  0x19   : > { %1637 = vmatprep.subr.bf16.mxu1 %v1881_v1  ;;  %v1860_v19 = vld [vmem:[%s2249_s1 + $0x1b0] sm:$0xff]   ;;  %v1869_v33 = vld [vmem:[%s2249_s1 + $0x220] sm:$0xff]  }
  0x1a   : > { %v798_v6 = vor.u32 %v797_v2, %v794_v0  ;;  %v1119_v37 = vld [vmem:[%s1958_s10 + $0x4] sm:$0x3] }
  0x1b   : > { %1618 = vmatpush3.bf16.msra.mxu0 %v1807_v13  ;;  %v1855_v13 = vld [vmem:[%s2249_s1 + $0x1d8] sm:$0xff]  }
  0x1c   : > { %1638 = vmatpush3.bf16.msra.mxu1 %v1808_v14  ;;  %1619 = vmatprep.subr.bf16.mxu0 %v1881_v1  ;;  %v1856_v14 = vld [vmem:[%s2249_s1 + $0x1a0] sm:$0xff]  }
  0x1d   : > { %1639 = vmatprep.subr.bf16.mxu1 %v1881_v1 }
  0x1f   : > { %1620 = vmatpush3.bf16.msra.mxu0 %v1809_v16  ;;  %v1858_v16 = vld [vmem:[%s2249_s1 + $0x1a8] sm:$0xff]  }
  0x20   : > { %1640 = vmatpush3.bf16.msra.mxu1 %v1810_v17  ;;  %1621 = vmatprep.subr.bf16.mxu0 %v1881_v1  ;;  %v1864_v17 = vld [vmem:[%s1958_s10] sm:$0x18]   ;;  %s1316_s10 = sshll.u32 %s2254_s16, 1 }
  0x21   : > { %1641 = vmatprep.subr.bf16.mxu1 %v1881_v1  ;;  %s208_s28 = scalar_lea.vmem %s2251_s3, %s1316_s10  ;;  %s212_s7 = scalar_lea.vmem %s2252_s4, %s1316_s10 }
  0x23   : > { %1622 = vmatpush3.bf16.msra.mxu0 %v1811_v20  ;;  %v1022_v20 = vshrl.u32 %v1864_v17, 16 }
  0x24   : > { %1642 = vmatpush3.bf16.msra.mxu1 %v1812_v21  ;;  %1647 = vmatprep.subr.bf16.mxu0 %v1881_v1  ;;  %v1025_v21 = vshll.u32 %v1864_v17, 16 }
  0x25   : > { %1667 = vmatprep.subr.bf16.mxu1 %v1881_v1 }
  0x26   : > { %1624 = vmatmul.mubr.bf16.vlgmr.msra.gmra.mrb[0].mxu0 %v257_v22  ;;  %v1861_v22 = vld [vmem:[%s2249_s1 + $0x1f0] sm:$0xff]  }
  0x27   : > { %1644 = vmatmul.mubr.bf16.vlgmr.msra.gmra.mrb[0].mxu1 %v214_v11  ;;  %1648 = vmatpush3.bf16.msra.mxu0 %v1814_v23  ;;  %v1853_v11 = vld [vmem:[%s2249_s1 + $0x1d0] sm:$0xff]   ;;  %v1862_v23 = vld [vmem:[%s2249_s1 + $0x1b8] sm:$0xff]  }
  0x28   : > { %1668 = vmatpush3.bf16.msra.mxu1 %v1815_v24  ;;  %1649 = vmatprep.subr.bf16.mxu0 %v1881_v1  ;;  %v1024_v24 = vrot.slane %v1022_v20, 3 }
  0x29   : > { %1669 = vmatprep.subr.bf16.mxu1 %v1881_v1  ;;  %1663 = vmatprep.mubr.msk.bf16.mxu0 %vm1882_vm0, %v1881_v1 }
  0x2a   : > { %1683 = vmatprep.mubr.msk.bf16.mxu1 %vm1882_vm0, %v1881_v1 }
  0x2b   : > { %1650 = vmatpush3.bf16.msra.mxu0 %v1816_v25  ;;  %v1027_v25 = vrot.slane %v1025_v21, 4 }
  0x2c   : > { %1670 = vmatpush3.bf16.msra.mxu1 %v1817_v26  ;;  %1651 = vmatprep.subr.bf16.mxu0 %v1881_v1  ;;  %v1863_v26 = vld [vmem:[%s2249_s1 + $0x1f8] sm:$0xff]  }
  0x2d   : > { %1671 = vmatprep.subr.bf16.mxu1 %v1881_v1 }
  0x2f   : > { %1652 = vmatpush3.bf16.msra.mxu0 %v1818_v27  ;;  %v913_v27 = vrot.slane %v1864_v17, 3 }
  0x30   : > { %1672 = vmatpush3.bf16.msra.mxu1 %v1819_v28  ;;  %1653 = vmatprep.subr.bf16.mxu0 %v1881_v1  ;;  %v1865_v28 = vld [vmem:[%s2249_s1 + $0x200] sm:$0xff]  }
  0x31   : > { %1673 = vmatprep.subr.bf16.mxu1 %v1881_v1 }
  0x33   : > { %1654 = vmatpush3.bf16.msra.mxu0 %v1820_v29  ;;  %v1028_v29 = vor.u32 %v1027_v25, %v1024_v24 }
  0x34   : > { %1674 = vmatpush3.bf16.msra.mxu1 %v1821_v30  ;;  %1655 = vmatprep.subr.bf16.mxu0 %v1881_v1  ;;  %v1866_v30 = vld [vmem:[%s2249_s1 + $0x208] sm:$0xff]  }
  0x35   : > { %1675 = vmatprep.subr.bf16.mxu1 %v1881_v1 }
  0x37   : > { %1656 = vmatpush3.bf16.msra.mxu0 %v1822_v31  ;;  %v1867_v31 = vld [vmem:[%s2249_s1 + $0x210] sm:$0xff]  }
  0x38   : > { %1676 = vmatpush3.bf16.msra.mxu1 %v1823_v32  ;;  %1657 = vmatprep.subr.bf16.mxu0 %v1881_v1  ;;  %v1868_v32 = vld [vmem:[%s2249_s1 + $0x218] sm:$0xff]  }
  0x39   : > { %1677 = vmatprep.subr.bf16.mxu1 %v1881_v1 }
  0x3b   : > { %1658 = vmatpush3.bf16.msra.mxu0 %v1824_v34  ;;  %v1870_v34 = vld [vmem:[%s2249_s1 + $0x228] sm:$0xff]  }
  0x3c   : > { %1678 = vmatpush3.bf16.msra.mxu1 %v1825_v35  ;;  %1659 = vmatprep.subr.bf16.mxu0 %v1881_v1  ;;  %v1871_v35 = vld [vmem:[%s2249_s1 + $0x230] sm:$0xff]  }
  0x3d   : > { %1679 = vmatprep.subr.bf16.mxu1 %v1881_v1 }
  0x3f   : > { %1660 = vmatpush3.bf16.msra.mxu0 %v1826_v36  ;;  %v1872_v36 = vld [vmem:[%s2249_s1 + $0x238] sm:$0xff]  }
  0x40   : > { %1680 = vmatpush3.bf16.msra.mxu1 %v1827_v39  ;;  %1661 = vmatprep.subr.bf16.mxu0 %v1881_v1 }
  0x41   : > { %1681 = vmatprep.subr.bf16.mxu1 %v1881_v1 }
  0x43   : > { %1662 = vmatpush3.bf16.msra.mxu0 %v1828_v40 }
  0x44   : > { %1682 = vmatpush3.bf16.msra.mxu1 %v1829_v43  ;;  %1687 = vmatprep.subr.bf16.mxu0 %v1881_v1 }
  0x45   : > { %1707 = vmatprep.subr.bf16.mxu1 %v1881_v1 }
  0x46   : > { %1664 = vmatmul.mubr.bf16.vlgmr.msra.gmra.mrb[4].mxu0 %v456_v44 }
  0x47   : > { %1688 = vmatpush3.bf16.msra.mxu0 %v1831_v45  ;;  %1684 = vmatmul.mubr.bf16.vlgmr.msra.gmra.mrb[4].mxu1 %v571_v46 }
  0x48   : > { %1708 = vmatpush3.bf16.msra.mxu1 %v1832_v47  ;;  %1689 = vmatprep.subr.bf16.mxu0 %v1881_v1 }
  0x49   : > { %1709 = vmatprep.subr.bf16.mxu1 %v1881_v1  ;;  %1703 = vmatprep.mubr.msk.bf16.mxu0 %vm1882_vm0, %v1881_v1 }
  0x4a   : > { %1723 = vmatprep.mubr.msk.bf16.mxu1 %vm1882_vm0, %v1881_v1 }
  0x4b   : > { %1690 = vmatpush3.bf16.msra.mxu0 %v1833_v48 }
  0x4c   : > { %1710 = vmatpush3.bf16.msra.mxu1 %v1834_v49  ;;  %1691 = vmatprep.subr.bf16.mxu0 %v1881_v1 }
  0x4d   : > { %1711 = vmatprep.subr.bf16.mxu1 %v1881_v1 }
  0x4f   : > { %1692 = vmatpush3.bf16.msra.mxu0 %v1835_v50 }
  0x50   : > { %1712 = vmatpush3.bf16.msra.mxu1 %v1836_v51  ;;  %1693 = vmatprep.subr.bf16.mxu0 %v1881_v1 }
  0x51   : > { %1713 = vmatprep.subr.bf16.mxu1 %v1881_v1 }
  0x53   : > { %1694 = vmatpush3.bf16.msra.mxu0 %v1837_v52 }
  0x54   : > { %1714 = vmatpush3.bf16.msra.mxu1 %v1838_v53  ;;  %1695 = vmatprep.subr.bf16.mxu0 %v1881_v1 }
  0x55   : > { %1715 = vmatprep.subr.bf16.mxu1 %v1881_v1 }
  0x57   : > { %1696 = vmatpush3.bf16.msra.mxu0 %v1839_v54 }
  0x58   : > { %1716 = vmatpush3.bf16.msra.mxu1 %v1840_v55  ;;  %1697 = vmatprep.subr.bf16.mxu0 %v1881_v1 }
  0x59   : > { %1717 = vmatprep.subr.bf16.mxu1 %v1881_v1 }
  0x5b   : > { %1698 = vmatpush3.bf16.msra.mxu0 %v1841_v56 }
  0x5c   : > { %1718 = vmatpush3.bf16.msra.mxu1 %v1842_v58  ;;  %1699 = vmatprep.subr.bf16.mxu0 %v1881_v1 }
  0x5d   : > { %1719 = vmatprep.subr.bf16.mxu1 %v1881_v1 }
  0x5f   : > { %1700 = vmatpush3.bf16.msra.mxu0 %v1843_v59 }
  0x60   : > { %1720 = vmatpush3.bf16.msra.mxu1 %v1844_v62  ;;  %1701 = vmatprep.subr.bf16.mxu0 %v1881_v1 }
  0x61   : > { %1721 = vmatprep.subr.bf16.mxu1 %v1881_v1 }
  0x63   : > { %1702 = vmatpush3.bf16.msra.mxu0 %v1845_v63 }
  0x64   : > { %1722 = vmatpush3.bf16.msra.mxu1 %v1846_v3  ;;  %1727 = vmatprep.subr.bf16.mxu0 %v1881_v1 }
  0x65   : > { %1747 = vmatprep.subr.bf16.mxu1 %v1881_v1 }
  0x66   : > { %1704 = vmatmul.mubr.bf16.vlgmr.msra.gmra.mrb[8].mxu0 %v683_v4 }
  0x67   : > { %1728 = vmatpush3.bf16.msra.mxu0 %v1848_v5  ;;  %1724 = vmatmul.mubr.bf16.vlgmr.msra.gmra.mrb[8].mxu1 %v798_v6 }
  0x68   : > { %1748 = vmatpush3.bf16.msra.mxu1 %v1849_v7  ;;  %1729 = vmatprep.subr.bf16.mxu0 %v1881_v1 }
  0x69   : > { %1749 = vmatprep.subr.bf16.mxu1 %v1881_v1  ;;  %1743 = vmatprep.mubr.msk.bf16.mxu0 %vm1882_vm0, %v1881_v1 }
  0x6a   : > { %1763 = vmatprep.mubr.msk.bf16.mxu1 %vm1882_vm0, %v1881_v1 }
  0x6b   : > { %1730 = vmatpush3.bf16.msra.mxu0 %v1850_v8 }
  0x6c   : > { %1750 = vmatpush3.bf16.msra.mxu1 %v1851_v9  ;;  %1731 = vmatprep.subr.bf16.mxu0 %v1881_v1 }
  0x6d   : > { %1751 = vmatprep.subr.bf16.mxu1 %v1881_v1 }
  0x6f   : > { %1732 = vmatpush3.bf16.msra.mxu0 %v1852_v10 }
  0x70   : > { %1752 = vmatpush3.bf16.msra.mxu1 %v1853_v11  ;;  %1733 = vmatprep.subr.bf16.mxu0 %v1881_v1 }
  0x71   : > { %1753 = vmatprep.subr.bf16.mxu1 %v1881_v1 }
  0x73   : > { %1734 = vmatpush3.bf16.msra.mxu0 %v1854_v12 }
  0x74   : > { %1754 = vmatpush3.bf16.msra.mxu1 %v1855_v13  ;;  %1735 = vmatprep.subr.bf16.mxu0 %v1881_v1  ;;  %v1234_v13 = vld [vmem:[%s208_s28] sm:$0x3] }
  0x75   : > { %1755 = vmatprep.subr.bf16.mxu1 %v1881_v1  ;;  %v1235_v17 = vunpack.c.l.bf16 %v1234_v13 }
  0x77   : > { %1736 = vmatpush3.bf16.msra.mxu0 %v1856_v14 }
  0x78   : > { %1756 = vmatpush3.bf16.msra.mxu1 %v1857_v15  ;;  %1737 = vmatprep.subr.bf16.mxu0 %v1881_v1  ;;  %v1522_v15 = vld [vmem:[%s2250_s2] ss:$0 sm:$0xff] }
  0x79   : > { %1757 = vmatprep.subr.bf16.mxu1 %v1881_v1 }
  0x7b   : > { %1738 = vmatpush3.bf16.msra.mxu0 %v1858_v16 }
  0x7c   : > { %1758 = vmatpush3.bf16.msra.mxu1 %v1859_v18  ;;  %1739 = vmatprep.subr.bf16.mxu0 %v1881_v1 }
  0x7d   : > { %1759 = vmatprep.subr.bf16.mxu1 %v1881_v1 }
  0x7f   : > { %1740 = vmatpush3.bf16.msra.mxu0 %v1860_v19 }
  0x80   : > { %1760 = vmatpush3.bf16.msra.mxu1 %v1861_v22  ;;  %1741 = vmatprep.subr.bf16.mxu0 %v1881_v1 }
  0x81   : > { %1761 = vmatprep.subr.bf16.mxu1 %v1881_v1 }
  0x83   : > { %1742 = vmatpush3.bf16.msra.mxu0 %v1862_v23  ;;  %v1241_v23 = vld [vmem:[%s212_s7] sm:$0x3] }
  0x84   : > { %1762 = vmatpush3.bf16.msra.mxu1 %v1863_v26  ;;  %1767 = vmatprep.subr.bf16.mxu0 %v1881_v1 }
  0x86   : > { %1744 = vmatmul.mubr.bf16.vlgmr.msra.gmra.mrb[12].mxu0 %v913_v27 }
  0x87   : > { %1768 = vmatpush3.bf16.msra.mxu0 %v1865_v28  ;;  %1764 = vmatmul.mubr.bf16.vlgmr.msra.gmra.mrb[12].mxu1 %v1028_v29 }
  0x88   : > { %1769 = vmatprep.subr.bf16.mxu0 %v1881_v1  ;;  %1783 = vmatprep.mubr.msk.bf16.mxu0 %vm1882_vm0, %v1881_v1 }
  0x8b   : > { %1770 = vmatpush3.bf16.msra.mxu0 %v1866_v30 }
  0x8c   : > { %1771 = vmatprep.subr.bf16.mxu0 %v1881_v1 }
  0x8f   : > { %1772 = vmatpush3.bf16.msra.mxu0 %v1867_v31 }
  0x90   : > { %1773 = vmatprep.subr.bf16.mxu0 %v1881_v1 }
  0x93   : > { %1774 = vmatpush3.bf16.msra.mxu0 %v1868_v32 }
  0x94   : > { %1775 = vmatprep.subr.bf16.mxu0 %v1881_v1 }
  0x97   : > { %1776 = vmatpush3.bf16.msra.mxu0 %v1869_v33 }
  0x98   : > { %1777 = vmatprep.subr.bf16.mxu0 %v1881_v1 }
  0x9b   : > { %1778 = vmatpush3.bf16.msra.mxu0 %v1870_v34 }
  0x9c   : > { %1779 = vmatprep.subr.bf16.mxu0 %v1881_v1 }
  0x9f   : > { %1780 = vmatpush3.bf16.msra.mxu0 %v1871_v35 }
  0xa0   : > { %1781 = vmatprep.subr.bf16.mxu0 %v1881_v1 }
  0xa3   : > { %1782 = vmatpush3.bf16.msra.mxu0 %v1872_v36 }
  0xa6   : > { %1784 = vmatmul.mubr.bf16.vlgmr.msra.gmra.mrb[16].mxu0 %v1119_v37 }
  0xf9   : > { %v341_v38 = vpop.f32.mrb[0].mxu0 }
  0xfa   : > { %v1625_v39 = vpop.f32.mrb[1].mxu0  ;;  %v429_v40 = vpop.f32.mrb[0].mxu1 }
  0xfb   : > { %v430_v41 = vadd.f32 %v429_v40, %v341_v38  ;;  %v344_v42 = vpop.f32.mrb[2].mxu0  ;;  %v1645_v43 = vpop.f32.mrb[1].mxu1 }
  0xfc   : > { %v1626_v44 = vpop.f32.mrb[3].mxu0  ;;  %v432_v45 = vpop.f32.mrb[2].mxu1 }
  0xfd   : > { %v1646_v46 = vpop.f32.mrb[3].mxu1 }
 0x119   : > { %v540_v47 = vpop.f32.mrb[4].mxu0 }
 0x11a   : > { %v546_v48 = vadd.f32 %v540_v47, %v430_v41  ;;  %v1665_v49 = vpop.f32.mrb[5].mxu0  ;;  %v655_v50 = vpop.f32.mrb[4].mxu1 }
 0x11b   : > { %v543_v51 = vpop.f32.mrb[6].mxu0  ;;  %v1685_v52 = vpop.f32.mrb[5].mxu1 }
 0x11c   : > { %v661_v53 = vadd.f32 %v655_v50, %v546_v48  ;;  %v1666_v1 = vpop.f32.mrb[7].mxu0  ;;  %v658_v54 = vpop.f32.mrb[6].mxu1 }
 0x11d   : > { %v1686_v55 = vpop.f32.mrb[7].mxu1 }
 0x139   : > { %v767_v56 = vpop.f32.mrb[8].mxu0 }
 0x13a   : > { %v773_v57 = vadd.f32 %v767_v56, %v661_v53  ;;  %v1705_v58 = vpop.f32.mrb[9].mxu0  ;;  %v882_v59 = vpop.f32.mrb[8].mxu1 }
 0x13b   : > { %v770_v60 = vpop.f32.mrb[10].mxu0  ;;  %v1725_v61 = vpop.f32.mrb[9].mxu1 }
 0x13c   : > { %v888_v62 = vadd.f32 %v882_v59, %v773_v57  ;;  %v1706_v63 = vpop.f32.mrb[11].mxu0  ;;  %v885_v0 = vpop.f32.mrb[10].mxu1 }
 0x13d   : > { %v1726_v2 = vpop.f32.mrb[11].mxu1 }
 0x159   : > { %v997_v3 = vpop.f32.mrb[12].mxu0 }
 0x15a   : > { %v1003_v4 = vadd.f32 %v997_v3, %v888_v62  ;;  %v1745_v5 = vpop.f32.mrb[13].mxu0  ;;  %v1112_v6 = vpop.f32.mrb[12].mxu1 }
 0x15b   : > { %v1000_v7 = vpop.f32.mrb[14].mxu0  ;;  %v1765_v8 = vpop.f32.mrb[13].mxu1 }
 0x15c   : > { %v1118_v9 = vadd.f32 %v1112_v6, %v1003_v4  ;;  %v1746_v10 = vpop.f32.mrb[15].mxu0  ;;  %v1115_v11 = vpop.f32.mrb[14].mxu1 }
 0x15d   : > { %v1766_v12 = vpop.f32.mrb[15].mxu1 }
 0x179   : > { %v1219_v14 = vpop.f32.mrb[16].mxu0 }
 0x17a   : > { %v1225_v16 = vadd.f32 %v1219_v14, %v1118_v9  ;;  %v1785_v18 = vpop.f32.mrb[17].mxu0 }
 0x17b   : > { %v1222_v19 = vpop.f32.mrb[18].mxu0 }
 0x17c   : > { %v1233_v20 = vadd.f32 %v1522_v15, %v1225_v16  ;;  %v1786_v21 = vpop.f32.mrb[19].mxu0 }
 0x17e   : > { %v1236_v22 = vadd.f32 %v1235_v17, %v1233_v20 }
 0x180   : > { %v1237_v24 = vpack.c.bf16 %v1236_v22, %v1236_v22 }
 0x182   : > { %v1242_v25 = vsel %vm1240_vm3, %v1237_v24, %v1241_v23 }
 0x183   : > { %1243 = vst [vmem:[%s212_s7] sm:$0x3] %v1242_v25 }
 0x184 PF: > { %s14_s15 = sadd.s32 1, %s1879_s15  }
 0x185   : > { %p11_p4 = scmp.ge.s32.totalorder %s14_s15, 4  }
 0x187   :  { %13 = sbr.rel (!%p11_p4) target bundleno = 1 (0x1), region = 77 }

</bundles_post_ra>
